<compile_context>
chip_gen: v7x
topology: tpu7x:2x2x1
jax: 0.10.0
libtpu: 0.0.40
codegen_flags: <defaults>
</compile_context>

<pallas_src>
import functools

import jax
import jax.numpy as jnp
from jax.experimental import pallas as pl
from jax.experimental.pallas import tpu as pltpu

K = 5                  # compressai conv()/deconv() kernel size
TARGET_ROWS = 1024     # matmul rows per grid step (perf review: 512-1024)


# ---------------------------------------------------------------------------
# Fused Pallas kernel: 3x3 / stride-1 conv + bias + optional (inverse) GDN
# ---------------------------------------------------------------------------
def _conv3x3_fused_kernel(*refs, th, wo, ci, co, groups, inverse, has_gdn):
    if has_gdn:
        x_ref, w_ref, b_ref, g_ref, gb_ref, o_ref = refs
    else:
        x_ref, w_ref, b_ref, o_ref = refs

    x = x_ref[0]                                    # (th+2, wo+2, ci) bf16
    acc = jnp.zeros((th * wo, co), jnp.float32)
    for t in range(9):                              # static tap loop -> 9 MXU dots
        r, s = t // 3, t % 3
        a = x[r:r + th, s:s + wo, :].reshape(th * wo, ci)
        acc = acc + jnp.dot(a, w_ref[t],
                            preferred_element_type=jnp.float32)
    y = acc + b_ref[...]                            # (th*wo, co) f32

    if not has_gdn:
        o_ref[0] = y.reshape(th, wo, co).astype(o_ref.dtype)
        return

    cg = co // groups
    for p in range(groups):                         # block-diagonal (per-parity) GDN
        yp = y[:, p * cg:(p + 1) * cg]
        norm = jnp.dot((yp * yp).astype(jnp.bfloat16), g_ref[...],
                       preferred_element_type=jnp.float32) + gb_ref[...]
        scale = jnp.sqrt(norm) if inverse else jax.lax.rsqrt(norm)
        o_ref[0, :, :, p * cg:(p + 1) * cg] = (
            (yp * scale).reshape(th, wo, cg).astype(o_ref.dtype))


def _pick_th(ho, wo, batch):
    """Largest row-strip height that divides ho, targets ~TARGET_ROWS matmul
    rows per grid step, and keeps >= 2 grid steps when possible (v7x)."""
    th = max(1, min(ho, TARGET_ROWS // max(wo, 1)))
    while ho % th:
        th -= 1
    if batch * (ho // th) < 2 and th > 1:
        th = max(1, th // 2)
        while ho % th:
            th -= 1
    return th


def _fused_conv3x3(x, wmat, bias, gdn, *, inverse, groups):
    """x: (B, Ho, Wo, Ci) bf16 -> (B, Ho, Wo, Co) bf16.

    wmat: (9, Ci, Co) bf16 tap-major packed weight, bias: (1, Co) f32,
    gdn: None or (gamma (Cg,Cg) bf16, gbeta (1,Cg) f32) with Cg = Co // groups.
    """
    b, ho, wo, ci = x.shape
    co = wmat.shape[-1]
    assert wmat.shape == (9, ci, co)
    th = _pick_th(ho, wo, b)
    ns = ho // th

    xp = jnp.pad(x, ((0, 0), (1, 1), (1, 1), (0, 0)))
    # halo'd row strips (2 rows of overlap between consecutive strips)
    strips = jnp.stack([xp[:, k * th:k * th + th + 2] for k in range(ns)],
                       axis=1).reshape(b * ns, th + 2, wo + 2, ci)

    in_specs = [
        pl.BlockSpec((1, th + 2, wo + 2, ci), lambda i: (i, 0, 0, 0)),
        pl.BlockSpec((9, ci, co), lambda i: (0, 0, 0)),      # resident weights
        pl.BlockSpec((1, co), lambda i: (0, 0)),             # resident bias
    ]
    args = [strips, wmat, bias]
    has_gdn = gdn is not None
    if has_gdn:
        gamma, gbeta = gdn
        cg = co // groups
        assert gamma.shape == (cg, cg) and gbeta.shape == (1, cg)
        in_specs += [pl.BlockSpec((cg, cg), lambda i: (0, 0)),
                     pl.BlockSpec((1, cg), lambda i: (0, 0))]
        args += [gamma, gbeta]

    kernel = functools.partial(
        _conv3x3_fused_kernel, th=th, wo=wo, ci=ci, co=co,
        groups=groups, inverse=inverse, has_gdn=has_gdn)

    out = pl.pallas_call(
        kernel,
        out_shape=jax.ShapeDtypeStruct((b * ns, th, wo, co), jnp.bfloat16),
        grid=(b * ns,),
        in_specs=in_specs,
        out_specs=pl.BlockSpec((1, th, wo, co), lambda i: (i, 0, 0, 0)),
        compiler_params=pltpu.CompilerParams(
            dimension_semantics=("parallel",)),
    )(*args)
    return out.reshape(b, ho, wo, co)


# ---------------------------------------------------------------------------
# Layer wrappers (XLA glue: space-to-depth / depth-to-space, both bf16)
# ---------------------------------------------------------------------------
def conv_layer(x, lp, gdn=None):
    """nn.Conv2d(Cin, Cout, k=5, stride=2, padding=2) [+ fused GDN]."""
    b, h, w, cin = x.shape
    ho, wo = h // 2, w // 2
    xs = x.reshape(b, ho, 2, wo, 2, cin)
    xs = jnp.transpose(xs, (0, 1, 3, 2, 4, 5)).reshape(b, ho, wo, 4 * cin)
    return _fused_conv3x3(xs, lp["w"], lp["b"], gdn, inverse=False, groups=1)


def deconv_layer(x, lp, gdn=None):
    """nn.ConvTranspose2d(Cin, Cout, k=5, stride=2, padding=2, output_padding=1)
    [+ fused inverse GDN], via sub-pixel decomposition + depth-to-space."""
    b, h, w, cin = x.shape
    y = _fused_conv3x3(x, lp["w"], lp["b"], gdn, inverse=True, groups=4)
    cg = y.shape[-1] // 4
    y = y.reshape(b, h, w, 2, 2, cg)
    y = jnp.transpose(y, (0, 1, 3, 2, 4, 5)).reshape(b, 2 * h, 2 * w, cg)
    return y


# ---------------------------------------------------------------------------
# Parameter init + one-time weight packing (matches module __init__ semantics)
# ---------------------------------------------------------------------------
def _kaiming_normal(key, shape):
    # torch kaiming_normal_ (fan_in, leaky_relu a=0): std = sqrt(2 / fan_in)
    fan_in = shape[1] * shape[2] * shape[3]
    std = (2.0 / fan_in) ** 0.5
    return std * jax.random.normal(key, shape, dtype=jnp.float32)


def _pack_conv_weight(w5):
    """(Cout, Cin, 5, 5) -> (9, 4*Cin, Cout) bf16: stride-2 5x5 conv expressed
    as a 3x3 conv over the space-to-depth input (rows ordered (ph, pw, ci))."""
    co, ci = w5.shape[0], w5.shape[1]
    taps = []
    for r in range(3):
        for s in range(3):
            blk = jnp.zeros((2, 2, ci, co), jnp.float32)
            for ph in range(2):
                for pw in range(2):
                    kh, kw = 2 * r + ph, 2 * s + pw
                    if kh < K and kw < K:
                        blk = blk.at[ph, pw].set(w5[:, :, kh, kw].T)
            taps.append(blk.reshape(4 * ci, co))
    return jnp.stack(taps, axis=0).astype(jnp.bfloat16)


def _pack_deconv_weight(w5):
    """(Cin, Cout, 5, 5) -> (9, Cin, 4*Cout) bf16: stride-2 5x5 deconv expressed
    as a 3x3 conv on the input grid, columns ordered (pi, pj, co) = the 4
    output-pixel parities (sub-pixel / depth-to-space form)."""
    ci, co = w5.shape[0], w5.shape[1]
    taps = []
    for t in range(3):
        for s in range(3):
            blk = jnp.zeros((ci, 2, 2, co), jnp.float32)
            for pi in range(2):
                for pj in range(2):
                    kh, kw = 4 - 2 * t + pi, 4 - 2 * s + pj
                    if 0 <= kh < K and 0 <= kw < K:
                        blk = blk.at[:, pi, pj, :].set(w5[:, :, kh, kw])
            taps.append(blk.reshape(ci, 4 * co))
    return jnp.stack(taps, axis=0).astype(jnp.bfloat16)


def _gdn_pack(c):
    # compressai GDN init: beta = 1, gamma = 0.1 * I.  norm = x^2 @ gamma^T + beta.
    gamma = 0.1 * jnp.eye(c, dtype=jnp.float32)
    return (gamma.T.astype(jnp.bfloat16), jnp.ones((1, c), dtype=jnp.float32))


def init_params(key, n, m):
    keys = jax.random.split(key, 8)
    ga_dims = [(n, 3), (n, n), (n, n), (m, n)]       # (Cout, Cin)
    gs_dims = [(m, n), (n, n), (n, n), (n, 3)]       # (Cin, Cout)
    p = {"ga": [], "gs": []}
    for i, (co, ci) in enumerate(ga_dims):
        w5 = _kaiming_normal(keys[i], (co, ci, K, K))
        p["ga"].append({"w": _pack_conv_weight(w5),
                        "b": jnp.zeros((1, co), jnp.float32)})
    for i, (ci, co) in enumerate(gs_dims):
        w5 = _kaiming_normal(keys[4 + i], (ci, co, K, K))
        p["gs"].append({"w": _pack_deconv_weight(w5),
                        "b": jnp.zeros((1, 4 * co), jnp.float32)})  # bias tiled over 4 parities
    p["gdn_a"] = [_gdn_pack(n) for _ in range(3)]
    p["gdn_s"] = [_gdn_pack(n) for _ in range(3)]
    return p


# ---------------------------------------------------------------------------
# Forward pass (NCHW in / NCHW out, matching the PyTorch module)
# ---------------------------------------------------------------------------
def factorized_prior_forward(params, x_nchw):
    h = jnp.transpose(x_nchw, (0, 2, 3, 1)).astype(jnp.bfloat16)   # NCHW -> NHWC

    # g_a: conv + fused GDN (layers 0-2), plain conv (layer 3)
    for i in range(4):
        gdn = params["gdn_a"][i] if i < 3 else None
        h = conv_layer(h, params["ga"][i], gdn)
    y = h                                           # (B, H/16, W/16, M)

    # g_s: deconv + fused inverse GDN (layers 0-2), plain deconv (layer 3)
    for i in range(4):
        gdn = params["gdn_s"][i] if i < 3 else None
        h = deconv_layer(h, params["gs"][i], gdn)

    x_hat = jnp.transpose(h, (0, 3, 1, 2)).astype(jnp.float32)     # NHWC -> NCHW
    return {"x_hat": x_hat}


if __name__ == "__main__":
    N_CH, M_CH = 8, 16            # FactorizedPriorNoEntropy(N=8, M=16), small synthetic
    B, H, W = 2, 16, 16           # spatial must be a multiple of 2**4 = 16

    key = jax.random.PRNGKey(0)
    pkey, xkey = jax.random.split(key)
    params = init_params(pkey, N_CH, M_CH)
    x = jax.random.normal(xkey, (B, 3, H, W), dtype=jnp.float32)

    fwd = jax.jit(factorized_prior_forward)
    out = fwd(params, x)
    x_hat = jax.block_until_ready(out["x_hat"])
    assert x_hat.shape == (B, 3, H, W) and x_hat.dtype == jnp.float32
    assert bool(jnp.all(jnp.isfinite(x_hat)))
    print("KERNEL_OK")
</pallas_src>

<mosaic_0001>
module attributes {stable_mosaic.version = 11 : i64} {
  func.func @_conv3x3_fused_kernel(%arg0: i32, %arg1: memref<1x10x10x12xbf16, #tpu.memory_space<vmem>>, %arg2: memref<9x12x8xbf16, #tpu.memory_space<vmem>>, %arg3: memref<1x8xf32, #tpu.memory_space<vmem>>, %arg4: memref<8x8xbf16, #tpu.memory_space<vmem>>, %arg5: memref<1x8xf32, #tpu.memory_space<vmem>>, %arg6: memref<1x8x8x8xbf16, #tpu.memory_space<vmem>>) attributes {dimension_semantics = [#tpu.dimension_semantics<parallel>], iteration_bounds = array<i64: 2>, scalar_prefetch = 0 : i64, scratch_operands = 0 : i64, tpu.core_type = #tpu.core_type<tc>, window_params = [{transform_indices = @transform_0, window_bounds = array<i64: 1, 10, 10, 12>}, {pipeline_mode = #tpu.pipeline_mode<synchronous>, transform_indices = @transform_1, window_bounds = array<i64: 9, 12, 8>}, {pipeline_mode = #tpu.pipeline_mode<synchronous>, transform_indices = @transform_2, window_bounds = array<i64: 1, 8>}, {pipeline_mode = #tpu.pipeline_mode<synchronous>, transform_indices = @transform_3, window_bounds = array<i64: 8, 8>}, {pipeline_mode = #tpu.pipeline_mode<synchronous>, transform_indices = @transform_4, window_bounds = array<i64: 1, 8>}, {transform_indices = @transform_5, window_bounds = array<i64: 1, 8, 8, 8>}]} {
    %c0 = arith.constant 0 : index
    %c0_0 = arith.constant 0 : index
    %c0_1 = arith.constant 0 : index
    %c0_2 = arith.constant 0 : index
    %0 = vector.load %arg1[%c0, %c0_0, %c0_1, %c0_2] : memref<1x10x10x12xbf16, #tpu.memory_space<vmem>>, vector<1x10x10x12xbf16>
    %1 = vector.shape_cast %0 : vector<1x10x10x12xbf16> to vector<10x10x12xbf16>
    %cst = arith.constant 0.000000e+00 : f32
    %2 = vector.broadcast %cst : f32 to vector<64x8xf32>
    %3 = vector.extract_strided_slice %1 {offsets = [0, 0, 0], sizes = [8, 8, 12], strides = [1, 1, 1]} : vector<10x10x12xbf16> to vector<8x8x12xbf16>
    %4 = vector.shape_cast %3 : vector<8x8x12xbf16> to vector<64x12xbf16>
    %c0_3 = arith.constant 0 : index
    %c0_4 = arith.constant 0 : index
    %c0_5 = arith.constant 0 : index
    %5 = vector.load %arg2[%c0_3, %c0_4, %c0_5] : memref<9x12x8xbf16, #tpu.memory_space<vmem>>, vector<1x12x8xbf16>
    %6 = vector.shape_cast %5 : vector<1x12x8xbf16> to vector<12x8xbf16>
    %cst_6 = arith.constant dense<0.000000e+00> : vector<64x8xf32>
    %7 = tpu.matmul %4, %6, %cst_6 {dimension_numbers = #tpu.dot_dimension_numbers<[1], [0], [0], [1], [0, 0, 1, 1], [], []>} : vector<64x12xbf16>, vector<12x8xbf16>, vector<64x8xf32> -> vector<64x8xf32>
    %8 = arith.addf %2, %7 : vector<64x8xf32>
    %9 = vector.extract_strided_slice %1 {offsets = [0, 1, 0], sizes = [8, 8, 12], strides = [1, 1, 1]} : vector<10x10x12xbf16> to vector<8x8x12xbf16>
    %10 = vector.shape_cast %9 : vector<8x8x12xbf16> to vector<64x12xbf16>
    %c1 = arith.constant 1 : index
    %c0_7 = arith.constant 0 : index
    %c0_8 = arith.constant 0 : index
    %11 = vector.load %arg2[%c1, %c0_7, %c0_8] : memref<9x12x8xbf16, #tpu.memory_space<vmem>>, vector<1x12x8xbf16>
    %12 = vector.shape_cast %11 : vector<1x12x8xbf16> to vector<12x8xbf16>
    %cst_9 = arith.constant dense<0.000000e+00> : vector<64x8xf32>
    %13 = tpu.matmul %10, %12, %cst_9 {dimension_numbers = #tpu.dot_dimension_numbers<[1], [0], [0], [1], [0, 0, 1, 1], [], []>} : vector<64x12xbf16>, vector<12x8xbf16>, vector<64x8xf32> -> vector<64x8xf32>
    %14 = arith.addf %8, %13 : vector<64x8xf32>
    %15 = vector.extract_strided_slice %1 {offsets = [0, 2, 0], sizes = [8, 8, 12], strides = [1, 1, 1]} : vector<10x10x12xbf16> to vector<8x8x12xbf16>
    %16 = vector.shape_cast %15 : vector<8x8x12xbf16> to vector<64x12xbf16>
    %c2 = arith.constant 2 : index
    %c0_10 = arith.constant 0 : index
    %c0_11 = arith.constant 0 : index
    %17 = vector.load %arg2[%c2, %c0_10, %c0_11] : memref<9x12x8xbf16, #tpu.memory_space<vmem>>, vector<1x12x8xbf16>
    %18 = vector.shape_cast %17 : vector<1x12x8xbf16> to vector<12x8xbf16>
    %cst_12 = arith.constant dense<0.000000e+00> : vector<64x8xf32>
    %19 = tpu.matmul %16, %18, %cst_12 {dimension_numbers = #tpu.dot_dimension_numbers<[1], [0], [0], [1], [0, 0, 1, 1], [], []>} : vector<64x12xbf16>, vector<12x8xbf16>, vector<64x8xf32> -> vector<64x8xf32>
    %20 = arith.addf %14, %19 : vector<64x8xf32>
    %21 = vector.extract_strided_slice %1 {offsets = [1, 0, 0], sizes = [8, 8, 12], strides = [1, 1, 1]} : vector<10x10x12xbf16> to vector<8x8x12xbf16>
    %22 = vector.shape_cast %21 : vector<8x8x12xbf16> to vector<64x12xbf16>
    %c3 = arith.constant 3 : index
    %c0_13 = arith.constant 0 : index
    %c0_14 = arith.constant 0 : index
    %23 = vector.load %arg2[%c3, %c0_13, %c0_14] : memref<9x12x8xbf16, #tpu.memory_space<vmem>>, vector<1x12x8xbf16>
    %24 = vector.shape_cast %23 : vector<1x12x8xbf16> to vector<12x8xbf16>
    %cst_15 = arith.constant dense<0.000000e+00> : vector<64x8xf32>
    %25 = tpu.matmul %22, %24, %cst_15 {dimension_numbers = #tpu.dot_dimension_numbers<[1], [0], [0], [1], [0, 0, 1, 1], [], []>} : vector<64x12xbf16>, vector<12x8xbf16>, vector<64x8xf32> -> vector<64x8xf32>
    %26 = arith.addf %20, %25 : vector<64x8xf32>
    %27 = vector.extract_strided_slice %1 {offsets = [1, 1, 0], sizes = [8, 8, 12], strides = [1, 1, 1]} : vector<10x10x12xbf16> to vector<8x8x12xbf16>
    %28 = vector.shape_cast %27 : vector<8x8x12xbf16> to vector<64x12xbf16>
    %c4 = arith.constant 4 : index
    %c0_16 = arith.constant 0 : index
    %c0_17 = arith.constant 0 : index
    %29 = vector.load %arg2[%c4, %c0_16, %c0_17] : memref<9x12x8xbf16, #tpu.memory_space<vmem>>, vector<1x12x8xbf16>
    %30 = vector.shape_cast %29 : vector<1x12x8xbf16> to vector<12x8xbf16>
    %cst_18 = arith.constant dense<0.000000e+00> : vector<64x8xf32>
    %31 = tpu.matmul %28, %30, %cst_18 {dimension_numbers = #tpu.dot_dimension_numbers<[1], [0], [0], [1], [0, 0, 1, 1], [], []>} : vector<64x12xbf16>, vector<12x8xbf16>, vector<64x8xf32> -> vector<64x8xf32>
    %32 = arith.addf %26, %31 : vector<64x8xf32>
    %33 = vector.extract_strided_slice %1 {offsets = [1, 2, 0], sizes = [8, 8, 12], strides = [1, 1, 1]} : vector<10x10x12xbf16> to vector<8x8x12xbf16>
    %34 = vector.shape_cast %33 : vector<8x8x12xbf16> to vector<64x12xbf16>
    %c5 = arith.constant 5 : index
    %c0_19 = arith.constant 0 : index
    %c0_20 = arith.constant 0 : index
    %35 = vector.load %arg2[%c5, %c0_19, %c0_20] : memref<9x12x8xbf16, #tpu.memory_space<vmem>>, vector<1x12x8xbf16>
    %36 = vector.shape_cast %35 : vector<1x12x8xbf16> to vector<12x8xbf16>
    %cst_21 = arith.constant dense<0.000000e+00> : vector<64x8xf32>
    %37 = tpu.matmul %34, %36, %cst_21 {dimension_numbers = #tpu.dot_dimension_numbers<[1], [0], [0], [1], [0, 0, 1, 1], [], []>} : vector<64x12xbf16>, vector<12x8xbf16>, vector<64x8xf32> -> vector<64x8xf32>
    %38 = arith.addf %32, %37 : vector<64x8xf32>
    %39 = vector.extract_strided_slice %1 {offsets = [2, 0, 0], sizes = [8, 8, 12], strides = [1, 1, 1]} : vector<10x10x12xbf16> to vector<8x8x12xbf16>
    %40 = vector.shape_cast %39 : vector<8x8x12xbf16> to vector<64x12xbf16>
    %c6 = arith.constant 6 : index
    %c0_22 = arith.constant 0 : index
    %c0_23 = arith.constant 0 : index
    %41 = vector.load %arg2[%c6, %c0_22, %c0_23] : memref<9x12x8xbf16, #tpu.memory_space<vmem>>, vector<1x12x8xbf16>
    %42 = vector.shape_cast %41 : vector<1x12x8xbf16> to vector<12x8xbf16>
    %cst_24 = arith.constant dense<0.000000e+00> : vector<64x8xf32>
    %43 = tpu.matmul %40, %42, %cst_24 {dimension_numbers = #tpu.dot_dimension_numbers<[1], [0], [0], [1], [0, 0, 1, 1], [], []>} : vector<64x12xbf16>, vector<12x8xbf16>, vector<64x8xf32> -> vector<64x8xf32>
    %44 = arith.addf %38, %43 : vector<64x8xf32>
    %45 = vector.extract_strided_slice %1 {offsets = [2, 1, 0], sizes = [8, 8, 12], strides = [1, 1, 1]} : vector<10x10x12xbf16> to vector<8x8x12xbf16>
    %46 = vector.shape_cast %45 : vector<8x8x12xbf16> to vector<64x12xbf16>
    %c7 = arith.constant 7 : index
    %c0_25 = arith.constant 0 : index
    %c0_26 = arith.constant 0 : index
    %47 = vector.load %arg2[%c7, %c0_25, %c0_26] : memref<9x12x8xbf16, #tpu.memory_space<vmem>>, vector<1x12x8xbf16>
    %48 = vector.shape_cast %47 : vector<1x12x8xbf16> to vector<12x8xbf16>
    %cst_27 = arith.constant dense<0.000000e+00> : vector<64x8xf32>
    %49 = tpu.matmul %46, %48, %cst_27 {dimension_numbers = #tpu.dot_dimension_numbers<[1], [0], [0], [1], [0, 0, 1, 1], [], []>} : vector<64x12xbf16>, vector<12x8xbf16>, vector<64x8xf32> -> vector<64x8xf32>
    %50 = arith.addf %44, %49 : vector<64x8xf32>
    %51 = vector.extract_strided_slice %1 {offsets = [2, 2, 0], sizes = [8, 8, 12], strides = [1, 1, 1]} : vector<10x10x12xbf16> to vector<8x8x12xbf16>
    %52 = vector.shape_cast %51 : vector<8x8x12xbf16> to vector<64x12xbf16>
    %c8 = arith.constant 8 : index
    %c0_28 = arith.constant 0 : index
    %c0_29 = arith.constant 0 : index
    %53 = vector.load %arg2[%c8, %c0_28, %c0_29] : memref<9x12x8xbf16, #tpu.memory_space<vmem>>, vector<1x12x8xbf16>
    %54 = vector.shape_cast %53 : vector<1x12x8xbf16> to vector<12x8xbf16>
    %cst_30 = arith.constant dense<0.000000e+00> : vector<64x8xf32>
    %55 = tpu.matmul %52, %54, %cst_30 {dimension_numbers = #tpu.dot_dimension_numbers<[1], [0], [0], [1], [0, 0, 1, 1], [], []>} : vector<64x12xbf16>, vector<12x8xbf16>, vector<64x8xf32> -> vector<64x8xf32>
    %56 = arith.addf %50, %55 : vector<64x8xf32>
    %c0_31 = arith.constant 0 : index
    %c0_32 = arith.constant 0 : index
    %57 = vector.load %arg3[%c0_31, %c0_32] : memref<1x8xf32, #tpu.memory_space<vmem>>, vector<1x8xf32>
    %58 = vector.broadcast %57 : vector<1x8xf32> to vector<64x8xf32>
    %59 = arith.addf %56, %58 : vector<64x8xf32>
    %60 = arith.mulf %59, %59 : vector<64x8xf32>
    %61 = arith.truncf %60 : vector<64x8xf32> to vector<64x8xbf16>
    %c0_33 = arith.constant 0 : index
    %c0_34 = arith.constant 0 : index
    %62 = vector.load %arg4[%c0_33, %c0_34] : memref<8x8xbf16, #tpu.memory_space<vmem>>, vector<8x8xbf16>
    %cst_35 = arith.constant dense<0.000000e+00> : vector<64x8xf32>
    %63 = tpu.matmul %61, %62, %cst_35 {dimension_numbers = #tpu.dot_dimension_numbers<[1], [0], [0], [1], [0, 0, 1, 1], [], []>} : vector<64x8xbf16>, vector<8x8xbf16>, vector<64x8xf32> -> vector<64x8xf32>
    %c0_36 = arith.constant 0 : index
    %c0_37 = arith.constant 0 : index
    %64 = vector.load %arg5[%c0_36, %c0_37] : memref<1x8xf32, #tpu.memory_space<vmem>>, vector<1x8xf32>
    %65 = vector.broadcast %64 : vector<1x8xf32> to vector<64x8xf32>
    %66 = arith.addf %63, %65 : vector<64x8xf32>
    %67 = math.rsqrt %66 : vector<64x8xf32>
    %68 = arith.mulf %59, %67 : vector<64x8xf32>
    %69 = vector.shape_cast %68 : vector<64x8xf32> to vector<8x8x8xf32>
    %70 = arith.truncf %69 : vector<8x8x8xf32> to vector<8x8x8xbf16>
    %c0_38 = arith.constant 0 : index
    %c0_39 = arith.constant 0 : index
    %c0_40 = arith.constant 0 : index
    %c0_41 = arith.constant 0 : index
    %71 = vector.load %arg6[%c0_38, %c0_39, %c0_40, %c0_41] : memref<1x8x8x8xbf16, #tpu.memory_space<vmem>>, vector<1x8x8x8xbf16>
    %72 = vector.shape_cast %71 : vector<1x8x8x8xbf16> to vector<8x8x8xbf16>
    %73 = vector.shape_cast %70 : vector<8x8x8xbf16> to vector<1x8x8x8xbf16>
    tpu.vector_store %arg6[%c0_38, %c0_39, %c0_40, %c0_41], %73 {strides = array<i32>} : memref<1x8x8x8xbf16, #tpu.memory_space<vmem>>, vector<1x8x8x8xbf16>,
    return
  }
  func.func @transform_0(%arg0: i32) -> (i32, i32, i32, i32) {
    %c0_i32 = arith.constant 0 : i32
    %c0_i32_0 = arith.constant 0 : i32
    %c0_i32_1 = arith.constant 0 : i32
    %c0_i32_2 = arith.constant 0 : i32
    return %arg0, %c0_i32, %c0_i32_0, %c0_i32_1 : i32, i32, i32, i32
  }
  func.func @transform_1(%arg0: i32) -> (i32, i32, i32) {
    %c0_i32 = arith.constant 0 : i32
    %c0_i32_0 = arith.constant 0 : i32
    %c0_i32_1 = arith.constant 0 : i32
    %c0_i32_2 = arith.constant 0 : i32
    return %c0_i32, %c0_i32_0, %c0_i32_1 : i32, i32, i32
  }
  func.func @transform_2(%arg0: i32) -> (i32, i32) {
    %c0_i32 = arith.constant 0 : i32
    %c0_i32_0 = arith.constant 0 : i32
    %c0_i32_1 = arith.constant 0 : i32
    return %c0_i32, %c0_i32_0 : i32, i32
  }
  func.func @transform_3(%arg0: i32) -> (i32, i32) {
    %c0_i32 = arith.constant 0 : i32
    %c0_i32_0 = arith.constant 0 : i32
    %c0_i32_1 = arith.constant 0 : i32
    return %c0_i32, %c0_i32_0 : i32, i32
  }
  func.func @transform_4(%arg0: i32) -> (i32, i32) {
    %c0_i32 = arith.constant 0 : i32
    %c0_i32_0 = arith.constant 0 : i32
    %c0_i32_1 = arith.constant 0 : i32
    return %c0_i32, %c0_i32_0 : i32, i32
  }
  func.func @transform_5(%arg0: i32) -> (i32, i32, i32, i32) {
    %c0_i32 = arith.constant 0 : i32
    %c0_i32_0 = arith.constant 0 : i32
    %c0_i32_1 = arith.constant 0 : i32
    %c0_i32_2 = arith.constant 0 : i32
    return %arg0, %c0_i32, %c0_i32_0, %c0_i32_1 : i32, i32, i32, i32
  }
}

module attributes {stable_mosaic.version = 11 : i64} {
  func.func @_conv3x3_fused_kernel(%arg0: i32, %arg1: memref<1x6x6x32xbf16, #tpu.memory_space<vmem>>, %arg2: memref<9x32x8xbf16, #tpu.memory_space<vmem>>, %arg3: memref<1x8xf32, #tpu.memory_space<vmem>>, %arg4: memref<8x8xbf16, #tpu.memory_space<vmem>>, %arg5: memref<1x8xf32, #tpu.memory_space<vmem>>, %arg6: memref<1x4x4x8xbf16, #tpu.memory_space<vmem>>) attributes {dimension_semantics = [#tpu.dimension_semantics<parallel>], iteration_bounds = array<i64: 2>, scalar_prefetch = 0 : i64, scratch_operands = 0 : i64, tpu.core_type = #tpu.core_type<tc>, window_params = [{transform_indices = @transform_0, window_bounds = array<i64: 1, 6, 6, 32>}, {pipeline_mode = #tpu.pipeline_mode<synchronous>, transform_indices = @transform_1, window_bounds = array<i64: 9, 32, 8>}, {pipeline_mode = #tpu.pipeline_mode<synchronous>, transform_indices = @transform_2, window_bounds = array<i64: 1, 8>}, {pipeline_mode = #tpu.pipeline_mode<synchronous>, transform_indices = @transform_3, window_bounds = array<i64: 8, 8>}, {pipeline_mode = #tpu.pipeline_mode<synchronous>, transform_indices = @transform_4, window_bounds = array<i64: 1, 8>}, {transform_indices = @transform_5, window_bounds = array<i64: 1, 4, 4, 8>}]} {
    %c0 = arith.constant 0 : index
    %c0_0 = arith.constant 0 : index
    %c0_1 = arith.constant 0 : index
    %c0_2 = arith.constant 0 : index
    %0 = vector.load %arg1[%c0, %c0_0, %c0_1, %c0_2] : memref<1x6x6x32xbf16, #tpu.memory_space<vmem>>, vector<1x6x6x32xbf16>
    %1 = vector.shape_cast %0 : vector<1x6x6x32xbf16> to vector<6x6x32xbf16>
    %cst = arith.constant 0.000000e+00 : f32
    %2 = vector.broadcast %cst : f32 to vector<16x8xf32>
    %3 = vector.extract_strided_slice %1 {offsets = [0, 0, 0], sizes = [4, 4, 32], strides = [1, 1, 1]} : vector<6x6x32xbf16> to vector<4x4x32xbf16>
    %4 = vector.shape_cast %3 : vector<4x4x32xbf16> to vector<16x32xbf16>
    %c0_3 = arith.constant 0 : index
    %c0_4 = arith.constant 0 : index
    %c0_5 = arith.constant 0 : index
    %5 = vector.load %arg2[%c0_3, %c0_4, %c0_5] : memref<9x32x8xbf16, #tpu.memory_space<vmem>>, vector<1x32x8xbf16>
    %6 = vector.shape_cast %5 : vector<1x32x8xbf16> to vector<32x8xbf16>
    %cst_6 = arith.constant dense<0.000000e+00> : vector<16x8xf32>
    %7 = tpu.matmul %4, %6, %cst_6 {dimension_numbers = #tpu.dot_dimension_numbers<[1], [0], [0], [1], [0, 0, 1, 1], [], []>} : vector<16x32xbf16>, vector<32x8xbf16>, vector<16x8xf32> -> vector<16x8xf32>
    %8 = arith.addf %2, %7 : vector<16x8xf32>
    %9 = vector.extract_strided_slice %1 {offsets = [0, 1, 0], sizes = [4, 4, 32], strides = [1, 1, 1]} : vector<6x6x32xbf16> to vector<4x4x32xbf16>
    %10 = vector.shape_cast %9 : vector<4x4x32xbf16> to vector<16x32xbf16>
    %c1 = arith.constant 1 : index
    %c0_7 = arith.constant 0 : index
    %c0_8 = arith.constant 0 : index
    %11 = vector.load %arg2[%c1, %c0_7, %c0_8] : memref<9x32x8xbf16, #tpu.memory_space<vmem>>, vector<1x32x8xbf16>
    %12 = vector.shape_cast %11 : vector<1x32x8xbf16> to vector<32x8xbf16>
    %cst_9 = arith.constant dense<0.000000e+00> : vector<16x8xf32>
    %13 = tpu.matmul %10, %12, %cst_9 {dimension_numbers = #tpu.dot_dimension_numbers<[1], [0], [0], [1], [0, 0, 1, 1], [], []>} : vector<16x32xbf16>, vector<32x8xbf16>, vector<16x8xf32> -> vector<16x8xf32>
    %14 = arith.addf %8, %13 : vector<16x8xf32>
    %15 = vector.extract_strided_slice %1 {offsets = [0, 2, 0], sizes = [4, 4, 32], strides = [1, 1, 1]} : vector<6x6x32xbf16> to vector<4x4x32xbf16>
    %16 = vector.shape_cast %15 : vector<4x4x32xbf16> to vector<16x32xbf16>
    %c2 = arith.constant 2 : index
    %c0_10 = arith.constant 0 : index
    %c0_11 = arith.constant 0 : index
    %17 = vector.load %arg2[%c2, %c0_10, %c0_11] : memref<9x32x8xbf16, #tpu.memory_space<vmem>>, vector<1x32x8xbf16>
    %18 = vector.shape_cast %17 : vector<1x32x8xbf16> to vector<32x8xbf16>
    %cst_12 = arith.constant dense<0.000000e+00> : vector<16x8xf32>
    %19 = tpu.matmul %16, %18, %cst_12 {dimension_numbers = #tpu.dot_dimension_numbers<[1], [0], [0], [1], [0, 0, 1, 1], [], []>} : vector<16x32xbf16>, vector<32x8xbf16>, vector<16x8xf32> -> vector<16x8xf32>
    %20 = arith.addf %14, %19 : vector<16x8xf32>
    %21 = vector.extract_strided_slice %1 {offsets = [1, 0, 0], sizes = [4, 4, 32], strides = [1, 1, 1]} : vector<6x6x32xbf16> to vector<4x4x32xbf16>
    %22 = vector.shape_cast %21 : vector<4x4x32xbf16> to vector<16x32xbf16>
    %c3 = arith.constant 3 : index
    %c0_13 = arith.constant 0 : index
    %c0_14 = arith.constant 0 : index
    %23 = vector.load %arg2[%c3, %c0_13, %c0_14] : memref<9x32x8xbf16, #tpu.memory_space<vmem>>, vector<1x32x8xbf16>
    %24 = vector.shape_cast %23 : vector<1x32x8xbf16> to vector<32x8xbf16>
    %cst_15 = arith.constant dense<0.000000e+00> : vector<16x8xf32>
    %25 = tpu.matmul %22, %24, %cst_15 {dimension_numbers = #tpu.dot_dimension_numbers<[1], [0], [0], [1], [0, 0, 1, 1], [], []>} : vector<16x32xbf16>, vector<32x8xbf16>, vector<16x8xf32> -> vector<16x8xf32>
    %26 = arith.addf %20, %25 : vector<16x8xf32>
    %27 = vector.extract_strided_slice %1 {offsets = [1, 1, 0], sizes = [4, 4, 32], strides = [1, 1, 1]} : vector<6x6x32xbf16> to vector<4x4x32xbf16>
    %28 = vector.shape_cast %27 : vector<4x4x32xbf16> to vector<16x32xbf16>
    %c4 = arith.constant 4 : index
    %c0_16 = arith.constant 0 : index
    %c0_17 = arith.constant 0 : index
    %29 = vector.load %arg2[%c4, %c0_16, %c0_17] : memref<9x32x8xbf16, #tpu.memory_space<vmem>>, vector<1x32x8xbf16>
    %30 = vector.shape_cast %29 : vector<1x32x8xbf16> to vector<32x8xbf16>
    %cst_18 = arith.constant dense<0.000000e+00> : vector<16x8xf32>
    %31 = tpu.matmul %28, %30, %cst_18 {dimension_numbers = #tpu.dot_dimension_numbers<[1], [0], [0], [1], [0, 0, 1, 1], [], []>} : vector<16x32xbf16>, vector<32x8xbf16>, vector<16x8xf32> -> vector<16x8xf32>
    %32 = arith.addf %26, %31 : vector<16x8xf32>
    %33 = vector.extract_strided_slice %1 {offsets = [1, 2, 0], sizes = [4, 4, 32], strides = [1, 1, 1]} : vector<6x6x32xbf16> to vector<4x4x32xbf16>
    %34 = vector.shape_cast %33 : vector<4x4x32xbf16> to vector<16x32xbf16>
    %c5 = arith.constant 5 : index
    %c0_19 = arith.constant 0 : index
    %c0_20 = arith.constant 0 : index
    %35 = vector.load %arg2[%c5, %c0_19, %c0_20] : memref<9x32x8xbf16, #tpu.memory_space<vmem>>, vector<1x32x8xbf16>
    %36 = vector.shape_cast %35 : vector<1x32x8xbf16> to vector<32x8xbf16>
    %cst_21 = arith.constant dense<0.000000e+00> : vector<16x8xf32>
    %37 = tpu.matmul %34, %36, %cst_21 {dimension_numbers = #tpu.dot_dimension_numbers<[1], [0], [0], [1], [0, 0, 1, 1], [], []>} : vector<16x32xbf16>, vector<32x8xbf16>, vector<16x8xf32> -> vector<16x8xf32>
    %38 = arith.addf %32, %37 : vector<16x8xf32>
    %39 = vector.extract_strided_slice %1 {offsets = [2, 0, 0], sizes = [4, 4, 32], strides = [1, 1, 1]} : vector<6x6x32xbf16> to vector<4x4x32xbf16>
    %40 = vector.shape_cast %39 : vector<4x4x32xbf16> to vector<16x32xbf16>
    %c6 = arith.constant 6 : index
    %c0_22 = arith.constant 0 : index
    %c0_23 = arith.constant 0 : index
    %41 = vector.load %arg2[%c6, %c0_22, %c0_23] : memref<9x32x8xbf16, #tpu.memory_space<vmem>>, vector<1x32x8xbf16>
    %42 = vector.shape_cast %41 : vector<1x32x8xbf16> to vector<32x8xbf16>
    %cst_24 = arith.constant dense<0.000000e+00> : vector<16x8xf32>
    %43 = tpu.matmul %40, %42, %cst_24 {dimension_numbers = #tpu.dot_dimension_numbers<[1], [0], [0], [1], [0, 0, 1, 1], [], []>} : vector<16x32xbf16>, vector<32x8xbf16>, vector<16x8xf32> -> vector<16x8xf32>
    %44 = arith.addf %38, %43 : vector<16x8xf32>
    %45 = vector.extract_strided_slice %1 {offsets = [2, 1, 0], sizes = [4, 4, 32], strides = [1, 1, 1]} : vector<6x6x32xbf16> to vector<4x4x32xbf16>
    %46 = vector.shape_cast %45 : vector<4x4x32xbf16> to vector<16x32xbf16>
    %c7 = arith.constant 7 : index
    %c0_25 = arith.constant 0 : index
    %c0_26 = arith.constant 0 : index
    %47 = vector.load %arg2[%c7, %c0_25, %c0_26] : memref<9x32x8xbf16, #tpu.memory_space<vmem>>, vector<1x32x8xbf16>
    %48 = vector.shape_cast %47 : vector<1x32x8xbf16> to vector<32x8xbf16>
    %cst_27 = arith.constant dense<0.000000e+00> : vector<16x8xf32>
    %49 = tpu.matmul %46, %48, %cst_27 {dimension_numbers = #tpu.dot_dimension_numbers<[1], [0], [0], [1], [0, 0, 1, 1], [], []>} : vector<16x32xbf16>, vector<32x8xbf16>, vector<16x8xf32> -> vector<16x8xf32>
    %50 = arith.addf %44, %49 : vector<16x8xf32>
    %51 = vector.extract_strided_slice %1 {offsets = [2, 2, 0], sizes = [4, 4, 32], strides = [1, 1, 1]} : vector<6x6x32xbf16> to vector<4x4x32xbf16>
    %52 = vector.shape_cast %51 : vector<4x4x32xbf16> to vector<16x32xbf16>
    %c8 = arith.constant 8 : index
    %c0_28 = arith.constant 0 : index
    %c0_29 = arith.constant 0 : index
    %53 = vector.load %arg2[%c8, %c0_28, %c0_29] : memref<9x32x8xbf16, #tpu.memory_space<vmem>>, vector<1x32x8xbf16>
    %54 = vector.shape_cast %53 : vector<1x32x8xbf16> to vector<32x8xbf16>
    %cst_30 = arith.constant dense<0.000000e+00> : vector<16x8xf32>
    %55 = tpu.matmul %52, %54, %cst_30 {dimension_numbers = #tpu.dot_dimension_numbers<[1], [0], [0], [1], [0, 0, 1, 1], [], []>} : vector<16x32xbf16>, vector<32x8xbf16>, vector<16x8xf32> -> vector<16x8xf32>
    %56 = arith.addf %50, %55 : vector<16x8xf32>
    %c0_31 = arith.constant 0 : index
    %c0_32 = arith.constant 0 : index
    %57 = vector.load %arg3[%c0_31, %c0_32] : memref<1x8xf32, #tpu.memory_space<vmem>>, vector<1x8xf32>
    %58 = vector.broadcast %57 : vector<1x8xf32> to vector<16x8xf32>
    %59 = arith.addf %56, %58 : vector<16x8xf32>
    %60 = arith.mulf %59, %59 : vector<16x8xf32>
    %61 = arith.truncf %60 : vector<16x8xf32> to vector<16x8xbf16>
    %c0_33 = arith.constant 0 : index
    %c0_34 = arith.constant 0 : index
    %62 = vector.load %arg4[%c0_33, %c0_34] : memref<8x8xbf16, #tpu.memory_space<vmem>>, vector<8x8xbf16>
    %cst_35 = arith.constant dense<0.000000e+00> : vector<16x8xf32>
    %63 = tpu.matmul %61, %62, %cst_35 {dimension_numbers = #tpu.dot_dimension_numbers<[1], [0], [0], [1], [0, 0, 1, 1], [], []>} : vector<16x8xbf16>, vector<8x8xbf16>, vector<16x8xf32> -> vector<16x8xf32>
    %c0_36 = arith.constant 0 : index
    %c0_37 = arith.constant 0 : index
    %64 = vector.load %arg5[%c0_36, %c0_37] : memref<1x8xf32, #tpu.memory_space<vmem>>, vector<1x8xf32>
    %65 = vector.broadcast %64 : vector<1x8xf32> to vector<16x8xf32>
    %66 = arith.addf %63, %65 : vector<16x8xf32>
    %67 = math.rsqrt %66 : vector<16x8xf32>
    %68 = arith.mulf %59, %67 : vector<16x8xf32>
    %69 = vector.shape_cast %68 : vector<16x8xf32> to vector<4x4x8xf32>
    %70 = arith.truncf %69 : vector<4x4x8xf32> to vector<4x4x8xbf16>
    %c0_38 = arith.constant 0 : index
    %c0_39 = arith.constant 0 : index
    %c0_40 = arith.constant 0 : index
    %c0_41 = arith.constant 0 : index
    %71 = vector.load %arg6[%c0_38, %c0_39, %c0_40, %c0_41] : memref<1x4x4x8xbf16, #tpu.memory_space<vmem>>, vector<1x4x4x8xbf16>
    %72 = vector.shape_cast %71 : vector<1x4x4x8xbf16> to vector<4x4x8xbf16>
    %73 = vector.shape_cast %70 : vector<4x4x8xbf16> to vector<1x4x4x8xbf16>
    tpu.vector_store %arg6[%c0_38, %c0_39, %c0_40, %c0_41], %73 {strides = array<i32>} : memref<1x4x4x8xbf16, #tpu.memory_space<vmem>>, vector<1x4x4x8xbf16>,
    return
  }
  func.func @transform_0(%arg0: i32) -> (i32, i32, i32, i32) {
    %c0_i32 = arith.constant 0 : i32
    %c0_i32_0 = arith.constant 0 : i32
    %c0_i32_1 = arith.constant 0 : i32
    %c0_i32_2 = arith.constant 0 : i32
    return %arg0, %c0_i32, %c0_i32_0, %c0_i32_1 : i32, i32, i32, i32
  }
  func.func @transform_1(%arg0: i32) -> (i32, i32, i32) {
    %c0_i32 = arith.constant 0 : i32
    %c0_i32_0 = arith.constant 0 : i32
    %c0_i32_1 = arith.constant 0 : i32
    %c0_i32_2 = arith.constant 0 : i32
    return %c0_i32, %c0_i32_0, %c0_i32_1 : i32, i32, i32
  }
  func.func @transform_2(%arg0: i32) -> (i32, i32) {
    %c0_i32 = arith.constant 0 : i32
    %c0_i32_0 = arith.constant 0 : i32
    %c0_i32_1 = arith.constant 0 : i32
    return %c0_i32, %c0_i32_0 : i32, i32
  }
  func.func @transform_3(%arg0: i32) -> (i32, i32) {
    %c0_i32 = arith.constant 0 : i32
    %c0_i32_0 = arith.constant 0 : i32
    %c0_i32_1 = arith.constant 0 : i32
    return %c0_i32, %c0_i32_0 : i32, i32
  }
  func.func @transform_4(%arg0: i32) -> (i32, i32) {
    %c0_i32 = arith.constant 0 : i32
    %c0_i32_0 = arith.constant 0 : i32
    %c0_i32_1 = arith.constant 0 : i32
    return %c0_i32, %c0_i32_0 : i32, i32
  }
  func.func @transform_5(%arg0: i32) -> (i32, i32, i32, i32) {
    %c0_i32 = arith.constant 0 : i32
    %c0_i32_0 = arith.constant 0 : i32
    %c0_i32_1 = arith.constant 0 : i32
    %c0_i32_2 = arith.constant 0 : i32
    return %arg0, %c0_i32, %c0_i32_0, %c0_i32_1 : i32, i32, i32, i32
  }
}

module attributes {stable_mosaic.version = 11 : i64} {
  func.func @_conv3x3_fused_kernel(%arg0: i32, %arg1: memref<1x4x4x32xbf16, #tpu.memory_space<vmem>>, %arg2: memref<9x32x8xbf16, #tpu.memory_space<vmem>>, %arg3: memref<1x8xf32, #tpu.memory_space<vmem>>, %arg4: memref<8x8xbf16, #tpu.memory_space<vmem>>, %arg5: memref<1x8xf32, #tpu.memory_space<vmem>>, %arg6: memref<1x2x2x8xbf16, #tpu.memory_space<vmem>>) attributes {dimension_semantics = [#tpu.dimension_semantics<parallel>], iteration_bounds = array<i64: 2>, scalar_prefetch = 0 : i64, scratch_operands = 0 : i64, tpu.core_type = #tpu.core_type<tc>, window_params = [{transform_indices = @transform_0, window_bounds = array<i64: 1, 4, 4, 32>}, {pipeline_mode = #tpu.pipeline_mode<synchronous>, transform_indices = @transform_1, window_bounds = array<i64: 9, 32, 8>}, {pipeline_mode = #tpu.pipeline_mode<synchronous>, transform_indices = @transform_2, window_bounds = array<i64: 1, 8>}, {pipeline_mode = #tpu.pipeline_mode<synchronous>, transform_indices = @transform_3, window_bounds = array<i64: 8, 8>}, {pipeline_mode = #tpu.pipeline_mode<synchronous>, transform_indices = @transform_4, window_bounds = array<i64: 1, 8>}, {transform_indices = @transform_5, window_bounds = array<i64: 1, 2, 2, 8>}]} {
    %c0 = arith.constant 0 : index
    %c0_0 = arith.constant 0 : index
    %c0_1 = arith.constant 0 : index
    %c0_2 = arith.constant 0 : index
    %0 = vector.load %arg1[%c0, %c0_0, %c0_1, %c0_2] : memref<1x4x4x32xbf16, #tpu.memory_space<vmem>>, vector<1x4x4x32xbf16>
    %1 = vector.shape_cast %0 : vector<1x4x4x32xbf16> to vector<4x4x32xbf16>
    %cst = arith.constant 0.000000e+00 : f32
    %2 = vector.broadcast %cst : f32 to vector<4x8xf32>
    %3 = vector.extract_strided_slice %1 {offsets = [0, 0, 0], sizes = [2, 2, 32], strides = [1, 1, 1]} : vector<4x4x32xbf16> to vector<2x2x32xbf16>
    %4 = vector.shape_cast %3 : vector<2x2x32xbf16> to vector<4x32xbf16>
    %c0_3 = arith.constant 0 : index
    %c0_4 = arith.constant 0 : index
    %c0_5 = arith.constant 0 : index
    %5 = vector.load %arg2[%c0_3, %c0_4, %c0_5] : memref<9x32x8xbf16, #tpu.memory_space<vmem>>, vector<1x32x8xbf16>
    %6 = vector.shape_cast %5 : vector<1x32x8xbf16> to vector<32x8xbf16>
    %cst_6 = arith.constant dense<0.000000e+00> : vector<4x8xf32>
    %7 = tpu.matmul %4, %6, %cst_6 {dimension_numbers = #tpu.dot_dimension_numbers<[1], [0], [0], [1], [0, 0, 1, 1], [], []>} : vector<4x32xbf16>, vector<32x8xbf16>, vector<4x8xf32> -> vector<4x8xf32>
    %8 = arith.addf %2, %7 : vector<4x8xf32>
    %9 = vector.extract_strided_slice %1 {offsets = [0, 1, 0], sizes = [2, 2, 32], strides = [1, 1, 1]} : vector<4x4x32xbf16> to vector<2x2x32xbf16>
    %10 = vector.shape_cast %9 : vector<2x2x32xbf16> to vector<4x32xbf16>
    %c1 = arith.constant 1 : index
    %c0_7 = arith.constant 0 : index
    %c0_8 = arith.constant 0 : index
    %11 = vector.load %arg2[%c1, %c0_7, %c0_8] : memref<9x32x8xbf16, #tpu.memory_space<vmem>>, vector<1x32x8xbf16>
    %12 = vector.shape_cast %11 : vector<1x32x8xbf16> to vector<32x8xbf16>
    %cst_9 = arith.constant dense<0.000000e+00> : vector<4x8xf32>
    %13 = tpu.matmul %10, %12, %cst_9 {dimension_numbers = #tpu.dot_dimension_numbers<[1], [0], [0], [1], [0, 0, 1, 1], [], []>} : vector<4x32xbf16>, vector<32x8xbf16>, vector<4x8xf32> -> vector<4x8xf32>
    %14 = arith.addf %8, %13 : vector<4x8xf32>
    %15 = vector.extract_strided_slice %1 {offsets = [0, 2, 0], sizes = [2, 2, 32], strides = [1, 1, 1]} : vector<4x4x32xbf16> to vector<2x2x32xbf16>
    %16 = vector.shape_cast %15 : vector<2x2x32xbf16> to vector<4x32xbf16>
    %c2 = arith.constant 2 : index
    %c0_10 = arith.constant 0 : index
    %c0_11 = arith.constant 0 : index
    %17 = vector.load %arg2[%c2, %c0_10, %c0_11] : memref<9x32x8xbf16, #tpu.memory_space<vmem>>, vector<1x32x8xbf16>
    %18 = vector.shape_cast %17 : vector<1x32x8xbf16> to vector<32x8xbf16>
    %cst_12 = arith.constant dense<0.000000e+00> : vector<4x8xf32>
    %19 = tpu.matmul %16, %18, %cst_12 {dimension_numbers = #tpu.dot_dimension_numbers<[1], [0], [0], [1], [0, 0, 1, 1], [], []>} : vector<4x32xbf16>, vector<32x8xbf16>, vector<4x8xf32> -> vector<4x8xf32>
    %20 = arith.addf %14, %19 : vector<4x8xf32>
    %21 = vector.extract_strided_slice %1 {offsets = [1, 0, 0], sizes = [2, 2, 32], strides = [1, 1, 1]} : vector<4x4x32xbf16> to vector<2x2x32xbf16>
    %22 = vector.shape_cast %21 : vector<2x2x32xbf16> to vector<4x32xbf16>
    %c3 = arith.constant 3 : index
    %c0_13 = arith.constant 0 : index
    %c0_14 = arith.constant 0 : index
    %23 = vector.load %arg2[%c3, %c0_13, %c0_14] : memref<9x32x8xbf16, #tpu.memory_space<vmem>>, vector<1x32x8xbf16>
    %24 = vector.shape_cast %23 : vector<1x32x8xbf16> to vector<32x8xbf16>
    %cst_15 = arith.constant dense<0.000000e+00> : vector<4x8xf32>
    %25 = tpu.matmul %22, %24, %cst_15 {dimension_numbers = #tpu.dot_dimension_numbers<[1], [0], [0], [1], [0, 0, 1, 1], [], []>} : vector<4x32xbf16>, vector<32x8xbf16>, vector<4x8xf32> -> vector<4x8xf32>
    %26 = arith.addf %20, %25 : vector<4x8xf32>
    %27 = vector.extract_strided_slice %1 {offsets = [1, 1, 0], sizes = [2, 2, 32], strides = [1, 1, 1]} : vector<4x4x32xbf16> to vector<2x2x32xbf16>
    %28 = vector.shape_cast %27 : vector<2x2x32xbf16> to vector<4x32xbf16>
    %c4 = arith.constant 4 : index
    %c0_16 = arith.constant 0 : index
    %c0_17 = arith.constant 0 : index
    %29 = vector.load %arg2[%c4, %c0_16, %c0_17] : memref<9x32x8xbf16, #tpu.memory_space<vmem>>, vector<1x32x8xbf16>
    %30 = vector.shape_cast %29 : vector<1x32x8xbf16> to vector<32x8xbf16>
    %cst_18 = arith.constant dense<0.000000e+00> : vector<4x8xf32>
    %31 = tpu.matmul %28, %30, %cst_18 {dimension_numbers = #tpu.dot_dimension_numbers<[1], [0], [0], [1], [0, 0, 1, 1], [], []>} : vector<4x32xbf16>, vector<32x8xbf16>, vector<4x8xf32> -> vector<4x8xf32>
    %32 = arith.addf %26, %31 : vector<4x8xf32>
    %33 = vector.extract_strided_slice %1 {offsets = [1, 2, 0], sizes = [2, 2, 32], strides = [1, 1, 1]} : vector<4x4x32xbf16> to vector<2x2x32xbf16>
    %34 = vector.shape_cast %33 : vector<2x2x32xbf16> to vector<4x32xbf16>
    %c5 = arith.constant 5 : index
    %c0_19 = arith.constant 0 : index
    %c0_20 = arith.constant 0 : index
    %35 = vector.load %arg2[%c5, %c0_19, %c0_20] : memref<9x32x8xbf16, #tpu.memory_space<vmem>>, vector<1x32x8xbf16>
    %36 = vector.shape_cast %35 : vector<1x32x8xbf16> to vector<32x8xbf16>
    %cst_21 = arith.constant dense<0.000000e+00> : vector<4x8xf32>
    %37 = tpu.matmul %34, %36, %cst_21 {dimension_numbers = #tpu.dot_dimension_numbers<[1], [0], [0], [1], [0, 0, 1, 1], [], []>} : vector<4x32xbf16>, vector<32x8xbf16>, vector<4x8xf32> -> vector<4x8xf32>
    %38 = arith.addf %32, %37 : vector<4x8xf32>
    %39 = vector.extract_strided_slice %1 {offsets = [2, 0, 0], sizes = [2, 2, 32], strides = [1, 1, 1]} : vector<4x4x32xbf16> to vector<2x2x32xbf16>
    %40 = vector.shape_cast %39 : vector<2x2x32xbf16> to vector<4x32xbf16>
    %c6 = arith.constant 6 : index
    %c0_22 = arith.constant 0 : index
    %c0_23 = arith.constant 0 : index
    %41 = vector.load %arg2[%c6, %c0_22, %c0_23] : memref<9x32x8xbf16, #tpu.memory_space<vmem>>, vector<1x32x8xbf16>
    %42 = vector.shape_cast %41 : vector<1x32x8xbf16> to vector<32x8xbf16>
    %cst_24 = arith.constant dense<0.000000e+00> : vector<4x8xf32>
    %43 = tpu.matmul %40, %42, %cst_24 {dimension_numbers = #tpu.dot_dimension_numbers<[1], [0], [0], [1], [0, 0, 1, 1], [], []>} : vector<4x32xbf16>, vector<32x8xbf16>, vector<4x8xf32> -> vector<4x8xf32>
    %44 = arith.addf %38, %43 : vector<4x8xf32>
    %45 = vector.extract_strided_slice %1 {offsets = [2, 1, 0], sizes = [2, 2, 32], strides = [1, 1, 1]} : vector<4x4x32xbf16> to vector<2x2x32xbf16>
    %46 = vector.shape_cast %45 : vector<2x2x32xbf16> to vector<4x32xbf16>
    %c7 = arith.constant 7 : index
    %c0_25 = arith.constant 0 : index
    %c0_26 = arith.constant 0 : index
    %47 = vector.load %arg2[%c7, %c0_25, %c0_26] : memref<9x32x8xbf16, #tpu.memory_space<vmem>>, vector<1x32x8xbf16>
    %48 = vector.shape_cast %47 : vector<1x32x8xbf16> to vector<32x8xbf16>
    %cst_27 = arith.constant dense<0.000000e+00> : vector<4x8xf32>
    %49 = tpu.matmul %46, %48, %cst_27 {dimension_numbers = #tpu.dot_dimension_numbers<[1], [0], [0], [1], [0, 0, 1, 1], [], []>} : vector<4x32xbf16>, vector<32x8xbf16>, vector<4x8xf32> -> vector<4x8xf32>
    %50 = arith.addf %44, %49 : vector<4x8xf32>
    %51 = vector.extract_strided_slice %1 {offsets = [2, 2, 0], sizes = [2, 2, 32], strides = [1, 1, 1]} : vector<4x4x32xbf16> to vector<2x2x32xbf16>
    %52 = vector.shape_cast %51 : vector<2x2x32xbf16> to vector<4x32xbf16>
    %c8 = arith.constant 8 : index
    %c0_28 = arith.constant 0 : index
    %c0_29 = arith.constant 0 : index
    %53 = vector.load %arg2[%c8, %c0_28, %c0_29] : memref<9x32x8xbf16, #tpu.memory_space<vmem>>, vector<1x32x8xbf16>
    %54 = vector.shape_cast %53 : vector<1x32x8xbf16> to vector<32x8xbf16>
    %cst_30 = arith.constant dense<0.000000e+00> : vector<4x8xf32>
    %55 = tpu.matmul %52, %54, %cst_30 {dimension_numbers = #tpu.dot_dimension_numbers<[1], [0], [0], [1], [0, 0, 1, 1], [], []>} : vector<4x32xbf16>, vector<32x8xbf16>, vector<4x8xf32> -> vector<4x8xf32>
    %56 = arith.addf %50, %55 : vector<4x8xf32>
    %c0_31 = arith.constant 0 : index
    %c0_32 = arith.constant 0 : index
    %57 = vector.load %arg3[%c0_31, %c0_32] : memref<1x8xf32, #tpu.memory_space<vmem>>, vector<1x8xf32>
    %58 = vector.broadcast %57 : vector<1x8xf32> to vector<4x8xf32>
    %59 = arith.addf %56, %58 : vector<4x8xf32>
    %60 = arith.mulf %59, %59 : vector<4x8xf32>
    %61 = arith.truncf %60 : vector<4x8xf32> to vector<4x8xbf16>
    %c0_33 = arith.constant 0 : index
    %c0_34 = arith.constant 0 : index
    %62 = vector.load %arg4[%c0_33, %c0_34] : memref<8x8xbf16, #tpu.memory_space<vmem>>, vector<8x8xbf16>
    %cst_35 = arith.constant dense<0.000000e+00> : vector<4x8xf32>
    %63 = tpu.matmul %61, %62, %cst_35 {dimension_numbers = #tpu.dot_dimension_numbers<[1], [0], [0], [1], [0, 0, 1, 1], [], []>} : vector<4x8xbf16>, vector<8x8xbf16>, vector<4x8xf32> -> vector<4x8xf32>
    %c0_36 = arith.constant 0 : index
    %c0_37 = arith.constant 0 : index
    %64 = vector.load %arg5[%c0_36, %c0_37] : memref<1x8xf32, #tpu.memory_space<vmem>>, vector<1x8xf32>
    %65 = vector.broadcast %64 : vector<1x8xf32> to vector<4x8xf32>
    %66 = arith.addf %63, %65 : vector<4x8xf32>
    %67 = math.rsqrt %66 : vector<4x8xf32>
    %68 = arith.mulf %59, %67 : vector<4x8xf32>
    %69 = vector.shape_cast %68 : vector<4x8xf32> to vector<2x2x8xf32>
    %70 = arith.truncf %69 : vector<2x2x8xf32> to vector<2x2x8xbf16>
    %c0_38 = arith.constant 0 : index
    %c0_39 = arith.constant 0 : index
    %c0_40 = arith.constant 0 : index
    %c0_41 = arith.constant 0 : index
    %71 = vector.load %arg6[%c0_38, %c0_39, %c0_40, %c0_41] : memref<1x2x2x8xbf16, #tpu.memory_space<vmem>>, vector<1x2x2x8xbf16>
    %72 = vector.shape_cast %71 : vector<1x2x2x8xbf16> to vector<2x2x8xbf16>
    %73 = vector.shape_cast %70 : vector<2x2x8xbf16> to vector<1x2x2x8xbf16>
    tpu.vector_store %arg6[%c0_38, %c0_39, %c0_40, %c0_41], %73 {strides = array<i32>} : memref<1x2x2x8xbf16, #tpu.memory_space<vmem>>, vector<1x2x2x8xbf16>,
    return
  }
  func.func @transform_0(%arg0: i32) -> (i32, i32, i32, i32) {
    %c0_i32 = arith.constant 0 : i32
    %c0_i32_0 = arith.constant 0 : i32
    %c0_i32_1 = arith.constant 0 : i32
    %c0_i32_2 = arith.constant 0 : i32
    return %arg0, %c0_i32, %c0_i32_0, %c0_i32_1 : i32, i32, i32, i32
  }
  func.func @transform_1(%arg0: i32) -> (i32, i32, i32) {
    %c0_i32 = arith.constant 0 : i32
    %c0_i32_0 = arith.constant 0 : i32
    %c0_i32_1 = arith.constant 0 : i32
    %c0_i32_2 = arith.constant 0 : i32
    return %c0_i32, %c0_i32_0, %c0_i32_1 : i32, i32, i32
  }
  func.func @transform_2(%arg0: i32) -> (i32, i32) {
    %c0_i32 = arith.constant 0 : i32
    %c0_i32_0 = arith.constant 0 : i32
    %c0_i32_1 = arith.constant 0 : i32
    return %c0_i32, %c0_i32_0 : i32, i32
  }
  func.func @transform_3(%arg0: i32) -> (i32, i32) {
    %c0_i32 = arith.constant 0 : i32
    %c0_i32_0 = arith.constant 0 : i32
    %c0_i32_1 = arith.constant 0 : i32
    return %c0_i32, %c0_i32_0 : i32, i32
  }
  func.func @transform_4(%arg0: i32) -> (i32, i32) {
    %c0_i32 = arith.constant 0 : i32
    %c0_i32_0 = arith.constant 0 : i32
    %c0_i32_1 = arith.constant 0 : i32
    return %c0_i32, %c0_i32_0 : i32, i32
  }
  func.func @transform_5(%arg0: i32) -> (i32, i32, i32, i32) {
    %c0_i32 = arith.constant 0 : i32
    %c0_i32_0 = arith.constant 0 : i32
    %c0_i32_1 = arith.constant 0 : i32
    %c0_i32_2 = arith.constant 0 : i32
    return %arg0, %c0_i32, %c0_i32_0, %c0_i32_1 : i32, i32, i32, i32
  }
}

module attributes {stable_mosaic.version = 11 : i64} {
  func.func @_conv3x3_fused_kernel(%arg0: i32, %arg1: memref<1x3x3x32xbf16, #tpu.memory_space<vmem>>, %arg2: memref<9x32x16xbf16, #tpu.memory_space<vmem>>, %arg3: memref<1x16xf32, #tpu.memory_space<vmem>>, %arg4: memref<1x1x1x16xbf16, #tpu.memory_space<vmem>>) attributes {dimension_semantics = [#tpu.dimension_semantics<parallel>], iteration_bounds = array<i64: 2>, scalar_prefetch = 0 : i64, scratch_operands = 0 : i64, tpu.core_type = #tpu.core_type<tc>, window_params = [{transform_indices = @transform_0, window_bounds = array<i64: 1, 3, 3, 32>}, {pipeline_mode = #tpu.pipeline_mode<synchronous>, transform_indices = @transform_1, window_bounds = array<i64: 9, 32, 16>}, {pipeline_mode = #tpu.pipeline_mode<synchronous>, transform_indices = @transform_2, window_bounds = array<i64: 1, 16>}, {transform_indices = @transform_3, window_bounds = array<i64: 1, 1, 1, 16>}]} {
    %c0 = arith.constant 0 : index
    %c0_0 = arith.constant 0 : index
    %c0_1 = arith.constant 0 : index
    %c0_2 = arith.constant 0 : index
    %0 = vector.load %arg1[%c0, %c0_0, %c0_1, %c0_2] : memref<1x3x3x32xbf16, #tpu.memory_space<vmem>>, vector<1x3x3x32xbf16>
    %1 = vector.shape_cast %0 : vector<1x3x3x32xbf16> to vector<3x3x32xbf16>
    %cst = arith.constant 0.000000e+00 : f32
    %2 = vector.broadcast %cst : f32 to vector<1x16xf32>
    %3 = vector.extract_strided_slice %1 {offsets = [0, 0, 0], sizes = [1, 1, 32], strides = [1, 1, 1]} : vector<3x3x32xbf16> to vector<1x1x32xbf16>
    %4 = vector.shape_cast %3 : vector<1x1x32xbf16> to vector<1x32xbf16>
    %c0_3 = arith.constant 0 : index
    %c0_4 = arith.constant 0 : index
    %c0_5 = arith.constant 0 : index
    %5 = vector.load %arg2[%c0_3, %c0_4, %c0_5] : memref<9x32x16xbf16, #tpu.memory_space<vmem>>, vector<1x32x16xbf16>
    %6 = vector.shape_cast %5 : vector<1x32x16xbf16> to vector<32x16xbf16>
    %cst_6 = arith.constant dense<0.000000e+00> : vector<1x16xf32>
    %7 = tpu.matmul %4, %6, %cst_6 {dimension_numbers = #tpu.dot_dimension_numbers<[1], [0], [0], [1], [0, 0, 1, 1], [], []>} : vector<1x32xbf16>, vector<32x16xbf16>, vector<1x16xf32> -> vector<1x16xf32>
    %8 = arith.addf %2, %7 : vector<1x16xf32>
    %9 = vector.extract_strided_slice %1 {offsets = [0, 1, 0], sizes = [1, 1, 32], strides = [1, 1, 1]} : vector<3x3x32xbf16> to vector<1x1x32xbf16>
    %10 = vector.shape_cast %9 : vector<1x1x32xbf16> to vector<1x32xbf16>
    %c1 = arith.constant 1 : index
    %c0_7 = arith.constant 0 : index
    %c0_8 = arith.constant 0 : index
    %11 = vector.load %arg2[%c1, %c0_7, %c0_8] : memref<9x32x16xbf16, #tpu.memory_space<vmem>>, vector<1x32x16xbf16>
    %12 = vector.shape_cast %11 : vector<1x32x16xbf16> to vector<32x16xbf16>
    %cst_9 = arith.constant dense<0.000000e+00> : vector<1x16xf32>
    %13 = tpu.matmul %10, %12, %cst_9 {dimension_numbers = #tpu.dot_dimension_numbers<[1], [0], [0], [1], [0, 0, 1, 1], [], []>} : vector<1x32xbf16>, vector<32x16xbf16>, vector<1x16xf32> -> vector<1x16xf32>
    %14 = arith.addf %8, %13 : vector<1x16xf32>
    %15 = vector.extract_strided_slice %1 {offsets = [0, 2, 0], sizes = [1, 1, 32], strides = [1, 1, 1]} : vector<3x3x32xbf16> to vector<1x1x32xbf16>
    %16 = vector.shape_cast %15 : vector<1x1x32xbf16> to vector<1x32xbf16>
    %c2 = arith.constant 2 : index
    %c0_10 = arith.constant 0 : index
    %c0_11 = arith.constant 0 : index
    %17 = vector.load %arg2[%c2, %c0_10, %c0_11] : memref<9x32x16xbf16, #tpu.memory_space<vmem>>, vector<1x32x16xbf16>
    %18 = vector.shape_cast %17 : vector<1x32x16xbf16> to vector<32x16xbf16>
    %cst_12 = arith.constant dense<0.000000e+00> : vector<1x16xf32>
    %19 = tpu.matmul %16, %18, %cst_12 {dimension_numbers = #tpu.dot_dimension_numbers<[1], [0], [0], [1], [0, 0, 1, 1], [], []>} : vector<1x32xbf16>, vector<32x16xbf16>, vector<1x16xf32> -> vector<1x16xf32>
    %20 = arith.addf %14, %19 : vector<1x16xf32>
    %21 = vector.extract_strided_slice %1 {offsets = [1, 0, 0], sizes = [1, 1, 32], strides = [1, 1, 1]} : vector<3x3x32xbf16> to vector<1x1x32xbf16>
    %22 = vector.shape_cast %21 : vector<1x1x32xbf16> to vector<1x32xbf16>
    %c3 = arith.constant 3 : index
    %c0_13 = arith.constant 0 : index
    %c0_14 = arith.constant 0 : index
    %23 = vector.load %arg2[%c3, %c0_13, %c0_14] : memref<9x32x16xbf16, #tpu.memory_space<vmem>>, vector<1x32x16xbf16>
    %24 = vector.shape_cast %23 : vector<1x32x16xbf16> to vector<32x16xbf16>
    %cst_15 = arith.constant dense<0.000000e+00> : vector<1x16xf32>
    %25 = tpu.matmul %22, %24, %cst_15 {dimension_numbers = #tpu.dot_dimension_numbers<[1], [0], [0], [1], [0, 0, 1, 1], [], []>} : vector<1x32xbf16>, vector<32x16xbf16>, vector<1x16xf32> -> vector<1x16xf32>
    %26 = arith.addf %20, %25 : vector<1x16xf32>
    %27 = vector.extract_strided_slice %1 {offsets = [1, 1, 0], sizes = [1, 1, 32], strides = [1, 1, 1]} : vector<3x3x32xbf16> to vector<1x1x32xbf16>
    %28 = vector.shape_cast %27 : vector<1x1x32xbf16> to vector<1x32xbf16>
    %c4 = arith.constant 4 : index
    %c0_16 = arith.constant 0 : index
    %c0_17 = arith.constant 0 : index
    %29 = vector.load %arg2[%c4, %c0_16, %c0_17] : memref<9x32x16xbf16, #tpu.memory_space<vmem>>, vector<1x32x16xbf16>
    %30 = vector.shape_cast %29 : vector<1x32x16xbf16> to vector<32x16xbf16>
    %cst_18 = arith.constant dense<0.000000e+00> : vector<1x16xf32>
    %31 = tpu.matmul %28, %30, %cst_18 {dimension_numbers = #tpu.dot_dimension_numbers<[1], [0], [0], [1], [0, 0, 1, 1], [], []>} : vector<1x32xbf16>, vector<32x16xbf16>, vector<1x16xf32> -> vector<1x16xf32>
    %32 = arith.addf %26, %31 : vector<1x16xf32>
    %33 = vector.extract_strided_slice %1 {offsets = [1, 2, 0], sizes = [1, 1, 32], strides = [1, 1, 1]} : vector<3x3x32xbf16> to vector<1x1x32xbf16>
    %34 = vector.shape_cast %33 : vector<1x1x32xbf16> to vector<1x32xbf16>
    %c5 = arith.constant 5 : index
    %c0_19 = arith.constant 0 : index
    %c0_20 = arith.constant 0 : index
    %35 = vector.load %arg2[%c5, %c0_19, %c0_20] : memref<9x32x16xbf16, #tpu.memory_space<vmem>>, vector<1x32x16xbf16>
    %36 = vector.shape_cast %35 : vector<1x32x16xbf16> to vector<32x16xbf16>
    %cst_21 = arith.constant dense<0.000000e+00> : vector<1x16xf32>
    %37 = tpu.matmul %34, %36, %cst_21 {dimension_numbers = #tpu.dot_dimension_numbers<[1], [0], [0], [1], [0, 0, 1, 1], [], []>} : vector<1x32xbf16>, vector<32x16xbf16>, vector<1x16xf32> -> vector<1x16xf32>
    %38 = arith.addf %32, %37 : vector<1x16xf32>
    %39 = vector.extract_strided_slice %1 {offsets = [2, 0, 0], sizes = [1, 1, 32], strides = [1, 1, 1]} : vector<3x3x32xbf16> to vector<1x1x32xbf16>
    %40 = vector.shape_cast %39 : vector<1x1x32xbf16> to vector<1x32xbf16>
    %c6 = arith.constant 6 : index
    %c0_22 = arith.constant 0 : index
    %c0_23 = arith.constant 0 : index
    %41 = vector.load %arg2[%c6, %c0_22, %c0_23] : memref<9x32x16xbf16, #tpu.memory_space<vmem>>, vector<1x32x16xbf16>
    %42 = vector.shape_cast %41 : vector<1x32x16xbf16> to vector<32x16xbf16>
    %cst_24 = arith.constant dense<0.000000e+00> : vector<1x16xf32>
    %43 = tpu.matmul %40, %42, %cst_24 {dimension_numbers = #tpu.dot_dimension_numbers<[1], [0], [0], [1], [0, 0, 1, 1], [], []>} : vector<1x32xbf16>, vector<32x16xbf16>, vector<1x16xf32> -> vector<1x16xf32>
    %44 = arith.addf %38, %43 : vector<1x16xf32>
    %45 = vector.extract_strided_slice %1 {offsets = [2, 1, 0], sizes = [1, 1, 32], strides = [1, 1, 1]} : vector<3x3x32xbf16> to vector<1x1x32xbf16>
    %46 = vector.shape_cast %45 : vector<1x1x32xbf16> to vector<1x32xbf16>
    %c7 = arith.constant 7 : index
    %c0_25 = arith.constant 0 : index
    %c0_26 = arith.constant 0 : index
    %47 = vector.load %arg2[%c7, %c0_25, %c0_26] : memref<9x32x16xbf16, #tpu.memory_space<vmem>>, vector<1x32x16xbf16>
    %48 = vector.shape_cast %47 : vector<1x32x16xbf16> to vector<32x16xbf16>
    %cst_27 = arith.constant dense<0.000000e+00> : vector<1x16xf32>
    %49 = tpu.matmul %46, %48, %cst_27 {dimension_numbers = #tpu.dot_dimension_numbers<[1], [0], [0], [1], [0, 0, 1, 1], [], []>} : vector<1x32xbf16>, vector<32x16xbf16>, vector<1x16xf32> -> vector<1x16xf32>
    %50 = arith.addf %44, %49 : vector<1x16xf32>
    %51 = vector.extract_strided_slice %1 {offsets = [2, 2, 0], sizes = [1, 1, 32], strides = [1, 1, 1]} : vector<3x3x32xbf16> to vector<1x1x32xbf16>
    %52 = vector.shape_cast %51 : vector<1x1x32xbf16> to vector<1x32xbf16>
    %c8 = arith.constant 8 : index
    %c0_28 = arith.constant 0 : index
    %c0_29 = arith.constant 0 : index
    %53 = vector.load %arg2[%c8, %c0_28, %c0_29] : memref<9x32x16xbf16, #tpu.memory_space<vmem>>, vector<1x32x16xbf16>
    %54 = vector.shape_cast %53 : vector<1x32x16xbf16> to vector<32x16xbf16>
    %cst_30 = arith.constant dense<0.000000e+00> : vector<1x16xf32>
    %55 = tpu.matmul %52, %54, %cst_30 {dimension_numbers = #tpu.dot_dimension_numbers<[1], [0], [0], [1], [0, 0, 1, 1], [], []>} : vector<1x32xbf16>, vector<32x16xbf16>, vector<1x16xf32> -> vector<1x16xf32>
    %56 = arith.addf %50, %55 : vector<1x16xf32>
    %c0_31 = arith.constant 0 : index
    %c0_32 = arith.constant 0 : index
    %57 = vector.load %arg3[%c0_31, %c0_32] : memref<1x16xf32, #tpu.memory_space<vmem>>, vector<1x16xf32>
    %58 = arith.addf %56, %57 : vector<1x16xf32>
    %59 = vector.shape_cast %58 : vector<1x16xf32> to vector<1x1x16xf32>
    %60 = arith.truncf %59 : vector<1x1x16xf32> to vector<1x1x16xbf16>
    %c0_33 = arith.constant 0 : index
    %c0_34 = arith.constant 0 : index
    %c0_35 = arith.constant 0 : index
    %c0_36 = arith.constant 0 : index
    %61 = vector.load %arg4[%c0_33, %c0_34, %c0_35, %c0_36] : memref<1x1x1x16xbf16, #tpu.memory_space<vmem>>, vector<1x1x1x16xbf16>
    %62 = vector.shape_cast %61 : vector<1x1x1x16xbf16> to vector<1x1x16xbf16>
    %63 = vector.shape_cast %60 : vector<1x1x16xbf16> to vector<1x1x1x16xbf16>
    tpu.vector_store %arg4[%c0_33, %c0_34, %c0_35, %c0_36], %63 {strides = array<i32>} : memref<1x1x1x16xbf16, #tpu.memory_space<vmem>>, vector<1x1x1x16xbf16>,
    return
  }
  func.func @transform_0(%arg0: i32) -> (i32, i32, i32, i32) {
    %c0_i32 = arith.constant 0 : i32
    %c0_i32_0 = arith.constant 0 : i32
    %c0_i32_1 = arith.constant 0 : i32
    %c0_i32_2 = arith.constant 0 : i32
    return %arg0, %c0_i32, %c0_i32_0, %c0_i32_1 : i32, i32, i32, i32
  }
  func.func @transform_1(%arg0: i32) -> (i32, i32, i32) {
    %c0_i32 = arith.constant 0 : i32
    %c0_i32_0 = arith.constant 0 : i32
    %c0_i32_1 = arith.constant 0 : i32
    %c0_i32_2 = arith.constant 0 : i32
    return %c0_i32, %c0_i32_0, %c0_i32_1 : i32, i32, i32
  }
  func.func @transform_2(%arg0: i32) -> (i32, i32) {
    %c0_i32 = arith.constant 0 : i32
    %c0_i32_0 = arith.constant 0 : i32
    %c0_i32_1 = arith.constant 0 : i32
    return %c0_i32, %c0_i32_0 : i32, i32
  }
  func.func @transform_3(%arg0: i32) -> (i32, i32, i32, i32) {
    %c0_i32 = arith.constant 0 : i32
    %c0_i32_0 = arith.constant 0 : i32
    %c0_i32_1 = arith.constant 0 : i32
    %c0_i32_2 = arith.constant 0 : i32
    return %arg0, %c0_i32, %c0_i32_0, %c0_i32_1 : i32, i32, i32, i32
  }
}

module attributes {stable_mosaic.version = 11 : i64} {
  func.func @_conv3x3_fused_kernel(%arg0: i32, %arg1: memref<1x3x3x16xbf16, #tpu.memory_space<vmem>>, %arg2: memref<9x16x32xbf16, #tpu.memory_space<vmem>>, %arg3: memref<1x32xf32, #tpu.memory_space<vmem>>, %arg4: memref<8x8xbf16, #tpu.memory_space<vmem>>, %arg5: memref<1x8xf32, #tpu.memory_space<vmem>>, %arg6: memref<1x1x1x32xbf16, #tpu.memory_space<vmem>>) attributes {dimension_semantics = [#tpu.dimension_semantics<parallel>], iteration_bounds = array<i64: 2>, scalar_prefetch = 0 : i64, scratch_operands = 0 : i64, tpu.core_type = #tpu.core_type<tc>, window_params = [{transform_indices = @transform_0, window_bounds = array<i64: 1, 3, 3, 16>}, {pipeline_mode = #tpu.pipeline_mode<synchronous>, transform_indices = @transform_1, window_bounds = array<i64: 9, 16, 32>}, {pipeline_mode = #tpu.pipeline_mode<synchronous>, transform_indices = @transform_2, window_bounds = array<i64: 1, 32>}, {pipeline_mode = #tpu.pipeline_mode<synchronous>, transform_indices = @transform_3, window_bounds = array<i64: 8, 8>}, {pipeline_mode = #tpu.pipeline_mode<synchronous>, transform_indices = @transform_4, window_bounds = array<i64: 1, 8>}, {transform_indices = @transform_5, window_bounds = array<i64: 1, 1, 1, 32>}]} {
    %c0 = arith.constant 0 : index
    %c0_0 = arith.constant 0 : index
    %c0_1 = arith.constant 0 : index
    %c0_2 = arith.constant 0 : index
    %0 = vector.load %arg1[%c0, %c0_0, %c0_1, %c0_2] : memref<1x3x3x16xbf16, #tpu.memory_space<vmem>>, vector<1x3x3x16xbf16>
    %1 = vector.shape_cast %0 : vector<1x3x3x16xbf16> to vector<3x3x16xbf16>
    %cst = arith.constant 0.000000e+00 : f32
    %2 = vector.broadcast %cst : f32 to vector<1x32xf32>
    %3 = vector.extract_strided_slice %1 {offsets = [0, 0, 0], sizes = [1, 1, 16], strides = [1, 1, 1]} : vector<3x3x16xbf16> to vector<1x1x16xbf16>
    %4 = vector.shape_cast %3 : vector<1x1x16xbf16> to vector<1x16xbf16>
    %c0_3 = arith.constant 0 : index
    %c0_4 = arith.constant 0 : index
    %c0_5 = arith.constant 0 : index
    %5 = vector.load %arg2[%c0_3, %c0_4, %c0_5] : memref<9x16x32xbf16, #tpu.memory_space<vmem>>, vector<1x16x32xbf16>
    %6 = vector.shape_cast %5 : vector<1x16x32xbf16> to vector<16x32xbf16>
    %cst_6 = arith.constant dense<0.000000e+00> : vector<1x32xf32>
    %7 = tpu.matmul %4, %6, %cst_6 {dimension_numbers = #tpu.dot_dimension_numbers<[1], [0], [0], [1], [0, 0, 1, 1], [], []>} : vector<1x16xbf16>, vector<16x32xbf16>, vector<1x32xf32> -> vector<1x32xf32>
    %8 = arith.addf %2, %7 : vector<1x32xf32>
    %9 = vector.extract_strided_slice %1 {offsets = [0, 1, 0], sizes = [1, 1, 16], strides = [1, 1, 1]} : vector<3x3x16xbf16> to vector<1x1x16xbf16>
    %10 = vector.shape_cast %9 : vector<1x1x16xbf16> to vector<1x16xbf16>
    %c1 = arith.constant 1 : index
    %c0_7 = arith.constant 0 : index
    %c0_8 = arith.constant 0 : index
    %11 = vector.load %arg2[%c1, %c0_7, %c0_8] : memref<9x16x32xbf16, #tpu.memory_space<vmem>>, vector<1x16x32xbf16>
    %12 = vector.shape_cast %11 : vector<1x16x32xbf16> to vector<16x32xbf16>
    %cst_9 = arith.constant dense<0.000000e+00> : vector<1x32xf32>
    %13 = tpu.matmul %10, %12, %cst_9 {dimension_numbers = #tpu.dot_dimension_numbers<[1], [0], [0], [1], [0, 0, 1, 1], [], []>} : vector<1x16xbf16>, vector<16x32xbf16>, vector<1x32xf32> -> vector<1x32xf32>
    %14 = arith.addf %8, %13 : vector<1x32xf32>
    %15 = vector.extract_strided_slice %1 {offsets = [0, 2, 0], sizes = [1, 1, 16], strides = [1, 1, 1]} : vector<3x3x16xbf16> to vector<1x1x16xbf16>
    %16 = vector.shape_cast %15 : vector<1x1x16xbf16> to vector<1x16xbf16>
    %c2 = arith.constant 2 : index
    %c0_10 = arith.constant 0 : index
    %c0_11 = arith.constant 0 : index
    %17 = vector.load %arg2[%c2, %c0_10, %c0_11] : memref<9x16x32xbf16, #tpu.memory_space<vmem>>, vector<1x16x32xbf16>
    %18 = vector.shape_cast %17 : vector<1x16x32xbf16> to vector<16x32xbf16>
    %cst_12 = arith.constant dense<0.000000e+00> : vector<1x32xf32>
    %19 = tpu.matmul %16, %18, %cst_12 {dimension_numbers = #tpu.dot_dimension_numbers<[1], [0], [0], [1], [0, 0, 1, 1], [], []>} : vector<1x16xbf16>, vector<16x32xbf16>, vector<1x32xf32> -> vector<1x32xf32>
    %20 = arith.addf %14, %19 : vector<1x32xf32>
    %21 = vector.extract_strided_slice %1 {offsets = [1, 0, 0], sizes = [1, 1, 16], strides = [1, 1, 1]} : vector<3x3x16xbf16> to vector<1x1x16xbf16>
    %22 = vector.shape_cast %21 : vector<1x1x16xbf16> to vector<1x16xbf16>
    %c3 = arith.constant 3 : index
    %c0_13 = arith.constant 0 : index
    %c0_14 = arith.constant 0 : index
    %23 = vector.load %arg2[%c3, %c0_13, %c0_14] : memref<9x16x32xbf16, #tpu.memory_space<vmem>>, vector<1x16x32xbf16>
    %24 = vector.shape_cast %23 : vector<1x16x32xbf16> to vector<16x32xbf16>
    %cst_15 = arith.constant dense<0.000000e+00> : vector<1x32xf32>
    %25 = tpu.matmul %22, %24, %cst_15 {dimension_numbers = #tpu.dot_dimension_numbers<[1], [0], [0], [1], [0, 0, 1, 1], [], []>} : vector<1x16xbf16>, vector<16x32xbf16>, vector<1x32xf32> -> vector<1x32xf32>
    %26 = arith.addf %20, %25 : vector<1x32xf32>
    %27 = vector.extract_strided_slice %1 {offsets = [1, 1, 0], sizes = [1, 1, 16], strides = [1, 1, 1]} : vector<3x3x16xbf16> to vector<1x1x16xbf16>
    %28 = vector.shape_cast %27 : vector<1x1x16xbf16> to vector<1x16xbf16>
    %c4 = arith.constant 4 : index
    %c0_16 = arith.constant 0 : index
    %c0_17 = arith.constant 0 : index
    %29 = vector.load %arg2[%c4, %c0_16, %c0_17] : memref<9x16x32xbf16, #tpu.memory_space<vmem>>, vector<1x16x32xbf16>
    %30 = vector.shape_cast %29 : vector<1x16x32xbf16> to vector<16x32xbf16>
    %cst_18 = arith.constant dense<0.000000e+00> : vector<1x32xf32>
    %31 = tpu.matmul %28, %30, %cst_18 {dimension_numbers = #tpu.dot_dimension_numbers<[1], [0], [0], [1], [0, 0, 1, 1], [], []>} : vector<1x16xbf16>, vector<16x32xbf16>, vector<1x32xf32> -> vector<1x32xf32>
    %32 = arith.addf %26, %31 : vector<1x32xf32>
    %33 = vector.extract_strided_slice %1 {offsets = [1, 2, 0], sizes = [1, 1, 16], strides = [1, 1, 1]} : vector<3x3x16xbf16> to vector<1x1x16xbf16>
    %34 = vector.shape_cast %33 : vector<1x1x16xbf16> to vector<1x16xbf16>
    %c5 = arith.constant 5 : index
    %c0_19 = arith.constant 0 : index
    %c0_20 = arith.constant 0 : index
    %35 = vector.load %arg2[%c5, %c0_19, %c0_20] : memref<9x16x32xbf16, #tpu.memory_space<vmem>>, vector<1x16x32xbf16>
    %36 = vector.shape_cast %35 : vector<1x16x32xbf16> to vector<16x32xbf16>
    %cst_21 = arith.constant dense<0.000000e+00> : vector<1x32xf32>
    %37 = tpu.matmul %34, %36, %cst_21 {dimension_numbers = #tpu.dot_dimension_numbers<[1], [0], [0], [1], [0, 0, 1, 1], [], []>} : vector<1x16xbf16>, vector<16x32xbf16>, vector<1x32xf32> -> vector<1x32xf32>
    %38 = arith.addf %32, %37 : vector<1x32xf32>
    %39 = vector.extract_strided_slice %1 {offsets = [2, 0, 0], sizes = [1, 1, 16], strides = [1, 1, 1]} : vector<3x3x16xbf16> to vector<1x1x16xbf16>
    %40 = vector.shape_cast %39 : vector<1x1x16xbf16> to vector<1x16xbf16>
    %c6 = arith.constant 6 : index
    %c0_22 = arith.constant 0 : index
    %c0_23 = arith.constant 0 : index
    %41 = vector.load %arg2[%c6, %c0_22, %c0_23] : memref<9x16x32xbf16, #tpu.memory_space<vmem>>, vector<1x16x32xbf16>
    %42 = vector.shape_cast %41 : vector<1x16x32xbf16> to vector<16x32xbf16>
    %cst_24 = arith.constant dense<0.000000e+00> : vector<1x32xf32>
    %43 = tpu.matmul %40, %42, %cst_24 {dimension_numbers = #tpu.dot_dimension_numbers<[1], [0], [0], [1], [0, 0, 1, 1], [], []>} : vector<1x16xbf16>, vector<16x32xbf16>, vector<1x32xf32> -> vector<1x32xf32>
    %44 = arith.addf %38, %43 : vector<1x32xf32>
    %45 = vector.extract_strided_slice %1 {offsets = [2, 1, 0], sizes = [1, 1, 16], strides = [1, 1, 1]} : vector<3x3x16xbf16> to vector<1x1x16xbf16>
    %46 = vector.shape_cast %45 : vector<1x1x16xbf16> to vector<1x16xbf16>
    %c7 = arith.constant 7 : index
    %c0_25 = arith.constant 0 : index
    %c0_26 = arith.constant 0 : index
    %47 = vector.load %arg2[%c7, %c0_25, %c0_26] : memref<9x16x32xbf16, #tpu.memory_space<vmem>>, vector<1x16x32xbf16>
    %48 = vector.shape_cast %47 : vector<1x16x32xbf16> to vector<16x32xbf16>
    %cst_27 = arith.constant dense<0.000000e+00> : vector<1x32xf32>
    %49 = tpu.matmul %46, %48, %cst_27 {dimension_numbers = #tpu.dot_dimension_numbers<[1], [0], [0], [1], [0, 0, 1, 1], [], []>} : vector<1x16xbf16>, vector<16x32xbf16>, vector<1x32xf32> -> vector<1x32xf32>
    %50 = arith.addf %44, %49 : vector<1x32xf32>
    %51 = vector.extract_strided_slice %1 {offsets = [2, 2, 0], sizes = [1, 1, 16], strides = [1, 1, 1]} : vector<3x3x16xbf16> to vector<1x1x16xbf16>
    %52 = vector.shape_cast %51 : vector<1x1x16xbf16> to vector<1x16xbf16>
    %c8 = arith.constant 8 : index
    %c0_28 = arith.constant 0 : index
    %c0_29 = arith.constant 0 : index
    %53 = vector.load %arg2[%c8, %c0_28, %c0_29] : memref<9x16x32xbf16, #tpu.memory_space<vmem>>, vector<1x16x32xbf16>
    %54 = vector.shape_cast %53 : vector<1x16x32xbf16> to vector<16x32xbf16>
    %cst_30 = arith.constant dense<0.000000e+00> : vector<1x32xf32>
    %55 = tpu.matmul %52, %54, %cst_30 {dimension_numbers = #tpu.dot_dimension_numbers<[1], [0], [0], [1], [0, 0, 1, 1], [], []>} : vector<1x16xbf16>, vector<16x32xbf16>, vector<1x32xf32> -> vector<1x32xf32>
    %56 = arith.addf %50, %55 : vector<1x32xf32>
    %c0_31 = arith.constant 0 : index
    %c0_32 = arith.constant 0 : index
    %57 = vector.load %arg3[%c0_31, %c0_32] : memref<1x32xf32, #tpu.memory_space<vmem>>, vector<1x32xf32>
    %58 = arith.addf %56, %57 : vector<1x32xf32>
    %59 = vector.extract_strided_slice %58 {offsets = [0, 0], sizes = [1, 8], strides = [1, 1]} : vector<1x32xf32> to vector<1x8xf32>
    %60 = arith.mulf %59, %59 : vector<1x8xf32>
    %61 = arith.truncf %60 : vector<1x8xf32> to vector<1x8xbf16>
    %c0_33 = arith.constant 0 : index
    %c0_34 = arith.constant 0 : index
    %62 = vector.load %arg4[%c0_33, %c0_34] : memref<8x8xbf16, #tpu.memory_space<vmem>>, vector<8x8xbf16>
    %cst_35 = arith.constant dense<0.000000e+00> : vector<1x8xf32>
    %63 = tpu.matmul %61, %62, %cst_35 {dimension_numbers = #tpu.dot_dimension_numbers<[1], [0], [0], [1], [0, 0, 1, 1], [], []>} : vector<1x8xbf16>, vector<8x8xbf16>, vector<1x8xf32> -> vector<1x8xf32>
    %c0_36 = arith.constant 0 : index
    %c0_37 = arith.constant 0 : index
    %64 = vector.load %arg5[%c0_36, %c0_37] : memref<1x8xf32, #tpu.memory_space<vmem>>, vector<1x8xf32>
    %65 = arith.addf %63, %64 : vector<1x8xf32>
    %66 = math.sqrt %65 : vector<1x8xf32>
    %67 = arith.mulf %59, %66 : vector<1x8xf32>
    %68 = vector.shape_cast %67 : vector<1x8xf32> to vector<1x1x8xf32>
    %69 = arith.truncf %68 : vector<1x1x8xf32> to vector<1x1x8xbf16>
    %c0_38 = arith.constant 0 : index
    %c0_39 = arith.constant 0 : index
    %c0_40 = arith.constant 0 : index
    %c0_41 = arith.constant 0 : index
    %70 = vector.load %arg6[%c0_38, %c0_39, %c0_40, %c0_41] : memref<1x1x1x32xbf16, #tpu.memory_space<vmem>>, vector<1x1x1x8xbf16>
    %71 = vector.shape_cast %70 : vector<1x1x1x8xbf16> to vector<1x1x8xbf16>
    %72 = vector.shape_cast %69 : vector<1x1x8xbf16> to vector<1x1x1x8xbf16>
    tpu.vector_store %arg6[%c0_38, %c0_39, %c0_40, %c0_41], %72 {strides = array<i32>} : memref<1x1x1x32xbf16, #tpu.memory_space<vmem>>, vector<1x1x1x8xbf16>,
    %73 = vector.extract_strided_slice %58 {offsets = [0, 8], sizes = [1, 8], strides = [1, 1]} : vector<1x32xf32> to vector<1x8xf32>
    %74 = arith.mulf %73, %73 : vector<1x8xf32>
    %75 = arith.truncf %74 : vector<1x8xf32> to vector<1x8xbf16>
    %c0_42 = arith.constant 0 : index
    %c0_43 = arith.constant 0 : index
    %76 = vector.load %arg4[%c0_42, %c0_43] : memref<8x8xbf16, #tpu.memory_space<vmem>>, vector<8x8xbf16>
    %cst_44 = arith.constant dense<0.000000e+00> : vector<1x8xf32>
    %77 = tpu.matmul %75, %76, %cst_44 {dimension_numbers = #tpu.dot_dimension_numbers<[1], [0], [0], [1], [0, 0, 1, 1], [], []>} : vector<1x8xbf16>, vector<8x8xbf16>, vector<1x8xf32> -> vector<1x8xf32>
    %c0_45 = arith.constant 0 : index
    %c0_46 = arith.constant 0 : index
    %78 = vector.load %arg5[%c0_45, %c0_46] : memref<1x8xf32, #tpu.memory_space<vmem>>, vector<1x8xf32>
    %79 = arith.addf %77, %78 : vector<1x8xf32>
    %80 = math.sqrt %79 : vector<1x8xf32>
    %81 = arith.mulf %73, %80 : vector<1x8xf32>
    %82 = vector.shape_cast %81 : vector<1x8xf32> to vector<1x1x8xf32>
    %83 = arith.truncf %82 : vector<1x1x8xf32> to vector<1x1x8xbf16>
    %c0_47 = arith.constant 0 : index
    %c0_48 = arith.constant 0 : index
    %c0_49 = arith.constant 0 : index
    %c8_50 = arith.constant 8 : index
    %84 = vector.load %arg6[%c0_47, %c0_48, %c0_49, %c8_50] : memref<1x1x1x32xbf16, #tpu.memory_space<vmem>>, vector<1x1x1x8xbf16>
    %85 = vector.shape_cast %84 : vector<1x1x1x8xbf16> to vector<1x1x8xbf16>
    %86 = vector.shape_cast %83 : vector<1x1x8xbf16> to vector<1x1x1x8xbf16>
    tpu.vector_store %arg6[%c0_47, %c0_48, %c0_49, %c8_50], %86 {strides = array<i32>} : memref<1x1x1x32xbf16, #tpu.memory_space<vmem>>, vector<1x1x1x8xbf16>,
    %87 = vector.extract_strided_slice %58 {offsets = [0, 16], sizes = [1, 8], strides = [1, 1]} : vector<1x32xf32> to vector<1x8xf32>
    %88 = arith.mulf %87, %87 : vector<1x8xf32>
    %89 = arith.truncf %88 : vector<1x8xf32> to vector<1x8xbf16>
    %c0_51 = arith.constant 0 : index
    %c0_52 = arith.constant 0 : index
    %90 = vector.load %arg4[%c0_51, %c0_52] : memref<8x8xbf16, #tpu.memory_space<vmem>>, vector<8x8xbf16>
    %cst_53 = arith.constant dense<0.000000e+00> : vector<1x8xf32>
    %91 = tpu.matmul %89, %90, %cst_53 {dimension_numbers = #tpu.dot_dimension_numbers<[1], [0], [0], [1], [0, 0, 1, 1], [], []>} : vector<1x8xbf16>, vector<8x8xbf16>, vector<1x8xf32> -> vector<1x8xf32>
    %c0_54 = arith.constant 0 : index
    %c0_55 = arith.constant 0 : index
    %92 = vector.load %arg5[%c0_54, %c0_55] : memref<1x8xf32, #tpu.memory_space<vmem>>, vector<1x8xf32>
    %93 = arith.addf %91, %92 : vector<1x8xf32>
    %94 = math.sqrt %93 : vector<1x8xf32>
    %95 = arith.mulf %87, %94 : vector<1x8xf32>
    %96 = vector.shape_cast %95 : vector<1x8xf32> to vector<1x1x8xf32>
    %97 = arith.truncf %96 : vector<1x1x8xf32> to vector<1x1x8xbf16>
    %c0_56 = arith.constant 0 : index
    %c0_57 = arith.constant 0 : index
    %c0_58 = arith.constant 0 : index
    %c16 = arith.constant 16 : index
    %98 = vector.load %arg6[%c0_56, %c0_57, %c0_58, %c16] : memref<1x1x1x32xbf16, #tpu.memory_space<vmem>>, vector<1x1x1x8xbf16>
    %99 = vector.shape_cast %98 : vector<1x1x1x8xbf16> to vector<1x1x8xbf16>
    %100 = vector.shape_cast %97 : vector<1x1x8xbf16> to vector<1x1x1x8xbf16>
    tpu.vector_store %arg6[%c0_56, %c0_57, %c0_58, %c16], %100 {strides = array<i32>} : memref<1x1x1x32xbf16, #tpu.memory_space<vmem>>, vector<1x1x1x8xbf16>,
    %101 = vector.extract_strided_slice %58 {offsets = [0, 24], sizes = [1, 8], strides = [1, 1]} : vector<1x32xf32> to vector<1x8xf32>
    %102 = arith.mulf %101, %101 : vector<1x8xf32>
    %103 = arith.truncf %102 : vector<1x8xf32> to vector<1x8xbf16>
    %c0_59 = arith.constant 0 : index
    %c0_60 = arith.constant 0 : index
    %104 = vector.load %arg4[%c0_59, %c0_60] : memref<8x8xbf16, #tpu.memory_space<vmem>>, vector<8x8xbf16>
    %cst_61 = arith.constant dense<0.000000e+00> : vector<1x8xf32>
    %105 = tpu.matmul %103, %104, %cst_61 {dimension_numbers = #tpu.dot_dimension_numbers<[1], [0], [0], [1], [0, 0, 1, 1], [], []>} : vector<1x8xbf16>, vector<8x8xbf16>, vector<1x8xf32> -> vector<1x8xf32>
    %c0_62 = arith.constant 0 : index
    %c0_63 = arith.constant 0 : index
    %106 = vector.load %arg5[%c0_62, %c0_63] : memref<1x8xf32, #tpu.memory_space<vmem>>, vector<1x8xf32>
    %107 = arith.addf %105, %106 : vector<1x8xf32>
    %108 = math.sqrt %107 : vector<1x8xf32>
    %109 = arith.mulf %101, %108 : vector<1x8xf32>
    %110 = vector.shape_cast %109 : vector<1x8xf32> to vector<1x1x8xf32>
    %111 = arith.truncf %110 : vector<1x1x8xf32> to vector<1x1x8xbf16>
    %c0_64 = arith.constant 0 : index
    %c0_65 = arith.constant 0 : index
    %c0_66 = arith.constant 0 : index
    %c24 = arith.constant 24 : index
    %112 = vector.load %arg6[%c0_64, %c0_65, %c0_66, %c24] : memref<1x1x1x32xbf16, #tpu.memory_space<vmem>>, vector<1x1x1x8xbf16>
    %113 = vector.shape_cast %112 : vector<1x1x1x8xbf16> to vector<1x1x8xbf16>
    %114 = vector.shape_cast %111 : vector<1x1x8xbf16> to vector<1x1x1x8xbf16>
    tpu.vector_store %arg6[%c0_64, %c0_65, %c0_66, %c24], %114 {strides = array<i32>} : memref<1x1x1x32xbf16, #tpu.memory_space<vmem>>, vector<1x1x1x8xbf16>,
    return
  }
  func.func @transform_0(%arg0: i32) -> (i32, i32, i32, i32) {
    %c0_i32 = arith.constant 0 : i32
    %c0_i32_0 = arith.constant 0 : i32
    %c0_i32_1 = arith.constant 0 : i32
    %c0_i32_2 = arith.constant 0 : i32
    return %arg0, %c0_i32, %c0_i32_0, %c0_i32_1 : i32, i32, i32, i32
  }
  func.func @transform_1(%arg0: i32) -> (i32, i32, i32) {
    %c0_i32 = arith.constant 0 : i32
    %c0_i32_0 = arith.constant 0 : i32
    %c0_i32_1 = arith.constant 0 : i32
    %c0_i32_2 = arith.constant 0 : i32
    return %c0_i32, %c0_i32_0, %c0_i32_1 : i32, i32, i32
  }
  func.func @transform_2(%arg0: i32) -> (i32, i32) {
    %c0_i32 = arith.constant 0 : i32
    %c0_i32_0 = arith.constant 0 : i32
    %c0_i32_1 = arith.constant 0 : i32
    return %c0_i32, %c0_i32_0 : i32, i32
  }
  func.func @transform_3(%arg0: i32) -> (i32, i32) {
    %c0_i32 = arith.constant 0 : i32
    %c0_i32_0 = arith.constant 0 : i32
    %c0_i32_1 = arith.constant 0 : i32
    return %c0_i32, %c0_i32_0 : i32, i32
  }
  func.func @transform_4(%arg0: i32) -> (i32, i32) {
    %c0_i32 = arith.constant 0 : i32
    %c0_i32_0 = arith.constant 0 : i32
    %c0_i32_1 = arith.constant 0 : i32
    return %c0_i32, %c0_i32_0 : i32, i32
  }
  func.func @transform_5(%arg0: i32) -> (i32, i32, i32, i32) {
    %c0_i32 = arith.constant 0 : i32
    %c0_i32_0 = arith.constant 0 : i32
    %c0_i32_1 = arith.constant 0 : i32
    %c0_i32_2 = arith.constant 0 : i32
    return %arg0, %c0_i32, %c0_i32_0, %c0_i32_1 : i32, i32, i32, i32
  }
}

module attributes {stable_mosaic.version = 11 : i64} {
  func.func @_conv3x3_fused_kernel(%arg0: i32, %arg1: memref<1x4x4x8xbf16, #tpu.memory_space<vmem>>, %arg2: memref<9x8x32xbf16, #tpu.memory_space<vmem>>, %arg3: memref<1x32xf32, #tpu.memory_space<vmem>>, %arg4: memref<8x8xbf16, #tpu.memory_space<vmem>>, %arg5: memref<1x8xf32, #tpu.memory_space<vmem>>, %arg6: memref<1x2x2x32xbf16, #tpu.memory_space<vmem>>) attributes {dimension_semantics = [#tpu.dimension_semantics<parallel>], iteration_bounds = array<i64: 2>, scalar_prefetch = 0 : i64, scratch_operands = 0 : i64, tpu.core_type = #tpu.core_type<tc>, window_params = [{transform_indices = @transform_0, window_bounds = array<i64: 1, 4, 4, 8>}, {pipeline_mode = #tpu.pipeline_mode<synchronous>, transform_indices = @transform_1, window_bounds = array<i64: 9, 8, 32>}, {pipeline_mode = #tpu.pipeline_mode<synchronous>, transform_indices = @transform_2, window_bounds = array<i64: 1, 32>}, {pipeline_mode = #tpu.pipeline_mode<synchronous>, transform_indices = @transform_3, window_bounds = array<i64: 8, 8>}, {pipeline_mode = #tpu.pipeline_mode<synchronous>, transform_indices = @transform_4, window_bounds = array<i64: 1, 8>}, {transform_indices = @transform_5, window_bounds = array<i64: 1, 2, 2, 32>}]} {
    %c0 = arith.constant 0 : index
    %c0_0 = arith.constant 0 : index
    %c0_1 = arith.constant 0 : index
    %c0_2 = arith.constant 0 : index
    %0 = vector.load %arg1[%c0, %c0_0, %c0_1, %c0_2] : memref<1x4x4x8xbf16, #tpu.memory_space<vmem>>, vector<1x4x4x8xbf16>
    %1 = vector.shape_cast %0 : vector<1x4x4x8xbf16> to vector<4x4x8xbf16>
    %cst = arith.constant 0.000000e+00 : f32
    %2 = vector.broadcast %cst : f32 to vector<4x32xf32>
    %3 = vector.extract_strided_slice %1 {offsets = [0, 0, 0], sizes = [2, 2, 8], strides = [1, 1, 1]} : vector<4x4x8xbf16> to vector<2x2x8xbf16>
    %4 = vector.shape_cast %3 : vector<2x2x8xbf16> to vector<4x8xbf16>
    %c0_3 = arith.constant 0 : index
    %c0_4 = arith.constant 0 : index
    %c0_5 = arith.constant 0 : index
    %5 = vector.load %arg2[%c0_3, %c0_4, %c0_5] : memref<9x8x32xbf16, #tpu.memory_space<vmem>>, vector<1x8x32xbf16>
    %6 = vector.shape_cast %5 : vector<1x8x32xbf16> to vector<8x32xbf16>
    %cst_6 = arith.constant dense<0.000000e+00> : vector<4x32xf32>
    %7 = tpu.matmul %4, %6, %cst_6 {dimension_numbers = #tpu.dot_dimension_numbers<[1], [0], [0], [1], [0, 0, 1, 1], [], []>} : vector<4x8xbf16>, vector<8x32xbf16>, vector<4x32xf32> -> vector<4x32xf32>
    %8 = arith.addf %2, %7 : vector<4x32xf32>
    %9 = vector.extract_strided_slice %1 {offsets = [0, 1, 0], sizes = [2, 2, 8], strides = [1, 1, 1]} : vector<4x4x8xbf16> to vector<2x2x8xbf16>
    %10 = vector.shape_cast %9 : vector<2x2x8xbf16> to vector<4x8xbf16>
    %c1 = arith.constant 1 : index
    %c0_7 = arith.constant 0 : index
    %c0_8 = arith.constant 0 : index
    %11 = vector.load %arg2[%c1, %c0_7, %c0_8] : memref<9x8x32xbf16, #tpu.memory_space<vmem>>, vector<1x8x32xbf16>
    %12 = vector.shape_cast %11 : vector<1x8x32xbf16> to vector<8x32xbf16>
    %cst_9 = arith.constant dense<0.000000e+00> : vector<4x32xf32>
    %13 = tpu.matmul %10, %12, %cst_9 {dimension_numbers = #tpu.dot_dimension_numbers<[1], [0], [0], [1], [0, 0, 1, 1], [], []>} : vector<4x8xbf16>, vector<8x32xbf16>, vector<4x32xf32> -> vector<4x32xf32>
    %14 = arith.addf %8, %13 : vector<4x32xf32>
    %15 = vector.extract_strided_slice %1 {offsets = [0, 2, 0], sizes = [2, 2, 8], strides = [1, 1, 1]} : vector<4x4x8xbf16> to vector<2x2x8xbf16>
    %16 = vector.shape_cast %15 : vector<2x2x8xbf16> to vector<4x8xbf16>
    %c2 = arith.constant 2 : index
    %c0_10 = arith.constant 0 : index
    %c0_11 = arith.constant 0 : index
    %17 = vector.load %arg2[%c2, %c0_10, %c0_11] : memref<9x8x32xbf16, #tpu.memory_space<vmem>>, vector<1x8x32xbf16>
    %18 = vector.shape_cast %17 : vector<1x8x32xbf16> to vector<8x32xbf16>
    %cst_12 = arith.constant dense<0.000000e+00> : vector<4x32xf32>
    %19 = tpu.matmul %16, %18, %cst_12 {dimension_numbers = #tpu.dot_dimension_numbers<[1], [0], [0], [1], [0, 0, 1, 1], [], []>} : vector<4x8xbf16>, vector<8x32xbf16>, vector<4x32xf32> -> vector<4x32xf32>
    %20 = arith.addf %14, %19 : vector<4x32xf32>
    %21 = vector.extract_strided_slice %1 {offsets = [1, 0, 0], sizes = [2, 2, 8], strides = [1, 1, 1]} : vector<4x4x8xbf16> to vector<2x2x8xbf16>
    %22 = vector.shape_cast %21 : vector<2x2x8xbf16> to vector<4x8xbf16>
    %c3 = arith.constant 3 : index
    %c0_13 = arith.constant 0 : index
    %c0_14 = arith.constant 0 : index
    %23 = vector.load %arg2[%c3, %c0_13, %c0_14] : memref<9x8x32xbf16, #tpu.memory_space<vmem>>, vector<1x8x32xbf16>
    %24 = vector.shape_cast %23 : vector<1x8x32xbf16> to vector<8x32xbf16>
    %cst_15 = arith.constant dense<0.000000e+00> : vector<4x32xf32>
    %25 = tpu.matmul %22, %24, %cst_15 {dimension_numbers = #tpu.dot_dimension_numbers<[1], [0], [0], [1], [0, 0, 1, 1], [], []>} : vector<4x8xbf16>, vector<8x32xbf16>, vector<4x32xf32> -> vector<4x32xf32>
    %26 = arith.addf %20, %25 : vector<4x32xf32>
    %27 = vector.extract_strided_slice %1 {offsets = [1, 1, 0], sizes = [2, 2, 8], strides = [1, 1, 1]} : vector<4x4x8xbf16> to vector<2x2x8xbf16>
    %28 = vector.shape_cast %27 : vector<2x2x8xbf16> to vector<4x8xbf16>
    %c4 = arith.constant 4 : index
    %c0_16 = arith.constant 0 : index
    %c0_17 = arith.constant 0 : index
    %29 = vector.load %arg2[%c4, %c0_16, %c0_17] : memref<9x8x32xbf16, #tpu.memory_space<vmem>>, vector<1x8x32xbf16>
    %30 = vector.shape_cast %29 : vector<1x8x32xbf16> to vector<8x32xbf16>
    %cst_18 = arith.constant dense<0.000000e+00> : vector<4x32xf32>
    %31 = tpu.matmul %28, %30, %cst_18 {dimension_numbers = #tpu.dot_dimension_numbers<[1], [0], [0], [1], [0, 0, 1, 1], [], []>} : vector<4x8xbf16>, vector<8x32xbf16>, vector<4x32xf32> -> vector<4x32xf32>
    %32 = arith.addf %26, %31 : vector<4x32xf32>
    %33 = vector.extract_strided_slice %1 {offsets = [1, 2, 0], sizes = [2, 2, 8], strides = [1, 1, 1]} : vector<4x4x8xbf16> to vector<2x2x8xbf16>
    %34 = vector.shape_cast %33 : vector<2x2x8xbf16> to vector<4x8xbf16>
    %c5 = arith.constant 5 : index
    %c0_19 = arith.constant 0 : index
    %c0_20 = arith.constant 0 : index
    %35 = vector.load %arg2[%c5, %c0_19, %c0_20] : memref<9x8x32xbf16, #tpu.memory_space<vmem>>, vector<1x8x32xbf16>
    %36 = vector.shape_cast %35 : vector<1x8x32xbf16> to vector<8x32xbf16>
    %cst_21 = arith.constant dense<0.000000e+00> : vector<4x32xf32>
    %37 = tpu.matmul %34, %36, %cst_21 {dimension_numbers = #tpu.dot_dimension_numbers<[1], [0], [0], [1], [0, 0, 1, 1], [], []>} : vector<4x8xbf16>, vector<8x32xbf16>, vector<4x32xf32> -> vector<4x32xf32>
    %38 = arith.addf %32, %37 : vector<4x32xf32>
    %39 = vector.extract_strided_slice %1 {offsets = [2, 0, 0], sizes = [2, 2, 8], strides = [1, 1, 1]} : vector<4x4x8xbf16> to vector<2x2x8xbf16>
    %40 = vector.shape_cast %39 : vector<2x2x8xbf16> to vector<4x8xbf16>
    %c6 = arith.constant 6 : index
    %c0_22 = arith.constant 0 : index
    %c0_23 = arith.constant 0 : index
    %41 = vector.load %arg2[%c6, %c0_22, %c0_23] : memref<9x8x32xbf16, #tpu.memory_space<vmem>>, vector<1x8x32xbf16>
    %42 = vector.shape_cast %41 : vector<1x8x32xbf16> to vector<8x32xbf16>
    %cst_24 = arith.constant dense<0.000000e+00> : vector<4x32xf32>
    %43 = tpu.matmul %40, %42, %cst_24 {dimension_numbers = #tpu.dot_dimension_numbers<[1], [0], [0], [1], [0, 0, 1, 1], [], []>} : vector<4x8xbf16>, vector<8x32xbf16>, vector<4x32xf32> -> vector<4x32xf32>
    %44 = arith.addf %38, %43 : vector<4x32xf32>
    %45 = vector.extract_strided_slice %1 {offsets = [2, 1, 0], sizes = [2, 2, 8], strides = [1, 1, 1]} : vector<4x4x8xbf16> to vector<2x2x8xbf16>
    %46 = vector.shape_cast %45 : vector<2x2x8xbf16> to vector<4x8xbf16>
    %c7 = arith.constant 7 : index
    %c0_25 = arith.constant 0 : index
    %c0_26 = arith.constant 0 : index
    %47 = vector.load %arg2[%c7, %c0_25, %c0_26] : memref<9x8x32xbf16, #tpu.memory_space<vmem>>, vector<1x8x32xbf16>
    %48 = vector.shape_cast %47 : vector<1x8x32xbf16> to vector<8x32xbf16>
    %cst_27 = arith.constant dense<0.000000e+00> : vector<4x32xf32>
    %49 = tpu.matmul %46, %48, %cst_27 {dimension_numbers = #tpu.dot_dimension_numbers<[1], [0], [0], [1], [0, 0, 1, 1], [], []>} : vector<4x8xbf16>, vector<8x32xbf16>, vector<4x32xf32> -> vector<4x32xf32>
    %50 = arith.addf %44, %49 : vector<4x32xf32>
    %51 = vector.extract_strided_slice %1 {offsets = [2, 2, 0], sizes = [2, 2, 8], strides = [1, 1, 1]} : vector<4x4x8xbf16> to vector<2x2x8xbf16>
    %52 = vector.shape_cast %51 : vector<2x2x8xbf16> to vector<4x8xbf16>
    %c8 = arith.constant 8 : index
    %c0_28 = arith.constant 0 : index
    %c0_29 = arith.constant 0 : index
    %53 = vector.load %arg2[%c8, %c0_28, %c0_29] : memref<9x8x32xbf16, #tpu.memory_space<vmem>>, vector<1x8x32xbf16>
    %54 = vector.shape_cast %53 : vector<1x8x32xbf16> to vector<8x32xbf16>
    %cst_30 = arith.constant dense<0.000000e+00> : vector<4x32xf32>
    %55 = tpu.matmul %52, %54, %cst_30 {dimension_numbers = #tpu.dot_dimension_numbers<[1], [0], [0], [1], [0, 0, 1, 1], [], []>} : vector<4x8xbf16>, vector<8x32xbf16>, vector<4x32xf32> -> vector<4x32xf32>
    %56 = arith.addf %50, %55 : vector<4x32xf32>
    %c0_31 = arith.constant 0 : index
    %c0_32 = arith.constant 0 : index
    %57 = vector.load %arg3[%c0_31, %c0_32] : memref<1x32xf32, #tpu.memory_space<vmem>>, vector<1x32xf32>
    %58 = vector.broadcast %57 : vector<1x32xf32> to vector<4x32xf32>
    %59 = arith.addf %56, %58 : vector<4x32xf32>
    %60 = vector.extract_strided_slice %59 {offsets = [0, 0], sizes = [4, 8], strides = [1, 1]} : vector<4x32xf32> to vector<4x8xf32>
    %61 = arith.mulf %60, %60 : vector<4x8xf32>
    %62 = arith.truncf %61 : vector<4x8xf32> to vector<4x8xbf16>
    %c0_33 = arith.constant 0 : index
    %c0_34 = arith.constant 0 : index
    %63 = vector.load %arg4[%c0_33, %c0_34] : memref<8x8xbf16, #tpu.memory_space<vmem>>, vector<8x8xbf16>
    %cst_35 = arith.constant dense<0.000000e+00> : vector<4x8xf32>
    %64 = tpu.matmul %62, %63, %cst_35 {dimension_numbers = #tpu.dot_dimension_numbers<[1], [0], [0], [1], [0, 0, 1, 1], [], []>} : vector<4x8xbf16>, vector<8x8xbf16>, vector<4x8xf32> -> vector<4x8xf32>
    %c0_36 = arith.constant 0 : index
    %c0_37 = arith.constant 0 : index
    %65 = vector.load %arg5[%c0_36, %c0_37] : memref<1x8xf32, #tpu.memory_space<vmem>>, vector<1x8xf32>
    %66 = vector.broadcast %65 : vector<1x8xf32> to vector<4x8xf32>
    %67 = arith.addf %64, %66 : vector<4x8xf32>
    %68 = math.sqrt %67 : vector<4x8xf32>
    %69 = arith.mulf %60, %68 : vector<4x8xf32>
    %70 = vector.shape_cast %69 : vector<4x8xf32> to vector<2x2x8xf32>
    %71 = arith.truncf %70 : vector<2x2x8xf32> to vector<2x2x8xbf16>
    %c0_38 = arith.constant 0 : index
    %c0_39 = arith.constant 0 : index
    %c0_40 = arith.constant 0 : index
    %c0_41 = arith.constant 0 : index
    %72 = vector.load %arg6[%c0_38, %c0_39, %c0_40, %c0_41] : memref<1x2x2x32xbf16, #tpu.memory_space<vmem>>, vector<1x2x2x8xbf16>
    %73 = vector.shape_cast %72 : vector<1x2x2x8xbf16> to vector<2x2x8xbf16>
    %74 = vector.shape_cast %71 : vector<2x2x8xbf16> to vector<1x2x2x8xbf16>
    tpu.vector_store %arg6[%c0_38, %c0_39, %c0_40, %c0_41], %74 {strides = array<i32>} : memref<1x2x2x32xbf16, #tpu.memory_space<vmem>>, vector<1x2x2x8xbf16>,
    %75 = vector.extract_strided_slice %59 {offsets = [0, 8], sizes = [4, 8], strides = [1, 1]} : vector<4x32xf32> to vector<4x8xf32>
    %76 = arith.mulf %75, %75 : vector<4x8xf32>
    %77 = arith.truncf %76 : vector<4x8xf32> to vector<4x8xbf16>
    %c0_42 = arith.constant 0 : index
    %c0_43 = arith.constant 0 : index
    %78 = vector.load %arg4[%c0_42, %c0_43] : memref<8x8xbf16, #tpu.memory_space<vmem>>, vector<8x8xbf16>
    %cst_44 = arith.constant dense<0.000000e+00> : vector<4x8xf32>
    %79 = tpu.matmul %77, %78, %cst_44 {dimension_numbers = #tpu.dot_dimension_numbers<[1], [0], [0], [1], [0, 0, 1, 1], [], []>} : vector<4x8xbf16>, vector<8x8xbf16>, vector<4x8xf32> -> vector<4x8xf32>
    %c0_45 = arith.constant 0 : index
    %c0_46 = arith.constant 0 : index
    %80 = vector.load %arg5[%c0_45, %c0_46] : memref<1x8xf32, #tpu.memory_space<vmem>>, vector<1x8xf32>
    %81 = vector.broadcast %80 : vector<1x8xf32> to vector<4x8xf32>
    %82 = arith.addf %79, %81 : vector<4x8xf32>
    %83 = math.sqrt %82 : vector<4x8xf32>
    %84 = arith.mulf %75, %83 : vector<4x8xf32>
    %85 = vector.shape_cast %84 : vector<4x8xf32> to vector<2x2x8xf32>
    %86 = arith.truncf %85 : vector<2x2x8xf32> to vector<2x2x8xbf16>
    %c0_47 = arith.constant 0 : index
    %c0_48 = arith.constant 0 : index
    %c0_49 = arith.constant 0 : index
    %c8_50 = arith.constant 8 : index
    %87 = vector.load %arg6[%c0_47, %c0_48, %c0_49, %c8_50] : memref<1x2x2x32xbf16, #tpu.memory_space<vmem>>, vector<1x2x2x8xbf16>
    %88 = vector.shape_cast %87 : vector<1x2x2x8xbf16> to vector<2x2x8xbf16>
    %89 = vector.shape_cast %86 : vector<2x2x8xbf16> to vector<1x2x2x8xbf16>
    tpu.vector_store %arg6[%c0_47, %c0_48, %c0_49, %c8_50], %89 {strides = array<i32>} : memref<1x2x2x32xbf16, #tpu.memory_space<vmem>>, vector<1x2x2x8xbf16>,
    %90 = vector.extract_strided_slice %59 {offsets = [0, 16], sizes = [4, 8], strides = [1, 1]} : vector<4x32xf32> to vector<4x8xf32>
    %91 = arith.mulf %90, %90 : vector<4x8xf32>
    %92 = arith.truncf %91 : vector<4x8xf32> to vector<4x8xbf16>
    %c0_51 = arith.constant 0 : index
    %c0_52 = arith.constant 0 : index
    %93 = vector.load %arg4[%c0_51, %c0_52] : memref<8x8xbf16, #tpu.memory_space<vmem>>, vector<8x8xbf16>
    %cst_53 = arith.constant dense<0.000000e+00> : vector<4x8xf32>
    %94 = tpu.matmul %92, %93, %cst_53 {dimension_numbers = #tpu.dot_dimension_numbers<[1], [0], [0], [1], [0, 0, 1, 1], [], []>} : vector<4x8xbf16>, vector<8x8xbf16>, vector<4x8xf32> -> vector<4x8xf32>
    %c0_54 = arith.constant 0 : index
    %c0_55 = arith.constant 0 : index
    %95 = vector.load %arg5[%c0_54, %c0_55] : memref<1x8xf32, #tpu.memory_space<vmem>>, vector<1x8xf32>
    %96 = vector.broadcast %95 : vector<1x8xf32> to vector<4x8xf32>
    %97 = arith.addf %94, %96 : vector<4x8xf32>
    %98 = math.sqrt %97 : vector<4x8xf32>
    %99 = arith.mulf %90, %98 : vector<4x8xf32>
    %100 = vector.shape_cast %99 : vector<4x8xf32> to vector<2x2x8xf32>
    %101 = arith.truncf %100 : vector<2x2x8xf32> to vector<2x2x8xbf16>
    %c0_56 = arith.constant 0 : index
    %c0_57 = arith.constant 0 : index
    %c0_58 = arith.constant 0 : index
    %c16 = arith.constant 16 : index
    %102 = vector.load %arg6[%c0_56, %c0_57, %c0_58, %c16] : memref<1x2x2x32xbf16, #tpu.memory_space<vmem>>, vector<1x2x2x8xbf16>
    %103 = vector.shape_cast %102 : vector<1x2x2x8xbf16> to vector<2x2x8xbf16>
    %104 = vector.shape_cast %101 : vector<2x2x8xbf16> to vector<1x2x2x8xbf16>
    tpu.vector_store %arg6[%c0_56, %c0_57, %c0_58, %c16], %104 {strides = array<i32>} : memref<1x2x2x32xbf16, #tpu.memory_space<vmem>>, vector<1x2x2x8xbf16>,
    %105 = vector.extract_strided_slice %59 {offsets = [0, 24], sizes = [4, 8], strides = [1, 1]} : vector<4x32xf32> to vector<4x8xf32>
    %106 = arith.mulf %105, %105 : vector<4x8xf32>
    %107 = arith.truncf %106 : vector<4x8xf32> to vector<4x8xbf16>
    %c0_59 = arith.constant 0 : index
    %c0_60 = arith.constant 0 : index
    %108 = vector.load %arg4[%c0_59, %c0_60] : memref<8x8xbf16, #tpu.memory_space<vmem>>, vector<8x8xbf16>
    %cst_61 = arith.constant dense<0.000000e+00> : vector<4x8xf32>
    %109 = tpu.matmul %107, %108, %cst_61 {dimension_numbers = #tpu.dot_dimension_numbers<[1], [0], [0], [1], [0, 0, 1, 1], [], []>} : vector<4x8xbf16>, vector<8x8xbf16>, vector<4x8xf32> -> vector<4x8xf32>
    %c0_62 = arith.constant 0 : index
    %c0_63 = arith.constant 0 : index
    %110 = vector.load %arg5[%c0_62, %c0_63] : memref<1x8xf32, #tpu.memory_space<vmem>>, vector<1x8xf32>
    %111 = vector.broadcast %110 : vector<1x8xf32> to vector<4x8xf32>
    %112 = arith.addf %109, %111 : vector<4x8xf32>
    %113 = math.sqrt %112 : vector<4x8xf32>
    %114 = arith.mulf %105, %113 : vector<4x8xf32>
    %115 = vector.shape_cast %114 : vector<4x8xf32> to vector<2x2x8xf32>
    %116 = arith.truncf %115 : vector<2x2x8xf32> to vector<2x2x8xbf16>
    %c0_64 = arith.constant 0 : index
    %c0_65 = arith.constant 0 : index
    %c0_66 = arith.constant 0 : index
    %c24 = arith.constant 24 : index
    %117 = vector.load %arg6[%c0_64, %c0_65, %c0_66, %c24] : memref<1x2x2x32xbf16, #tpu.memory_space<vmem>>, vector<1x2x2x8xbf16>
    %118 = vector.shape_cast %117 : vector<1x2x2x8xbf16> to vector<2x2x8xbf16>
    %119 = vector.shape_cast %116 : vector<2x2x8xbf16> to vector<1x2x2x8xbf16>
    tpu.vector_store %arg6[%c0_64, %c0_65, %c0_66, %c24], %119 {strides = array<i32>} : memref<1x2x2x32xbf16, #tpu.memory_space<vmem>>, vector<1x2x2x8xbf16>,
    return
  }
  func.func @transform_0(%arg0: i32) -> (i32, i32, i32, i32) {
    %c0_i32 = arith.constant 0 : i32
    %c0_i32_0 = arith.constant 0 : i32
    %c0_i32_1 = arith.constant 0 : i32
    %c0_i32_2 = arith.constant 0 : i32
    return %arg0, %c0_i32, %c0_i32_0, %c0_i32_1 : i32, i32, i32, i32
  }
  func.func @transform_1(%arg0: i32) -> (i32, i32, i32) {
    %c0_i32 = arith.constant 0 : i32
    %c0_i32_0 = arith.constant 0 : i32
    %c0_i32_1 = arith.constant 0 : i32
    %c0_i32_2 = arith.constant 0 : i32
    return %c0_i32, %c0_i32_0, %c0_i32_1 : i32, i32, i32
  }
  func.func @transform_2(%arg0: i32) -> (i32, i32) {
    %c0_i32 = arith.constant 0 : i32
    %c0_i32_0 = arith.constant 0 : i32
    %c0_i32_1 = arith.constant 0 : i32
    return %c0_i32, %c0_i32_0 : i32, i32
  }
  func.func @transform_3(%arg0: i32) -> (i32, i32) {
    %c0_i32 = arith.constant 0 : i32
    %c0_i32_0 = arith.constant 0 : i32
    %c0_i32_1 = arith.constant 0 : i32
    return %c0_i32, %c0_i32_0 : i32, i32
  }
  func.func @transform_4(%arg0: i32) -> (i32, i32) {
    %c0_i32 = arith.constant 0 : i32
    %c0_i32_0 = arith.constant 0 : i32
    %c0_i32_1 = arith.constant 0 : i32
    return %c0_i32, %c0_i32_0 : i32, i32
  }
  func.func @transform_5(%arg0: i32) -> (i32, i32, i32, i32) {
    %c0_i32 = arith.constant 0 : i32
    %c0_i32_0 = arith.constant 0 : i32
    %c0_i32_1 = arith.constant 0 : i32
    %c0_i32_2 = arith.constant 0 : i32
    return %arg0, %c0_i32, %c0_i32_0, %c0_i32_1 : i32, i32, i32, i32
  }
}

module attributes {stable_mosaic.version = 11 : i64} {
  func.func @_conv3x3_fused_kernel(%arg0: i32, %arg1: memref<1x6x6x8xbf16, #tpu.memory_space<vmem>>, %arg2: memref<9x8x32xbf16, #tpu.memory_space<vmem>>, %arg3: memref<1x32xf32, #tpu.memory_space<vmem>>, %arg4: memref<8x8xbf16, #tpu.memory_space<vmem>>, %arg5: memref<1x8xf32, #tpu.memory_space<vmem>>, %arg6: memref<1x4x4x32xbf16, #tpu.memory_space<vmem>>) attributes {dimension_semantics = [#tpu.dimension_semantics<parallel>], iteration_bounds = array<i64: 2>, scalar_prefetch = 0 : i64, scratch_operands = 0 : i64, tpu.core_type = #tpu.core_type<tc>, window_params = [{transform_indices = @transform_0, window_bounds = array<i64: 1, 6, 6, 8>}, {pipeline_mode = #tpu.pipeline_mode<synchronous>, transform_indices = @transform_1, window_bounds = array<i64: 9, 8, 32>}, {pipeline_mode = #tpu.pipeline_mode<synchronous>, transform_indices = @transform_2, window_bounds = array<i64: 1, 32>}, {pipeline_mode = #tpu.pipeline_mode<synchronous>, transform_indices = @transform_3, window_bounds = array<i64: 8, 8>}, {pipeline_mode = #tpu.pipeline_mode<synchronous>, transform_indices = @transform_4, window_bounds = array<i64: 1, 8>}, {transform_indices = @transform_5, window_bounds = array<i64: 1, 4, 4, 32>}]} {
    %c0 = arith.constant 0 : index
    %c0_0 = arith.constant 0 : index
    %c0_1 = arith.constant 0 : index
    %c0_2 = arith.constant 0 : index
    %0 = vector.load %arg1[%c0, %c0_0, %c0_1, %c0_2] : memref<1x6x6x8xbf16, #tpu.memory_space<vmem>>, vector<1x6x6x8xbf16>
    %1 = vector.shape_cast %0 : vector<1x6x6x8xbf16> to vector<6x6x8xbf16>
    %cst = arith.constant 0.000000e+00 : f32
    %2 = vector.broadcast %cst : f32 to vector<16x32xf32>
    %3 = vector.extract_strided_slice %1 {offsets = [0, 0, 0], sizes = [4, 4, 8], strides = [1, 1, 1]} : vector<6x6x8xbf16> to vector<4x4x8xbf16>
    %4 = vector.shape_cast %3 : vector<4x4x8xbf16> to vector<16x8xbf16>
    %c0_3 = arith.constant 0 : index
    %c0_4 = arith.constant 0 : index
    %c0_5 = arith.constant 0 : index
    %5 = vector.load %arg2[%c0_3, %c0_4, %c0_5] : memref<9x8x32xbf16, #tpu.memory_space<vmem>>, vector<1x8x32xbf16>
    %6 = vector.shape_cast %5 : vector<1x8x32xbf16> to vector<8x32xbf16>
    %cst_6 = arith.constant dense<0.000000e+00> : vector<16x32xf32>
    %7 = tpu.matmul %4, %6, %cst_6 {dimension_numbers = #tpu.dot_dimension_numbers<[1], [0], [0], [1], [0, 0, 1, 1], [], []>} : vector<16x8xbf16>, vector<8x32xbf16>, vector<16x32xf32> -> vector<16x32xf32>
    %8 = arith.addf %2, %7 : vector<16x32xf32>
    %9 = vector.extract_strided_slice %1 {offsets = [0, 1, 0], sizes = [4, 4, 8], strides = [1, 1, 1]} : vector<6x6x8xbf16> to vector<4x4x8xbf16>
    %10 = vector.shape_cast %9 : vector<4x4x8xbf16> to vector<16x8xbf16>
    %c1 = arith.constant 1 : index
    %c0_7 = arith.constant 0 : index
    %c0_8 = arith.constant 0 : index
    %11 = vector.load %arg2[%c1, %c0_7, %c0_8] : memref<9x8x32xbf16, #tpu.memory_space<vmem>>, vector<1x8x32xbf16>
    %12 = vector.shape_cast %11 : vector<1x8x32xbf16> to vector<8x32xbf16>
    %cst_9 = arith.constant dense<0.000000e+00> : vector<16x32xf32>
    %13 = tpu.matmul %10, %12, %cst_9 {dimension_numbers = #tpu.dot_dimension_numbers<[1], [0], [0], [1], [0, 0, 1, 1], [], []>} : vector<16x8xbf16>, vector<8x32xbf16>, vector<16x32xf32> -> vector<16x32xf32>
    %14 = arith.addf %8, %13 : vector<16x32xf32>
    %15 = vector.extract_strided_slice %1 {offsets = [0, 2, 0], sizes = [4, 4, 8], strides = [1, 1, 1]} : vector<6x6x8xbf16> to vector<4x4x8xbf16>
    %16 = vector.shape_cast %15 : vector<4x4x8xbf16> to vector<16x8xbf16>
    %c2 = arith.constant 2 : index
    %c0_10 = arith.constant 0 : index
    %c0_11 = arith.constant 0 : index
    %17 = vector.load %arg2[%c2, %c0_10, %c0_11] : memref<9x8x32xbf16, #tpu.memory_space<vmem>>, vector<1x8x32xbf16>
    %18 = vector.shape_cast %17 : vector<1x8x32xbf16> to vector<8x32xbf16>
    %cst_12 = arith.constant dense<0.000000e+00> : vector<16x32xf32>
    %19 = tpu.matmul %16, %18, %cst_12 {dimension_numbers = #tpu.dot_dimension_numbers<[1], [0], [0], [1], [0, 0, 1, 1], [], []>} : vector<16x8xbf16>, vector<8x32xbf16>, vector<16x32xf32> -> vector<16x32xf32>
    %20 = arith.addf %14, %19 : vector<16x32xf32>
    %21 = vector.extract_strided_slice %1 {offsets = [1, 0, 0], sizes = [4, 4, 8], strides = [1, 1, 1]} : vector<6x6x8xbf16> to vector<4x4x8xbf16>
    %22 = vector.shape_cast %21 : vector<4x4x8xbf16> to vector<16x8xbf16>
    %c3 = arith.constant 3 : index
    %c0_13 = arith.constant 0 : index
    %c0_14 = arith.constant 0 : index
    %23 = vector.load %arg2[%c3, %c0_13, %c0_14] : memref<9x8x32xbf16, #tpu.memory_space<vmem>>, vector<1x8x32xbf16>
    %24 = vector.shape_cast %23 : vector<1x8x32xbf16> to vector<8x32xbf16>
    %cst_15 = arith.constant dense<0.000000e+00> : vector<16x32xf32>
    %25 = tpu.matmul %22, %24, %cst_15 {dimension_numbers = #tpu.dot_dimension_numbers<[1], [0], [0], [1], [0, 0, 1, 1], [], []>} : vector<16x8xbf16>, vector<8x32xbf16>, vector<16x32xf32> -> vector<16x32xf32>
    %26 = arith.addf %20, %25 : vector<16x32xf32>
    %27 = vector.extract_strided_slice %1 {offsets = [1, 1, 0], sizes = [4, 4, 8], strides = [1, 1, 1]} : vector<6x6x8xbf16> to vector<4x4x8xbf16>
    %28 = vector.shape_cast %27 : vector<4x4x8xbf16> to vector<16x8xbf16>
    %c4 = arith.constant 4 : index
    %c0_16 = arith.constant 0 : index
    %c0_17 = arith.constant 0 : index
    %29 = vector.load %arg2[%c4, %c0_16, %c0_17] : memref<9x8x32xbf16, #tpu.memory_space<vmem>>, vector<1x8x32xbf16>
    %30 = vector.shape_cast %29 : vector<1x8x32xbf16> to vector<8x32xbf16>
    %cst_18 = arith.constant dense<0.000000e+00> : vector<16x32xf32>
    %31 = tpu.matmul %28, %30, %cst_18 {dimension_numbers = #tpu.dot_dimension_numbers<[1], [0], [0], [1], [0, 0, 1, 1], [], []>} : vector<16x8xbf16>, vector<8x32xbf16>, vector<16x32xf32> -> vector<16x32xf32>
    %32 = arith.addf %26, %31 : vector<16x32xf32>
    %33 = vector.extract_strided_slice %1 {offsets = [1, 2, 0], sizes = [4, 4, 8], strides = [1, 1, 1]} : vector<6x6x8xbf16> to vector<4x4x8xbf16>
    %34 = vector.shape_cast %33 : vector<4x4x8xbf16> to vector<16x8xbf16>
    %c5 = arith.constant 5 : index
    %c0_19 = arith.constant 0 : index
    %c0_20 = arith.constant 0 : index
    %35 = vector.load %arg2[%c5, %c0_19, %c0_20] : memref<9x8x32xbf16, #tpu.memory_space<vmem>>, vector<1x8x32xbf16>
    %36 = vector.shape_cast %35 : vector<1x8x32xbf16> to vector<8x32xbf16>
    %cst_21 = arith.constant dense<0.000000e+00> : vector<16x32xf32>
    %37 = tpu.matmul %34, %36, %cst_21 {dimension_numbers = #tpu.dot_dimension_numbers<[1], [0], [0], [1], [0, 0, 1, 1], [], []>} : vector<16x8xbf16>, vector<8x32xbf16>, vector<16x32xf32> -> vector<16x32xf32>
    %38 = arith.addf %32, %37 : vector<16x32xf32>
    %39 = vector.extract_strided_slice %1 {offsets = [2, 0, 0], sizes = [4, 4, 8], strides = [1, 1, 1]} : vector<6x6x8xbf16> to vector<4x4x8xbf16>
    %40 = vector.shape_cast %39 : vector<4x4x8xbf16> to vector<16x8xbf16>
    %c6 = arith.constant 6 : index
    %c0_22 = arith.constant 0 : index
    %c0_23 = arith.constant 0 : index
    %41 = vector.load %arg2[%c6, %c0_22, %c0_23] : memref<9x8x32xbf16, #tpu.memory_space<vmem>>, vector<1x8x32xbf16>
    %42 = vector.shape_cast %41 : vector<1x8x32xbf16> to vector<8x32xbf16>
    %cst_24 = arith.constant dense<0.000000e+00> : vector<16x32xf32>
    %43 = tpu.matmul %40, %42, %cst_24 {dimension_numbers = #tpu.dot_dimension_numbers<[1], [0], [0], [1], [0, 0, 1, 1], [], []>} : vector<16x8xbf16>, vector<8x32xbf16>, vector<16x32xf32> -> vector<16x32xf32>
    %44 = arith.addf %38, %43 : vector<16x32xf32>
    %45 = vector.extract_strided_slice %1 {offsets = [2, 1, 0], sizes = [4, 4, 8], strides = [1, 1, 1]} : vector<6x6x8xbf16> to vector<4x4x8xbf16>
    %46 = vector.shape_cast %45 : vector<4x4x8xbf16> to vector<16x8xbf16>
    %c7 = arith.constant 7 : index
    %c0_25 = arith.constant 0 : index
    %c0_26 = arith.constant 0 : index
    %47 = vector.load %arg2[%c7, %c0_25, %c0_26] : memref<9x8x32xbf16, #tpu.memory_space<vmem>>, vector<1x8x32xbf16>
    %48 = vector.shape_cast %47 : vector<1x8x32xbf16> to vector<8x32xbf16>
    %cst_27 = arith.constant dense<0.000000e+00> : vector<16x32xf32>
    %49 = tpu.matmul %46, %48, %cst_27 {dimension_numbers = #tpu.dot_dimension_numbers<[1], [0], [0], [1], [0, 0, 1, 1], [], []>} : vector<16x8xbf16>, vector<8x32xbf16>, vector<16x32xf32> -> vector<16x32xf32>
    %50 = arith.addf %44, %49 : vector<16x32xf32>
    %51 = vector.extract_strided_slice %1 {offsets = [2, 2, 0], sizes = [4, 4, 8], strides = [1, 1, 1]} : vector<6x6x8xbf16> to vector<4x4x8xbf16>
    %52 = vector.shape_cast %51 : vector<4x4x8xbf16> to vector<16x8xbf16>
    %c8 = arith.constant 8 : index
    %c0_28 = arith.constant 0 : index
    %c0_29 = arith.constant 0 : index
    %53 = vector.load %arg2[%c8, %c0_28, %c0_29] : memref<9x8x32xbf16, #tpu.memory_space<vmem>>, vector<1x8x32xbf16>
    %54 = vector.shape_cast %53 : vector<1x8x32xbf16> to vector<8x32xbf16>
    %cst_30 = arith.constant dense<0.000000e+00> : vector<16x32xf32>
    %55 = tpu.matmul %52, %54, %cst_30 {dimension_numbers = #tpu.dot_dimension_numbers<[1], [0], [0], [1], [0, 0, 1, 1], [], []>} : vector<16x8xbf16>, vector<8x32xbf16>, vector<16x32xf32> -> vector<16x32xf32>
    %56 = arith.addf %50, %55 : vector<16x32xf32>
    %c0_31 = arith.constant 0 : index
    %c0_32 = arith.constant 0 : index
    %57 = vector.load %arg3[%c0_31, %c0_32] : memref<1x32xf32, #tpu.memory_space<vmem>>, vector<1x32xf32>
    %58 = vector.broadcast %57 : vector<1x32xf32> to vector<16x32xf32>
    %59 = arith.addf %56, %58 : vector<16x32xf32>
    %60 = vector.extract_strided_slice %59 {offsets = [0, 0], sizes = [16, 8], strides = [1, 1]} : vector<16x32xf32> to vector<16x8xf32>
    %61 = arith.mulf %60, %60 : vector<16x8xf32>
    %62 = arith.truncf %61 : vector<16x8xf32> to vector<16x8xbf16>
    %c0_33 = arith.constant 0 : index
    %c0_34 = arith.constant 0 : index
    %63 = vector.load %arg4[%c0_33, %c0_34] : memref<8x8xbf16, #tpu.memory_space<vmem>>, vector<8x8xbf16>
    %cst_35 = arith.constant dense<0.000000e+00> : vector<16x8xf32>
    %64 = tpu.matmul %62, %63, %cst_35 {dimension_numbers = #tpu.dot_dimension_numbers<[1], [0], [0], [1], [0, 0, 1, 1], [], []>} : vector<16x8xbf16>, vector<8x8xbf16>, vector<16x8xf32> -> vector<16x8xf32>
    %c0_36 = arith.constant 0 : index
    %c0_37 = arith.constant 0 : index
    %65 = vector.load %arg5[%c0_36, %c0_37] : memref<1x8xf32, #tpu.memory_space<vmem>>, vector<1x8xf32>
    %66 = vector.broadcast %65 : vector<1x8xf32> to vector<16x8xf32>
    %67 = arith.addf %64, %66 : vector<16x8xf32>
    %68 = math.sqrt %67 : vector<16x8xf32>
    %69 = arith.mulf %60, %68 : vector<16x8xf32>
    %70 = vector.shape_cast %69 : vector<16x8xf32> to vector<4x4x8xf32>
    %71 = arith.truncf %70 : vector<4x4x8xf32> to vector<4x4x8xbf16>
    %c0_38 = arith.constant 0 : index
    %c0_39 = arith.constant 0 : index
    %c0_40 = arith.constant 0 : index
    %c0_41 = arith.constant 0 : index
    %72 = vector.load %arg6[%c0_38, %c0_39, %c0_40, %c0_41] : memref<1x4x4x32xbf16, #tpu.memory_space<vmem>>, vector<1x4x4x8xbf16>
    %73 = vector.shape_cast %72 : vector<1x4x4x8xbf16> to vector<4x4x8xbf16>
    %74 = vector.shape_cast %71 : vector<4x4x8xbf16> to vector<1x4x4x8xbf16>
    tpu.vector_store %arg6[%c0_38, %c0_39, %c0_40, %c0_41], %74 {strides = array<i32>} : memref<1x4x4x32xbf16, #tpu.memory_space<vmem>>, vector<1x4x4x8xbf16>,
    %75 = vector.extract_strided_slice %59 {offsets = [0, 8], sizes = [16, 8], strides = [1, 1]} : vector<16x32xf32> to vector<16x8xf32>
    %76 = arith.mulf %75, %75 : vector<16x8xf32>
    %77 = arith.truncf %76 : vector<16x8xf32> to vector<16x8xbf16>
    %c0_42 = arith.constant 0 : index
    %c0_43 = arith.constant 0 : index
    %78 = vector.load %arg4[%c0_42, %c0_43] : memref<8x8xbf16, #tpu.memory_space<vmem>>, vector<8x8xbf16>
    %cst_44 = arith.constant dense<0.000000e+00> : vector<16x8xf32>
    %79 = tpu.matmul %77, %78, %cst_44 {dimension_numbers = #tpu.dot_dimension_numbers<[1], [0], [0], [1], [0, 0, 1, 1], [], []>} : vector<16x8xbf16>, vector<8x8xbf16>, vector<16x8xf32> -> vector<16x8xf32>
    %c0_45 = arith.constant 0 : index
    %c0_46 = arith.constant 0 : index
    %80 = vector.load %arg5[%c0_45, %c0_46] : memref<1x8xf32, #tpu.memory_space<vmem>>, vector<1x8xf32>
    %81 = vector.broadcast %80 : vector<1x8xf32> to vector<16x8xf32>
    %82 = arith.addf %79, %81 : vector<16x8xf32>
    %83 = math.sqrt %82 : vector<16x8xf32>
    %84 = arith.mulf %75, %83 : vector<16x8xf32>
    %85 = vector.shape_cast %84 : vector<16x8xf32> to vector<4x4x8xf32>
    %86 = arith.truncf %85 : vector<4x4x8xf32> to vector<4x4x8xbf16>
    %c0_47 = arith.constant 0 : index
    %c0_48 = arith.constant 0 : index
    %c0_49 = arith.constant 0 : index
    %c8_50 = arith.constant 8 : index
    %87 = vector.load %arg6[%c0_47, %c0_48, %c0_49, %c8_50] : memref<1x4x4x32xbf16, #tpu.memory_space<vmem>>, vector<1x4x4x8xbf16>
    %88 = vector.shape_cast %87 : vector<1x4x4x8xbf16> to vector<4x4x8xbf16>
    %89 = vector.shape_cast %86 : vector<4x4x8xbf16> to vector<1x4x4x8xbf16>
    tpu.vector_store %arg6[%c0_47, %c0_48, %c0_49, %c8_50], %89 {strides = array<i32>} : memref<1x4x4x32xbf16, #tpu.memory_space<vmem>>, vector<1x4x4x8xbf16>,
    %90 = vector.extract_strided_slice %59 {offsets = [0, 16], sizes = [16, 8], strides = [1, 1]} : vector<16x32xf32> to vector<16x8xf32>
    %91 = arith.mulf %90, %90 : vector<16x8xf32>
    %92 = arith.truncf %91 : vector<16x8xf32> to vector<16x8xbf16>
    %c0_51 = arith.constant 0 : index
    %c0_52 = arith.constant 0 : index
    %93 = vector.load %arg4[%c0_51, %c0_52] : memref<8x8xbf16, #tpu.memory_space<vmem>>, vector<8x8xbf16>
    %cst_53 = arith.constant dense<0.000000e+00> : vector<16x8xf32>
    %94 = tpu.matmul %92, %93, %cst_53 {dimension_numbers = #tpu.dot_dimension_numbers<[1], [0], [0], [1], [0, 0, 1, 1], [], []>} : vector<16x8xbf16>, vector<8x8xbf16>, vector<16x8xf32> -> vector<16x8xf32>
    %c0_54 = arith.constant 0 : index
    %c0_55 = arith.constant 0 : index
    %95 = vector.load %arg5[%c0_54, %c0_55] : memref<1x8xf32, #tpu.memory_space<vmem>>, vector<1x8xf32>
    %96 = vector.broadcast %95 : vector<1x8xf32> to vector<16x8xf32>
    %97 = arith.addf %94, %96 : vector<16x8xf32>
    %98 = math.sqrt %97 : vector<16x8xf32>
    %99 = arith.mulf %90, %98 : vector<16x8xf32>
    %100 = vector.shape_cast %99 : vector<16x8xf32> to vector<4x4x8xf32>
    %101 = arith.truncf %100 : vector<4x4x8xf32> to vector<4x4x8xbf16>
    %c0_56 = arith.constant 0 : index
    %c0_57 = arith.constant 0 : index
    %c0_58 = arith.constant 0 : index
    %c16 = arith.constant 16 : index
    %102 = vector.load %arg6[%c0_56, %c0_57, %c0_58, %c16] : memref<1x4x4x32xbf16, #tpu.memory_space<vmem>>, vector<1x4x4x8xbf16>
    %103 = vector.shape_cast %102 : vector<1x4x4x8xbf16> to vector<4x4x8xbf16>
    %104 = vector.shape_cast %101 : vector<4x4x8xbf16> to vector<1x4x4x8xbf16>
    tpu.vector_store %arg6[%c0_56, %c0_57, %c0_58, %c16], %104 {strides = array<i32>} : memref<1x4x4x32xbf16, #tpu.memory_space<vmem>>, vector<1x4x4x8xbf16>,
    %105 = vector.extract_strided_slice %59 {offsets = [0, 24], sizes = [16, 8], strides = [1, 1]} : vector<16x32xf32> to vector<16x8xf32>
    %106 = arith.mulf %105, %105 : vector<16x8xf32>
    %107 = arith.truncf %106 : vector<16x8xf32> to vector<16x8xbf16>
    %c0_59 = arith.constant 0 : index
    %c0_60 = arith.constant 0 : index
    %108 = vector.load %arg4[%c0_59, %c0_60] : memref<8x8xbf16, #tpu.memory_space<vmem>>, vector<8x8xbf16>
    %cst_61 = arith.constant dense<0.000000e+00> : vector<16x8xf32>
    %109 = tpu.matmul %107, %108, %cst_61 {dimension_numbers = #tpu.dot_dimension_numbers<[1], [0], [0], [1], [0, 0, 1, 1], [], []>} : vector<16x8xbf16>, vector<8x8xbf16>, vector<16x8xf32> -> vector<16x8xf32>
    %c0_62 = arith.constant 0 : index
    %c0_63 = arith.constant 0 : index
    %110 = vector.load %arg5[%c0_62, %c0_63] : memref<1x8xf32, #tpu.memory_space<vmem>>, vector<1x8xf32>
    %111 = vector.broadcast %110 : vector<1x8xf32> to vector<16x8xf32>
    %112 = arith.addf %109, %111 : vector<16x8xf32>
    %113 = math.sqrt %112 : vector<16x8xf32>
    %114 = arith.mulf %105, %113 : vector<16x8xf32>
    %115 = vector.shape_cast %114 : vector<16x8xf32> to vector<4x4x8xf32>
    %116 = arith.truncf %115 : vector<4x4x8xf32> to vector<4x4x8xbf16>
    %c0_64 = arith.constant 0 : index
    %c0_65 = arith.constant 0 : index
    %c0_66 = arith.constant 0 : index
    %c24 = arith.constant 24 : index
    %117 = vector.load %arg6[%c0_64, %c0_65, %c0_66, %c24] : memref<1x4x4x32xbf16, #tpu.memory_space<vmem>>, vector<1x4x4x8xbf16>
    %118 = vector.shape_cast %117 : vector<1x4x4x8xbf16> to vector<4x4x8xbf16>
    %119 = vector.shape_cast %116 : vector<4x4x8xbf16> to vector<1x4x4x8xbf16>
    tpu.vector_store %arg6[%c0_64, %c0_65, %c0_66, %c24], %119 {strides = array<i32>} : memref<1x4x4x32xbf16, #tpu.memory_space<vmem>>, vector<1x4x4x8xbf16>,
    return
  }
  func.func @transform_0(%arg0: i32) -> (i32, i32, i32, i32) {
    %c0_i32 = arith.constant 0 : i32
    %c0_i32_0 = arith.constant 0 : i32
    %c0_i32_1 = arith.constant 0 : i32
    %c0_i32_2 = arith.constant 0 : i32
    return %arg0, %c0_i32, %c0_i32_0, %c0_i32_1 : i32, i32, i32, i32
  }
  func.func @transform_1(%arg0: i32) -> (i32, i32, i32) {
    %c0_i32 = arith.constant 0 : i32
    %c0_i32_0 = arith.constant 0 : i32
    %c0_i32_1 = arith.constant 0 : i32
    %c0_i32_2 = arith.constant 0 : i32
    return %c0_i32, %c0_i32_0, %c0_i32_1 : i32, i32, i32
  }
  func.func @transform_2(%arg0: i32) -> (i32, i32) {
    %c0_i32 = arith.constant 0 : i32
    %c0_i32_0 = arith.constant 0 : i32
    %c0_i32_1 = arith.constant 0 : i32
    return %c0_i32, %c0_i32_0 : i32, i32
  }
  func.func @transform_3(%arg0: i32) -> (i32, i32) {
    %c0_i32 = arith.constant 0 : i32
    %c0_i32_0 = arith.constant 0 : i32
    %c0_i32_1 = arith.constant 0 : i32
    return %c0_i32, %c0_i32_0 : i32, i32
  }
  func.func @transform_4(%arg0: i32) -> (i32, i32) {
    %c0_i32 = arith.constant 0 : i32
    %c0_i32_0 = arith.constant 0 : i32
    %c0_i32_1 = arith.constant 0 : i32
    return %c0_i32, %c0_i32_0 : i32, i32
  }
  func.func @transform_5(%arg0: i32) -> (i32, i32, i32, i32) {
    %c0_i32 = arith.constant 0 : i32
    %c0_i32_0 = arith.constant 0 : i32
    %c0_i32_1 = arith.constant 0 : i32
    %c0_i32_2 = arith.constant 0 : i32
    return %arg0, %c0_i32, %c0_i32_0, %c0_i32_1 : i32, i32, i32, i32
  }
}

module attributes {stable_mosaic.version = 11 : i64} {
  func.func @_conv3x3_fused_kernel(%arg0: i32, %arg1: memref<1x10x10x8xbf16, #tpu.memory_space<vmem>>, %arg2: memref<9x8x12xbf16, #tpu.memory_space<vmem>>, %arg3: memref<1x12xf32, #tpu.memory_space<vmem>>, %arg4: memref<1x8x8x12xbf16, #tpu.memory_space<vmem>>) attributes {dimension_semantics = [#tpu.dimension_semantics<parallel>], iteration_bounds = array<i64: 2>, scalar_prefetch = 0 : i64, scratch_operands = 0 : i64, tpu.core_type = #tpu.core_type<tc>, window_params = [{transform_indices = @transform_0, window_bounds = array<i64: 1, 10, 10, 8>}, {pipeline_mode = #tpu.pipeline_mode<synchronous>, transform_indices = @transform_1, window_bounds = array<i64: 9, 8, 12>}, {pipeline_mode = #tpu.pipeline_mode<synchronous>, transform_indices = @transform_2, window_bounds = array<i64: 1, 12>}, {transform_indices = @transform_3, window_bounds = array<i64: 1, 8, 8, 12>}]} {
    %c0 = arith.constant 0 : index
    %c0_0 = arith.constant 0 : index
    %c0_1 = arith.constant 0 : index
    %c0_2 = arith.constant 0 : index
    %0 = vector.load %arg1[%c0, %c0_0, %c0_1, %c0_2] : memref<1x10x10x8xbf16, #tpu.memory_space<vmem>>, vector<1x10x10x8xbf16>
    %1 = vector.shape_cast %0 : vector<1x10x10x8xbf16> to vector<10x10x8xbf16>
    %cst = arith.constant 0.000000e+00 : f32
    %2 = vector.broadcast %cst : f32 to vector<64x12xf32>
    %3 = vector.extract_strided_slice %1 {offsets = [0, 0, 0], sizes = [8, 8, 8], strides = [1, 1, 1]} : vector<10x10x8xbf16> to vector<8x8x8xbf16>
    %4 = vector.shape_cast %3 : vector<8x8x8xbf16> to vector<64x8xbf16>
    %c0_3 = arith.constant 0 : index
    %c0_4 = arith.constant 0 : index
    %c0_5 = arith.constant 0 : index
    %5 = vector.load %arg2[%c0_3, %c0_4, %c0_5] : memref<9x8x12xbf16, #tpu.memory_space<vmem>>, vector<1x8x12xbf16>
    %6 = vector.shape_cast %5 : vector<1x8x12xbf16> to vector<8x12xbf16>
    %cst_6 = arith.constant dense<0.000000e+00> : vector<64x12xf32>
    %7 = tpu.matmul %4, %6, %cst_6 {dimension_numbers = #tpu.dot_dimension_numbers<[1], [0], [0], [1], [0, 0, 1, 1], [], []>} : vector<64x8xbf16>, vector<8x12xbf16>, vector<64x12xf32> -> vector<64x12xf32>
    %8 = arith.addf %2, %7 : vector<64x12xf32>
    %9 = vector.extract_strided_slice %1 {offsets = [0, 1, 0], sizes = [8, 8, 8], strides = [1, 1, 1]} : vector<10x10x8xbf16> to vector<8x8x8xbf16>
    %10 = vector.shape_cast %9 : vector<8x8x8xbf16> to vector<64x8xbf16>
    %c1 = arith.constant 1 : index
    %c0_7 = arith.constant 0 : index
    %c0_8 = arith.constant 0 : index
    %11 = vector.load %arg2[%c1, %c0_7, %c0_8] : memref<9x8x12xbf16, #tpu.memory_space<vmem>>, vector<1x8x12xbf16>
    %12 = vector.shape_cast %11 : vector<1x8x12xbf16> to vector<8x12xbf16>
    %cst_9 = arith.constant dense<0.000000e+00> : vector<64x12xf32>
    %13 = tpu.matmul %10, %12, %cst_9 {dimension_numbers = #tpu.dot_dimension_numbers<[1], [0], [0], [1], [0, 0, 1, 1], [], []>} : vector<64x8xbf16>, vector<8x12xbf16>, vector<64x12xf32> -> vector<64x12xf32>
    %14 = arith.addf %8, %13 : vector<64x12xf32>
    %15 = vector.extract_strided_slice %1 {offsets = [0, 2, 0], sizes = [8, 8, 8], strides = [1, 1, 1]} : vector<10x10x8xbf16> to vector<8x8x8xbf16>
    %16 = vector.shape_cast %15 : vector<8x8x8xbf16> to vector<64x8xbf16>
    %c2 = arith.constant 2 : index
    %c0_10 = arith.constant 0 : index
    %c0_11 = arith.constant 0 : index
    %17 = vector.load %arg2[%c2, %c0_10, %c0_11] : memref<9x8x12xbf16, #tpu.memory_space<vmem>>, vector<1x8x12xbf16>
    %18 = vector.shape_cast %17 : vector<1x8x12xbf16> to vector<8x12xbf16>
    %cst_12 = arith.constant dense<0.000000e+00> : vector<64x12xf32>
    %19 = tpu.matmul %16, %18, %cst_12 {dimension_numbers = #tpu.dot_dimension_numbers<[1], [0], [0], [1], [0, 0, 1, 1], [], []>} : vector<64x8xbf16>, vector<8x12xbf16>, vector<64x12xf32> -> vector<64x12xf32>
    %20 = arith.addf %14, %19 : vector<64x12xf32>
    %21 = vector.extract_strided_slice %1 {offsets = [1, 0, 0], sizes = [8, 8, 8], strides = [1, 1, 1]} : vector<10x10x8xbf16> to vector<8x8x8xbf16>
    %22 = vector.shape_cast %21 : vector<8x8x8xbf16> to vector<64x8xbf16>
    %c3 = arith.constant 3 : index
    %c0_13 = arith.constant 0 : index
    %c0_14 = arith.constant 0 : index
    %23 = vector.load %arg2[%c3, %c0_13, %c0_14] : memref<9x8x12xbf16, #tpu.memory_space<vmem>>, vector<1x8x12xbf16>
    %24 = vector.shape_cast %23 : vector<1x8x12xbf16> to vector<8x12xbf16>
    %cst_15 = arith.constant dense<0.000000e+00> : vector<64x12xf32>
    %25 = tpu.matmul %22, %24, %cst_15 {dimension_numbers = #tpu.dot_dimension_numbers<[1], [0], [0], [1], [0, 0, 1, 1], [], []>} : vector<64x8xbf16>, vector<8x12xbf16>, vector<64x12xf32> -> vector<64x12xf32>
    %26 = arith.addf %20, %25 : vector<64x12xf32>
    %27 = vector.extract_strided_slice %1 {offsets = [1, 1, 0], sizes = [8, 8, 8], strides = [1, 1, 1]} : vector<10x10x8xbf16> to vector<8x8x8xbf16>
    %28 = vector.shape_cast %27 : vector<8x8x8xbf16> to vector<64x8xbf16>
    %c4 = arith.constant 4 : index
    %c0_16 = arith.constant 0 : index
    %c0_17 = arith.constant 0 : index
    %29 = vector.load %arg2[%c4, %c0_16, %c0_17] : memref<9x8x12xbf16, #tpu.memory_space<vmem>>, vector<1x8x12xbf16>
    %30 = vector.shape_cast %29 : vector<1x8x12xbf16> to vector<8x12xbf16>
    %cst_18 = arith.constant dense<0.000000e+00> : vector<64x12xf32>
    %31 = tpu.matmul %28, %30, %cst_18 {dimension_numbers = #tpu.dot_dimension_numbers<[1], [0], [0], [1], [0, 0, 1, 1], [], []>} : vector<64x8xbf16>, vector<8x12xbf16>, vector<64x12xf32> -> vector<64x12xf32>
    %32 = arith.addf %26, %31 : vector<64x12xf32>
    %33 = vector.extract_strided_slice %1 {offsets = [1, 2, 0], sizes = [8, 8, 8], strides = [1, 1, 1]} : vector<10x10x8xbf16> to vector<8x8x8xbf16>
    %34 = vector.shape_cast %33 : vector<8x8x8xbf16> to vector<64x8xbf16>
    %c5 = arith.constant 5 : index
    %c0_19 = arith.constant 0 : index
    %c0_20 = arith.constant 0 : index
    %35 = vector.load %arg2[%c5, %c0_19, %c0_20] : memref<9x8x12xbf16, #tpu.memory_space<vmem>>, vector<1x8x12xbf16>
    %36 = vector.shape_cast %35 : vector<1x8x12xbf16> to vector<8x12xbf16>
    %cst_21 = arith.constant dense<0.000000e+00> : vector<64x12xf32>
    %37 = tpu.matmul %34, %36, %cst_21 {dimension_numbers = #tpu.dot_dimension_numbers<[1], [0], [0], [1], [0, 0, 1, 1], [], []>} : vector<64x8xbf16>, vector<8x12xbf16>, vector<64x12xf32> -> vector<64x12xf32>
    %38 = arith.addf %32, %37 : vector<64x12xf32>
    %39 = vector.extract_strided_slice %1 {offsets = [2, 0, 0], sizes = [8, 8, 8], strides = [1, 1, 1]} : vector<10x10x8xbf16> to vector<8x8x8xbf16>
    %40 = vector.shape_cast %39 : vector<8x8x8xbf16> to vector<64x8xbf16>
    %c6 = arith.constant 6 : index
    %c0_22 = arith.constant 0 : index
    %c0_23 = arith.constant 0 : index
    %41 = vector.load %arg2[%c6, %c0_22, %c0_23] : memref<9x8x12xbf16, #tpu.memory_space<vmem>>, vector<1x8x12xbf16>
    %42 = vector.shape_cast %41 : vector<1x8x12xbf16> to vector<8x12xbf16>
    %cst_24 = arith.constant dense<0.000000e+00> : vector<64x12xf32>
    %43 = tpu.matmul %40, %42, %cst_24 {dimension_numbers = #tpu.dot_dimension_numbers<[1], [0], [0], [1], [0, 0, 1, 1], [], []>} : vector<64x8xbf16>, vector<8x12xbf16>, vector<64x12xf32> -> vector<64x12xf32>
    %44 = arith.addf %38, %43 : vector<64x12xf32>
    %45 = vector.extract_strided_slice %1 {offsets = [2, 1, 0], sizes = [8, 8, 8], strides = [1, 1, 1]} : vector<10x10x8xbf16> to vector<8x8x8xbf16>
    %46 = vector.shape_cast %45 : vector<8x8x8xbf16> to vector<64x8xbf16>
    %c7 = arith.constant 7 : index
    %c0_25 = arith.constant 0 : index
    %c0_26 = arith.constant 0 : index
    %47 = vector.load %arg2[%c7, %c0_25, %c0_26] : memref<9x8x12xbf16, #tpu.memory_space<vmem>>, vector<1x8x12xbf16>
    %48 = vector.shape_cast %47 : vector<1x8x12xbf16> to vector<8x12xbf16>
    %cst_27 = arith.constant dense<0.000000e+00> : vector<64x12xf32>
    %49 = tpu.matmul %46, %48, %cst_27 {dimension_numbers = #tpu.dot_dimension_numbers<[1], [0], [0], [1], [0, 0, 1, 1], [], []>} : vector<64x8xbf16>, vector<8x12xbf16>, vector<64x12xf32> -> vector<64x12xf32>
    %50 = arith.addf %44, %49 : vector<64x12xf32>
    %51 = vector.extract_strided_slice %1 {offsets = [2, 2, 0], sizes = [8, 8, 8], strides = [1, 1, 1]} : vector<10x10x8xbf16> to vector<8x8x8xbf16>
    %52 = vector.shape_cast %51 : vector<8x8x8xbf16> to vector<64x8xbf16>
    %c8 = arith.constant 8 : index
    %c0_28 = arith.constant 0 : index
    %c0_29 = arith.constant 0 : index
    %53 = vector.load %arg2[%c8, %c0_28, %c0_29] : memref<9x8x12xbf16, #tpu.memory_space<vmem>>, vector<1x8x12xbf16>
    %54 = vector.shape_cast %53 : vector<1x8x12xbf16> to vector<8x12xbf16>
    %cst_30 = arith.constant dense<0.000000e+00> : vector<64x12xf32>
    %55 = tpu.matmul %52, %54, %cst_30 {dimension_numbers = #tpu.dot_dimension_numbers<[1], [0], [0], [1], [0, 0, 1, 1], [], []>} : vector<64x8xbf16>, vector<8x12xbf16>, vector<64x12xf32> -> vector<64x12xf32>
    %56 = arith.addf %50, %55 : vector<64x12xf32>
    %c0_31 = arith.constant 0 : index
    %c0_32 = arith.constant 0 : index
    %57 = vector.load %arg3[%c0_31, %c0_32] : memref<1x12xf32, #tpu.memory_space<vmem>>, vector<1x12xf32>
    %58 = vector.broadcast %57 : vector<1x12xf32> to vector<64x12xf32>
    %59 = arith.addf %56, %58 : vector<64x12xf32>
    %60 = vector.shape_cast %59 : vector<64x12xf32> to vector<8x8x12xf32>
    %61 = arith.truncf %60 : vector<8x8x12xf32> to vector<8x8x12xbf16>
    %c0_33 = arith.constant 0 : index
    %c0_34 = arith.constant 0 : index
    %c0_35 = arith.constant 0 : index
    %c0_36 = arith.constant 0 : index
    %62 = vector.load %arg4[%c0_33, %c0_34, %c0_35, %c0_36] : memref<1x8x8x12xbf16, #tpu.memory_space<vmem>>, vector<1x8x8x12xbf16>
    %63 = vector.shape_cast %62 : vector<1x8x8x12xbf16> to vector<8x8x12xbf16>
    %64 = vector.shape_cast %61 : vector<8x8x12xbf16> to vector<1x8x8x12xbf16>
    tpu.vector_store %arg4[%c0_33, %c0_34, %c0_35, %c0_36], %64 {strides = array<i32>} : memref<1x8x8x12xbf16, #tpu.memory_space<vmem>>, vector<1x8x8x12xbf16>,
    return
  }
  func.func @transform_0(%arg0: i32) -> (i32, i32, i32, i32) {
    %c0_i32 = arith.constant 0 : i32
    %c0_i32_0 = arith.constant 0 : i32
    %c0_i32_1 = arith.constant 0 : i32
    %c0_i32_2 = arith.constant 0 : i32
    return %arg0, %c0_i32, %c0_i32_0, %c0_i32_1 : i32, i32, i32, i32
  }
  func.func @transform_1(%arg0: i32) -> (i32, i32, i32) {
    %c0_i32 = arith.constant 0 : i32
    %c0_i32_0 = arith.constant 0 : i32
    %c0_i32_1 = arith.constant 0 : i32
    %c0_i32_2 = arith.constant 0 : i32
    return %c0_i32, %c0_i32_0, %c0_i32_1 : i32, i32, i32
  }
  func.func @transform_2(%arg0: i32) -> (i32, i32) {
    %c0_i32 = arith.constant 0 : i32
    %c0_i32_0 = arith.constant 0 : i32
    %c0_i32_1 = arith.constant 0 : i32
    return %c0_i32, %c0_i32_0 : i32, i32
  }
  func.func @transform_3(%arg0: i32) -> (i32, i32, i32, i32) {
    %c0_i32 = arith.constant 0 : i32
    %c0_i32_0 = arith.constant 0 : i32
    %c0_i32_1 = arith.constant 0 : i32
    %c0_i32_2 = arith.constant 0 : i32
    return %arg0, %c0_i32, %c0_i32_0, %c0_i32_1 : i32, i32, i32, i32
  }
}

</mosaic_0001>

<bundles_post_ra>
// kernel: factorized_prior_forward.10
= control target key start
LH: loop header
LB: loop body
LE: loop exit
PB: predicated region body
PF: predicated region fallthrough
CT: control target
= control target key end

     0   :  { %s1395_s18 = smov 0   ;;  %s1589_s0 = inlined_call_operand.vmem [shape: bf16[2,4,4,32], index: 0, kind: input, shape index: {}]   ;;  %s1590_s1 = inlined_call_operand.vmem [shape: bf16[9,32,8], index: 1, kind: input, shape index: {}]   ;;  %s1591_s2 = inlined_call_operand.vmem [shape: f32[1,8], index: 2, kind: input, shape index: {}]   ;;  %s1592_s3 = inlined_call_operand.vmem [shape: bf16[8,8], index: 3, kind: input, shape index: {}]   ;;  %s1593_s4 = inlined_call_operand.vmem [shape: f32[1,8], index: 4, kind: input, shape index: {}]   ;;  %s1594_s5 = inlined_call_operand.vmem [shape: bf16[2,2,2,8], index: 5, kind: output, shape index: {}]  }
   0x1 LB: > { %s1134_s19 = sadd.s32 4294967295, %s1359_s18   ;;  %p1138_p0 = scmp.ge.s32.totalorder %s1359_s18, 1  ;;  %s1359_s18 = sphi %s1395_s18, %s15_s18  }
   0x2   : > { %p187_p1 = scmp.lt.s32.totalorder %s1359_s18, 3 }
   0x4   : > { %p188_p2 = pnand %p1138_p0, %p187_p1 }
   0x5   : > { %v1333_v0 = vld [vmem:[%s1590_s1 + $0x10] sm:$0xff] (!%p188_p2)   ;;  %v1361_v1 = vmov (!%p188_p2), 0.0   ;;  %v1334_v2 = vld [vmem:[%s1590_s1] sm:$0xff] (!%p188_p2)   ;;  %v237_v3 = vlaneseq (!%p188_p2)  ;;  %v1335_v4 = vld [vmem:[%s1590_s1 + $0x18] sm:$0xff] (!%p188_p2)   ;;  %vm1362_vm0 = vmmov (!%p188_p2), 0   ;;  %p214_p3 = scmp.lt.s32.totalorder (!%p188_p2), %s1134_s19, 1 }
   0x6   : > { %191 = sbr.rel (%p188_p2) target bundleno = 516 (0x204), region = 40  ;;  %1243 = vmatprep.subr.bf16.mxu0 (!%p188_p2), %v1361_v1  ;;  %1251 = vmatprep.subr.bf16.mxu1 (!%p188_p2), %v1361_v1  ;;  %v1336_v5 = vld [vmem:[%s1590_s1 + $0x8] sm:$0xff] (!%p188_p2)   ;;  %vm250_vm1 = vsmask.f32 (!%p188_p2), 256  ;;  %v1363_v6 = vmov (!%p188_p2), 1966171168  }
   0x7   : > { %1244 = vmatpush3.bf16.msra.mxu0 (!%p188_p2), %v1333_v0  ;;  %1247 = vmatprep.mubr.msk.bf16.mxu0 (!%p188_p2), %vm1362_vm0, %v1361_v1  ;;  %v235_v7 = vunpack.c.l.s4 (!%p188_p2), %v1363_v6  ;;  %v1425_v8 = vshrl.u32 (!%p188_p2), %v237_v3, 7  ;;  %vm251_vm2 = vsmask.f32 (!%p188_p2), 1284  ;;  %vm253_vm3 = vsmask.f32 (!%p188_p2), 2312  ;;  %v1338_v25 = vld [vmem:[%s1590_s1 + $0x30] sm:$0xff] (!%p188_p2)  }
   0x8   : > { %1252 = vmatpush3.bf16.msra.mxu1 (!%p188_p2), %v1334_v2  ;;  %1245 = vmatprep.subr.bf16.mxu0 (!%p188_p2), %v1361_v1  ;;  %vm252_vm4 = vmor (!%p188_p2), %vm250_vm1, %vm251_vm2  ;;  %vm255_vm5 = vsmask.f32 (!%p188_p2), 3340  ;;  %vm257_vm7 = vsmask.f32 (!%p188_p2), 4368  ;;  %vm259_vm8 = vsmask.f32 (!%p188_p2), 5396 }
   0x9   : > { %1253 = vmatprep.subr.bf16.mxu1 (!%p188_p2), %v1361_v1  ;;  %1255 = vmatprep.mubr.msk.bf16.mxu1 (!%p188_p2), %vm1362_vm0, %v1361_v1  ;;  %v236_v9 = vunpack.c.0.s8 (!%p188_p2), %v235_v7  ;;  %vm254_vm6 = vmor (!%p188_p2), %vm252_vm4, %vm253_vm3  ;;  %vm261_vm10 = vsmask.f32 (!%p188_p2), 6424  ;;  %vm263_vm13 = vsmask.f32 (!%p188_p2), 7452  ;;  %vm315_vm1 = vcmask (!%p188_p2), 261120   ;;  %v1340_v35 = vld [vmem:[%s1590_s1 + $0x38] sm:$0xff] (!%p188_p2)  }
   0xa   : > { %vm256_vm9 = vmor (!%p188_p2), %vm254_vm6, %vm255_vm5  ;;  %v1337_v39 = vld [vmem:[%s1590_s1 + $0x20] sm:$0xff] (!%p188_p2)   ;;  %v1342_v48 = vld [vmem:[%s1590_s1 + $0x50] sm:$0xff] (!%p188_p2)   ;;  %vm1019_vm2 = vcmask (!%p188_p2), 1043456   ;;  %vm1078_vm3 = vcmask (!%p188_p2), 57344  }
   0xb   : > { %1246 = vmatpush3.bf16.msra.mxu0 (!%p188_p2), %v1335_v4  ;;  %v1436_v13 = vsub.s32 (!%p188_p2), %v236_v9, %v1425_v8  ;;  %vm258_vm11 = vmor (!%p188_p2), %vm256_vm9, %vm257_vm7  ;;  %v1339_v51 = vld [vmem:[%s1590_s1 + $0x28] sm:$0xff] (!%p188_p2)   ;;  %v1344_v54 = vld [vmem:[%s1590_s1 + $0x58] sm:$0xff] (!%p188_p2)  }
   0xc   : > { %1254 = vmatpush3.bf16.msra.mxu1 (!%p188_p2), %v1336_v5  ;;  %1259 = vmatprep.subr.bf16.mxu0 (!%p188_p2), %v1361_v1  ;;  %vm260_vm12 = vmor (!%p188_p2), %vm258_vm11, %vm259_vm8  ;;  %v1341_v57 = vld [vmem:[%s1590_s1 + $0x40] sm:$0xff] (!%p188_p2)   ;;  %v1346_v60 = vld [vmem:[%s1590_s1 + $0x70] sm:$0xff] (!%p188_p2)  }
   0xd   : > { %s1598_s19 = smov (!%p214_p3, %s1134_s19), 1  ;;  %1267 = vmatprep.subr.bf16.mxu1 %v1361_v1  ;;  %vm262_vm14 = vmor %vm260_vm12, %vm261_vm10  ;;  %v1343_v62 = vld [vmem:[%s1590_s1 + $0x48] sm:$0xff]   ;;  %v1348_v0 = vld [vmem:[%s1590_s1 + $0x78] sm:$0xff]  }
   0xe   : > { %s1213_s28 = sshll.u32 %s1598_s19, 3  ;;  %vm1447_vm15 = vmor %vm262_vm14, %vm263_vm13  ;;  %v1345_v4 = vld [vmem:[%s1590_s1 + $0x60] sm:$0xff]   ;;  %v1347_v7 = vld [vmem:[%s1590_s1 + $0x68] sm:$0xff]   ;;  %s1141_s20 = sshll.u32 %s1598_s19, 1 }
   0xf   : > { %s218_s6 = scalar_lea.vmem %s1589_s0, %s1213_s28  ;;  %s222_s23 = scalar_lea.vmem %s1594_s5, %s1141_s20 }
  0x10   : > { %v224_v10 = vld [vmem:[%s218_s6] sm:$0x3]  ;;  %v225_v11 = vld [vmem:[%s218_s6 + $0x2] sm:$0x3]  ;;  %v1433_v12 = vld [vmem:[%s218_s6 + $0x4] sm:$0x3] }
  0x11   : > { %v359_v14 = vcombine.low %v224_v10, %v225_v11  ;;  %v240_v15 = vrot.slane %v224_v10, %v1436_v13  ;;  %v248_v16 = vrot.slane %v225_v11, %v1436_v13  ;;  %v1440_v17 = vld [vmem:[%s218_s6 + $0x6] sm:$0x3]  ;;  %v1444_v18 = vrot.slane %v1433_v12, %v1436_v13 }
  0x12   : > { %v511_v26 = vcombine.low %v225_v11, %v1433_v12  ;;  %v1457_v29 = vrot.slane %v1440_v17, %v1436_v13  ;;  %v757_v3 = vcombine.low %v1433_v12, %v1440_v17  ;;  %v1349_v11 = vld [vmem:[%s1590_s1 + $0x80] sm:$0xff]  }
  0x13   : > { %v366_v19 = vrot.slane %v359_v14, %v1436_v13  ;;  %v241_v20 = vcombine.high %v240_v15, %v240_v15  ;;  %v249_v21 = vcombine.high %v248_v16, %v248_v16  ;;  %v266_v22 = vshrl.u32 %v240_v15, 16  ;;  %v1350_v14 = vld [vmem:[%s1590_s1 + $0x88] sm:$0xff]  }
  0x14   : > { %v275_v23 = vshrl.u32 %v248_v16, 16  ;;  %v589_v33 = vcombine.high %v1444_v18, %v1444_v18  ;;  %v518_v36 = vrot.slane %v511_v26, %v1436_v13  ;;  %v835_v37 = vcombine.high %v1457_v29, %v1457_v29 }
  0x15   : > { %v271_v27 = vshll.u32 %v241_v20, 16  ;;  %v280_v28 = vshll.u32 %v249_v21, 16  ;;  %v373_v30 = vrot.slane %v366_v19, %v1436_v13  ;;  %v1158_v40 = vcombine.high %v240_v15, %v248_v16 }
  0x16   : > { %v591_v41 = vshrl.u32 %v1444_v18, 16  ;;  %v596_v42 = vshll.u32 %v589_v33, 16  ;;  %v837_v44 = vshrl.u32 %v1457_v29, 16  ;;  %v525_v45 = vrot.slane %v518_v36, %v1436_v13 }
  0x17   : > { %v273_v31 = vsel %vm1447_vm15, %v266_v22, %v271_v27  ;;  %v282_v32 = vsel %vm1447_vm15, %v275_v23, %v280_v28  ;;  %1256 = vmatmul.mubr.msk.bf16.vlgmr.msra.gmra.mrb[0].mxu1 %vm315_vm1, %v373_v30  ;;  %v1181_v46 = vcombine.high %v248_v16, %v1444_v18  ;;  %v842_v47 = vshll.u32 %v835_v37, 16  ;;  %v1007_v16 = vld [vmem:[%s1592_s3] sm:$0xf] }
  0x18   : > { %v288_v34 = vcombine.low %v273_v31, %v282_v32  ;;  %1268 = vmatpush3.bf16.msra.mxu1 %v1338_v25  ;;  %1271 = vmatprep.mubr.msk.bf16.mxu1 %vm1362_vm0, %v1361_v1  ;;  %v441_v49 = vrot.slane %v1158_v40, %v1436_v13  ;;  %v598_v50 = vsel %vm1447_vm15, %v591_v41, %v596_v42  ;;  %v1021_v17 = vsel %vm1019_vm2, %v1007_v16, 0 }
  0x19   : > { %1269 = vmatprep.subr.bf16.mxu1 %v1361_v1  ;;  %v687_v52 = vrot.slane %v1181_v46, %v1436_v13  ;;  %v844_v53 = vsel %vm1447_vm15, %v837_v44, %v842_v47  ;;  %v604_v55 = vcombine.low %v282_v32, %v598_v50  ;;  %v764_v6 = vrot.slane %v757_v3, %v1436_v13 }
  0x1a   : > { %v295_v38 = vrot.slane %v288_v34, %v1436_v13  ;;  %v448_v56 = vrot.slane %v441_v49, %v1436_v13  ;;  %v850_v58 = vcombine.low %v598_v50, %v844_v53  ;;  %v1204_v10 = vcombine.high %v1444_v18, %v1457_v29 }
  0x1b   : > { %v694_v59 = vrot.slane %v687_v52, %v1436_v13  ;;  %v611_v61 = vrot.slane %v604_v55, %v1436_v13  ;;  %v771_v9 = vrot.slane %v764_v6, %v1436_v13 }
  0x1c   : > { %v302_v43 = vrot.slane %v295_v38, %v1436_v13  ;;  %1270 = vmatpush3.bf16.msra.mxu1 %v1340_v35  ;;  %v857_v63 = vrot.slane %v850_v58, %v1436_v13  ;;  %v933_v12 = vrot.slane %v1204_v10, %v1436_v13 }
  0x1d   : > { %1283 = vmatprep.subr.bf16.mxu1 %v1361_v1  ;;  %v618_v2 = vrot.slane %v611_v61, %v1436_v13 }
  0x1e   : > { %1248 = vmatmul.mubr.msk.bf16.vlgmr.msra.gmra.mrb[0].mxu0 %vm315_vm1, %v302_v43  ;;  %v864_v5 = vrot.slane %v857_v63, %v1436_v13  ;;  %v940_v15 = vrot.slane %v933_v12, %v1436_v13 }
  0x1f   : > { %1260 = vmatpush3.bf16.msra.mxu0 %v1337_v39  ;;  %1263 = vmatprep.mubr.msk.bf16.mxu0 %vm1362_vm0, %v1361_v1 }
  0x20   : > { %1261 = vmatprep.subr.bf16.mxu0 %v1361_v1  ;;  %1272 = vmatmul.mubr.msk.bf16.vlgmr.msra.gmra.mrb[4].mxu1 %vm315_vm1, %v525_v45 }
  0x21   : > { %1284 = vmatpush3.bf16.msra.mxu1 %v1342_v48  ;;  %1287 = vmatprep.mubr.msk.bf16.mxu1 %vm1362_vm0, %v1361_v1 }
  0x22   : > { %1285 = vmatprep.subr.bf16.mxu1 %v1361_v1 }
  0x23   : > { %1262 = vmatpush3.bf16.msra.mxu0 %v1339_v51 }
  0x24   : > { %1275 = vmatprep.subr.bf16.mxu0 %v1361_v1 }
  0x25   : > { %1286 = vmatpush3.bf16.msra.mxu1 %v1344_v54 }
  0x26   : > { %1264 = vmatmul.mubr.msk.bf16.vlgmr.msra.gmra.mrb[4].mxu0 %vm315_vm1, %v448_v56  ;;  %1299 = vmatprep.subr.bf16.mxu1 %v1361_v1  ;;  %v1208_v56 = vld [vmem:[%s1591_s2] ss:$0 sm:$0xff] }
  0x27   : > { %1276 = vmatpush3.bf16.msra.mxu0 %v1341_v57  ;;  %1279 = vmatprep.mubr.msk.bf16.mxu0 %vm1362_vm0, %v1361_v1 }
  0x28   : > { %1277 = vmatprep.subr.bf16.mxu0 %v1361_v1  ;;  %1288 = vmatmul.mubr.msk.bf16.vlgmr.msra.gmra.mrb[8].mxu1 %vm315_vm1, %v694_v59 }
  0x29   : > { %1300 = vmatpush3.bf16.msra.mxu1 %v1346_v60  ;;  %1303 = vmatprep.mubr.msk.bf16.mxu1 %vm1362_vm0, %v1361_v1 }
  0x2a   : > { %1301 = vmatprep.subr.bf16.mxu1 %v1361_v1 }
  0x2b   : > { %1278 = vmatpush3.bf16.msra.mxu0 %v1343_v62 }
  0x2c   : > { %1291 = vmatprep.subr.bf16.mxu0 %v1361_v1 }
  0x2d   : > { %1302 = vmatpush3.bf16.msra.mxu1 %v1348_v0  ;;  %v1209_v0 = vld [vmem:[%s1593_s4] ss:$0 sm:$0xff] }
  0x2e   : > { %1280 = vmatmul.mubr.msk.bf16.vlgmr.msra.gmra.mrb[8].mxu0 %vm315_vm1, %v618_v2  ;;  %1315 = vmatprep.subr.bf16.mxu1 %v1361_v1 }
  0x2f   : > { %1292 = vmatpush3.bf16.msra.mxu0 %v1345_v4  ;;  %1295 = vmatprep.mubr.msk.bf16.mxu0 %vm1362_vm0, %v1361_v1 }
  0x30   : > { %1293 = vmatprep.subr.bf16.mxu0 %v1361_v1  ;;  %1304 = vmatmul.mubr.msk.bf16.vlgmr.msra.gmra.mrb[12].mxu1 %vm315_vm1, %v864_v5 }
  0x31   : > { %1317 = vmatprep.mubr.msk.bf16.mxu1 %vm1362_vm0, %v1361_v1  ;;  %1316 = vmatpush3.bf16.msra.mxu1 %v1021_v17 }
  0x33   : > { %1294 = vmatpush3.bf16.msra.mxu0 %v1347_v7  ;;  %v1364_v7 = vmov 1983009808  }
  0x34   : > { %1307 = vmatprep.subr.bf16.mxu0 %v1361_v1 }
  0x36   : > { %1296 = vmatmul.mubr.msk.bf16.vlgmr.msra.gmra.mrb[12].mxu0 %vm315_vm1, %v771_v9  ;;  %v1067_v9 = vunpack.c.l.s4 %v1364_v7 }
  0x37   : > { %1308 = vmatpush3.bf16.msra.mxu0 %v1349_v11  ;;  %1311 = vmatprep.mubr.msk.bf16.mxu0 %vm1362_vm0, %v1361_v1  ;;  %vm1015_vm0 = vcmask 64512  }
  0x38   : > { %1309 = vmatprep.subr.bf16.mxu0 %v1361_v1  ;;  %v1068_v10 = vunpack.c.0.s8 %v1067_v9 }
  0x3a   : > { %v1071_v11 = vsub.s32 %v1068_v10, %v1425_v8 }
  0x3b   : > { %1310 = vmatpush3.bf16.msra.mxu0 %v1350_v14 }
  0x3e   : > { %1312 = vmatmul.mubr.msk.bf16.vlgmr.msra.gmra.mrb[16].mxu0 %vm315_vm1, %v940_v15 }
  0xea   : > { %v423_v18 = vpop.f32.mrb[0].mxu1 }
  0xeb   : > { %v1257_v19 = vpop.f32.mrb[1].mxu1 }
  0xec   : > { %v426_v20 = vpop.f32.mrb[2].mxu1 }
  0xed   : > { %v1258_v21 = vpop.f32.mrb[3].mxu1 }
  0xf1   : > { %v353_v22 = vpop.f32.mrb[0].mxu0 }
  0xf2   : > { %v424_v23 = vadd.f32 %v423_v18, %v353_v22  ;;  %v1249_v24 = vpop.f32.mrb[1].mxu0 }
  0xf3   : > { %v356_v1 = vpop.f32.mrb[2].mxu0  ;;  %v575_v25 = vpop.f32.mrb[4].mxu1 }
  0xf4   : > { %v1250_v13 = vpop.f32.mrb[3].mxu0  ;;  %v1273_v26 = vpop.f32.mrb[5].mxu1 }
  0xf5   : > { %v578_v27 = vpop.f32.mrb[6].mxu1 }
  0xf6   : > { %v1274_v28 = vpop.f32.mrb[7].mxu1 }
  0xf9   : > { %v498_v29 = vpop.f32.mrb[4].mxu0 }
  0xfa   : > { %v504_v30 = vadd.f32 %v498_v29, %v424_v23  ;;  %v1265_v31 = vpop.f32.mrb[5].mxu0 }
  0xfb   : > { %v501_v32 = vpop.f32.mrb[6].mxu0  ;;  %v744_v33 = vpop.f32.mrb[8].mxu1 }
  0xfc   : > { %v581_v34 = vadd.f32 %v575_v25, %v504_v30  ;;  %v1266_v35 = vpop.f32.mrb[7].mxu0  ;;  %v1289_v36 = vpop.f32.mrb[9].mxu1 }
  0xfd   : > { %v747_v37 = vpop.f32.mrb[10].mxu1 }
  0xfe   : > { %v1290_v38 = vpop.f32.mrb[11].mxu1 }
 0x101   : > { %v668_v39 = vpop.f32.mrb[8].mxu0 }
 0x102   : > { %v674_v40 = vadd.f32 %v668_v39, %v581_v34  ;;  %v1281_v41 = vpop.f32.mrb[9].mxu0 }
 0x103   : > { %v671_v42 = vpop.f32.mrb[10].mxu0  ;;  %v914_v43 = vpop.f32.mrb[12].mxu1 }
 0x104   : > { %v750_v44 = vadd.f32 %v744_v33, %v674_v40  ;;  %v1282_v45 = vpop.f32.mrb[11].mxu0  ;;  %v1305_v46 = vpop.f32.mrb[13].mxu1 }
 0x105   : > { %v917_v47 = vpop.f32.mrb[14].mxu1 }
 0x106   : > { %v1306_v48 = vpop.f32.mrb[15].mxu1 }
 0x109   : > { %v821_v49 = vpop.f32.mrb[12].mxu0 }
 0x10a   : > { %v827_v50 = vadd.f32 %v821_v49, %v750_v44  ;;  %v1297_v51 = vpop.f32.mrb[13].mxu0 }
 0x10b   : > { %v824_v52 = vpop.f32.mrb[14].mxu0 }
 0x10c   : > { %v920_v53 = vadd.f32 %v914_v43, %v827_v50  ;;  %v1298_v54 = vpop.f32.mrb[15].mxu0 }
 0x111   : > { %v990_v55 = vpop.f32.mrb[16].mxu0 }
 0x112   : > { %v996_v57 = vadd.f32 %v990_v55, %v920_v53  ;;  %v1313_v58 = vpop.f32.mrb[17].mxu0 }
 0x113   : > { %v993_v59 = vpop.f32.mrb[18].mxu0 }
 0x114   : > { %v1004_v60 = vadd.f32 %v1208_v56, %v996_v57  ;;  %v1314_v61 = vpop.f32.mrb[19].mxu0 }
 0x116   : > { %v1005_v62 = vmul.f32 %v1004_v60, %v1004_v60 }
 0x118   : > { %v1006_v63 = vpack.c.bf16 %v1005_v62, %v1005_v62 }
 0x11a   : > { %1318 = vmatmul.mubr.msk.bf16.vlgmr.msra.gmra.mrb[16].mxu1 %vm1015_vm0, %v1006_v63 }
 0x1ed   : > { %v1057_v2 = vpop.f32.mrb[16].mxu1 }
 0x1ee   : > { %v1058_v3 = vadd.f32 %v1209_v0, %v1057_v2  ;;  %v1319_v4 = vpop.f32.mrb[17].mxu1 }
 0x1ef   : > { %v1060_v5 = vpop.f32.mrb[18].mxu1 }
 0x1f0   : > { %1351 = vrsqrt.f32 %v1058_v3  ;;  %v1320_v6 = vpop.f32.mrb[19].mxu1 }
 0x1fa   : > { %v1352_v12 = vpop.eup %1351 }
 0x1fb   : > { %v1064_v14 = vmul.f32 %v1352_v12, %v1004_v60 }
 0x1fd   : > { %v1072_v15 = vrot.slane %v1064_v14, %v1071_v11 }
 0x1ff   : > { %v1073_v16 = vcombine.high %v1072_v15, %v1072_v15  ;;  %v1076_v17 = vpack.c.bf16 %v1072_v15, %v1072_v15 }
 0x201   : > { %v1077_v18 = vpack.c.bf16 %v1073_v16, %v1073_v16  ;;  %1079 = vst.msk [vmem:[%s222_s23] sm:$0x1] %vm1078_vm3, %v1076_v17 }
 0x203   : > { %1080 = vst.msk [vmem:[%s222_s23 + $0x1] sm:$0x1] %vm1078_vm3, %v1077_v18 }
 0x204 PF: > { %s15_s18 = sadd.s32 1, %s1359_s18  }
 0x205   : > { %p12_p4 = scmp.ge.s32.totalorder %s15_s18, 4  }
 0x207   :  { %14 = sbr.rel (!%p12_p4) target bundleno = 1 (0x1), region = 78 }

// kernel: factorized_prior_forward.9
= control target key start
LH: loop header
LB: loop body
LE: loop exit
PB: predicated region body
PF: predicated region fallthrough
CT: control target
= control target key end

     0   :  { %s1509_s18 = smov 0   ;;  %s1822_s0 = inlined_call_operand.vmem [shape: bf16[2,6,6,32], index: 0, kind: input, shape index: {}]   ;;  %s1823_s1 = inlined_call_operand.vmem [shape: bf16[9,32,8], index: 1, kind: input, shape index: {}]   ;;  %s1824_s2 = inlined_call_operand.vmem [shape: f32[1,8], index: 2, kind: input, shape index: {}]   ;;  %s1825_s3 = inlined_call_operand.vmem [shape: bf16[8,8], index: 3, kind: input, shape index: {}]   ;;  %s1826_s4 = inlined_call_operand.vmem [shape: f32[1,8], index: 4, kind: input, shape index: {}]   ;;  %s1827_s5 = inlined_call_operand.vmem [shape: bf16[2,4,4,8], index: 5, kind: output, shape index: {}]  }
   0x1 LB: > { %s1243_s19 = sadd.s32 4294967295, %s1474_s18   ;;  %p1247_p0 = scmp.ge.s32.totalorder %s1474_s18, 1  ;;  %s1474_s18 = sphi %s1509_s18, %s15_s18  }
   0x2   : > { %p187_p1 = scmp.lt.s32.totalorder %s1474_s18, 3 }
   0x4   : > { %p188_p2 = pnand %p1247_p0, %p187_p1 }
   0x5   : > { %v1441_v0 = vld [vmem:[%s1823_s1 + $0x10] sm:$0xff] (!%p188_p2)   ;;  %v1476_v1 = vmov (!%p188_p2), 0.0   ;;  %v1442_v2 = vld [vmem:[%s1823_s1] sm:$0xff] (!%p188_p2)   ;;  %v243_v3 = vlaneseq (!%p188_p2)  ;;  %v1443_v4 = vld [vmem:[%s1823_s1 + $0x18] sm:$0xff] (!%p188_p2)   ;;  %vm1477_vm0 = vmmov (!%p188_p2), 0   ;;  %p215_p3 = scmp.lt.s32.totalorder (!%p188_p2), %s1243_s19, 1 }
   0x6   : > { %191 = sbr.rel (%p188_p2) target bundleno = 529 (0x211), region = 40  ;;  %1351 = vmatprep.subr.bf16.mxu0 (!%p188_p2), %v1476_v1  ;;  %1359 = vmatprep.subr.bf16.mxu1 (!%p188_p2), %v1476_v1  ;;  %v1444_v5 = vld [vmem:[%s1823_s1 + $0x8] sm:$0xff] (!%p188_p2)   ;;  %v1478_v6 = vmov (!%p188_p2), 1983009808   ;;  %vm272_vm1 = vsmask.f32 (!%p188_p2), 1280 }
   0x7   : > { %1352 = vmatpush3.bf16.msra.mxu0 (!%p188_p2), %v1441_v0  ;;  %1355 = vmatprep.mubr.msk.bf16.mxu0 (!%p188_p2), %vm1477_vm0, %v1476_v1  ;;  %v241_v7 = vunpack.c.l.s4 (!%p188_p2), %v1478_v6  ;;  %v244_v8 = vshrl.u32 (!%p188_p2), %v243_v3, 7  ;;  %vm273_vm2 = vsmask.f32 (!%p188_p2), 3336  ;;  %vm275_vm3 = vsmask.f32 (!%p188_p2), 5392 }
   0x8   : > { %1360 = vmatpush3.bf16.msra.mxu1 (!%p188_p2), %v1442_v2  ;;  %1353 = vmatprep.subr.bf16.mxu0 (!%p188_p2), %v1476_v1  ;;  %vm277_vm4 = vsmask.f32 (!%p188_p2), 7448  ;;  %vm487_vm5 = vcmask (!%p188_p2), 1040384   ;;  %vm488_vm6 = vcmask (!%p188_p2), 1042434   ;;  %vm274_vm7 = vmor (!%p188_p2), %vm272_vm1, %vm273_vm2  ;;  %vm490_vm8 = vcmask (!%p188_p2), 1044484  }
   0x9   : > { %1361 = vmatprep.subr.bf16.mxu1 (!%p188_p2), %v1476_v1  ;;  %1363 = vmatprep.mubr.msk.bf16.mxu1 (!%p188_p2), %vm1477_vm0, %v1476_v1  ;;  %v242_v9 = vunpack.c.0.s8 (!%p188_p2), %v241_v7  ;;  %vm276_vm9 = vmor (!%p188_p2), %vm274_vm7, %vm275_vm3  ;;  %vm369_vm11 = vcmask (!%p188_p2), 261120   ;;  %vm492_vm13 = vcmask (!%p188_p2), 1046534   ;;  %vm1124_vm1 = vcmask (!%p188_p2), 1043456  }
   0xa   : > { %vm1611_vm10 = vmor (!%p188_p2), %vm276_vm9, %vm277_vm4  ;;  %vm1183_vm2 = vcmask (!%p188_p2), 58368  }
   0xb   : > { %1354 = vmatpush3.bf16.msra.mxu0 (!%p188_p2), %v1443_v4  ;;  %v1551_v13 = vsub.s32 (!%p188_p2), %v242_v9, %v244_v8  ;;  %vm489_vm12 = vmor (!%p188_p2), %vm487_vm5, %vm488_vm6 }
   0xc   : > { %1362 = vmatpush3.bf16.msra.mxu1 (!%p188_p2), %v1444_v5  ;;  %1367 = vmatprep.subr.bf16.mxu0 (!%p188_p2), %v1476_v1  ;;  %vm491_vm14 = vmor (!%p188_p2), %vm489_vm12, %vm490_vm8 }
   0xd   : > { %s1833_s19 = smov (!%p215_p3, %s1243_s19), 1  ;;  %1375 = vmatprep.subr.bf16.mxu1 %v1476_v1  ;;  %vm1667_vm15 = vmor %vm491_vm14, %vm492_vm13 }
   0xe   : > { %s1429_s28 = smul.u32 24, %s1833_s19  ;;  %s1321_s20 = sshll.u32 %s1833_s19, 3 }
   0xf   : > { %s224_s23 = scalar_lea.vmem %s1827_s5, %s1321_s20 }
  0x10   : > { %s219_s6 = scalar_lea.vmem %s1822_s0, %s1429_s28 }
  0x11   : > { %v1545_v10 = vld [vmem:[%s219_s6] sm:$0x7]  ;;  %v1547_v11 = vld [vmem:[%s219_s6 + $0x4] sm:$0x7]  ;;  %v1549_v12 = vld [vmem:[%s219_s6 + $0x8] sm:$0x7] }
  0x12   : > { %v1553_v14 = vld [vmem:[%s219_s6 + $0xc] sm:$0x7]  ;;  %v1555_v15 = vld [vmem:[%s219_s6 + $0x10] sm:$0x7]  ;;  %v1559_v16 = vrot.slane %v1545_v10, %v1551_v13  ;;  %v1563_v17 = vrot.slane %v1547_v11, %v1551_v13  ;;  %v1567_v18 = vrot.slane %v1549_v12, %v1551_v13  ;;  %v414_v21 = vcombine.low %v1545_v10, %v1547_v11  ;;  %v1597_v26 = vld [vmem:[%s219_s6 + $0x14] sm:$0x7] }
  0x13   : > { %v1571_v19 = vrot.slane %v1553_v14, %v1551_v13  ;;  %v1575_v20 = vrot.slane %v1555_v15, %v1551_v13  ;;  %v1619_v51 = vrot.slane %v1597_v26, %v1551_v13  ;;  %v415_v55 = vcombine.low %v1549_v12, %v1553_v14 }
  0x14   : > { %v1581_v22 = vcombine.high %v1559_v16, %v1559_v16  ;;  %v1585_v23 = vcombine.high %v1563_v17, %v1563_v17  ;;  %v1589_v24 = vcombine.high %v1567_v18, %v1567_v18  ;;  %v280_v27 = vshrl.u32 %v1559_v16, 16 }
  0x15   : > { %v1593_v25 = vcombine.high %v1571_v19, %v1571_v19  ;;  %v283_v28 = vshll.u32 %v1559_v16, 16  ;;  %v294_v29 = vshrl.u32 %v1563_v17, 16  ;;  %v297_v30 = vshll.u32 %v1563_v17, 16 }
  0x16   : > { %v289_v31 = vshll.u32 %v1581_v22, 16  ;;  %v303_v32 = vshll.u32 %v1585_v23, 16  ;;  %v308_v33 = vshrl.u32 %v1567_v18, 16  ;;  %v311_v34 = vshll.u32 %v1567_v18, 16 }
  0x17   : > { %v282_v35 = vrot.slane %v280_v27, 6  ;;  %v285_v36 = vrot.slane %v283_v28, 7  ;;  %v296_v37 = vrot.slane %v294_v29, 6  ;;  %v299_v38 = vrot.slane %v297_v30, 7 }
  0x18   : > { %v291_v39 = vrot.slane %v289_v31, 7  ;;  %v305_v40 = vrot.slane %v303_v32, 7  ;;  %v310_v41 = vrot.slane %v308_v33, 6  ;;  %v313_v42 = vrot.slane %v311_v34, 7  ;;  %v1449_v33 = vld [vmem:[%s1823_s1 + $0x30] sm:$0xff]  }
  0x19   : > { %v286_v43 = vor.u32 %v285_v36, %v282_v35  ;;  %v300_v44 = vor.u32 %v299_v38, %v296_v37  ;;  %v317_v45 = vshll.u32 %v1589_v24, 16  ;;  %v322_v46 = vshrl.u32 %v1571_v19, 16 }
  0x1a   : > { %v314_v48 = vor.u32 %v313_v42, %v310_v41  ;;  %v325_v49 = vshll.u32 %v1571_v19, 16  ;;  %v331_v50 = vshll.u32 %v1593_v25, 16  ;;  %v680_v59 = vshrl.u32 %v1575_v20, 16 }
  0x1b   : > { %v287_v52 = vrot.slane %v286_v43, 2  ;;  %v301_v53 = vrot.slane %v300_v44, 2  ;;  %v324_v54 = vrot.slane %v322_v46, 6  ;;  %v319_v57 = vrot.slane %v317_v45, 7 }
  0x1c   : > { %v315_v56 = vrot.slane %v314_v48, 2  ;;  %v327_v58 = vrot.slane %v325_v49, 7  ;;  %v1632_v62 = vcombine.high %v1575_v20, %v1575_v20  ;;  %v683_v63 = vshll.u32 %v1575_v20, 16 }
  0x1d   : > { %v292_v60 = vsel %vm1611_vm10, %v287_v52, %v291_v39  ;;  %v1628_v61 = vsel %vm1611_vm10, %v301_v53, %v305_v40  ;;  %v333_v2 = vrot.slane %v331_v50, 7  ;;  %v682_v3 = vrot.slane %v680_v59, 6 }
  0x1e   : > { %v328_v0 = vor.u32 %v327_v58, %v324_v54  ;;  %v340_v4 = vcombine.low %v292_v60, %v1628_v61  ;;  %v685_v5 = vrot.slane %v683_v63, 7  ;;  %v422_v6 = vrot.slane %v414_v21, %v1551_v13  ;;  %v1455_v63 = vld [vmem:[%s1823_s1 + $0x50] sm:$0xff]  }
  0x1f   : > { %v1641_v7 = vsel %vm1611_vm10, %v315_v56, %v319_v57  ;;  %v939_v9 = vshrl.u32 %v1619_v51, 16  ;;  %v942_v10 = vshll.u32 %v1619_v51, 16  ;;  %v689_v28 = vshll.u32 %v1632_v62, 16 }
  0x20   : > { %v329_v8 = vrot.slane %v328_v0, 2  ;;  %v686_v27 = vor.u32 %v685_v5, %v682_v3  ;;  %v1649_v29 = vcombine.high %v1619_v51, %v1619_v51  ;;  %v1652_v21 = vrot.slane %v415_v55, %v1551_v13 }
  0x21   : > { %v941_v31 = vrot.slane %v939_v9, 6  ;;  %v944_v32 = vrot.slane %v942_v10, 7  ;;  %v1261_v34 = vrot.slane %v1559_v16, 9  ;;  %v348_v36 = vrot.slane %v340_v4, %v1551_v13  ;;  %v1457_v10 = vld [vmem:[%s1823_s1 + $0x58] sm:$0xff]  }
  0x22   : > { %v1656_v30 = vsel %vm1611_vm10, %v329_v8, %v333_v2  ;;  %v430_v37 = vcombine.low %v422_v6, %v1652_v21  ;;  %v496_v39 = vrot.slane %v1581_v22, 7  ;;  %v1262_v40 = vrot.slane %v1563_v17, 9  ;;  %v1448_v17 = vld [vmem:[%s1823_s1 + $0x20] sm:$0xff]  }
  0x23   : > { %v341_v35 = vcombine.low %v1641_v7, %v1656_v30  ;;  %v596_v41 = vcombine.low %v1547_v11, %v1549_v12  ;;  %v948_v42 = vshll.u32 %v1649_v29, 16  ;;  %v500_v43 = vrot.slane %v1585_v23, 7 }
  0x24   : > { %1364 = vmatmul.mubr.msk.bf16.vlgmr.msra.gmra.mrb[0].mxu1 %vm369_vm11, %v430_v37  ;;  %v1263_v44 = vrot.slane %v1567_v18, 9  ;;  %v687_v45 = vrot.slane %v686_v27, 2  ;;  %v691_v46 = vrot.slane %v689_v28, 7  ;;  %v945_v48 = vor.u32 %v944_v32, %v941_v31  ;;  %v1451_v18 = vld [vmem:[%s1823_s1 + $0x38] sm:$0xff]   ;;  %v1456_v31 = vld [vmem:[%s1823_s1 + $0x48] sm:$0xff]   ;;  %v1458_v37 = vld [vmem:[%s1823_s1 + $0x60] sm:$0xff]  }
  0x25   : > { %v1676_v16 = vrot.slane %v341_v35, %v1551_v13  ;;  %1376 = vmatpush3.bf16.msra.mxu1 %v1449_v33  ;;  %v497_v11 = vsel %vm1667_vm15, %v1261_v34, %v496_v39  ;;  %1379 = vmatprep.mubr.msk.bf16.mxu1 %vm1477_vm0, %v1476_v1  ;;  %v501_v22 = vsel %vm1667_vm15, %v1262_v40, %v500_v43  ;;  %v504_v23 = vrot.slane %v1589_v24, 7  ;;  %v1459_v33 = vld [vmem:[%s1823_s1 + $0x70] sm:$0xff]  }
  0x26   : > { %1377 = vmatprep.subr.bf16.mxu1 %v1476_v1  ;;  %v1264_v49 = vrot.slane %v1571_v19, 9  ;;  %v508_v50 = vrot.slane %v1593_v25, 7  ;;  %v515_v52 = vcombine.low %v497_v11, %v501_v22  ;;  %v597_v53 = vcombine.low %v1553_v14, %v1555_v15  ;;  %v1450_v19 = vld [vmem:[%s1823_s1 + $0x28] sm:$0xff]  }
  0x27   : > { %v356_v12 = vcombine.low %v348_v36, %v1676_v16  ;;  %v950_v54 = vrot.slane %v948_v42, 7  ;;  %v505_v55 = vsel %vm1667_vm15, %v1263_v44, %v504_v23  ;;  %v604_v56 = vrot.slane %v596_v41, %v1551_v13 }
  0x28   : > { %v692_v57 = vsel %vm1611_vm10, %v687_v45, %v691_v46  ;;  %v509_v14 = vsel %vm1667_vm15, %v1264_v49, %v508_v50  ;;  %v611_v24 = vrot.slane %v597_v53, %v1551_v13  ;;  %v1286_v25 = vrot.slane %v1575_v20, 9  ;;  %v1112_v45 = vld [vmem:[%s1825_s3] sm:$0xf] }
  0x29   : > { %1356 = vmatmul.mubr.msk.bf16.vlgmr.msra.gmra.mrb[0].mxu0 %vm369_vm11, %v356_v12  ;;  %v946_v58 = vrot.slane %v945_v48, 2  ;;  %1378 = vmatpush3.bf16.msra.mxu1 %v1451_v18  ;;  %v516_v59 = vcombine.low %v505_v55, %v509_v14  ;;  %v523_v60 = vrot.slane %v515_v52, %v1551_v13  ;;  %v775_v0 = vrot.slane %v1632_v62, 7  ;;  %v1452_v62 = vld [vmem:[%s1823_s1 + $0x40] sm:$0xff]  }
  0x2a   : > { %1368 = vmatpush3.bf16.msra.mxu0 %v1448_v17  ;;  %1371 = vmatprep.mubr.msk.bf16.mxu0 %vm1477_vm0, %v1476_v1  ;;  %v612_v2 = vcombine.low %v604_v56, %v611_v24  ;;  %v782_v3 = vcombine.low %v501_v22, %v505_v55  ;;  %v698_v20 = vcombine.low %v1628_v61, %v1641_v7  ;;  %v1308_v39 = vrot.slane %v1619_v51, 9 }
  0x2b   : > { %1369 = vmatprep.subr.bf16.mxu0 %v1476_v1  ;;  %1391 = vmatprep.subr.bf16.mxu1 %v1476_v1  ;;  %v699_v4 = vcombine.low %v1656_v30, %v692_v57  ;;  %v1727_v5 = vrot.slane %v516_v59, %v1551_v13  ;;  %v776_v6 = vsel %vm1667_vm15, %v1286_v25, %v775_v0  ;;  %v1026_v40 = vrot.slane %v1649_v29, 7  ;;  %v1460_v29 = vld [vmem:[%s1823_s1 + $0x68] sm:$0xff]  }
  0x2c   : > { %1380 = vmatmul.mubr.msk.bf16.vlgmr.msra.gmra.mrb[4].mxu1 %vm369_vm11, %v612_v2  ;;  %v783_v8 = vcombine.low %v509_v14, %v776_v6  ;;  %v790_v9 = vrot.slane %v782_v3, %v1551_v13  ;;  %v951_v61 = vsel %vm1611_vm10, %v946_v58, %v950_v54  ;;  %v706_v47 = vrot.slane %v698_v20, %v1551_v13 }
  0x2d   : > { %v531_v7 = vcombine.low %v523_v60, %v1727_v5  ;;  %1392 = vmatpush3.bf16.msra.mxu1 %v1455_v63  ;;  %1395 = vmatprep.mubr.msk.bf16.mxu1 %vm1477_vm0, %v1476_v1  ;;  %v713_v28 = vrot.slane %v699_v4, %v1551_v13  ;;  %v957_v30 = vcombine.low %v692_v57, %v951_v61 }
  0x2e   : > { %1370 = vmatpush3.bf16.msra.mxu0 %v1450_v19  ;;  %1393 = vmatprep.subr.bf16.mxu1 %v1476_v1  ;;  %v797_v27 = vrot.slane %v783_v8, %v1551_v13  ;;  %v863_v34 = vcombine.low %v1555_v15, %v1597_v26  ;;  %v1461_v15 = vld [vmem:[%s1823_s1 + $0x78] sm:$0xff]   ;;  %v1027_v41 = vsel %vm1667_vm15, %v1308_v39, %v1026_v40 }
  0x2f   : > { %1383 = vmatprep.subr.bf16.mxu0 %v1476_v1  ;;  %v714_v35 = vcombine.low %v706_v47, %v713_v28  ;;  %v964_v36 = vrot.slane %v957_v30, %v1551_v13  ;;  %v1033_v43 = vcombine.low %v776_v6, %v1027_v41 }
  0x30   : > { %v798_v32 = vcombine.low %v790_v9, %v797_v27  ;;  %v870_v26 = vrot.slane %v863_v34, %v1551_v13 }
  0x31   : > { %1372 = vmatmul.mubr.msk.bf16.vlgmr.msra.gmra.mrb[4].mxu0 %vm369_vm11, %v531_v7  ;;  %1394 = vmatpush3.bf16.msra.mxu1 %v1457_v10  ;;  %v965_v51 = vcombine.low %v1676_v16, %v964_v36  ;;  %v1462_v16 = vld [vmem:[%s1823_s1 + $0x80] sm:$0xff]   ;;  %v1040_v38 = vrot.slane %v1033_v43, %v1551_v13  ;;  %v1126_v13 = vsel %vm1124_vm1, %v1112_v45, 0 }
  0x32   : > { %1384 = vmatpush3.bf16.msra.mxu0 %v1452_v62  ;;  %1387 = vmatprep.mubr.msk.bf16.mxu0 %vm1477_vm0, %v1476_v1  ;;  %v871_v42 = vcombine.low %v1652_v21, %v870_v26  ;;  %v1463_v21 = vld [vmem:[%s1823_s1 + $0x88] sm:$0xff]   ;;  %v1316_v36 = vld [vmem:[%s1824_s2] ss:$0 sm:$0xff] }
  0x33   : > { %1385 = vmatprep.subr.bf16.mxu0 %v1476_v1  ;;  %1407 = vmatprep.subr.bf16.mxu1 %v1476_v1  ;;  %v1041_v44 = vcombine.low %v1727_v5, %v1040_v38 }
  0x34   : > { %1396 = vmatmul.mubr.msk.bf16.vlgmr.msra.gmra.mrb[8].mxu1 %vm369_vm11, %v798_v32 }
  0x35   : > { %1408 = vmatpush3.bf16.msra.mxu1 %v1459_v33  ;;  %1411 = vmatprep.mubr.msk.bf16.mxu1 %vm1477_vm0, %v1476_v1 }
  0x36   : > { %1386 = vmatpush3.bf16.msra.mxu0 %v1456_v31  ;;  %1409 = vmatprep.subr.bf16.mxu1 %v1476_v1 }
  0x37   : > { %1399 = vmatprep.subr.bf16.mxu0 %v1476_v1 }
  0x39   : > { %1388 = vmatmul.mubr.msk.bf16.vlgmr.msra.gmra.mrb[8].mxu0 %vm369_vm11, %v714_v35  ;;  %1410 = vmatpush3.bf16.msra.mxu1 %v1461_v15 }
  0x3a   : > { %1400 = vmatpush3.bf16.msra.mxu0 %v1458_v37  ;;  %1403 = vmatprep.mubr.msk.bf16.mxu0 %vm1477_vm0, %v1476_v1 }
  0x3b   : > { %1401 = vmatprep.subr.bf16.mxu0 %v1476_v1  ;;  %1423 = vmatprep.subr.bf16.mxu1 %v1476_v1 }
  0x3c   : > { %1412 = vmatmul.mubr.msk.bf16.vlgmr.msra.gmra.mrb[12].mxu1 %vm369_vm11, %v965_v51 }
  0x3d   : > { %1425 = vmatprep.mubr.msk.bf16.mxu1 %vm1477_vm0, %v1476_v1  ;;  %1424 = vmatpush3.bf16.msra.mxu1 %v1126_v13 }
  0x3e   : > { %1402 = vmatpush3.bf16.msra.mxu0 %v1460_v29 }
  0x3f   : > { %1415 = vmatprep.subr.bf16.mxu0 %v1476_v1 }
  0x41   : > { %1404 = vmatmul.mubr.msk.bf16.vlgmr.msra.gmra.mrb[12].mxu0 %vm369_vm11, %v871_v42 }
  0x42   : > { %1416 = vmatpush3.bf16.msra.mxu0 %v1462_v16  ;;  %1419 = vmatprep.mubr.msk.bf16.mxu0 %vm1477_vm0, %v1476_v1  ;;  %vm1120_vm0 = vcmask 64512   ;;  %v1317_v16 = vld [vmem:[%s1826_s4] ss:$0 sm:$0xff] }
  0x43   : > { %1417 = vmatprep.subr.bf16.mxu0 %v1476_v1 }
  0x46   : > { %1418 = vmatpush3.bf16.msra.mxu0 %v1463_v21 }
  0x49   : > { %1420 = vmatmul.mubr.msk.bf16.vlgmr.msra.gmra.mrb[16].mxu0 %vm369_vm11, %v1041_v44 }
  0xf7   : > { %v480_v46 = vpop.f32.mrb[0].mxu1 }
  0xf8   : > { %v1365_v48 = vpop.f32.mrb[1].mxu1 }
  0xf9   : > { %v483_v17 = vpop.f32.mrb[2].mxu1 }
  0xfa   : > { %v1366_v11 = vpop.f32.mrb[3].mxu1 }
  0xfc   : > { %v407_v12 = vpop.f32.mrb[0].mxu0 }
  0xfd   : > { %v481_v18 = vadd.f32 %v480_v46, %v407_v12  ;;  %v1357_v22 = vpop.f32.mrb[1].mxu0 }
  0xfe   : > { %v410_v1 = vpop.f32.mrb[2].mxu0 }
  0xff   : > { %v484_v23 = vadd.f32 %v483_v17, %v410_v1  ;;  %v1358_v49 = vpop.f32.mrb[3].mxu0  ;;  %v662_v50 = vpop.f32.mrb[4].mxu1 }
 0x100   : > { %v1381_v52 = vpop.f32.mrb[5].mxu1 }
 0x101   : > { %v665_v53 = vpop.f32.mrb[6].mxu1 }
 0x102   : > { %v1382_v55 = vpop.f32.mrb[7].mxu1 }
 0x104   : > { %v581_v54 = vpop.f32.mrb[4].mxu0 }
 0x105   : > { %v588_v56 = vadd.f32 %v581_v54, %v481_v18  ;;  %v1373_v57 = vpop.f32.mrb[5].mxu0 }
 0x106   : > { %v584_v19 = vpop.f32.mrb[6].mxu0 }
 0x107   : > { %v589_v14 = vadd.f32 %v584_v19, %v484_v23  ;;  %v669_v24 = vadd.f32 %v662_v50, %v588_v56  ;;  %v1374_v25 = vpop.f32.mrb[7].mxu0  ;;  %v848_v59 = vpop.f32.mrb[8].mxu1 }
 0x108   : > { %v1397_v60 = vpop.f32.mrb[9].mxu1 }
 0x109   : > { %v670_v58 = vadd.f32 %v665_v53, %v589_v14  ;;  %v851_v63 = vpop.f32.mrb[10].mxu1 }
 0x10a   : > { %v1398_v2 = vpop.f32.mrb[11].mxu1 }
 0x10c   : > { %v764_v0 = vpop.f32.mrb[8].mxu0 }
 0x10d   : > { %v771_v3 = vadd.f32 %v764_v0, %v669_v24  ;;  %v1389_v20 = vpop.f32.mrb[9].mxu0 }
 0x10e   : > { %v767_v4 = vpop.f32.mrb[10].mxu0 }
 0x10f   : > { %v772_v5 = vadd.f32 %v767_v4, %v670_v58  ;;  %v855_v6 = vadd.f32 %v848_v59, %v771_v3  ;;  %v1390_v62 = vpop.f32.mrb[11].mxu0  ;;  %v1015_v9 = vpop.f32.mrb[12].mxu1 }
 0x110   : > { %v1413_v61 = vpop.f32.mrb[13].mxu1 }
 0x111   : > { %v856_v8 = vadd.f32 %v851_v63, %v772_v5  ;;  %v1018_v7 = vpop.f32.mrb[14].mxu1 }
 0x112   : > { %v1414_v27 = vpop.f32.mrb[15].mxu1 }
 0x114   : > { %v921_v10 = vpop.f32.mrb[12].mxu0 }
 0x115   : > { %v928_v47 = vadd.f32 %v921_v10, %v855_v6  ;;  %v1405_v28 = vpop.f32.mrb[13].mxu0 }
 0x116   : > { %v924_v30 = vpop.f32.mrb[14].mxu0 }
 0x117   : > { %v929_v31 = vadd.f32 %v924_v30, %v856_v8  ;;  %v1022_v32 = vadd.f32 %v1015_v9, %v928_v47  ;;  %v1406_v33 = vpop.f32.mrb[15].mxu0 }
 0x119   : > { %v1023_v34 = vadd.f32 %v1018_v7, %v929_v31 }
 0x11c   : > { %v1091_v35 = vpop.f32.mrb[16].mxu0 }
 0x11d   : > { %v1098_v37 = vadd.f32 %v1091_v35, %v1022_v32  ;;  %v1421_v39 = vpop.f32.mrb[17].mxu0 }
 0x11e   : > { %v1094_v40 = vpop.f32.mrb[18].mxu0 }
 0x11f   : > { %v1107_v15 = vadd.f32 %v1316_v36, %v1098_v37  ;;  %v1099_v26 = vadd.f32 %v1094_v40, %v1023_v34  ;;  %v1422_v51 = vpop.f32.mrb[19].mxu0 }
 0x121   : > { %v1108_v29 = vadd.f32 %v1316_v36, %v1099_v26  ;;  %v1109_v41 = vmul.f32 %v1107_v15, %v1107_v15 }
 0x123   : > { %v1110_v42 = vmul.f32 %v1108_v29, %v1108_v29 }
 0x125   : > { %v1111_v43 = vpack.c.bf16 %v1110_v42, %v1109_v41 }
 0x127   : > { %1426 = vmatmul.mubr.msk.bf16.vlgmr.msra.gmra.mrb[16].mxu1 %vm1120_vm0, %v1111_v43 }
 0x1fa   : > { %v1162_v38 = vpop.f32.mrb[16].mxu1 }
 0x1fb   : > { %v1163_v21 = vadd.f32 %v1317_v16, %v1162_v38  ;;  %v1427_v44 = vpop.f32.mrb[17].mxu1 }
 0x1fc   : > { %v1165_v45 = vpop.f32.mrb[18].mxu1 }
 0x1fd   : > { %1464 = vrsqrt.f32 %v1163_v21  ;;  %v1166_v13 = vadd.f32 %v1317_v16, %v1165_v45  ;;  %v1428_v46 = vpop.f32.mrb[19].mxu1 }
 0x1ff   : > { %1466 = vrsqrt.f32 %v1166_v13 }
 0x207   : > { %v1465_v48 = vpop.eup %1464 }
 0x208   : > { %v1171_v17 = vmul.f32 %v1465_v48, %v1107_v15 }
 0x209   : > { %v1467_v11 = vpop.eup %1466 }
 0x20a   : > { %v1175_v12 = vcombine.high %v1171_v17, %v1171_v17  ;;  %v1179_v18 = vpack.c.bf16 %v1171_v17, %v1171_v17  ;;  %v1172_v22 = vmul.f32 %v1467_v11, %v1108_v29 }
 0x20c   : > { %v1180_v1 = vpack.c.bf16 %v1175_v12, %v1175_v12  ;;  %1184 = vst.msk [vmem:[%s224_s23] sm:$0x3] %vm1183_vm2, %v1179_v18  ;;  %v1176_v23 = vcombine.high %v1172_v22, %v1172_v22  ;;  %v1181_v49 = vpack.c.bf16 %v1172_v22, %v1172_v22 }
 0x20e   : > { %1185 = vst.msk [vmem:[%s224_s23 + $0x2] sm:$0x3] %vm1183_vm2, %v1180_v1  ;;  %v1182_v50 = vpack.c.bf16 %v1176_v23, %v1176_v23  ;;  %1186 = vst.msk [vmem:[%s224_s23 + $0x4] sm:$0x3] %vm1183_vm2, %v1181_v49 }
 0x210   : > { %1187 = vst.msk [vmem:[%s224_s23 + $0x6] sm:$0x3] %vm1183_vm2, %v1182_v50 }
 0x211 PF: > { %s15_s18 = sadd.s32 1, %s1474_s18  }
 0x212   : > { %p12_p4 = scmp.ge.s32.totalorder %s15_s18, 4  }
 0x214   :  { %14 = sbr.rel (!%p12_p4) target bundleno = 1 (0x1), region = 78 }

// kernel: factorized_prior_forward.11
= control target key start
LH: loop header
LB: loop body
LE: loop exit
PB: predicated region body
PF: predicated region fallthrough
CT: control target
= control target key end

     0   :  { %s1037_s12 = smov 0   ;;  %s1165_s0 = inlined_call_operand.vmem [shape: bf16[2,3,3,32], index: 0, kind: input, shape index: {}]   ;;  %s1166_s1 = inlined_call_operand.vmem [shape: bf16[9,32,16], index: 1, kind: input, shape index: {}]   ;;  %s1167_s2 = inlined_call_operand.vmem [shape: f32[1,16], index: 2, kind: input, shape index: {}]   ;;  %s1168_s3 = inlined_call_operand.vmem [shape: bf16[2,1,1,16], index: 3, kind: output, shape index: {}]  }
   0x1 LB: > { %s810_s13 = sadd.s32 4294967295, %s1012_s12   ;;  %p814_p0 = scmp.ge.s32.totalorder %s1012_s12, 1  ;;  %s1012_s12 = sphi %s1037_s12, %s13_s12  }
   0x2   : > { %p137_p1 = scmp.lt.s32.totalorder %s1012_s12, 3 }
   0x4   : > { %p138_p2 = pnand %p814_p0, %p137_p1 }
   0x5   : > { %v988_v0 = vld [vmem:[%s1166_s1 + $0x10] sm:$0xff] (!%p138_p2)   ;;  %v1014_v1 = vmov (!%p138_p2), 0.0   ;;  %v989_v2 = vld [vmem:[%s1166_s1] sm:$0xff] (!%p138_p2)   ;;  %v184_v3 = vlaneseq (!%p138_p2)  ;;  %v990_v4 = vld [vmem:[%s1166_s1 + $0x18] sm:$0xff] (!%p138_p2)   ;;  %vm1015_vm0 = vmmov (!%p138_p2), 0   ;;  %p159_p3 = scmp.lt.s32.totalorder (!%p138_p2), %s810_s13, 1 }
   0x6   : > { %141 = sbr.rel (%p138_p2) target bundleno = 275 (0x113), region = 32  ;;  %904 = vmatprep.subr.bf16.mxu0 (!%p138_p2), %v1014_v1  ;;  %912 = vmatprep.subr.bf16.mxu1 (!%p138_p2), %v1014_v1  ;;  %v991_v5 = vld [vmem:[%s1166_s1 + $0x8] sm:$0xff] (!%p138_p2)   ;;  %v1016_v6 = vmov (!%p138_p2), 1983009808   ;;  %vm203_vm1 = vcmask (!%p138_p2), 261120   ;;  %v993_v10 = vld [vmem:[%s1166_s1 + $0x30] sm:$0xff] (!%p138_p2)  }
   0x7   : > { %905 = vmatpush3.bf16.msra.mxu0 (!%p138_p2), %v988_v0  ;;  %908 = vmatprep.mubr.msk.bf16.mxu0 (!%p138_p2), %vm1015_vm0, %v1014_v1  ;;  %v182_v7 = vunpack.c.l.s4 (!%p138_p2), %v1016_v6  ;;  %v185_v8 = vshrl.u32 (!%p138_p2), %v184_v3, 7  ;;  %v995_v14 = vld [vmem:[%s1166_s1 + $0x38] sm:$0xff] (!%p138_p2)   ;;  %v992_v15 = vld [vmem:[%s1166_s1 + $0x20] sm:$0xff] (!%p138_p2)   ;;  %v997_v18 = vld [vmem:[%s1166_s1 + $0x50] sm:$0xff] (!%p138_p2)   ;;  %vm757_vm2 = vcmask (!%p138_p2), 122880  }
   0x8   : > { %913 = vmatpush3.bf16.msra.mxu1 (!%p138_p2), %v989_v2  ;;  %906 = vmatprep.subr.bf16.mxu0 (!%p138_p2), %v1014_v1  ;;  %v994_v19 = vld [vmem:[%s1166_s1 + $0x28] sm:$0xff] (!%p138_p2)   ;;  %v999_v21 = vld [vmem:[%s1166_s1 + $0x58] sm:$0xff] (!%p138_p2)   ;;  %v996_v22 = vld [vmem:[%s1166_s1 + $0x40] sm:$0xff] (!%p138_p2)   ;;  %vm758_vm3 = vsmask.f32 (!%p138_p2), 256 }
   0x9   : > { %914 = vmatprep.subr.bf16.mxu1 (!%p138_p2), %v1014_v1  ;;  %916 = vmatprep.mubr.msk.bf16.mxu1 (!%p138_p2), %vm1015_vm0, %v1014_v1  ;;  %v183_v9 = vunpack.c.0.s8 (!%p138_p2), %v182_v7  ;;  %v1001_v25 = vld [vmem:[%s1166_s1 + $0x70] sm:$0xff] (!%p138_p2)   ;;  %v998_v27 = vld [vmem:[%s1166_s1 + $0x48] sm:$0xff] (!%p138_p2)   ;;  %v1003_v30 = vld [vmem:[%s1166_s1 + $0x78] sm:$0xff] (!%p138_p2)  }
   0xa   : > { %v1000_v31 = vld [vmem:[%s1166_s1 + $0x60] sm:$0xff] (!%p138_p2)   ;;  %v1002_v33 = vld [vmem:[%s1166_s1 + $0x68] sm:$0xff] (!%p138_p2)   ;;  %vm759_vm4 = vmand (!%p138_p2), %vm757_vm2, %vm758_vm3 }
   0xb   : > { %907 = vmatpush3.bf16.msra.mxu0 (!%p138_p2), %v990_v4  ;;  %v186_v12 = vsub.s32 (!%p138_p2), %v183_v9, %v185_v8  ;;  %v1004_v34 = vld [vmem:[%s1166_s1 + $0x80] sm:$0xff] (!%p138_p2)   ;;  %v1005_v35 = vld [vmem:[%s1166_s1 + $0x88] sm:$0xff] (!%p138_p2)  }
   0xc   : > { %915 = vmatpush3.bf16.msra.mxu1 (!%p138_p2), %v991_v5  ;;  %920 = vmatprep.subr.bf16.mxu0 (!%p138_p2), %v1014_v1 }
   0xd   : > { %s1170_s13 = smov (!%p159_p3, %s810_s13), 1  ;;  %928 = vmatprep.subr.bf16.mxu1 %v1014_v1 }
   0xe   : > { %s976_s22 = smul.u32 6, %s1170_s13  ;;  %s166_s6 = scalar_lea.vmem %s1168_s3, %s1170_s13 }
  0x10   : > { %s1075_s27 = scalar_lea.vmem %s1165_s0, %s976_s22 }
  0x11   : > { %v168_v11 = vld [vmem:[%s1075_s27] sm:$0x3]  ;;  %v169_v17 = vld [vmem:[%s1075_s27 + $0x2] sm:$0x3]  ;;  %v170_v26 = vld [vmem:[%s1075_s27 + $0x4] sm:$0x3] }
  0x12   : > { %917 = vmatmul.mubr.msk.bf16.vlgmr.msra.gmra.mrb[0].mxu1 %vm203_vm1, %v168_v11  ;;  %v187_v13 = vrot.slane %v168_v11, %v186_v12  ;;  %v437_v23 = vrot.slane %v169_v17, %v186_v12  ;;  %v632_v28 = vrot.slane %v170_v26, %v186_v12 }
  0x13   : > { %929 = vmatpush3.bf16.msra.mxu1 %v993_v10  ;;  %932 = vmatprep.mubr.msk.bf16.mxu1 %vm1015_vm0, %v1014_v1 }
  0x14   : > { %930 = vmatprep.subr.bf16.mxu1 %v1014_v1  ;;  %v189_v16 = vshrl.u32 %v187_v13, 16  ;;  %v307_v20 = vrot.slane %v187_v13, 1  ;;  %v502_v24 = vrot.slane %v437_v23, 1  ;;  %v439_v29 = vshrl.u32 %v437_v23, 16  ;;  %v754_v13 = vld [vmem:[%s1167_s2] sm:$0x1] }
  0x15   : > { %v634_v32 = vshrl.u32 %v632_v28, 16  ;;  %v697_v36 = vrot.slane %v632_v28, 1 }
  0x16   : > { %909 = vmatmul.mubr.msk.bf16.vlgmr.msra.gmra.mrb[0].mxu0 %vm203_vm1, %v189_v16 }
  0x17   : > { %931 = vmatpush3.bf16.msra.mxu1 %v995_v14  ;;  %921 = vmatpush3.bf16.msra.mxu0 %v992_v15 }
  0x18   : > { %924 = vmatprep.mubr.msk.bf16.mxu0 %vm1015_vm0, %v1014_v1  ;;  %922 = vmatprep.subr.bf16.mxu0 %v1014_v1 }
  0x19   : > { %944 = vmatprep.subr.bf16.mxu1 %v1014_v1 }
  0x1a   : > { %933 = vmatmul.mubr.msk.bf16.vlgmr.msra.gmra.mrb[4].mxu1 %vm203_vm1, %v169_v17 }
  0x1b   : > { %945 = vmatpush3.bf16.msra.mxu1 %v997_v18  ;;  %948 = vmatprep.mubr.msk.bf16.mxu1 %vm1015_vm0, %v1014_v1 }
  0x1c   : > { %923 = vmatpush3.bf16.msra.mxu0 %v994_v19  ;;  %946 = vmatprep.subr.bf16.mxu1 %v1014_v1  ;;  %v760_v19 = vld [vmem:[%s166_s6] sm:$0x1] }
  0x1d   : > { %936 = vmatprep.subr.bf16.mxu0 %v1014_v1 }
  0x1f   : > { %925 = vmatmul.mubr.msk.bf16.vlgmr.msra.gmra.mrb[4].mxu0 %vm203_vm1, %v307_v20  ;;  %947 = vmatpush3.bf16.msra.mxu1 %v999_v21 }
  0x20   : > { %937 = vmatpush3.bf16.msra.mxu0 %v996_v22  ;;  %940 = vmatprep.mubr.msk.bf16.mxu0 %vm1015_vm0, %v1014_v1 }
  0x21   : > { %938 = vmatprep.subr.bf16.mxu0 %v1014_v1  ;;  %960 = vmatprep.subr.bf16.mxu1 %v1014_v1 }
  0x22   : > { %949 = vmatmul.mubr.msk.bf16.vlgmr.msra.gmra.mrb[8].mxu1 %vm203_vm1, %v502_v24 }
  0x23   : > { %961 = vmatpush3.bf16.msra.mxu1 %v1001_v25  ;;  %964 = vmatprep.mubr.msk.bf16.mxu1 %vm1015_vm0, %v1014_v1 }
  0x24   : > { %939 = vmatpush3.bf16.msra.mxu0 %v998_v27  ;;  %962 = vmatprep.subr.bf16.mxu1 %v1014_v1 }
  0x25   : > { %952 = vmatprep.subr.bf16.mxu0 %v1014_v1 }
  0x27   : > { %941 = vmatmul.mubr.msk.bf16.vlgmr.msra.gmra.mrb[8].mxu0 %vm203_vm1, %v439_v29  ;;  %963 = vmatpush3.bf16.msra.mxu1 %v1003_v30 }
  0x28   : > { %953 = vmatpush3.bf16.msra.mxu0 %v1000_v31  ;;  %956 = vmatprep.mubr.msk.bf16.mxu0 %vm1015_vm0, %v1014_v1 }
  0x29   : > { %954 = vmatprep.subr.bf16.mxu0 %v1014_v1 }
  0x2a   : > { %965 = vmatmul.mubr.msk.bf16.vlgmr.msra.gmra.mrb[12].mxu1 %vm203_vm1, %v634_v32 }
  0x2c   : > { %955 = vmatpush3.bf16.msra.mxu0 %v1002_v33 }
  0x2d   : > { %968 = vmatprep.subr.bf16.mxu0 %v1014_v1 }
  0x2f   : > { %957 = vmatmul.mubr.msk.bf16.vlgmr.msra.gmra.mrb[12].mxu0 %vm203_vm1, %v170_v26 }
  0x30   : > { %969 = vmatpush3.bf16.msra.mxu0 %v1004_v34  ;;  %972 = vmatprep.mubr.msk.bf16.mxu0 %vm1015_vm0, %v1014_v1 }
  0x31   : > { %970 = vmatprep.subr.bf16.mxu0 %v1014_v1 }
  0x34   : > { %971 = vmatpush3.bf16.msra.mxu0 %v1005_v35 }
  0x37   : > { %973 = vmatmul.mubr.msk.bf16.vlgmr.msra.gmra.mrb[16].mxu0 %vm203_vm1, %v697_v36 }
  0xe5   : > { %v296_v37 = vpop.f32.mrb[0].mxu1 }
  0xe6   : > { %v918_v38 = vpop.f32.mrb[1].mxu1 }
  0xe7   : > { %v299_v39 = vpop.f32.mrb[2].mxu1 }
  0xe8   : > { %v919_v40 = vpop.f32.mrb[3].mxu1 }
  0xe9   : > { %v241_v41 = vpop.f32.mrb[0].mxu0 }
  0xea   : > { %v297_v42 = vadd.f32 %v296_v37, %v241_v41  ;;  %v910_v43 = vpop.f32.mrb[1].mxu0 }
  0xeb   : > { %v244_v44 = vpop.f32.mrb[2].mxu0 }
  0xec   : > { %v911_v45 = vpop.f32.mrb[3].mxu0 }
  0xed   : > { %v418_v46 = vpop.f32.mrb[4].mxu1 }
  0xee   : > { %v934_v47 = vpop.f32.mrb[5].mxu1 }
  0xef   : > { %v421_v48 = vpop.f32.mrb[6].mxu1 }
  0xf0   : > { %v935_v49 = vpop.f32.mrb[7].mxu1 }
  0xf2   : > { %v357_v50 = vpop.f32.mrb[4].mxu0 }
  0xf3   : > { %v363_v51 = vadd.f32 %v357_v50, %v297_v42  ;;  %v926_v52 = vpop.f32.mrb[5].mxu0 }
  0xf4   : > { %v360_v53 = vpop.f32.mrb[6].mxu0 }
  0xf5   : > { %v424_v54 = vadd.f32 %v418_v46, %v363_v51  ;;  %v927_v55 = vpop.f32.mrb[7].mxu0  ;;  %v552_v56 = vpop.f32.mrb[8].mxu1 }
  0xf6   : > { %v950_v57 = vpop.f32.mrb[9].mxu1 }
  0xf7   : > { %v555_v58 = vpop.f32.mrb[10].mxu1 }
  0xf8   : > { %v951_v59 = vpop.f32.mrb[11].mxu1 }
  0xfa   : > { %v490_v60 = vpop.f32.mrb[8].mxu0 }
  0xfb   : > { %v496_v61 = vadd.f32 %v490_v60, %v424_v54  ;;  %v942_v62 = vpop.f32.mrb[9].mxu0 }
  0xfc   : > { %v493_v63 = vpop.f32.mrb[10].mxu0 }
  0xfd   : > { %v558_v0 = vadd.f32 %v552_v56, %v496_v61  ;;  %v943_v1 = vpop.f32.mrb[11].mxu0  ;;  %v685_v2 = vpop.f32.mrb[12].mxu1 }
  0xfe   : > { %v966_v3 = vpop.f32.mrb[13].mxu1 }
  0xff   : > { %v688_v4 = vpop.f32.mrb[14].mxu1 }
 0x100   : > { %v967_v5 = vpop.f32.mrb[15].mxu1 }
 0x102   : > { %v613_v6 = vpop.f32.mrb[12].mxu0 }
 0x103   : > { %v619_v7 = vadd.f32 %v613_v6, %v558_v0  ;;  %v958_v8 = vpop.f32.mrb[13].mxu0 }
 0x104   : > { %v616_v9 = vpop.f32.mrb[14].mxu0 }
 0x105   : > { %v691_v10 = vadd.f32 %v685_v2, %v619_v7  ;;  %v959_v11 = vpop.f32.mrb[15].mxu0 }
 0x10a   : > { %v747_v12 = vpop.f32.mrb[16].mxu0 }
 0x10b   : > { %v753_v14 = vadd.f32 %v747_v12, %v691_v10  ;;  %v974_v15 = vpop.f32.mrb[17].mxu0 }
 0x10c   : > { %v750_v16 = vpop.f32.mrb[18].mxu0 }
 0x10d   : > { %v755_v17 = vadd.f32 %v754_v13, %v753_v14  ;;  %v975_v18 = vpop.f32.mrb[19].mxu0 }
 0x10f   : > { %v756_v20 = vpack.c.bf16 %v755_v17, %v755_v17 }
 0x111   : > { %v761_v21 = vsel %vm759_vm4, %v756_v20, %v760_v19 }
 0x112   : > { %762 = vst [vmem:[%s166_s6] sm:$0x1] %v761_v21 }
 0x113 PF: > { %s13_s12 = sadd.s32 1, %s1012_s12  }
 0x114   : > { %p10_p4 = scmp.ge.s32.totalorder %s13_s12, 4  }
 0x116   :  { %12 = sbr.rel (!%p10_p4) target bundleno = 1 (0x1), region = 70 }

// kernel: factorized_prior_forward.8
= control target key start
LH: loop header
LB: loop body
LE: loop exit
PB: predicated region body
PF: predicated region fallthrough
CT: control target
= control target key end

     0   :  { %s1956_s18 = smov 0   ;;  %s2323_s0 = inlined_call_operand.vmem [shape: bf16[2,10,10,12], index: 0, kind: input, shape index: {}]   ;;  %s2324_s1 = inlined_call_operand.vmem [shape: bf16[9,12,8], index: 1, kind: input, shape index: {}]   ;;  %s2325_s2 = inlined_call_operand.vmem [shape: f32[1,8], index: 2, kind: input, shape index: {}]   ;;  %s2326_s3 = inlined_call_operand.vmem [shape: bf16[8,8], index: 3, kind: input, shape index: {}]   ;;  %s2327_s4 = inlined_call_operand.vmem [shape: f32[1,8], index: 4, kind: input, shape index: {}]   ;;  %s2328_s5 = inlined_call_operand.vmem [shape: bf16[2,8,8,8], index: 5, kind: output, shape index: {}]  }
   0x1 LB: > { %s1536_s19 = sadd.s32 4294967295, %s1924_s18   ;;  %p1540_p0 = scmp.ge.s32.totalorder %s1924_s18, 1  ;;  %s1924_s18 = sphi %s1956_s18, %s15_s18  }
   0x2   : > { %p187_p1 = scmp.lt.s32.totalorder %s1924_s18, 3 }
   0x4   : > { %p188_p2 = pnand %p1540_p0, %p187_p1 }
   0x5   : > { %vm396_vm0 = vcmask (!%p188_p2), 1045504   ;;  %p215_p3 = scmp.lt.s32.totalorder (!%p188_p2), %s1536_s19, 1  ;;  %v1884_v0 = vld [vmem:[%s2324_s1 + $0x20] sm:$0x3f] (!%p188_p2)   ;;  %v1885_v1 = vld [vmem:[%s2324_s1 + $0x8] sm:$0x3f] (!%p188_p2)  }
   0x6   : > { %191 = sbr.rel (%p188_p2) target bundleno = 569 (0x239), region = 40  ;;  %1869 = vmatprep.subr.msk.bf16.mxu0 (!%p188_p2), %vm396_vm0, %v1884_v0  ;;  %v863_v2 = vsel (!%p188_p2), %vm396_vm0, %v1884_v0, 0  ;;  %vm248_vm1 = vsmask.f32 (!%p188_p2), 3328  ;;  %1865 = vmatprep.subr.msk.bf16.mxu1 (!%p188_p2), %vm396_vm0, %v1885_v1  ;;  %v398_v3 = vsel (!%p188_p2), %vm396_vm0, %v1885_v1, 0  ;;  %vm383_vm3 = vcmask (!%p188_p2), 97280  }
   0x7   : > { %1742 = vmatpush3.bf16.msra.mxu0 (!%p188_p2), %v863_v2  ;;  %v1886_v4 = vld [vmem:[%s2324_s1 + $0x28] sm:$0x3f] (!%p188_p2)   ;;  %1702 = vmatpush3.bf16.msra.mxu1 (!%p188_p2), %v398_v3  ;;  %v1983_v5 = vld [vmem:[%s2324_s1] sm:$0x3f] (!%p188_p2)   ;;  %vm249_vm2 = vsmask.f32 (!%p188_p2), 7440 }
   0x8   : > { %1870 = vmatprep.subr.msk.bf16.mxu0 (!%p188_p2), %vm396_vm0, %v1886_v4  ;;  %1866 = vmatprep.subr.msk.bf16.mxu1 (!%p188_p2), %vm396_vm0, %v1983_v5  ;;  %v2015_v17 = vsel (!%p188_p2), %vm396_vm0, %v1886_v4, 0  ;;  %vm2031_vm4 = vmor (!%p188_p2), %vm248_vm1, %vm249_vm2  ;;  %vm578_vm5 = vcmask (!%p188_p2), 1042432   ;;  %vm579_vm6 = vcmask (!%p188_p2), 1046532   ;;  %v1898_v31 = vld [vmem:[%s2324_s1 + $0x40] sm:$0x3f] (!%p188_p2)   ;;  %vm1379_vm8 = vcmask (!%p188_p2), 1043456  }
   0x9   : > { %vm2121_vm7 = vmor (!%p188_p2), %vm578_vm5, %vm579_vm6  ;;  %vm1366_vm9 = vcmask (!%p188_p2), 64512   ;;  %vm1472_vm10 = vcmask (!%p188_p2), 60416  }
   0xd   : > { %s2334_s19 = smov (!%p215_p3, %s1536_s19), 1 }
   0xe   : > { %s1875_s24 = smul.u32 80, %s2334_s19  ;;  %s1650_s25 = sshll.u32 %s2334_s19, 5 }
   0xf   : > { %s224_s28 = scalar_lea.vmem %s2328_s5, %s1650_s25 }
  0x10   : > { %s1988_s6 = scalar_lea.vmem %s2323_s0, %s1875_s24 }
  0x11   : > { %v1992_v6 = vld [vmem:[%s1988_s6] sm:$0xf]  ;;  %v1995_v7 = vld [vmem:[%s1988_s6 + $0x4] sm:$0x1]  ;;  %v1998_v8 = vld [vmem:[%s1988_s6 + $0x8] sm:$0xf] }
  0x12   : > { %v2003_v9 = vld [vmem:[%s1988_s6 + $0xc] sm:$0x1]  ;;  %v252_v10 = vshrl.u32 %v1992_v6, 16  ;;  %v255_v11 = vshll.u32 %v1992_v6, 16  ;;  %v261_v12 = vshll.u32 %v1995_v7, 16  ;;  %v266_v13 = vshrl.u32 %v1998_v8, 16 }
  0x13   : > { %v269_v14 = vshll.u32 %v1998_v8, 16  ;;  %v275_v15 = vshll.u32 %v2003_v9, 16  ;;  %v2012_v16 = vld [vmem:[%s1988_s6 + $0x10] sm:$0xf]  ;;  %v587_v21 = vrot.slane %v2003_v9, 5  ;;  %v1555_v1 = vcombine.low %v1992_v6, %v1998_v8 }
  0x14   : > { %v254_v18 = vrot.slane %v252_v10, 4  ;;  %v257_v19 = vrot.slane %v255_v11, 5  ;;  %v268_v20 = vrot.slane %v266_v13, 4  ;;  %v2019_v22 = vld [vmem:[%s1988_s6 + $0x14] sm:$0x1]  ;;  %v263_v23 = vrot.slane %v261_v12, 5 }
  0x15   : > { %v271_v24 = vrot.slane %v269_v14, 5  ;;  %v2022_v25 = vld [vmem:[%s1988_s6 + $0x18] sm:$0xf]  ;;  %v2025_v26 = vld [vmem:[%s1988_s6 + $0x1c] sm:$0x1]  ;;  %v277_v28 = vrot.slane %v275_v15, 5 }
  0x16   : > { %v258_v27 = vor.u32 %v257_v19, %v254_v18  ;;  %v280_v29 = vshrl.u32 %v2012_v16, 16  ;;  %v283_v30 = vshll.u32 %v2012_v16, 16  ;;  %v2036_v33 = vld [vmem:[%s1988_s6 + $0x20] sm:$0xf]  ;;  %v289_v34 = vshll.u32 %v2019_v22, 16 }
  0x17   : > { %v272_v32 = vor.u32 %v271_v24, %v268_v20  ;;  %v294_v35 = vshrl.u32 %v2022_v25, 16  ;;  %v297_v36 = vshll.u32 %v2022_v25, 16  ;;  %v2042_v38 = vld [vmem:[%s1988_s6 + $0x24] sm:$0x1]  ;;  %v303_v41 = vshll.u32 %v2025_v26, 16 }
  0x18   : > { %v259_v37 = vrot.slane %v258_v27, 4  ;;  %v282_v39 = vrot.slane %v280_v29, 4  ;;  %v285_v40 = vrot.slane %v283_v30, 5  ;;  %v291_v43 = vrot.slane %v289_v34, 5  ;;  %v2053_v54 = vld [vmem:[%s1988_s6 + $0x28] sm:$0xf] }
  0x19   : > { %v273_v42 = vrot.slane %v272_v32, 4  ;;  %v296_v44 = vrot.slane %v294_v35, 4  ;;  %v299_v45 = vrot.slane %v297_v36, 5  ;;  %v305_v48 = vrot.slane %v303_v41, 5  ;;  %v2056_v55 = vld [vmem:[%s1988_s6 + $0x2c] sm:$0x1] }
  0x1a   : > { %v264_v46 = vsel %vm2031_vm4, %v259_v37, %v263_v23  ;;  %v286_v47 = vor.u32 %v285_v40, %v282_v39  ;;  %v308_v49 = vshrl.u32 %v2036_v33, 16  ;;  %v311_v52 = vshll.u32 %v2036_v33, 16  ;;  %v2059_v59 = vld [vmem:[%s1988_s6 + $0x30] sm:$0xf]  ;;  %v2062_v60 = vld [vmem:[%s1988_s6 + $0x34] sm:$0x1] }
  0x1b   : > { %v278_v50 = vsel %vm2031_vm4, %v273_v42, %v277_v28  ;;  %v300_v51 = vor.u32 %v299_v45, %v296_v44  ;;  %v317_v53 = vshll.u32 %v2042_v38, 16  ;;  %v591_v63 = vrot.slane %v2019_v22, 5  ;;  %v2066_v0 = vld [vmem:[%s1988_s6 + $0x38] sm:$0xf]  ;;  %v2079_v15 = vld [vmem:[%s1988_s6 + $0x3c] sm:$0x1] }
  0x1c   : > { %v1546_v56 = vcombine.low %v264_v46, %v278_v50  ;;  %v287_v57 = vrot.slane %v286_v47, 4  ;;  %v310_v58 = vrot.slane %v308_v49, 4  ;;  %v313_v62 = vrot.slane %v311_v52, 5  ;;  %v2085_v24 = vld [vmem:[%s1988_s6 + $0x40] sm:$0xf] }
  0x1d   : > { %v301_v61 = vrot.slane %v300_v51, 4  ;;  %v319_v3 = vrot.slane %v317_v53, 5  ;;  %v322_v4 = vshrl.u32 %v2053_v54, 16  ;;  %v325_v10 = vshll.u32 %v2053_v54, 16  ;;  %v2091_v32 = vld [vmem:[%s1988_s6 + $0x44] sm:$0x1] }
  0x1e   : > { %1703 = vmatprep.mubr.msk.bf16.mxu1 %vm383_vm3, %v1546_v56  ;;  %v292_v2 = vsel %vm2031_vm4, %v287_v57, %v291_v43  ;;  %v314_v12 = vor.u32 %v313_v62, %v310_v58  ;;  %v331_v14 = vshll.u32 %v2056_v55, 16  ;;  %v336_v23 = vshrl.u32 %v2059_v59, 16  ;;  %v2100_v39 = vld [vmem:[%s2324_s1 + $0x30] sm:$0x3f]  }
  0x1f   : > { %v306_v11 = vsel %vm2031_vm4, %v301_v61, %v305_v48  ;;  %v1596_v13 = vcombine.low %v278_v50, %v292_v2  ;;  %v324_v19 = vrot.slane %v322_v4, 4  ;;  %v327_v20 = vrot.slane %v325_v10, 5  ;;  %v1893_v44 = vld [vmem:[%s2324_s1 + $0x10] sm:$0x3f]  }
  0x20   : > { %v2081_v18 = vcombine.low %v292_v2, %v306_v11  ;;  %v315_v27 = vrot.slane %v314_v12, 4  ;;  %v333_v28 = vrot.slane %v331_v14, 5  ;;  %v339_v29 = vshll.u32 %v2059_v59, 16 }
  0x21   : > { %1743 = vmatprep.mubr.msk.bf16.mxu0 %vm383_vm3, %v1596_v13  ;;  %v345_v30 = vshll.u32 %v2062_v60, 16  ;;  %v328_v34 = vor.u32 %v327_v20, %v324_v19  ;;  %v338_v35 = vrot.slane %v336_v23, 4  ;;  %v350_v36 = vshrl.u32 %v2066_v0, 16 }
  0x22   : > { %1704 = vmatmul.mubr.msk.bf16.vlgmr.msra.gmra.mrb[0].mxu1 %vm383_vm3, %v2081_v18  ;;  %v353_v37 = vshll.u32 %v2066_v0, 16  ;;  %v320_v40 = vsel %vm2031_vm4, %v315_v27, %v319_v3  ;;  %v341_v41 = vrot.slane %v339_v29, 5  ;;  %v359_v43 = vshll.u32 %v2079_v15, 16 }
  0x23   : > { %v347_v42 = vrot.slane %v345_v30, 5  ;;  %v1597_v45 = vcombine.low %v306_v11, %v320_v40  ;;  %v329_v46 = vrot.slane %v328_v34, 4  ;;  %v352_v47 = vrot.slane %v350_v36, 4 }
  0x24   : > { %v355_v48 = vrot.slane %v353_v37, 5  ;;  %v342_v49 = vor.u32 %v341_v41, %v338_v35  ;;  %v361_v50 = vrot.slane %v359_v43, 5  ;;  %v824_v51 = vshrl.u32 %v2085_v24, 16 }
  0x25   : > { %v827_v52 = vshll.u32 %v2085_v24, 16  ;;  %1744 = vmatmul.mubr.msk.bf16.vlgmr.msra.gmra.mrb[0].mxu0 %vm383_vm3, %v1597_v45  ;;  %v334_v53 = vsel %vm2031_vm4, %v329_v46, %v333_v28  ;;  %v833_v57 = vshll.u32 %v2091_v32, 16  ;;  %v503_v58 = vsel %vm396_vm0, %v1983_v5, 0  ;;  %v2188_v45 = vld [vmem:[%s1988_s6 + $0x48] sm:$0xf] }
  0x26   : > { %v356_v56 = vor.u32 %v355_v48, %v352_v47  ;;  %1752 = vmatpush3.bf16.msra.mxu0 %v2015_v17  ;;  %v2117_v61 = vcombine.low %v320_v40, %v334_v53  ;;  %v343_v62 = vrot.slane %v342_v49, 4  ;;  %v826_v2 = vrot.slane %v824_v51, 4  ;;  %1712 = vmatpush3.bf16.msra.mxu1 %v503_v58  ;;  %v2191_v46 = vld [vmem:[%s1988_s6 + $0x4c] sm:$0x1] }
  0x27   : > { %v829_v3 = vrot.slane %v827_v52, 5  ;;  %v595_v10 = vrot.slane %v2025_v26, 5  ;;  %v1565_v12 = vrot.slane %v1998_v8, 9  ;;  %v1566_v5 = vrot.slane %v2012_v16, 9  ;;  %1871 = vmatprep.subr.msk.bf16.mxu0 %vm396_vm0, %v2100_v39  ;;  %1867 = vmatprep.subr.msk.bf16.mxu1 %vm396_vm0, %v1893_v44 }
  0x28   : > { %v357_v11 = vrot.slane %v356_v56, 4  ;;  %v599_v17 = vrot.slane %v2042_v38, 5  ;;  %1707 = vmatprep.mubr.msk.bf16.mxu1 %vm383_vm3, %v2117_v61  ;;  %v348_v13 = vsel %vm2031_vm4, %v343_v62, %v347_v42  ;;  %v835_v26 = vrot.slane %v833_v57, 5 }
  0x29   : > { %v830_v14 = vor.u32 %v829_v3, %v826_v2  ;;  %v1598_v19 = vcombine.low %v334_v53, %v348_v13  ;;  %v2142_v23 = vsel %vm2121_vm7, %v1565_v12, %v587_v21  ;;  %v2148_v38 = vsel %vm2121_vm7, %v1566_v5, %v591_v63 }
  0x2a   : > { %v362_v20 = vsel %vm2031_vm4, %v357_v11, %v361_v50  ;;  %v1567_v29 = vrot.slane %v2022_v25, 9  ;;  %v1568_v30 = vrot.slane %v2036_v33, 9  ;;  %v1608_v21 = vcombine.low %v2142_v23, %v2148_v38  ;;  %v1896_v50 = vld [vmem:[%s2324_s1 + $0x18] sm:$0x3f]  }
  0x2b   : > { %v2150_v27 = vcombine.low %v348_v13, %v362_v20  ;;  %v831_v28 = vrot.slane %v830_v14, 4  ;;  %1747 = vmatprep.mubr.msk.bf16.mxu0 %vm383_vm3, %v1598_v19  ;;  %v1569_v22 = vrot.slane %v2053_v54, 9  ;;  %v603_v34 = vrot.slane %v2056_v55, 5 }
  0x2c   : > { %v1570_v35 = vrot.slane %v2059_v59, 9  ;;  %v607_v36 = vrot.slane %v2062_v60, 5  ;;  %v596_v37 = vsel %vm2121_vm7, %v1567_v29, %v595_v10  ;;  %v600_v40 = vsel %vm2121_vm7, %v1568_v30, %v599_v17 }
  0x2d   : > { %1708 = vmatmul.mubr.msk.bf16.gmra.mrb[4].mxu1 %vm383_vm3, %v2150_v27  ;;  %v2159_v9 = vsel %vm2031_vm4, %v831_v28, %v835_v26  ;;  %v583_v41 = vrot.slane %v1995_v7, 5  ;;  %v1609_v55 = vcombine.low %v596_v37, %v600_v40  ;;  %v1557_v42 = vcombine.low %v2036_v33, %v2053_v54 }
  0x2e   : > { %v1599_v63 = vcombine.low %v362_v20, %v2159_v9  ;;  %1713 = vmatprep.mubr.msk.bf16.mxu1 %vm383_vm3, %v1555_v1  ;;  %v1556_v1 = vcombine.low %v2012_v16, %v2022_v25  ;;  %v604_v60 = vsel %vm2121_vm7, %v1569_v22, %v603_v34  ;;  %v608_v43 = vsel %vm2121_vm7, %v1570_v35, %v607_v36 }
  0x2f   : > { %v646_v7 = vsel %vm396_vm0, %v1893_v44, 0  ;;  %v1564_v47 = vrot.slane %v1992_v6, 9  ;;  %v1135_v48 = vshrl.u32 %v2188_v45, 16  ;;  %v1138_v49 = vshll.u32 %v2188_v45, 16 }
  0x30   : > { %1748 = vmatmul.mubr.msk.bf16.gmra.mrb[4].mxu0 %vm383_vm3, %v1599_v63  ;;  %v1571_v51 = vrot.slane %v2066_v0, 9  ;;  %v611_v52 = vrot.slane %v2079_v15, 5  ;;  %v1605_v53 = vrot.slane %v2085_v24, 9  ;;  %v941_v56 = vrot.slane %v2091_v32, 5  ;;  %v1894_v15 = vld [vmem:[%s2324_s1 + $0x38] sm:$0x3f]  }
  0x31   : > { %1753 = vmatprep.mubr.msk.bf16.mxu0 %vm383_vm3, %v1608_v21  ;;  %v1610_v44 = vcombine.low %v604_v60, %v608_v43  ;;  %v1137_v6 = vrot.slane %v1135_v48, 4  ;;  %v1140_v57 = vrot.slane %v1138_v49, 5  ;;  %v1144_v58 = vshll.u32 %v2191_v46, 16 }
  0x32   : > { %v1059_v62 = vsel %vm396_vm0, %v2100_v39, 0  ;;  %v584_v32 = vsel %vm2121_vm7, %v1564_v47, %v583_v41  ;;  %v1558_v39 = vcombine.low %v2059_v59, %v2066_v0  ;;  %v612_v10 = vsel %vm2121_vm7, %v1571_v51, %v611_v52 }
  0x33   : > { %v1141_v2 = vor.u32 %v1140_v57, %v1137_v6  ;;  %v1146_v3 = vrot.slane %v1144_v58, 5  ;;  %v942_v11 = vsel %vm2121_vm7, %v1605_v53, %v941_v56  ;;  %v1574_v5 = vcombine.low %v584_v32, %v2142_v23 }
  0x34   : > { %v1611_v13 = vcombine.low %v612_v10, %v942_v11  ;;  %v1575_v14 = vcombine.low %v2148_v38, %v596_v37  ;;  %v1576_v26 = vcombine.low %v600_v40, %v604_v60  ;;  %v748_v19 = vsel %vm396_vm0, %v1896_v50, 0  ;;  %v1642_v37 = vld [vmem:[%s2325_s2] ss:$0 sm:$0xff] }
  0x35   : > { %1714 = vmatmul.mubr.msk.bf16.vlgmr.msra.gmra.mrb[0].mxu1 %vm383_vm3, %v1556_v1  ;;  %v1142_v12 = vrot.slane %v1141_v2, 4  ;;  %v1162_v20 = vsel %vm396_vm0, %v1894_v15, 0  ;;  %v1577_v23 = vcombine.low %v608_v43, %v612_v10  ;;  %v1585_v38 = vcombine.low %v1998_v8, %v2012_v16 }
  0x36   : > { %1717 = vmatprep.mubr.msk.bf16.mxu1 %vm383_vm3, %v1557_v42  ;;  %1722 = vmatpush3.bf16.msra.mxu1 %v646_v7  ;;  %v1619_v28 = vcombine.low %v2085_v24, %v2188_v45  ;;  %v1586_v29 = vcombine.low %v2022_v25, %v2036_v33  ;;  %v1587_v8 = vcombine.low %v2053_v54, %v2059_v59  ;;  %v1256_v16 = vsel %vm396_vm0, %v1898_v31, 0 }
  0x37   : > { %1868 = vmatprep.subr.msk.bf16.mxu1 %vm396_vm0, %v1896_v50  ;;  %v1147_v17 = vsel %vm2031_vm4, %v1142_v12, %v1146_v3  ;;  %v1633_v33 = vrot.slane %v2188_v45, 9  ;;  %v1240_v54 = vrot.slane %v2191_v46, 5 }
  0x38   : > { %1754 = vmatmul.mubr.msk.bf16.vlgmr.msra.gmra.mrb[0].mxu0 %vm383_vm3, %v1609_v55  ;;  %v1627_v25 = vcombine.low %v2159_v9, %v1147_v17 }
  0x39   : > { %1762 = vmatpush3.bf16.msra.mxu0 %v1059_v62  ;;  %1757 = vmatprep.mubr.msk.bf16.mxu0 %vm383_vm3, %v1610_v44  ;;  %v1241_v59 = vsel %vm2121_vm7, %v1633_v33, %v1240_v54 }
  0x3a   : > { %1872 = vmatprep.subr.msk.bf16.mxu0 %vm396_vm0, %v1894_v15 }
  0x3d   : > { %1718 = vmatmul.mubr.msk.bf16.gmra.mrb[4].mxu1 %vm383_vm3, %v1558_v39 }
  0x3e   : > { %1723 = vmatprep.mubr.msk.bf16.mxu1 %vm383_vm3, %v1574_v5 }
  0x40   : > { %1758 = vmatmul.mubr.msk.bf16.gmra.mrb[4].mxu0 %vm383_vm3, %v1611_v13 }
  0x41   : > { %1763 = vmatprep.mubr.msk.bf16.mxu0 %vm383_vm3, %v1556_v1 }
  0x45   : > { %1724 = vmatmul.mubr.msk.bf16.vlgmr.msra.gmra.mrb[0].mxu1 %vm383_vm3, %v1575_v14 }
  0x46   : > { %1727 = vmatprep.mubr.msk.bf16.mxu1 %vm383_vm3, %v1576_v26  ;;  %1732 = vmatpush3.bf16.msra.mxu1 %v748_v19 }
  0x48   : > { %1764 = vmatmul.mubr.msk.bf16.vlgmr.msra.gmra.mrb[0].mxu0 %vm383_vm3, %v1557_v42 }
  0x49   : > { %1772 = vmatpush3.bf16.msra.mxu0 %v1162_v20  ;;  %1767 = vmatprep.mubr.msk.bf16.mxu0 %vm383_vm3, %v1558_v39 }
  0x4a   : > { %1873 = vmatprep.subr.msk.bf16.mxu0 %vm396_vm0, %v1898_v31 }
  0x4d   : > { %1728 = vmatmul.mubr.msk.bf16.gmra.mrb[4].mxu1 %vm383_vm3, %v1577_v23 }
  0x4e   : > { %1733 = vmatprep.mubr.msk.bf16.mxu1 %vm383_vm3, %v1585_v38 }
  0x50   : > { %1768 = vmatmul.mubr.msk.bf16.gmra.mrb[4].mxu0 %vm383_vm3, %v1619_v28 }
  0x51   : > { %1773 = vmatprep.mubr.msk.bf16.mxu0 %vm383_vm3, %v2081_v18  ;;  %v1588_v18 = vcombine.low %v2066_v0, %v2085_v24  ;;  %v1636_v0 = vcombine.low %v942_v11, %v1241_v59  ;;  %v1358_v24 = vld [vmem:[%s2326_s3] sm:$0xf] }
  0x52   : > { %1874 = vmatprep.subr.msk.bf16.mxu1 %vm1379_vm8, %v1358_v24 }
  0x55   : > { %1734 = vmatmul.mubr.msk.bf16.vlgmr.msra.gmra.mrb[0].mxu1 %vm383_vm3, %v1586_v29 }
  0x56   : > { %1737 = vmatprep.mubr.msk.bf16.mxu1 %vm383_vm3, %v1587_v8 }
  0x58   : > { %1774 = vmatmul.mubr.msk.bf16.vlgmr.msra.gmra.mrb[0].mxu0 %vm383_vm3, %v2117_v61  ;;  %v1381_v61 = vsel %vm1379_vm8, %v1358_v24, 0 }
  0x59   : > { %1782 = vmatpush3.bf16.msra.mxu0 %v1256_v16  ;;  %1777 = vmatprep.mubr.msk.bf16.mxu0 %vm383_vm3, %v2150_v27 }
  0x5a   : > { %1792 = vmatpush3.bf16.msra.mxu1 %v1381_v61 }
  0x5d   : > { %1738 = vmatmul.mubr.msk.bf16.gmra.mrb[4].mxu1 %vm383_vm3, %v1588_v18 }
  0x60   : > { %1778 = vmatmul.mubr.msk.bf16.gmra.mrb[4].mxu0 %vm383_vm3, %v1627_v25 }
  0x61   : > { %1783 = vmatprep.mubr.msk.bf16.mxu0 %vm383_vm3, %v1575_v14  ;;  %v1643_v14 = vld [vmem:[%s2327_s4] ss:$0 sm:$0xff] }
  0x68   : > { %1784 = vmatmul.mubr.msk.bf16.vlgmr.msra.gmra.mrb[0].mxu0 %vm383_vm3, %v1576_v26 }
  0x69   : > { %1787 = vmatprep.mubr.msk.bf16.mxu0 %vm383_vm3, %v1577_v23 }
  0x70   : > { %1788 = vmatmul.mubr.msk.bf16.gmra.mrb[4].mxu0 %vm383_vm3, %v1636_v0 }
 0x128   : > { %v1735_v27 = vpop.f32.mrb[0].mxu1 }
 0x129   : > { %v784_v30 = vpop.f32.mrb[1].mxu1 }
 0x12a   : > { %v1736_v9 = vpop.f32.mrb[2].mxu1 }
 0x12b   : > { %v787_v21 = vpop.f32.mrb[3].mxu1 }
 0x130   : > { %v1739_v22 = vpop.f32.mrb[4].mxu1 }
 0x131   : > { %v800_v63 = vpop.f32.mrb[5].mxu1 }
 0x132   : > { %v1740_v34 = vpop.f32.mrb[6].mxu1 }
 0x133   : > { %v803_v4 = vpop.f32.mrb[7].mxu1 }
 0x13b   : > { %v1785_v35 = vpop.f32.mrb[0].mxu0 }
 0x13c   : > { %v1801_v36 = vadd.f32 %v1785_v35, %v1735_v27  ;;  %v1292_v40 = vpop.f32.mrb[1].mxu0 }
 0x13d   : > { %v1802_v41 = vadd.f32 %v1292_v40, %v784_v30  ;;  %v1786_v1 = vpop.f32.mrb[2].mxu0 }
 0x13e   : > { %v1803_v55 = vadd.f32 %v1786_v1, %v1736_v9  ;;  %v1295_v42 = vpop.f32.mrb[3].mxu0  ;;  %v1340_v45 = vadd.f32 %v1801_v36, %v1642_v37 }
 0x13f   : > { %v2281_v60 = vadd.f32 %v1802_v41, %v1642_v37  ;;  %v1804_v43 = vadd.f32 %v1295_v42, %v787_v21 }
 0x140   : > { %v2283_v46 = vadd.f32 %v1803_v55, %v1642_v37  ;;  %v1348_v51 = vmul.f32 %v1340_v45, %v1340_v45 }
 0x141   : > { %v2285_v7 = vadd.f32 %v1804_v43, %v1642_v37  ;;  %v1346_v48 = vmul.f32 %v2281_v60, %v2281_v60 }
 0x142   : > { %v1349_v47 = vmul.f32 %v2283_v46, %v2283_v46 }
 0x143   : > { %v1347_v49 = vmul.f32 %v2285_v7, %v2285_v7  ;;  %v1789_v50 = vpop.f32.mrb[4].mxu0 }
 0x144   : > { %v1805_v52 = vadd.f32 %v1789_v50, %v1739_v22  ;;  %v1308_v53 = vpop.f32.mrb[5].mxu0  ;;  %v1355_v57 = vpack.c.bf16 %v1349_v47, %v1348_v51 }
 0x145   : > { %v1354_v56 = vpack.c.bf16 %v1347_v49, %v1346_v48  ;;  %v1806_v44 = vadd.f32 %v1308_v53, %v800_v63  ;;  %v1790_v6 = vpop.f32.mrb[6].mxu0 }
 0x146   : > { %v1807_v58 = vadd.f32 %v1790_v6, %v1740_v34  ;;  %v1311_v62 = vpop.f32.mrb[7].mxu0  ;;  %v1344_v2 = vadd.f32 %v1805_v52, %v1642_v37 }
 0x147   : > { %v2293_v15 = vadd.f32 %v1806_v44, %v1642_v37  ;;  %v1808_v32 = vadd.f32 %v1311_v62, %v803_v4  ;;  %1793 = vmatprep.mubr.msk.bf16.mxu1 %vm1366_vm9, %v1354_v56 }
 0x148   : > { %v1345_v3 = vadd.f32 %v1807_v58, %v1642_v37  ;;  %1794 = vmatmul.mubr.msk.bf16.vlgmr.msra.gmra.mrb[8].mxu1 %vm1366_vm9, %v1355_v57  ;;  %v1352_v5 = vmul.f32 %v1344_v2, %v1344_v2 }
 0x149   : > { %v1343_v39 = vadd.f32 %v1808_v32, %v1642_v37  ;;  %v1350_v11 = vmul.f32 %v2293_v15, %v2293_v15 }
 0x14a   : > { %v1353_v10 = vmul.f32 %v1345_v3, %v1345_v3 }
 0x14b   : > { %v1351_v12 = vmul.f32 %v1343_v39, %v1343_v39 }
 0x14c   : > { %v1357_v13 = vpack.c.bf16 %v1353_v10, %v1352_v5 }
 0x14d   : > { %v1356_v17 = vpack.c.bf16 %v1351_v12, %v1350_v11 }
 0x14f   : > { %1797 = vmatprep.mubr.msk.bf16.mxu1 %vm1366_vm9, %v1356_v17 }
 0x150   : > { %1798 = vmatmul.mubr.msk.bf16.gmra.mrb[12].mxu1 %vm1366_vm9, %v1357_v13 }
 0x21b   : > { %v1795_v26 = vpop.f32.mrb[8].mxu1 }
 0x21c   : > { %v1426_v19 = vadd.f32 %v1795_v26, %v1643_v14  ;;  %v1417_v20 = vpop.f32.mrb[9].mxu1 }
 0x21d   : > { %v1418_v31 = vadd.f32 %v1643_v14, %v1417_v20  ;;  %v1796_v23 = vpop.f32.mrb[10].mxu1 }
 0x21e   : > { %1902 = vrsqrt.f32 %v1426_v19  ;;  %v1429_v38 = vadd.f32 %v1796_v23, %v1643_v14  ;;  %v1420_v28 = vpop.f32.mrb[11].mxu1 }
 0x21f   : > { %1904 = vrsqrt.f32 %v1418_v31  ;;  %v1421_v29 = vadd.f32 %v1643_v14, %v1420_v28 }
 0x220   : > { %1906 = vrsqrt.f32 %v1429_v38 }
 0x221   : > { %1908 = vrsqrt.f32 %v1421_v29 }
 0x223   : > { %v1799_v8 = vpop.f32.mrb[12].mxu1 }
 0x224   : > { %v1442_v16 = vadd.f32 %v1799_v8, %v1643_v14  ;;  %v1433_v18 = vpop.f32.mrb[13].mxu1 }
 0x225   : > { %v1434_v25 = vadd.f32 %v1643_v14, %v1433_v18  ;;  %v1800_v33 = vpop.f32.mrb[14].mxu1 }
 0x226   : > { %1910 = vrsqrt.f32 %v1442_v16  ;;  %v1445_v54 = vadd.f32 %v1800_v33, %v1643_v14  ;;  %v1436_v59 = vpop.f32.mrb[15].mxu1 }
 0x227   : > { %1912 = vrsqrt.f32 %v1434_v25  ;;  %v1437_v0 = vadd.f32 %v1643_v14, %v1436_v59 }
 0x228   : > { %v1903_v24 = vpop.eup %1902  ;;  %1914 = vrsqrt.f32 %v1445_v54 }
 0x229   : > { %v1905_v61 = vpop.eup %1904  ;;  %v1458_v27 = vmul.f32 %v1903_v24, %v1340_v45  ;;  %1916 = vrsqrt.f32 %v1437_v0 }
 0x22a   : > { %v1907_v30 = vpop.eup %1906  ;;  %v1456_v9 = vmul.f32 %v1905_v61, %v2281_v60 }
 0x22b   : > { %v1909_v21 = vpop.eup %1908  ;;  %v1466_v22 = vpack.c.bf16 %v1458_v27, %v1458_v27  ;;  %v1459_v63 = vmul.f32 %v1907_v30, %v2283_v46 }
 0x22c   : > { %v1464_v34 = vpack.c.bf16 %v1456_v9, %v1456_v9  ;;  %v1457_v4 = vmul.f32 %v1909_v21, %v2285_v7 }
 0x22d   : > { %1475 = vst.msk [vmem:[%s224_s28 + $0x8] sm:$0xf] %vm1472_vm10, %v1466_v22  ;;  %v1467_v35 = vpack.c.bf16 %v1459_v63, %v1459_v63 }
 0x22e   : > { %1473 = vst.msk [vmem:[%s224_s28] sm:$0xf] %vm1472_vm10, %v1464_v34  ;;  %v1465_v36 = vpack.c.bf16 %v1457_v4, %v1457_v4 }
 0x22f   : > { %1476 = vst.msk [vmem:[%s224_s28 + $0xc] sm:$0xf] %vm1472_vm10, %v1467_v35 }
 0x230   : > { %v1911_v37 = vpop.eup %1910  ;;  %1474 = vst.msk [vmem:[%s224_s28 + $0x4] sm:$0xf] %vm1472_vm10, %v1465_v36 }
 0x231   : > { %v1913_v40 = vpop.eup %1912  ;;  %v1462_v41 = vmul.f32 %v1911_v37, %v1344_v2 }
 0x232   : > { %v1915_v1 = vpop.eup %1914  ;;  %v1460_v55 = vmul.f32 %v1913_v40, %v2293_v15 }
 0x233   : > { %v1917_v42 = vpop.eup %1916  ;;  %v1470_v60 = vpack.c.bf16 %v1462_v41, %v1462_v41  ;;  %v1463_v43 = vmul.f32 %v1915_v1, %v1345_v3 }
 0x234   : > { %v1468_v45 = vpack.c.bf16 %v1460_v55, %v1460_v55  ;;  %v1461_v46 = vmul.f32 %v1917_v42, %v1343_v39 }
 0x235   : > { %1479 = vst.msk [vmem:[%s224_s28 + $0x18] sm:$0xf] %vm1472_vm10, %v1470_v60  ;;  %v1471_v7 = vpack.c.bf16 %v1463_v43, %v1463_v43 }
 0x236   : > { %1477 = vst.msk [vmem:[%s224_s28 + $0x10] sm:$0xf] %vm1472_vm10, %v1468_v45  ;;  %v1469_v47 = vpack.c.bf16 %v1461_v46, %v1461_v46 }
 0x237   : > { %1480 = vst.msk [vmem:[%s224_s28 + $0x1c] sm:$0xf] %vm1472_vm10, %v1471_v7 }
 0x238   : > { %1478 = vst.msk [vmem:[%s224_s28 + $0x14] sm:$0xf] %vm1472_vm10, %v1469_v47 }
 0x239 PF: > { %s15_s18 = sadd.s32 1, %s1924_s18  }
 0x23a   : > { %p12_p4 = scmp.ge.s32.totalorder %s15_s18, 4  }
 0x23c   :  { %14 = sbr.rel (!%p12_p4) target bundleno = 1 (0x1), region = 78 }

// kernel: factorized_prior_forward.12
= control target key start
LH: loop header
LB: loop body
LE: loop exit
PB: predicated region body
PF: predicated region fallthrough
CT: control target
= control target key end

     0   :  { %s1289_s18 = smov 0   ;;  %s1442_s0 = inlined_call_operand.vmem [shape: bf16[2,3,3,16], index: 0, kind: input, shape index: {}]   ;;  %s1443_s1 = inlined_call_operand.vmem [shape: bf16[9,16,32], index: 1, kind: input, shape index: {}]   ;;  %s1444_s2 = inlined_call_operand.vmem [shape: f32[1,32], index: 2, kind: input, shape index: {}]   ;;  %s1445_s3 = inlined_call_operand.vmem [shape: bf16[8,8], index: 3, kind: input, shape index: {}]   ;;  %s1446_s4 = inlined_call_operand.vmem [shape: f32[1,8], index: 4, kind: input, shape index: {}]   ;;  %s1447_s5 = inlined_call_operand.vmem [shape: bf16[2,1,1,32], index: 5, kind: output, shape index: {}]  }
   0x1 LB: > { %s1057_s19 = sadd.s32 4294967295, %s1248_s18   ;;  %p1061_p0 = scmp.ge.s32.totalorder %s1248_s18, 1  ;;  %s1248_s18 = sphi %s1289_s18, %s15_s18  }
   0x2   : > { %p187_p1 = scmp.lt.s32.totalorder %s1248_s18, 3 }
   0x4   : > { %p188_p2 = pnand %p1061_p0, %p187_p1 }
   0x5   : > { %v1225_v0 = vld [vmem:[%s1443_s1 + $0x8] sm:$0xff] (!%p188_p2)   ;;  %v234_v1 = vlaneseq (!%p188_p2)  ;;  %v1250_v2 = vmov (!%p188_p2), 0.0   ;;  %v1226_v3 = vld [vmem:[%s1443_s1] sm:$0xff] (!%p188_p2)   ;;  %vm1251_vm0 = vmmov (!%p188_p2), 0   ;;  %p213_p3 = scmp.lt.s32.totalorder (!%p188_p2), %s1057_s19, 1  ;;  %vm247_vm1 = vcmask (!%p188_p2), 130048  }
   0x6   : > { %191 = sbr.rel (%p188_p2) target bundleno = 757 (0x2f5), region = 40  ;;  %1129 = vmatprep.subr.bf16.mxu0 (!%p188_p2), %v1250_v2  ;;  %1135 = vmatprep.subr.bf16.mxu1 (!%p188_p2), %v1250_v2  ;;  %v1252_v5 = vmov (!%p188_p2), 1983009808   ;;  %v1228_v9 = vld [vmem:[%s1443_s1 + $0x18] sm:$0xff] (!%p188_p2)   ;;  %v1227_v12 = vld [vmem:[%s1443_s1 + $0x10] sm:$0xff] (!%p188_p2)   ;;  %v1230_v15 = vld [vmem:[%s1443_s1 + $0x28] sm:$0xff] (!%p188_p2)  }
   0x7   : > { %1130 = vmatpush3.bf16.msra.mxu0 (!%p188_p2), %v1225_v0  ;;  %1131 = vmatprep.mubr.msk.bf16.mxu0 (!%p188_p2), %vm1251_vm0, %v1250_v2  ;;  %v235_v4 = vshrl.u32 (!%p188_p2), %v234_v1, 7  ;;  %v232_v6 = vunpack.c.l.s4 (!%p188_p2), %v1252_v5  ;;  %v1229_v17 = vld [vmem:[%s1443_s1 + $0x20] sm:$0xff] (!%p188_p2)   ;;  %v1232_v20 = vld [vmem:[%s1443_s1 + $0x38] sm:$0xff] (!%p188_p2)   ;;  %v1231_v24 = vld [vmem:[%s1443_s1 + $0x30] sm:$0xff] (!%p188_p2)   ;;  %vm746_vm2 = vcmask (!%p188_p2), 1043456   ;;  %vm742_vm3 = vcmask (!%p188_p2), 64512  }
   0x8   : > { %1136 = vmatpush3.bf16.msra.mxu1 (!%p188_p2), %v1226_v3  ;;  %1137 = vmatprep.mubr.msk.bf16.mxu1 (!%p188_p2), %vm1251_vm0, %v1250_v2  ;;  %v1233_v26 = vld [vmem:[%s1443_s1 + $0x40] sm:$0xff] (!%p188_p2)   ;;  %s1253_s27 = smov (!%p188_p2), 104   ;;  %s1254_s28 = smov (!%p188_p2), 120   ;;  %vm799_vm6 = vcmask (!%p188_p2), 57344   ;;  %vm800_vm7 = vsmask.f32 (!%p188_p2), 256 }
   0x9   : > { %1141 = vmatprep.subr.bf16.mxu0 (!%p188_p2), %v1250_v2  ;;  %1147 = vmatprep.subr.bf16.mxu1 (!%p188_p2), %v1250_v2  ;;  %v233_v7 = vunpack.c.0.s8 (!%p188_p2), %v232_v6  ;;  %v740_v28 = vld [vmem:[%s1445_s3] sm:$0xf] (!%p188_p2)  ;;  %vm801_vm8 = vmand (!%p188_p2), %vm799_vm6, %vm800_vm7  ;;  %s1256_s17 = smov (!%p188_p2), 8   ;;  %s1257_s20 = smov (!%p188_p2), 16   ;;  %vm869_vm15 = vcmask (!%p188_p2), 122944  }
   0xa   : > { %v748_v29 = vsel (!%p188_p2), %vm746_vm2, %v740_v28, 0  ;;  %v805_v30 = vld [vmem:[%s1445_s3] sm:$0xf] (!%p188_p2)  ;;  %s1258_s21 = smov (!%p188_p2), 24  }
   0xb   : > { %v236_v8 = vsub.s32 (!%p188_p2), %v233_v7, %v235_v4  ;;  %v814_v31 = vsel (!%p188_p2), %vm746_vm2, %v805_v30, 0 }
   0xd   : > { %s1449_s19 = smov (!%p213_p3, %s1057_s19), 1 }
   0xe   : > { %s1207_s24 = smul.u32 6, %s1449_s19  ;;  %s1412_s11 = scalar_lea.vmem %s1447_s5, %s1449_s19 }
  0x10   : > { %s217_s29 = scalar_lea.vmem %s1442_s0, %s1207_s24 }
  0x11   : > { %v222_v10 = vld [vmem:[%s217_s29] sm:$0x3]  ;;  %v223_v14 = vld [vmem:[%s217_s29 + $0x2] sm:$0x3]  ;;  %v224_v21 = vld [vmem:[%s217_s29 + $0x4] sm:$0x3] }
  0x12   : > { %v237_v11 = vrot.slane %v222_v10, %v236_v8  ;;  %1138 = vmatmul.mubr.msk.bf16.vlgmr.msra.gmra.mrb[0].mxu1 %vm247_vm1, %v222_v10  ;;  %v457_v18 = vrot.slane %v223_v14, %v236_v8  ;;  %v628_v23 = vrot.slane %v224_v21, %v236_v8  ;;  %s1255_s29 = smov 112  }
  0x13   : > { %1148 = vmatpush3.bf16.msra.mxu1 %v1228_v9  ;;  %1149 = vmatprep.mubr.msk.bf16.mxu1 %vm1251_vm0, %v1250_v2  ;;  %v736_v9 = vld [vmem:[%s1444_s2] sm:$0x1] }
  0x14   : > { %v239_v13 = vshrl.u32 %v237_v11, 16  ;;  %1159 = vmatprep.subr.bf16.mxu1 %v1250_v2  ;;  %v343_v16 = vrot.slane %v237_v11, 1  ;;  %v514_v19 = vrot.slane %v457_v18, 1  ;;  %v459_v22 = vshrl.u32 %v457_v18, 16 }
  0x15   : > { %v630_v25 = vshrl.u32 %v628_v23, 16  ;;  %v685_v27 = vrot.slane %v628_v23, 1 }
  0x16   : > { %1132 = vmatmul.mubr.msk.bf16.vlgmr.msra.gmra.mrb[0].mxu0 %vm247_vm1, %v239_v13 }
  0x17   : > { %1142 = vmatpush3.bf16.msra.mxu0 %v1227_v12  ;;  %1143 = vmatprep.mubr.msk.bf16.mxu0 %vm1251_vm0, %v1250_v2 }
  0x18   : > { %1153 = vmatprep.subr.bf16.mxu0 %v1250_v2 }
  0x1a   : > { %1150 = vmatmul.mubr.msk.bf16.vlgmr.msra.gmra.mrb[4].mxu1 %vm247_vm1, %v223_v14 }
  0x1b   : > { %1160 = vmatpush3.bf16.msra.mxu1 %v1230_v15  ;;  %1161 = vmatprep.mubr.msk.bf16.mxu1 %vm1251_vm0, %v1250_v2 }
  0x1c   : > { %1171 = vmatprep.subr.bf16.mxu1 %v1250_v2 }
  0x1e   : > { %1144 = vmatmul.mubr.msk.bf16.vlgmr.msra.gmra.mrb[4].mxu0 %vm247_vm1, %v343_v16  ;;  %v874_v16 = vld [vmem:[%s1445_s3] sm:$0xf] }
  0x1f   : > { %1154 = vmatpush3.bf16.msra.mxu0 %v1229_v17  ;;  %1155 = vmatprep.mubr.msk.bf16.mxu0 %vm1251_vm0, %v1250_v2  ;;  %v882_v18 = vsel %vm746_vm2, %v874_v16, 0 }
  0x20   : > { %1165 = vmatprep.subr.bf16.mxu0 %v1250_v2 }
  0x22   : > { %1162 = vmatmul.mubr.msk.bf16.vlgmr.msra.gmra.mrb[8].mxu1 %vm247_vm1, %v514_v19  ;;  %v942_v19 = vld [vmem:[%s1445_s3] sm:$0xf] }
  0x23   : > { %1172 = vmatpush3.bf16.msra.mxu1 %v1232_v20  ;;  %1173 = vmatprep.mubr.msk.bf16.mxu1 %vm1251_vm0, %v1250_v2  ;;  %v950_v20 = vsel %vm746_vm2, %v942_v19, 0 }
  0x24   : > { %1183 = vmatprep.subr.bf16.mxu1 %v1250_v2 }
  0x26   : > { %1156 = vmatmul.mubr.msk.bf16.vlgmr.msra.gmra.mrb[8].mxu0 %vm247_vm1, %v459_v22 }
  0x27   : > { %1166 = vmatpush3.bf16.msra.mxu0 %v1231_v24  ;;  %1167 = vmatprep.mubr.msk.bf16.mxu0 %vm1251_vm0, %v1250_v2  ;;  %v741_v24 = vld [vmem:[%s1446_s4] sm:$0x1] }
  0x28   : > { %1177 = vmatprep.subr.bf16.mxu0 %v1250_v2 }
  0x2a   : > { %1174 = vmatmul.mubr.msk.bf16.vlgmr.msra.gmra.mrb[12].mxu1 %vm247_vm1, %v630_v25 }
  0x2b   : > { %1185 = vmatprep.mubr.msk.bf16.mxu1 %vm1251_vm0, %v1250_v2  ;;  %1184 = vmatpush3.bf16.msra.mxu1 %v748_v29 }
  0x2c   : > { %1195 = vmatprep.subr.bf16.mxu1 %v1250_v2 }
  0x2e   : > { %1168 = vmatmul.mubr.msk.bf16.vlgmr.msra.gmra.mrb[12].mxu0 %vm247_vm1, %v224_v21 }
  0x2f   : > { %1178 = vmatpush3.bf16.msra.mxu0 %v1233_v26  ;;  %1179 = vmatprep.mubr.msk.bf16.mxu0 %vm1251_vm0, %v1250_v2 }
  0x30   : > { %1189 = vmatprep.subr.bf16.mxu0 %v1250_v2 }
  0x36   : > { %1180 = vmatmul.mubr.msk.bf16.vlgmr.msra.gmra.mrb[16].mxu0 %vm247_vm1, %v685_v27  ;;  %vm937_vm1 = vcmask 188544  }
  0x37   : > { %1191 = vmatprep.mubr.msk.bf16.mxu0 %vm1251_vm0, %v1250_v2  ;;  %1190 = vmatpush3.bf16.msra.mxu0 %v814_v31  ;;  %vm938_vm2 = vmand %vm937_vm1, %vm800_vm7 }
  0x38   : > { %1201 = vmatprep.subr.bf16.mxu0 %v1250_v2 }
  0xe5   : > { %v334_v32 = vpop.f32.mrb[0].mxu1 }
  0xe6   : > { %v1139_v33 = vpop.f32.mrb[1].mxu1 }
  0xe7   : > { %v337_v34 = vpop.f32.mrb[2].mxu1 }
  0xe8   : > { %v1140_v35 = vpop.f32.mrb[3].mxu1 }
  0xe9   : > { %v285_v36 = vpop.f32.mrb[0].mxu0  ;;  %v802_v35 = vld [vmem:[%s1412_s11] sm:$0x1] }
  0xea   : > { %v335_v37 = vadd.f32 %v334_v32, %v285_v36  ;;  %v1133_v38 = vpop.f32.mrb[1].mxu0 }
  0xeb   : > { %v288_v39 = vpop.f32.mrb[2].mxu0  ;;  %v806_v38 = vld [vmem:[%s1446_s4] sm:$0x1] }
  0xec   : > { %v1134_v40 = vpop.f32.mrb[3].mxu0 }
  0xed   : > { %v440_v41 = vpop.f32.mrb[4].mxu1 }
  0xee   : > { %v1151_v42 = vpop.f32.mrb[5].mxu1 }
  0xef   : > { %v443_v43 = vpop.f32.mrb[6].mxu1 }
  0xf0   : > { %v1152_v44 = vpop.f32.mrb[7].mxu1  ;;  %v875_v43 = vld [vmem:[%s1446_s4] sm:$0x1] }
  0xf1   : > { %v387_v45 = vpop.f32.mrb[4].mxu0 }
  0xf2   : > { %v393_v46 = vadd.f32 %v387_v45, %v335_v37  ;;  %v1145_v47 = vpop.f32.mrb[5].mxu0 }
  0xf3   : > { %v390_v48 = vpop.f32.mrb[6].mxu0 }
  0xf4   : > { %v446_v49 = vadd.f32 %v440_v41, %v393_v46  ;;  %v1146_v50 = vpop.f32.mrb[7].mxu0 }
  0xf5   : > { %v558_v51 = vpop.f32.mrb[8].mxu1 }
  0xf6   : > { %v1163_v52 = vpop.f32.mrb[9].mxu1 }
  0xf7   : > { %v561_v53 = vpop.f32.mrb[10].mxu1 }
  0xf8   : > { %v1164_v54 = vpop.f32.mrb[11].mxu1 }
  0xf9   : > { %v504_v55 = vpop.f32.mrb[8].mxu0 }
  0xfa   : > { %v510_v56 = vadd.f32 %v504_v55, %v446_v49  ;;  %v1157_v57 = vpop.f32.mrb[9].mxu0  ;;  %v943_v49 = vld [vmem:[%s1446_s4] sm:$0x1] }
  0xfb   : > { %v507_v58 = vpop.f32.mrb[10].mxu0 }
  0xfc   : > { %v564_v59 = vadd.f32 %v558_v51, %v510_v56  ;;  %v1158_v60 = vpop.f32.mrb[11].mxu0 }
  0xfd   : > { %v675_v61 = vpop.f32.mrb[12].mxu1 }
  0xfe   : > { %v1175_v62 = vpop.f32.mrb[13].mxu1 }
  0xff   : > { %v678_v63 = vpop.f32.mrb[14].mxu1 }
 0x100   : > { %v1176_v0 = vpop.f32.mrb[15].mxu1 }
 0x101   : > { %v611_v1 = vpop.f32.mrb[12].mxu0 }
 0x102   : > { %v617_v3 = vadd.f32 %v611_v1, %v564_v59  ;;  %v1169_v4 = vpop.f32.mrb[13].mxu0 }
 0x103   : > { %v614_v5 = vpop.f32.mrb[14].mxu0 }
 0x104   : > { %v681_v6 = vadd.f32 %v675_v61, %v617_v3  ;;  %v1170_v7 = vpop.f32.mrb[15].mxu0 }
 0x109   : > { %v729_v8 = vpop.f32.mrb[16].mxu0 }
 0x10a   : > { %v735_v10 = vadd.f32 %v729_v8, %v681_v6  ;;  %v1181_v11 = vpop.f32.mrb[17].mxu0 }
 0x10b   : > { %v732_v12 = vpop.f32.mrb[18].mxu0 }
 0x10c   : > { %v1385_v13 = vadd.f32 %v736_v9, %v735_v10  ;;  %v1182_v14 = vpop.f32.mrb[19].mxu0 }
 0x10e   : > { %v738_v15 = vmul.f32 %v1385_v13, %v1385_v13 }
 0x110   : > { %v739_v17 = vpack.c.bf16 %v738_v15, %v738_v15 }
 0x112   : > { %944 = vrot.lane.b32.xlu1 %v739_v17, %s1253_s27  ;;  %808 = vrot.lane.b32.xlu0 %v739_v17, %s1254_s28 }
 0x113   : > { %1186 = vmatmul.mubr.msk.bf16.vlgmr.msra.gmra.mrb[16].mxu1 %vm742_vm3, %v739_v17 }
 0x114   : > { %1196 = vmatpush3.bf16.msra.mxu1 %v882_v18  ;;  %1197 = vmatprep.mubr.msk.bf16.mxu1 %vm1251_vm0, %v1250_v2 }
 0x116   : > { %876 = vrot.lane.b32.xlu0 %v739_v17, %s1255_s29 }
 0x184   : > { %v809_v21 = vpop.permute.xlu0 %808  ;;  %v945_v23 = vpop.permute.xlu1 %944 }
 0x185   : > { %1192 = vmatmul.mubr.msk.bf16.vlgmr.msra.gmra.mrb[20].mxu0 %vm742_vm3, %v809_v21 }
 0x186   : > { %1202 = vmatpush3.bf16.msra.mxu0 %v950_v20  ;;  %1203 = vmatprep.mubr.msk.bf16.mxu0 %vm1251_vm0, %v1250_v2  ;;  %vm870_vm0 = vmand %vm869_vm15, %vm800_vm7 }
 0x188   : > { %v877_v22 = vpop.permute.xlu0 %876 }
 0x189   : > { %1198 = vmatmul.mubr.msk.bf16.vlgmr.msra.gmra.mrb[20].mxu1 %vm742_vm3, %v877_v22 }
 0x18d   : > { %1204 = vmatmul.mubr.msk.bf16.vlgmr.msra.gmra.mrb[24].mxu0 %vm742_vm3, %v945_v23  ;;  %vm1005_vm3 = vcmask 254144  }
 0x1e6   : > { %v784_v25 = vpop.f32.mrb[16].mxu1 }
 0x1e7   : > { %v785_v26 = vadd.f32 %v784_v25, %v741_v24  ;;  %v1187_v27 = vpop.f32.mrb[17].mxu1 }
 0x1e8   : > { %v787_v28 = vpop.f32.mrb[18].mxu1 }
 0x1e9   : > { %1234 = vrsqrt.f32 %v785_v26  ;;  %v1188_v29 = vpop.f32.mrb[19].mxu1  ;;  %vm792_vm4 = vcmp.eq.f32.partialorder %v785_v26, inf  ;;  %v795_v2 = vand.u32 2147483648, %v785_v26  ;;  %vm794_vm5 = vcmp.eq.f32.partialorder %v785_v26, 0.0 }
 0x1f3   : > { %v1235_v30 = vpop.eup %1234 }
 0x1f4   : > { %v791_v31 = vmul.f32 %v1235_v30, %v785_v26 }
 0x1f6   : > { %v793_v32 = vsel %vm792_vm4, %v785_v26, %v791_v31  ;;  %vm1006_vm4 = vmand %vm1005_vm3, %vm800_vm7 }
 0x1f7   : > { %v796_v33 = vsel %vm794_vm5, %v795_v2, %v793_v32 }
 0x1f8   : > { %v797_v34 = vmul.f32 %v796_v33, %v1385_v13 }
 0x1fa   : > { %v798_v36 = vpack.c.bf16 %v797_v34, %v797_v34 }
 0x1fc   : > { %v803_v37 = vsel %vm801_vm8, %v798_v36, %v802_v35 }
 0x1fd   : > { %804 = vst [vmem:[%s1412_s11] sm:$0x1] %v803_v37 }
 0x204   : > { %v871_v11 = vld [vmem:[%s1412_s11] sm:$0x1] }
 0x258   : > { %v850_v39 = vpop.f32.mrb[20].mxu0 }
 0x259   : > { %v851_v40 = vadd.f32 %v850_v39, %v806_v38  ;;  %v1193_v41 = vpop.f32.mrb[21].mxu0 }
 0x25a   : > { %v853_v42 = vpop.f32.mrb[22].mxu0 }
 0x25b   : > { %1236 = vrsqrt.f32 %v851_v40  ;;  %v1194_v44 = vpop.f32.mrb[23].mxu0  ;;  %vm858_vm9 = vcmp.eq.f32.partialorder %v851_v40, inf  ;;  %v861_v58 = vand.u32 2147483648, %v851_v40  ;;  %vm860_vm10 = vcmp.eq.f32.partialorder %v851_v40, 0.0 }
 0x25c   : > { %v918_v45 = vpop.f32.mrb[20].mxu1 }
 0x25d   : > { %v919_v46 = vadd.f32 %v918_v45, %v875_v43  ;;  %v1199_v47 = vpop.f32.mrb[21].mxu1 }
 0x25e   : > { %v921_v48 = vpop.f32.mrb[22].mxu1 }
 0x25f   : > { %1238 = vrsqrt.f32 %v919_v46  ;;  %v1200_v50 = vpop.f32.mrb[23].mxu1  ;;  %vm926_vm11 = vcmp.eq.f32.partialorder %v919_v46, inf  ;;  %v929_v63 = vand.u32 2147483648, %v919_v46  ;;  %vm928_vm12 = vcmp.eq.f32.partialorder %v919_v46, 0.0 }
 0x260   : > { %v986_v51 = vpop.f32.mrb[24].mxu0 }
 0x261   : > { %v987_v52 = vadd.f32 %v986_v51, %v943_v49  ;;  %v1205_v53 = vpop.f32.mrb[25].mxu0 }
 0x262   : > { %v989_v54 = vpop.f32.mrb[26].mxu0 }
 0x263   : > { %1240 = vrsqrt.f32 %v987_v52  ;;  %v1206_v55 = vpop.f32.mrb[27].mxu0  ;;  %vm994_vm13 = vcmp.eq.f32.partialorder %v987_v52, inf  ;;  %v997_v5 = vand.u32 2147483648, %v987_v52  ;;  %vm996_vm14 = vcmp.eq.f32.partialorder %v987_v52, 0.0 }
 0x265   : > { %v1237_v56 = vpop.eup %1236 }
 0x266   : > { %v857_v57 = vmul.f32 %v1237_v56, %v851_v40 }
 0x268   : > { %v859_v59 = vsel %vm858_vm9, %v851_v40, %v857_v57 }
 0x269   : > { %v1239_v60 = vpop.eup %1238  ;;  %v862_v61 = vsel %vm860_vm10, %v861_v58, %v859_v59 }
 0x26a   : > { %864 = vrot.lane.b32.xlu1 %v862_v61, %s1256_s17  ;;  %v925_v62 = vmul.f32 %v1239_v60, %v919_v46 }
 0x26c   : > { %v927_v0 = vsel %vm926_vm11, %v919_v46, %v925_v62 }
 0x26d   : > { %v1241_v1 = vpop.eup %1240  ;;  %v930_v3 = vsel %vm928_vm12, %v929_v63, %v927_v0 }
 0x26e   : > { %932 = vrot.lane.b32.xlu0 %v930_v3, %s1257_s20  ;;  %v993_v4 = vmul.f32 %v1241_v1, %v987_v52 }
 0x270   : > { %v995_v6 = vsel %vm994_vm13, %v987_v52, %v993_v4 }
 0x271   : > { %v998_v7 = vsel %vm996_vm14, %v997_v5, %v995_v6 }
 0x272   : > { %1000 = vrot.lane.b32.xlu1 %v998_v7, %s1258_s21 }
 0x2dc   : > { %v865_v8 = vpop.permute.xlu1 %864 }
 0x2dd   : > { %v867_v9 = vmul.f32 %v865_v8, %v1385_v13 }
 0x2df   : > { %v868_v10 = vpack.c.bf16 %v867_v9, %v867_v9 }
 0x2e0   : > { %v933_v14 = vpop.permute.xlu0 %932 }
 0x2e1   : > { %v872_v12 = vsel %vm870_vm0, %v868_v10, %v871_v11  ;;  %v935_v15 = vmul.f32 %v933_v14, %v1385_v13 }
 0x2e2   : > { %873 = vst [vmem:[%s1412_s11] sm:$0x1] %v872_v12 }
 0x2e3   : > { %v936_v16 = vpack.c.bf16 %v935_v15, %v935_v15 }
 0x2e4   : > { %v1001_v19 = vpop.permute.xlu1 %1000 }
 0x2e5   : > { %v1003_v20 = vmul.f32 %v1001_v19, %v1385_v13 }
 0x2e7   : > { %v1004_v21 = vpack.c.bf16 %v1003_v20, %v1003_v20 }
 0x2e9   : > { %v939_v17 = vld [vmem:[%s1412_s11] sm:$0x1] }
 0x2ea   : > { %v940_v18 = vsel %vm938_vm2, %v936_v16, %v939_v17 }
 0x2eb   : > { %941 = vst [vmem:[%s1412_s11] sm:$0x1] %v940_v18 }
 0x2f2   : > { %v1007_v22 = vld [vmem:[%s1412_s11] sm:$0x1] }
 0x2f3   : > { %v1008_v23 = vsel %vm1006_vm4, %v1004_v21, %v1007_v22 }
 0x2f4   : > { %1009 = vst [vmem:[%s1412_s11] sm:$0x1] %v1008_v23 }
 0x2f5 PF: > { %s15_s18 = sadd.s32 1, %s1248_s18  }
 0x2f6   : > { %p12_p4 = scmp.ge.s32.totalorder %s15_s18, 4  }
 0x2f8   :  { %14 = sbr.rel (!%p12_p4) target bundleno = 1 (0x1), region = 78 }

// kernel: factorized_prior_forward.13
= control target key start
LH: loop header
LB: loop body
LE: loop exit
PB: predicated region body
PF: predicated region fallthrough
CT: control target
= control target key end

     0   :  { %s1506_s18 = smov 0   ;;  %s1723_s0 = inlined_call_operand.vmem [shape: bf16[2,4,4,8], index: 0, kind: input, shape index: {}]   ;;  %s1724_s1 = inlined_call_operand.vmem [shape: bf16[9,8,32], index: 1, kind: input, shape index: {}]   ;;  %s1725_s2 = inlined_call_operand.vmem [shape: f32[1,32], index: 2, kind: input, shape index: {}]   ;;  %s1726_s3 = inlined_call_operand.vmem [shape: bf16[8,8], index: 3, kind: input, shape index: {}]   ;;  %s1727_s4 = inlined_call_operand.vmem [shape: f32[1,8], index: 4, kind: input, shape index: {}]   ;;  %s1728_s5 = inlined_call_operand.vmem [shape: bf16[2,2,2,32], index: 5, kind: output, shape index: {}]  }
   0x1 LB: > { %s1284_s19 = sadd.s32 4294967295, %s1464_s18   ;;  %p1288_p0 = scmp.ge.s32.totalorder %s1464_s18, 1  ;;  %s1464_s18 = sphi %s1506_s18, %s15_s18  }
   0x2   : > { %p187_p1 = scmp.lt.s32.totalorder %s1464_s18, 3 }
   0x4   : > { %p188_p2 = pnand %p1288_p0, %p187_p1 }
   0x5   : > { %v1294_v0 = vld [vmem:[%s1724_s1 + $0x4] sm:$0xf] (!%p188_p2)  ;;  %vm301_vm0 = vcmask (!%p188_p2), 1043456   ;;  %v228_v1 = vld [vmem:[%s1724_s1] sm:$0xf] (!%p188_p2)  ;;  %v234_v2 = vlaneseq (!%p188_p2)  ;;  %v1466_v3 = vmov (!%p188_p2), 0.0  }
   0x6   : > { %191 = sbr.rel (%p188_p2) target bundleno = 758 (0x2f6), region = 40  ;;  %1354 = vmatprep.subr.bf16.mxu0 (!%p188_p2), %v1466_v3  ;;  %v303_v4 = vsel (!%p188_p2), %vm301_vm0, %v1294_v0, 0  ;;  %1360 = vmatprep.subr.bf16.mxu1 (!%p188_p2), %v1466_v3  ;;  %v364_v5 = vsel (!%p188_p2), %vm301_vm0, %v228_v1, 0  ;;  %p214_p3 = scmp.lt.s32.totalorder (!%p188_p2), %s1284_s19, 1  ;;  %v1467_v6 = vmov (!%p188_p2), 1966171168  }
   0x7   : > { %1355 = vmatpush3.bf16.msra.mxu0 (!%p188_p2), %v303_v4  ;;  %1361 = vmatpush3.bf16.msra.mxu1 (!%p188_p2), %v364_v5  ;;  %v232_v7 = vunpack.c.l.s4 (!%p188_p2), %v1467_v6  ;;  %v1524_v8 = vshrl.u32 (!%p188_p2), %v234_v2, 7  ;;  %vm247_vm1 = vsmask.f32 (!%p188_p2), 256  ;;  %vm248_vm2 = vsmask.f32 (!%p188_p2), 1284  ;;  %s1470_s28 = smov (!%p188_p2), 120  }
   0x8   : > { %vm1468_vm3 = vmmov (!%p188_p2), 0   ;;  %vm249_vm4 = vmor (!%p188_p2), %vm247_vm1, %vm248_vm2  ;;  %vm250_vm5 = vsmask.f32 (!%p188_p2), 2312  ;;  %vm252_vm6 = vsmask.f32 (!%p188_p2), 3340  ;;  %1366 = vmatprep.subr.bf16.mxu0 (!%p188_p2), %v1466_v3  ;;  %1372 = vmatprep.subr.bf16.mxu1 (!%p188_p2), %v1466_v3  ;;  %vm297_vm2 = vcmask (!%p188_p2), 64512  }
   0x9   : > { %1356 = vmatprep.mubr.msk.bf16.mxu0 (!%p188_p2), %vm1468_vm3, %v1466_v3  ;;  %1362 = vmatprep.mubr.msk.bf16.mxu1 (!%p188_p2), %vm1468_vm3, %v1466_v3  ;;  %v233_v9 = vunpack.c.0.s8 (!%p188_p2), %v232_v7  ;;  %vm251_vm7 = vmor (!%p188_p2), %vm249_vm4, %vm250_vm5  ;;  %vm254_vm8 = vsmask.f32 (!%p188_p2), 4368  ;;  %vm256_vm10 = vsmask.f32 (!%p188_p2), 5396  ;;  %vm258_vm12 = vsmask.f32 (!%p188_p2), 6424 }
   0xa   : > { %vm253_vm9 = vmor (!%p188_p2), %vm251_vm7, %vm252_vm6  ;;  %vm260_vm14 = vsmask.f32 (!%p188_p2), 7452  ;;  %v1300_v23 = vld [vmem:[%s1724_s1 + $0xc] sm:$0xf] (!%p188_p2)  ;;  %v1297_v36 = vld [vmem:[%s1724_s1 + $0x8] sm:$0xf] (!%p188_p2) }
   0xb   : > { %v1539_v10 = vsub.s32 (!%p188_p2), %v233_v9, %v1524_v8  ;;  %vm255_vm11 = vmor (!%p188_p2), %vm253_vm9, %vm254_vm8  ;;  %v492_v30 = vsel (!%p188_p2), %vm301_vm0, %v1300_v23, 0  ;;  %v427_v44 = vsel (!%p188_p2), %vm301_vm0, %v1297_v36, 0  ;;  %v1305_v45 = vld [vmem:[%s1724_s1 + $0x14] sm:$0xf] (!%p188_p2)  ;;  %v1303_v53 = vld [vmem:[%s1724_s1 + $0x10] sm:$0xf] (!%p188_p2) }
   0xc   : > { %vm257_vm13 = vmor (!%p188_p2), %vm255_vm11, %vm256_vm10  ;;  %v637_v52 = vsel (!%p188_p2), %vm301_vm0, %v1305_v45, 0  ;;  %v573_v58 = vsel (!%p188_p2), %vm301_vm0, %v1303_v53, 0  ;;  %v1311_v59 = vld [vmem:[%s1724_s1 + $0x1c] sm:$0xf] (!%p188_p2)  ;;  %v1308_v0 = vld [vmem:[%s1724_s1 + $0x18] sm:$0xf] (!%p188_p2) }
   0xd   : > { %s1732_s19 = smov (!%p214_p3, %s1284_s19), 1  ;;  %vm259_vm15 = vmor %vm257_vm13, %vm258_vm12  ;;  %v783_v63 = vsel %vm301_vm0, %v1311_v59, 0  ;;  %v702_v5 = vsel %vm301_vm0, %v1308_v0, 0  ;;  %v1313_v9 = vld [vmem:[%s1724_s1 + $0x20] sm:$0xf]  ;;  %s1471_s29 = smov 112  }
   0xe   : > { %s1327_s24 = sshll.u32 %s1732_s19, 3  ;;  %vm1554_vm1 = vmor %vm259_vm15, %vm260_vm14  ;;  %v1316_v59 = vld [vmem:[%s1725_s2] ss:$0 sm:$0xff]  ;;  %s1291_s9 = sshll.u32 %s1732_s19, 1  ;;  %vm975_vm4 = vcmask 57344   ;;  %vm1060_vm11 = vcmask 122944  }
   0xf   : > { %s218_s27 = scalar_lea.vmem %s1723_s0, %s1327_s24  ;;  %s1704_s12 = scalar_lea.vmem %s1728_s5, %s1291_s9  ;;  %vm1144_vm12 = vcmask 188544   ;;  %vm1228_vm13 = vcmask 254144  }
  0x10   : > { %v224_v11 = vld [vmem:[%s218_s27] sm:$0x3]  ;;  %v225_v12 = vld [vmem:[%s218_s27 + $0x2] sm:$0x3]  ;;  %v1541_v13 = vld [vmem:[%s218_s27 + $0x4] sm:$0x3] }
  0x11   : > { %v237_v14 = vrot.slane %v224_v11, %v1539_v10  ;;  %v245_v15 = vrot.slane %v225_v12, %v1539_v10  ;;  %v345_v16 = vcombine.low %v224_v11, %v225_v12  ;;  %v1547_v17 = vrot.slane %v1541_v13, %v1539_v10  ;;  %v1549_v18 = vld [vmem:[%s218_s27 + $0x6] sm:$0x3]  ;;  %s1469_s27 = smov 104   ;;  %s1473_s19 = smov 8  }
  0x12   : > { %v473_v28 = vcombine.low %v225_v12, %v1541_v13  ;;  %v1562_v29 = vrot.slane %v1549_v18, %v1539_v10  ;;  %v683_v4 = vcombine.low %v1541_v13, %v1549_v18  ;;  %v847_v13 = vsel %vm301_vm0, %v1313_v9, 0  ;;  %v978_v18 = vld [vmem:[%s1726_s3] sm:$0xf]  ;;  %s1474_s13 = smov 16   ;;  %s1475_s14 = smov 24  }
  0x13   : > { %v238_v19 = vcombine.high %v237_v14, %v237_v14  ;;  %v246_v20 = vcombine.high %v245_v15, %v245_v15  ;;  %v263_v21 = vshrl.u32 %v237_v14, 16  ;;  %v272_v22 = vshrl.u32 %v245_v15, 16 }
  0x14   : > { %v352_v27 = vrot.slane %v345_v16, %v1539_v10  ;;  %v542_v33 = vcombine.high %v1547_v17, %v1547_v17  ;;  %v480_v37 = vrot.slane %v473_v28, %v1539_v10  ;;  %v752_v39 = vcombine.high %v1562_v29, %v1562_v29  ;;  %v900_v16 = vld [vmem:[%s1726_s3] sm:$0xf] }
  0x15   : > { %v268_v25 = vshll.u32 %v238_v19, 16  ;;  %v277_v26 = vshll.u32 %v246_v20, 16  ;;  %v1298_v40 = vcombine.high %v237_v14, %v245_v15  ;;  %v544_v41 = vshrl.u32 %v1547_v17, 16 }
  0x16   : > { %v359_v34 = vrot.slane %v352_v27, %v1539_v10  ;;  %v549_v42 = vshll.u32 %v542_v33, 16  ;;  %v487_v46 = vrot.slane %v480_v37, %v1539_v10  ;;  %v1306_v47 = vcombine.high %v245_v15, %v1547_v17 }
  0x17   : > { %v270_v31 = vsel %vm1554_vm1, %v263_v21, %v268_v25  ;;  %v279_v32 = vsel %vm1554_vm1, %v272_v22, %v277_v26  ;;  %v754_v48 = vshrl.u32 %v1562_v29, 16  ;;  %v759_v49 = vshll.u32 %v752_v39, 16 }
  0x18   : > { %v282_v35 = vcombine.low %v270_v31, %v279_v32  ;;  %1363 = vmatmul.mubr.msk.bf16.vlgmr.msra.gmra.mrb[0].mxu1 %vm297_vm2, %v359_v34  ;;  %v415_v50 = vrot.slane %v1298_v40, %v1539_v10  ;;  %v551_v51 = vsel %vm1554_vm1, %v544_v41, %v549_v42  ;;  %v625_v54 = vrot.slane %v1306_v47, %v1539_v10 }
  0x19   : > { %1373 = vmatpush3.bf16.msra.mxu1 %v492_v30  ;;  %1374 = vmatprep.mubr.msk.bf16.mxu1 %vm1468_vm3, %v1466_v3  ;;  %v554_v55 = vcombine.low %v279_v32, %v551_v51  ;;  %v761_v56 = vsel %vm1554_vm1, %v754_v48, %v759_v49  ;;  %v690_v7 = vrot.slane %v683_v4, %v1539_v10 }
  0x1a   : > { %v289_v38 = vrot.slane %v282_v35, %v1539_v10  ;;  %1384 = vmatprep.subr.bf16.mxu1 %v1466_v3  ;;  %v422_v57 = vrot.slane %v415_v50, %v1539_v10  ;;  %v764_v60 = vcombine.low %v551_v51, %v761_v56  ;;  %v632_v61 = vrot.slane %v625_v54, %v1539_v10 }
  0x1b   : > { %v561_v62 = vrot.slane %v554_v55, %v1539_v10  ;;  %v697_v11 = vrot.slane %v690_v7, %v1539_v10  ;;  %v1314_v12 = vcombine.high %v1547_v17, %v1562_v29  ;;  %v912_v17 = vsel %vm301_vm0, %v900_v16, 0 }
  0x1c   : > { %v296_v43 = vrot.slane %v289_v38, %v1539_v10  ;;  %v771_v1 = vrot.slane %v764_v60, %v1539_v10 }
  0x1d   : > { %v568_v2 = vrot.slane %v561_v62, %v1539_v10  ;;  %v835_v14 = vrot.slane %v1314_v12, %v1539_v10 }
  0x1e   : > { %1357 = vmatmul.mubr.msk.bf16.vlgmr.msra.gmra.mrb[0].mxu0 %vm297_vm2, %v296_v43  ;;  %v778_v6 = vrot.slane %v771_v1, %v1539_v10 }
  0x1f   : > { %1367 = vmatpush3.bf16.msra.mxu0 %v427_v44  ;;  %1368 = vmatprep.mubr.msk.bf16.mxu0 %vm1468_vm3, %v1466_v3  ;;  %v842_v15 = vrot.slane %v835_v14, %v1539_v10  ;;  %v993_v10 = vsel %vm301_vm0, %v978_v18, 0 }
  0x20   : > { %1378 = vmatprep.subr.bf16.mxu0 %v1466_v3  ;;  %1375 = vmatmul.mubr.msk.bf16.vlgmr.msra.gmra.mrb[4].mxu1 %vm297_vm2, %v487_v46 }
  0x21   : > { %1385 = vmatpush3.bf16.msra.mxu1 %v637_v52  ;;  %1386 = vmatprep.mubr.msk.bf16.mxu1 %vm1468_vm3, %v1466_v3 }
  0x22   : > { %1396 = vmatprep.subr.bf16.mxu1 %v1466_v3 }
  0x26   : > { %1369 = vmatmul.mubr.msk.bf16.vlgmr.msra.gmra.mrb[4].mxu0 %vm297_vm2, %v422_v57 }
  0x27   : > { %1379 = vmatpush3.bf16.msra.mxu0 %v573_v58  ;;  %1380 = vmatprep.mubr.msk.bf16.mxu0 %vm1468_vm3, %v1466_v3 }
  0x28   : > { %1390 = vmatprep.subr.bf16.mxu0 %v1466_v3  ;;  %1387 = vmatmul.mubr.msk.bf16.vlgmr.msra.gmra.mrb[8].mxu1 %vm297_vm2, %v632_v61 }
  0x29   : > { %1397 = vmatpush3.bf16.msra.mxu1 %v783_v63  ;;  %1398 = vmatprep.mubr.msk.bf16.mxu1 %vm1468_vm3, %v1466_v3 }
  0x2a   : > { %1408 = vmatprep.subr.bf16.mxu1 %v1466_v3 }
  0x2e   : > { %1381 = vmatmul.mubr.msk.bf16.vlgmr.msra.gmra.mrb[8].mxu0 %vm297_vm2, %v568_v2  ;;  %v1063_v2 = vld [vmem:[%s1726_s3] sm:$0xf] }
  0x2f   : > { %1391 = vmatpush3.bf16.msra.mxu0 %v702_v5  ;;  %1392 = vmatprep.mubr.msk.bf16.mxu0 %vm1468_vm3, %v1466_v3  ;;  %v1077_v5 = vsel %vm301_vm0, %v1063_v2, 0 }
  0x30   : > { %1402 = vmatprep.subr.bf16.mxu0 %v1466_v3  ;;  %1399 = vmatmul.mubr.msk.bf16.vlgmr.msra.gmra.mrb[12].mxu1 %vm297_vm2, %v778_v6  ;;  %v1147_v6 = vld [vmem:[%s1726_s3] sm:$0xf] }
  0x31   : > { %1410 = vmatprep.mubr.msk.bf16.mxu1 %vm1468_vm3, %v1466_v3  ;;  %1409 = vmatpush3.bf16.msra.mxu1 %v912_v17  ;;  %v1161_v7 = vsel %vm301_vm0, %v1147_v6, 0 }
  0x32   : > { %1420 = vmatprep.subr.bf16.mxu1 %v1466_v3 }
  0x36   : > { %1393 = vmatmul.mubr.msk.bf16.vlgmr.msra.gmra.mrb[12].mxu0 %vm297_vm2, %v697_v11 }
  0x37   : > { %1403 = vmatpush3.bf16.msra.mxu0 %v847_v13  ;;  %1404 = vmatprep.mubr.msk.bf16.mxu0 %vm1468_vm3, %v1466_v3  ;;  %v1317_v13 = vld [vmem:[%s1727_s4] ss:$0 sm:$0xff] }
  0x38   : > { %1414 = vmatprep.subr.bf16.mxu0 %v1466_v3 }
  0x3e   : > { %1405 = vmatmul.mubr.msk.bf16.vlgmr.msra.gmra.mrb[16].mxu0 %vm297_vm2, %v842_v15 }
  0x3f   : > { %1416 = vmatprep.mubr.msk.bf16.mxu0 %vm1468_vm3, %v1466_v3  ;;  %1415 = vmatpush3.bf16.msra.mxu0 %v993_v10  ;;  %v1472_v10 = vmov 1983009808  }
  0x40   : > { %1426 = vmatprep.subr.bf16.mxu0 %v1466_v3 }
  0xeb   : > { %v400_v19 = vpop.f32.mrb[0].mxu1 }
  0xec   : > { %v1364_v20 = vpop.f32.mrb[1].mxu1 }
  0xed   : > { %v403_v21 = vpop.f32.mrb[2].mxu1 }
  0xee   : > { %v1365_v22 = vpop.f32.mrb[3].mxu1 }
  0xf1   : > { %v339_v23 = vpop.f32.mrb[0].mxu0 }
  0xf2   : > { %v401_v24 = vadd.f32 %v400_v19, %v339_v23  ;;  %v1358_v25 = vpop.f32.mrb[1].mxu0  ;;  %v964_v19 = vunpack.c.l.s4 %v1472_v10 }
  0xf3   : > { %v342_v26 = vpop.f32.mrb[2].mxu0  ;;  %v528_v28 = vpop.f32.mrb[4].mxu1 }
  0xf4   : > { %v1359_v27 = vpop.f32.mrb[3].mxu0  ;;  %v1376_v29 = vpop.f32.mrb[5].mxu1 }
  0xf5   : > { %v531_v30 = vpop.f32.mrb[6].mxu1 }
  0xf6   : > { %v1377_v31 = vpop.f32.mrb[7].mxu1 }
  0xf9   : > { %v463_v32 = vpop.f32.mrb[4].mxu0 }
  0xfa   : > { %v469_v33 = vadd.f32 %v463_v32, %v401_v24  ;;  %v1370_v34 = vpop.f32.mrb[5].mxu0 }
  0xfb   : > { %v466_v35 = vpop.f32.mrb[6].mxu0  ;;  %v673_v38 = vpop.f32.mrb[8].mxu1 }
  0xfc   : > { %v534_v36 = vadd.f32 %v528_v28, %v469_v33  ;;  %v1371_v37 = vpop.f32.mrb[7].mxu0  ;;  %v1388_v39 = vpop.f32.mrb[9].mxu1 }
  0xfd   : > { %v676_v40 = vpop.f32.mrb[10].mxu1 }
  0xfe   : > { %v1389_v41 = vpop.f32.mrb[11].mxu1 }
 0x101   : > { %v609_v42 = vpop.f32.mrb[8].mxu0 }
 0x102   : > { %v615_v43 = vadd.f32 %v609_v42, %v534_v36  ;;  %v1382_v44 = vpop.f32.mrb[9].mxu0 }
 0x103   : > { %v612_v45 = vpop.f32.mrb[10].mxu0  ;;  %v819_v48 = vpop.f32.mrb[12].mxu1 }
 0x104   : > { %v679_v46 = vadd.f32 %v673_v38, %v615_v43  ;;  %v1383_v47 = vpop.f32.mrb[11].mxu0  ;;  %v1400_v49 = vpop.f32.mrb[13].mxu1 }
 0x105   : > { %v822_v50 = vpop.f32.mrb[14].mxu1 }
 0x106   : > { %v1401_v51 = vpop.f32.mrb[15].mxu1 }
 0x109   : > { %v738_v52 = vpop.f32.mrb[12].mxu0 }
 0x10a   : > { %v744_v53 = vadd.f32 %v738_v52, %v679_v46  ;;  %v1394_v54 = vpop.f32.mrb[13].mxu0 }
 0x10b   : > { %v741_v55 = vpop.f32.mrb[14].mxu0 }
 0x10c   : > { %v825_v56 = vadd.f32 %v819_v48, %v744_v53  ;;  %v1395_v57 = vpop.f32.mrb[15].mxu0 }
 0x111   : > { %v883_v58 = vpop.f32.mrb[16].mxu0 }
 0x112   : > { %v889_v60 = vadd.f32 %v883_v58, %v825_v56  ;;  %v1406_v61 = vpop.f32.mrb[17].mxu0 }
 0x113   : > { %v886_v62 = vpop.f32.mrb[18].mxu0 }
 0x114   : > { %v1672_v63 = vadd.f32 %v1316_v59, %v889_v60  ;;  %v1407_v0 = vpop.f32.mrb[19].mxu0 }
 0x116   : > { %v898_v1 = vmul.f32 %v1672_v63, %v1672_v63 }
 0x118   : > { %v899_v4 = vpack.c.bf16 %v898_v1, %v898_v1 }
 0x11a   : > { %1155 = vrot.lane.b32.xlu1 %v899_v4, %s1469_s27  ;;  %987 = vrot.lane.b32.xlu0 %v899_v4, %s1470_s28 }
 0x11b   : > { %1411 = vmatmul.mubr.msk.bf16.vlgmr.msra.gmra.mrb[16].mxu1 %vm297_vm2, %v899_v4 }
 0x11c   : > { %1421 = vmatpush3.bf16.msra.mxu1 %v1077_v5  ;;  %1422 = vmatprep.mubr.msk.bf16.mxu1 %vm1468_vm3, %v1466_v3 }
 0x11e   : > { %1071 = vrot.lane.b32.xlu0 %v899_v4, %s1471_s29 }
 0x18c   : > { %v988_v9 = vpop.permute.xlu0 %987  ;;  %v1156_v12 = vpop.permute.xlu1 %1155 }
 0x18d   : > { %1417 = vmatmul.mubr.msk.bf16.vlgmr.msra.gmra.mrb[20].mxu0 %vm297_vm2, %v988_v9 }
 0x18e   : > { %1427 = vmatpush3.bf16.msra.mxu0 %v1161_v7  ;;  %1428 = vmatprep.mubr.msk.bf16.mxu0 %vm1468_vm3, %v1466_v3  ;;  %v965_v3 = vunpack.c.0.s8 %v964_v19 }
 0x190   : > { %v1072_v11 = vpop.permute.xlu0 %1071  ;;  %v1696_v24 = vsub.s32 %v965_v3, %v1524_v8 }
 0x191   : > { %1423 = vmatmul.mubr.msk.bf16.vlgmr.msra.gmra.mrb[20].mxu1 %vm297_vm2, %v1072_v11 }
 0x195   : > { %1429 = vmatmul.mubr.msk.bf16.vlgmr.msra.gmra.mrb[24].mxu0 %vm297_vm2, %v1156_v12 }
 0x1ee   : > { %v948_v14 = vpop.f32.mrb[16].mxu1 }
 0x1ef   : > { %v949_v15 = vadd.f32 %v1317_v13, %v948_v14  ;;  %v1412_v16 = vpop.f32.mrb[17].mxu1 }
 0x1f0   : > { %v951_v17 = vpop.f32.mrb[18].mxu1 }
 0x1f1   : > { %1450 = vrsqrt.f32 %v949_v15  ;;  %v1413_v18 = vpop.f32.mrb[19].mxu1  ;;  %vm956_vm0 = vcmp.eq.f32.partialorder %v949_v15, inf  ;;  %v959_v22 = vand.u32 2147483648, %v949_v15  ;;  %vm958_vm3 = vcmp.eq.f32.partialorder %v949_v15, 0.0 }
 0x1fb   : > { %v1451_v20 = vpop.eup %1450 }
 0x1fc   : > { %v955_v21 = vmul.f32 %v1451_v20, %v949_v15 }
 0x1fe   : > { %v957_v23 = vsel %vm956_vm0, %v949_v15, %v955_v21 }
 0x1ff   : > { %v960_v25 = vsel %vm958_vm3, %v959_v22, %v957_v23 }
 0x200   : > { %v961_v26 = vmul.f32 %v960_v25, %v1672_v63 }
 0x202   : > { %v969_v27 = vrot.slane %v961_v26, %v1696_v24 }
 0x204   : > { %v970_v28 = vcombine.high %v969_v27, %v969_v27  ;;  %v973_v29 = vpack.c.bf16 %v969_v27, %v969_v27 }
 0x206   : > { %v974_v30 = vpack.c.bf16 %v970_v28, %v970_v28  ;;  %976 = vst.msk [vmem:[%s1704_s12] sm:$0x1] %vm975_vm4, %v973_v29 }
 0x208   : > { %977 = vst.msk [vmem:[%s1704_s12 + $0x1] sm:$0x1] %vm975_vm4, %v974_v30 }
 0x260   : > { %v1029_v8 = vpop.f32.mrb[20].mxu0 }
 0x261   : > { %v1030_v31 = vadd.f32 %v1317_v13, %v1029_v8  ;;  %v1418_v32 = vpop.f32.mrb[21].mxu0 }
 0x262   : > { %v1032_v33 = vpop.f32.mrb[22].mxu0 }
 0x263   : > { %1452 = vrsqrt.f32 %v1030_v31  ;;  %v1419_v34 = vpop.f32.mrb[23].mxu0  ;;  %vm1037_vm5 = vcmp.eq.f32.partialorder %v1030_v31, inf  ;;  %v1040_v47 = vand.u32 2147483648, %v1030_v31  ;;  %vm1039_vm6 = vcmp.eq.f32.partialorder %v1030_v31, 0.0 }
 0x264   : > { %v1113_v35 = vpop.f32.mrb[20].mxu1 }
 0x265   : > { %v1114_v36 = vadd.f32 %v1317_v13, %v1113_v35  ;;  %v1424_v37 = vpop.f32.mrb[21].mxu1 }
 0x266   : > { %v1116_v38 = vpop.f32.mrb[22].mxu1 }
 0x267   : > { %1454 = vrsqrt.f32 %v1114_v36  ;;  %v1425_v39 = vpop.f32.mrb[23].mxu1  ;;  %vm1121_vm7 = vcmp.eq.f32.partialorder %v1114_v36, inf  ;;  %v1124_v52 = vand.u32 2147483648, %v1114_v36  ;;  %vm1123_vm8 = vcmp.eq.f32.partialorder %v1114_v36, 0.0 }
 0x268   : > { %v1197_v40 = vpop.f32.mrb[24].mxu0 }
 0x269   : > { %v1198_v41 = vadd.f32 %v1317_v13, %v1197_v40  ;;  %v1430_v42 = vpop.f32.mrb[25].mxu0 }
 0x26a   : > { %v1200_v43 = vpop.f32.mrb[26].mxu0 }
 0x26b   : > { %1456 = vrsqrt.f32 %v1198_v41  ;;  %v1431_v44 = vpop.f32.mrb[27].mxu0  ;;  %vm1205_vm9 = vcmp.eq.f32.partialorder %v1198_v41, inf  ;;  %v1208_v57 = vand.u32 2147483648, %v1198_v41  ;;  %vm1207_vm10 = vcmp.eq.f32.partialorder %v1198_v41, 0.0 }
 0x26d   : > { %v1453_v45 = vpop.eup %1452 }
 0x26e   : > { %v1036_v46 = vmul.f32 %v1453_v45, %v1030_v31 }
 0x270   : > { %v1038_v48 = vsel %vm1037_vm5, %v1030_v31, %v1036_v46 }
 0x271   : > { %v1455_v49 = vpop.eup %1454  ;;  %v1041_v50 = vsel %vm1039_vm6, %v1040_v47, %v1038_v48 }
 0x272   : > { %1043 = vrot.lane.b32.xlu1 %v1041_v50, %s1473_s19  ;;  %v1120_v51 = vmul.f32 %v1455_v49, %v1114_v36 }
 0x274   : > { %v1122_v53 = vsel %vm1121_vm7, %v1114_v36, %v1120_v51 }
 0x275   : > { %v1457_v54 = vpop.eup %1456  ;;  %v1125_v55 = vsel %vm1123_vm8, %v1124_v52, %v1122_v53 }
 0x276   : > { %1127 = vrot.lane.b32.xlu0 %v1125_v55, %s1474_s13  ;;  %v1204_v56 = vmul.f32 %v1457_v54, %v1198_v41 }
 0x278   : > { %v1206_v58 = vsel %vm1205_vm9, %v1198_v41, %v1204_v56 }
 0x279   : > { %v1209_v59 = vsel %vm1207_vm10, %v1208_v57, %v1206_v58 }
 0x27a   : > { %1211 = vrot.lane.b32.xlu1 %v1209_v59, %s1475_s14 }
 0x2e4   : > { %v1044_v60 = vpop.permute.xlu1 %1043 }
 0x2e5   : > { %v1046_v61 = vmul.f32 %v1044_v60, %v1672_v63 }
 0x2e7   : > { %v1054_v62 = vrot.slane %v1046_v61, %v1696_v24 }
 0x2e8   : > { %v1128_v0 = vpop.permute.xlu0 %1127 }
 0x2e9   : > { %v1055_v1 = vcombine.high %v1054_v62, %v1054_v62  ;;  %v1058_v2 = vpack.c.bf16 %v1054_v62, %v1054_v62  ;;  %v1130_v4 = vmul.f32 %v1128_v0, %v1672_v63 }
 0x2eb   : > { %v1059_v5 = vpack.c.bf16 %v1055_v1, %v1055_v1  ;;  %1061 = vst.msk [vmem:[%s1704_s12] sm:$0x1] %vm1060_vm11, %v1058_v2  ;;  %v1138_v6 = vrot.slane %v1130_v4, %v1696_v24 }
 0x2ec   : > { %v1212_v7 = vpop.permute.xlu1 %1211 }
 0x2ed   : > { %1062 = vst.msk [vmem:[%s1704_s12 + $0x1] sm:$0x1] %vm1060_vm11, %v1059_v5  ;;  %v1139_v9 = vcombine.high %v1138_v6, %v1138_v6  ;;  %v1142_v11 = vpack.c.bf16 %v1138_v6, %v1138_v6  ;;  %v1214_v12 = vmul.f32 %v1212_v7, %v1672_v63 }
 0x2ef   : > { %v1143_v13 = vpack.c.bf16 %v1139_v9, %v1139_v9  ;;  %1145 = vst.msk [vmem:[%s1704_s12] sm:$0x1] %vm1144_vm12, %v1142_v11  ;;  %v1222_v14 = vrot.slane %v1214_v12, %v1696_v24 }
 0x2f1   : > { %1146 = vst.msk [vmem:[%s1704_s12 + $0x1] sm:$0x1] %vm1144_vm12, %v1143_v13  ;;  %v1223_v15 = vcombine.high %v1222_v14, %v1222_v14  ;;  %v1226_v16 = vpack.c.bf16 %v1222_v14, %v1222_v14 }
 0x2f3   : > { %v1227_v17 = vpack.c.bf16 %v1223_v15, %v1223_v15  ;;  %1229 = vst.msk [vmem:[%s1704_s12] sm:$0x1] %vm1228_vm13, %v1226_v16 }
 0x2f5   : > { %1230 = vst.msk [vmem:[%s1704_s12 + $0x1] sm:$0x1] %vm1228_vm13, %v1227_v17 }
 0x2f6 PF: > { %s15_s18 = sadd.s32 1, %s1464_s18  }
 0x2f7   : > { %p12_p4 = scmp.ge.s32.totalorder %s15_s18, 4  }
 0x2f9   :  { %14 = sbr.rel (!%p12_p4) target bundleno = 1 (0x1), region = 78 }

// kernel: factorized_prior_forward.14
= control target key start
LH: loop header
LB: loop body
LE: loop exit
PB: predicated region body
PF: predicated region fallthrough
CT: control target
= control target key end

     0   :  { %s1668_s18 = smov 0   ;;  %s2027_s0 = inlined_call_operand.vmem [shape: bf16[2,6,6,8], index: 0, kind: input, shape index: {}]   ;;  %s2028_s1 = inlined_call_operand.vmem [shape: bf16[9,8,32], index: 1, kind: input, shape index: {}]   ;;  %s2029_s2 = inlined_call_operand.vmem [shape: f32[1,32], index: 2, kind: input, shape index: {}]   ;;  %s2030_s3 = inlined_call_operand.vmem [shape: bf16[8,8], index: 3, kind: input, shape index: {}]   ;;  %s2031_s4 = inlined_call_operand.vmem [shape: f32[1,8], index: 4, kind: input, shape index: {}]   ;;  %s2032_s5 = inlined_call_operand.vmem [shape: bf16[2,4,4,32], index: 5, kind: output, shape index: {}]  }
   0x1 LB: > { %s1435_s19 = sadd.s32 4294967295, %s1627_s18   ;;  %p1439_p0 = scmp.ge.s32.totalorder %s1627_s18, 1  ;;  %s1627_s18 = sphi %s1668_s18, %s15_s18  }
   0x2   : > { %p187_p1 = scmp.lt.s32.totalorder %s1627_s18, 3 }
   0x4   : > { %p188_p2 = pnand %p1439_p0, %p187_p1 }
   0x5   : > { %v1443_v0 = vld [vmem:[%s2028_s1 + $0x4] sm:$0xf] (!%p188_p2)  ;;  %vm355_vm0 = vcmask (!%p188_p2), 1043456   ;;  %v232_v1 = vld [vmem:[%s2028_s1] sm:$0xf] (!%p188_p2)  ;;  %v240_v2 = vlaneseq (!%p188_p2)  ;;  %v1629_v3 = vmov (!%p188_p2), 0.0  }
   0x6   : > { %191 = sbr.rel (%p188_p2) target bundleno = 771 (0x303), region = 40  ;;  %1504 = vmatprep.subr.bf16.mxu0 (!%p188_p2), %v1629_v3  ;;  %v357_v4 = vsel (!%p188_p2), %vm355_vm0, %v1443_v0, 0  ;;  %1510 = vmatprep.subr.bf16.mxu1 (!%p188_p2), %v1629_v3  ;;  %v421_v5 = vsel (!%p188_p2), %vm355_vm0, %v232_v1, 0  ;;  %p215_p3 = scmp.lt.s32.totalorder (!%p188_p2), %s1435_s19, 1  ;;  %v1630_v6 = vmov (!%p188_p2), 1983009808  }
   0x7   : > { %1505 = vmatpush3.bf16.msra.mxu0 (!%p188_p2), %v357_v4  ;;  %1511 = vmatpush3.bf16.msra.mxu1 (!%p188_p2), %v421_v5  ;;  %v238_v7 = vunpack.c.l.s4 (!%p188_p2), %v1630_v6  ;;  %v241_v8 = vshrl.u32 (!%p188_p2), %v240_v2, 7  ;;  %vm1631_vm1 = vmmov (!%p188_p2), 0   ;;  %vm269_vm2 = vsmask.f32 (!%p188_p2), 1280  ;;  %v1461_v48 = vld [vmem:[%s2028_s1 + $0x1c] sm:$0xf] (!%p188_p2) }
   0x8   : > { %1506 = vmatprep.mubr.msk.bf16.mxu0 (!%p188_p2), %vm1631_vm1, %v1629_v3  ;;  %1512 = vmatprep.mubr.msk.bf16.mxu1 (!%p188_p2), %vm1631_vm1, %v1629_v3  ;;  %vm270_vm3 = vsmask.f32 (!%p188_p2), 3336  ;;  %vm272_vm4 = vsmask.f32 (!%p188_p2), 5392  ;;  %vm274_vm5 = vsmask.f32 (!%p188_p2), 7448 }
   0x9   : > { %1516 = vmatprep.subr.bf16.mxu0 (!%p188_p2), %v1629_v3  ;;  %v239_v9 = vunpack.c.0.s8 (!%p188_p2), %v238_v7  ;;  %1522 = vmatprep.subr.bf16.mxu1 (!%p188_p2), %v1629_v3  ;;  %vm464_vm6 = vcmask (!%p188_p2), 1040384   ;;  %vm465_vm7 = vcmask (!%p188_p2), 1042434   ;;  %vm271_vm8 = vmor (!%p188_p2), %vm269_vm2, %vm270_vm3  ;;  %vm467_vm9 = vcmask (!%p188_p2), 1044484   ;;  %s1633_s28 = smov (!%p188_p2), 120   ;;  %s1634_s29 = smov (!%p188_p2), 112  }
   0xa   : > { %vm273_vm10 = vmor (!%p188_p2), %vm271_vm8, %vm272_vm4  ;;  %vm351_vm13 = vcmask (!%p188_p2), 64512   ;;  %vm469_vm15 = vcmask (!%p188_p2), 1046534   ;;  %s1636_s13 = smov (!%p188_p2), 16   ;;  %s1637_s14 = smov (!%p188_p2), 24  }
   0xb   : > { %v1695_v10 = vsub.s32 (!%p188_p2), %v239_v9, %v241_v8  ;;  %vm1768_vm11 = vmor (!%p188_p2), %vm273_vm10, %vm274_vm5  ;;  %vm1086_vm5 = vcmask (!%p188_p2), 58368  }
   0xc   : > { %vm466_vm12 = vmor (!%p188_p2), %vm464_vm6, %vm465_vm7 }
   0xd   : > { %s2040_s19 = smov (!%p215_p3, %s1435_s19), 1  ;;  %vm1797_vm14 = vmor %vm466_vm12, %vm467_vm9 }
   0xe   : > { %s1582_s24 = smul.u32 24, %s2040_s19  ;;  %vm1826_vm2 = vmor %vm1797_vm14, %vm469_vm15  ;;  %s1477_s9 = sshll.u32 %s2040_s19, 3 }
   0xf   : > { %s1987_s12 = scalar_lea.vmem %s2032_s5, %s1477_s9  ;;  %s1635_s19 = smov 8  }
  0x10   : > { %s219_s27 = scalar_lea.vmem %s2027_s0, %s1582_s24 }
  0x11   : > { %v1700_v11 = vld [vmem:[%s219_s27] sm:$0x7]  ;;  %v1702_v12 = vld [vmem:[%s219_s27 + $0x4] sm:$0x7]  ;;  %v1704_v13 = vld [vmem:[%s219_s27 + $0x8] sm:$0x7] }
  0x12   : > { %v1706_v14 = vld [vmem:[%s219_s27 + $0xc] sm:$0x7]  ;;  %v1708_v15 = vld [vmem:[%s219_s27 + $0x10] sm:$0x7]  ;;  %v1710_v16 = vld [vmem:[%s219_s27 + $0x14] sm:$0x7]  ;;  %v1714_v17 = vrot.slane %v1700_v11, %v1695_v10  ;;  %v1718_v18 = vrot.slane %v1702_v12, %v1695_v10  ;;  %v1722_v19 = vrot.slane %v1704_v13, %v1695_v10  ;;  %v400_v23 = vcombine.low %v1700_v11, %v1702_v12 }
  0x13   : > { %v1726_v20 = vrot.slane %v1706_v14, %v1695_v10  ;;  %v1730_v21 = vrot.slane %v1708_v15, %v1695_v10  ;;  %v1734_v22 = vrot.slane %v1710_v16, %v1695_v10  ;;  %v401_v52 = vcombine.low %v1704_v13, %v1706_v14  ;;  %s1632_s27 = smov 104  }
  0x14   : > { %v1740_v24 = vcombine.high %v1714_v17, %v1714_v17  ;;  %v1744_v25 = vcombine.high %v1718_v18, %v1718_v18  ;;  %v1748_v26 = vcombine.high %v1722_v19, %v1722_v19  ;;  %v277_v27 = vshrl.u32 %v1714_v17, 16 }
  0x15   : > { %v1755_v28 = vcombine.high %v1726_v20, %v1726_v20  ;;  %v280_v29 = vshll.u32 %v1714_v17, 16  ;;  %v291_v30 = vshrl.u32 %v1718_v18, 16  ;;  %v294_v31 = vshll.u32 %v1718_v18, 16 }
  0x16   : > { %v279_v32 = vrot.slane %v277_v27, 6  ;;  %v286_v33 = vshll.u32 %v1740_v24, 16  ;;  %v300_v34 = vshll.u32 %v1744_v25, 16  ;;  %v305_v35 = vshrl.u32 %v1722_v19, 16 }
  0x17   : > { %v282_v36 = vrot.slane %v280_v29, 7  ;;  %v293_v37 = vrot.slane %v291_v30, 6  ;;  %v296_v38 = vrot.slane %v294_v31, 7  ;;  %v308_v39 = vshll.u32 %v1722_v19, 16  ;;  %v1450_v31 = vld [vmem:[%s2028_s1 + $0x8] sm:$0xf] }
  0x18   : > { %v288_v40 = vrot.slane %v286_v33, 7  ;;  %v302_v41 = vrot.slane %v300_v34, 7  ;;  %v307_v42 = vrot.slane %v305_v35, 6  ;;  %v314_v43 = vshll.u32 %v1748_v26, 16 }
  0x19   : > { %v283_v44 = vor.u32 %v282_v36, %v279_v32  ;;  %v297_v45 = vor.u32 %v296_v38, %v293_v37  ;;  %v310_v46 = vrot.slane %v308_v39, 7  ;;  %v319_v47 = vshrl.u32 %v1726_v20, 16  ;;  %v1452_v32 = vld [vmem:[%s2028_s1 + $0xc] sm:$0xf] }
  0x1a   : > { %v316_v49 = vrot.slane %v314_v43, 7  ;;  %v322_v50 = vshll.u32 %v1726_v20, 16  ;;  %v328_v51 = vshll.u32 %v1755_v28, 16  ;;  %v1778_v58 = vcombine.high %v1730_v21, %v1730_v21 }
  0x1b   : > { %v284_v53 = vrot.slane %v283_v44, 2  ;;  %v298_v54 = vrot.slane %v297_v45, 2  ;;  %v311_v55 = vor.u32 %v310_v46, %v307_v42  ;;  %v321_v56 = vrot.slane %v319_v47, 6 }
  0x1c   : > { %v324_v57 = vrot.slane %v322_v50, 7  ;;  %v633_v59 = vshrl.u32 %v1730_v21, 16  ;;  %v636_v60 = vshll.u32 %v1730_v21, 16  ;;  %v330_v0 = vrot.slane %v328_v51, 7 }
  0x1d   : > { %v289_v61 = vsel %vm1768_vm11, %v284_v53, %v288_v40  ;;  %v1786_v62 = vsel %vm1768_vm11, %v298_v54, %v302_v41  ;;  %v312_v63 = vrot.slane %v311_v55, 2  ;;  %v856_v6 = vshrl.u32 %v1734_v22, 16 }
  0x1e   : > { %v325_v1 = vor.u32 %v324_v57, %v321_v56  ;;  %v334_v2 = vcombine.low %v289_v61, %v1786_v62  ;;  %v635_v4 = vrot.slane %v633_v59, 6  ;;  %v638_v5 = vrot.slane %v636_v60, 7 }
  0x1f   : > { %v1794_v7 = vsel %vm1768_vm11, %v312_v63, %v316_v49  ;;  %v642_v11 = vshll.u32 %v1778_v58, 16  ;;  %v1804_v27 = vcombine.high %v1734_v22, %v1734_v22  ;;  %v859_v29 = vshll.u32 %v1734_v22, 16 }
  0x20   : > { %v326_v8 = vrot.slane %v325_v1, 2  ;;  %v408_v30 = vrot.slane %v400_v23, %v1695_v10  ;;  %v342_v34 = vrot.slane %v334_v2, %v1695_v10  ;;  %v639_v35 = vor.u32 %v638_v5, %v635_v4  ;;  %v1454_v1 = vld [vmem:[%s2028_s1 + $0x10] sm:$0xf] }
  0x21   : > { %v1820_v36 = vrot.slane %v401_v52, %v1695_v10  ;;  %v858_v37 = vrot.slane %v856_v6, 6  ;;  %v861_v38 = vrot.slane %v859_v29, 7  ;;  %v1446_v40 = vrot.slane %v1714_v17, 9 }
  0x22   : > { %v1816_v33 = vsel %vm1768_vm11, %v326_v8, %v330_v0  ;;  %v510_v42 = vsel %vm355_vm0, %v1450_v31, 0  ;;  %v579_v43 = vsel %vm355_vm0, %v1452_v32, 0  ;;  %v473_v44 = vrot.slane %v1740_v24, 7 }
  0x23   : > { %v335_v23 = vcombine.low %v1794_v7, %v1816_v33  ;;  %v416_v41 = vcombine.low %v408_v30, %v1820_v36  ;;  %v644_v46 = vrot.slane %v642_v11, 7  ;;  %v865_v47 = vshll.u32 %v1804_v27, 16 }
  0x24   : > { %v1447_v49 = vrot.slane %v1718_v18, 9  ;;  %v640_v50 = vrot.slane %v639_v35, 2  ;;  %v474_v17 = vsel %vm1826_vm2, %v1446_v40, %v473_v44  ;;  %v477_v51 = vrot.slane %v1744_v25, 7  ;;  %v1457_v18 = vld [vmem:[%s2028_s1 + $0x14] sm:$0xf] }
  0x25   : > { %v1836_v45 = vrot.slane %v335_v23, %v1695_v10  ;;  %1513 = vmatmul.mubr.msk.bf16.vlgmr.msra.gmra.mrb[0].mxu1 %vm351_vm13, %v416_v41  ;;  %v1448_v52 = vrot.slane %v1722_v19, 9  ;;  %v862_v53 = vor.u32 %v861_v38, %v858_v37  ;;  %v481_v54 = vrot.slane %v1748_v26, 7  ;;  %v1459_v23 = vld [vmem:[%s2028_s1 + $0x18] sm:$0xf] }
  0x26   : > { %1523 = vmatpush3.bf16.msra.mxu1 %v579_v43  ;;  %v1449_v55 = vrot.slane %v1726_v20, 9  ;;  %1524 = vmatprep.mubr.msk.bf16.mxu1 %vm1631_vm1, %v1629_v3  ;;  %v478_v25 = vsel %vm1826_vm2, %v1447_v49, %v477_v51  ;;  %v485_v19 = vrot.slane %v1755_v28, 7  ;;  %v558_v56 = vcombine.low %v1702_v12, %v1704_v13 }
  0x27   : > { %v350_v24 = vcombine.low %v342_v34, %v1836_v45  ;;  %v559_v26 = vcombine.low %v1706_v14, %v1708_v15  ;;  %1534 = vmatprep.subr.bf16.mxu1 %v1629_v3  ;;  %v482_v20 = vsel %vm1826_vm2, %v1448_v52, %v481_v54  ;;  %v489_v57 = vcombine.low %v474_v17, %v478_v25 }
  0x28   : > { %v645_v59 = vsel %vm1768_vm11, %v640_v50, %v644_v46  ;;  %v486_v12 = vsel %vm1826_vm2, %v1449_v55, %v485_v19  ;;  %v566_v13 = vrot.slane %v558_v56, %v1695_v10  ;;  %v741_v14 = vsel %vm355_vm0, %v1457_v18, 0 }
  0x29   : > { %1507 = vmatmul.mubr.msk.bf16.vlgmr.msra.gmra.mrb[0].mxu0 %vm351_vm13, %v350_v24  ;;  %v867_v28 = vrot.slane %v865_v47, 7  ;;  %v490_v60 = vcombine.low %v482_v20, %v486_v12  ;;  %v497_v61 = vrot.slane %v489_v57, %v1695_v10  ;;  %v573_v63 = vrot.slane %v559_v26, %v1695_v10 }
  0x2a   : > { %1517 = vmatpush3.bf16.msra.mxu0 %v510_v42  ;;  %1518 = vmatprep.mubr.msk.bf16.mxu0 %vm1631_vm1, %v1629_v3  ;;  %v863_v0 = vrot.slane %v862_v53, 2  ;;  %v1456_v2 = vrot.slane %v1730_v21, 9  ;;  %v716_v4 = vrot.slane %v1778_v58, 7  ;;  %v720_v5 = vcombine.low %v478_v25, %v482_v20 }
  0x2b   : > { %1528 = vmatprep.subr.bf16.mxu0 %v1629_v3  ;;  %v648_v6 = vcombine.low %v1786_v62, %v1794_v7  ;;  %v649_v8 = vcombine.low %v1816_v33, %v645_v59  ;;  %v504_v9 = vrot.slane %v490_v60, %v1695_v10  ;;  %v574_v11 = vcombine.low %v566_v13, %v573_v63 }
  0x2c   : > { %v717_v29 = vsel %vm1826_vm2, %v1456_v2, %v716_v4  ;;  %v669_v31 = vsel %vm355_vm0, %v1454_v1, 0  ;;  %v728_v58 = vrot.slane %v720_v5, %v1695_v10  ;;  %v868_v32 = vsel %vm1768_vm11, %v863_v0, %v867_v28 }
  0x2d   : > { %v505_v30 = vcombine.low %v497_v61, %v504_v9  ;;  %1525 = vmatmul.mubr.msk.bf16.vlgmr.msra.gmra.mrb[4].mxu1 %vm351_vm13, %v574_v11  ;;  %v721_v21 = vcombine.low %v486_v12, %v717_v29  ;;  %v656_v62 = vrot.slane %v648_v6, %v1695_v10  ;;  %v663_v7 = vrot.slane %v649_v8, %v1695_v10 }
  0x2e   : > { %1535 = vmatpush3.bf16.msra.mxu1 %v741_v14  ;;  %1536 = vmatprep.mubr.msk.bf16.mxu1 %vm1631_vm1, %v1629_v3  ;;  %v871_v34 = vcombine.low %v645_v59, %v868_v32  ;;  %v789_v37 = vcombine.low %v1708_v15, %v1710_v16  ;;  %v884_v40 = vsel %vm355_vm0, %v1461_v48, 0  ;;  %v1463_v41 = vrot.slane %v1734_v22, 9  ;;  %v1464_v22 = vld [vmem:[%s2028_s1 + $0x20] sm:$0xf] }
  0x2f   : > { %v735_v33 = vrot.slane %v721_v21, %v1695_v10  ;;  %1546 = vmatprep.subr.bf16.mxu1 %v1629_v3  ;;  %v664_v38 = vcombine.low %v656_v62, %v663_v7  ;;  %v931_v42 = vrot.slane %v1804_v27, 7  ;;  %v802_v44 = vsel %vm355_vm0, %v1459_v23, 0 }
  0x30   : > { %v878_v43 = vrot.slane %v871_v34, %v1695_v10  ;;  %v796_v46 = vrot.slane %v789_v37, %v1695_v10  ;;  %v948_v49 = vsel %vm355_vm0, %v1464_v22, 0 }
  0x31   : > { %1519 = vmatmul.mubr.msk.bf16.vlgmr.msra.gmra.mrb[4].mxu0 %vm351_vm13, %v505_v30  ;;  %v736_v35 = vcombine.low %v728_v58, %v735_v33  ;;  %v932_v15 = vsel %vm1826_vm2, %v1463_v41, %v931_v42  ;;  %v1466_v42 = vld [vmem:[%s2029_s2] ss:$0 sm:$0xff] }
  0x32   : > { %1529 = vmatpush3.bf16.msra.mxu0 %v669_v31  ;;  %1530 = vmatprep.mubr.msk.bf16.mxu0 %vm1631_vm1, %v1629_v3  ;;  %v879_v16 = vcombine.low %v1836_v45, %v878_v43  ;;  %v797_v27 = vcombine.low %v1820_v36, %v796_v46  ;;  %v935_v47 = vcombine.low %v717_v29, %v932_v15  ;;  %v1005_v36 = vld [vmem:[%s2030_s3] sm:$0xf] }
  0x33   : > { %1540 = vmatprep.subr.bf16.mxu0 %v1629_v3  ;;  %v1017_v50 = vsel %vm355_vm0, %v1005_v36, 0 }
  0x34   : > { %v942_v39 = vrot.slane %v935_v47, %v1695_v10  ;;  %v1091_v10 = vld [vmem:[%s2030_s3] sm:$0xf] }
  0x35   : > { %1537 = vmatmul.mubr.msk.bf16.vlgmr.msra.gmra.mrb[8].mxu1 %vm351_vm13, %v736_v35  ;;  %v1106_v17 = vsel %vm355_vm0, %v1091_v10, 0 }
  0x36   : > { %1547 = vmatpush3.bf16.msra.mxu1 %v884_v40  ;;  %1548 = vmatprep.mubr.msk.bf16.mxu1 %vm1631_vm1, %v1629_v3  ;;  %v943_v45 = vcombine.low %v504_v9, %v942_v39  ;;  %v1188_v39 = vld [vmem:[%s2030_s3] sm:$0xf] }
  0x37   : > { %1558 = vmatprep.subr.bf16.mxu1 %v1629_v3  ;;  %v1202_v36 = vsel %vm355_vm0, %v1188_v39, 0 }
  0x39   : > { %1531 = vmatmul.mubr.msk.bf16.vlgmr.msra.gmra.mrb[8].mxu0 %vm351_vm13, %v664_v38 }
  0x3a   : > { %1541 = vmatpush3.bf16.msra.mxu0 %v802_v44  ;;  %1542 = vmatprep.mubr.msk.bf16.mxu0 %vm1631_vm1, %v1629_v3 }
  0x3b   : > { %1552 = vmatprep.subr.bf16.mxu0 %v1629_v3 }
  0x3d   : > { %1549 = vmatmul.mubr.msk.bf16.vlgmr.msra.gmra.mrb[12].mxu1 %vm351_vm13, %v879_v16 }
  0x3e   : > { %1560 = vmatprep.mubr.msk.bf16.mxu1 %vm1631_vm1, %v1629_v3  ;;  %1559 = vmatpush3.bf16.msra.mxu1 %v1017_v50  ;;  %v1284_v50 = vld [vmem:[%s2030_s3] sm:$0xf] }
  0x3f   : > { %1570 = vmatprep.subr.bf16.mxu1 %v1629_v3  ;;  %v1298_v10 = vsel %vm355_vm0, %v1284_v50, 0 }
  0x41   : > { %1543 = vmatmul.mubr.msk.bf16.vlgmr.msra.gmra.mrb[12].mxu0 %vm351_vm13, %v797_v27 }
  0x42   : > { %1553 = vmatpush3.bf16.msra.mxu0 %v948_v49  ;;  %1554 = vmatprep.mubr.msk.bf16.mxu0 %vm1631_vm1, %v1629_v3 }
  0x43   : > { %1564 = vmatprep.subr.bf16.mxu0 %v1629_v3 }
  0x49   : > { %1555 = vmatmul.mubr.msk.bf16.vlgmr.msra.gmra.mrb[16].mxu0 %vm351_vm13, %v943_v45 }
  0x4a   : > { %1566 = vmatprep.mubr.msk.bf16.mxu0 %vm1631_vm1, %v1629_v3  ;;  %1565 = vmatpush3.bf16.msra.mxu0 %v1106_v17 }
  0x4b   : > { %1576 = vmatprep.subr.bf16.mxu0 %v1629_v3 }
  0xf8   : > { %v457_v51 = vpop.f32.mrb[0].mxu1 }
  0xf9   : > { %v1514_v52 = vpop.f32.mrb[1].mxu1 }
  0xfa   : > { %v460_v24 = vpop.f32.mrb[2].mxu1 }
  0xfb   : > { %v1515_v54 = vpop.f32.mrb[3].mxu1 }
  0xfc   : > { %v393_v53 = vpop.f32.mrb[0].mxu0 }
  0xfd   : > { %v458_v55 = vadd.f32 %v457_v51, %v393_v53  ;;  %v1508_v18 = vpop.f32.mrb[1].mxu0 }
  0xfe   : > { %v396_v25 = vpop.f32.mrb[2].mxu0 }
  0xff   : > { %v461_v19 = vadd.f32 %v460_v24, %v396_v25  ;;  %v1509_v56 = vpop.f32.mrb[3].mxu0  ;;  %v1467_v24 = vld [vmem:[%s2031_s4] ss:$0 sm:$0xff] }
 0x100   : > { %v615_v26 = vpop.f32.mrb[4].mxu1 }
 0x101   : > { %v1526_v20 = vpop.f32.mrb[5].mxu1 }
 0x102   : > { %v618_v59 = vpop.f32.mrb[6].mxu1 }
 0x103   : > { %v1527_v14 = vpop.f32.mrb[7].mxu1 }
 0x104   : > { %v546_v57 = vpop.f32.mrb[4].mxu0 }
 0x105   : > { %v553_v12 = vadd.f32 %v546_v57, %v458_v55  ;;  %v1520_v13 = vpop.f32.mrb[5].mxu0 }
 0x106   : > { %v549_v28 = vpop.f32.mrb[6].mxu0 }
 0x107   : > { %v554_v60 = vadd.f32 %v549_v28, %v461_v19  ;;  %v622_v61 = vadd.f32 %v615_v26, %v553_v12  ;;  %v1521_v63 = vpop.f32.mrb[7].mxu0 }
 0x108   : > { %v777_v1 = vpop.f32.mrb[8].mxu1 }
 0x109   : > { %v623_v0 = vadd.f32 %v618_v59, %v554_v60  ;;  %v1538_v2 = vpop.f32.mrb[9].mxu1 }
 0x10a   : > { %v780_v5 = vpop.f32.mrb[10].mxu1 }
 0x10b   : > { %v1539_v9 = vpop.f32.mrb[11].mxu1 }
 0x10c   : > { %v705_v4 = vpop.f32.mrb[8].mxu0 }
 0x10d   : > { %v712_v6 = vadd.f32 %v705_v4, %v622_v61  ;;  %v1532_v8 = vpop.f32.mrb[9].mxu0 }
 0x10e   : > { %v708_v11 = vpop.f32.mrb[10].mxu0 }
 0x10f   : > { %v713_v29 = vadd.f32 %v708_v11, %v623_v0  ;;  %v784_v30 = vadd.f32 %v777_v1, %v712_v6  ;;  %v1533_v31 = vpop.f32.mrb[11].mxu0 }
 0x110   : > { %v920_v58 = vpop.f32.mrb[12].mxu1 }
 0x111   : > { %v785_v21 = vadd.f32 %v780_v5, %v713_v29  ;;  %v1550_v32 = vpop.f32.mrb[13].mxu1 }
 0x112   : > { %v923_v7 = vpop.f32.mrb[14].mxu1 }
 0x113   : > { %v1551_v34 = vpop.f32.mrb[15].mxu1 }
 0x114   : > { %v838_v62 = vpop.f32.mrb[12].mxu0 }
 0x115   : > { %v845_v33 = vadd.f32 %v838_v62, %v784_v30  ;;  %v1544_v48 = vpop.f32.mrb[13].mxu0 }
 0x116   : > { %v841_v35 = vpop.f32.mrb[14].mxu0 }
 0x117   : > { %v846_v23 = vadd.f32 %v841_v35, %v785_v21  ;;  %v927_v37 = vadd.f32 %v920_v58, %v845_v33  ;;  %v1545_v38 = vpop.f32.mrb[15].mxu0 }
 0x119   : > { %v928_v40 = vadd.f32 %v923_v7, %v846_v23 }
 0x11c   : > { %v984_v41 = vpop.f32.mrb[16].mxu0 }
 0x11d   : > { %v991_v43 = vadd.f32 %v984_v41, %v927_v37  ;;  %v1556_v44 = vpop.f32.mrb[17].mxu0 }
 0x11e   : > { %v987_v46 = vpop.f32.mrb[18].mxu0 }
 0x11f   : > { %v1955_v15 = vadd.f32 %v1466_v42, %v991_v43  ;;  %v992_v16 = vadd.f32 %v987_v46, %v928_v40  ;;  %v1557_v22 = vpop.f32.mrb[19].mxu0 }
 0x121   : > { %v1957_v27 = vadd.f32 %v1466_v42, %v992_v16  ;;  %v1002_v47 = vmul.f32 %v1955_v15, %v1955_v15 }
 0x123   : > { %v1003_v49 = vmul.f32 %v1957_v27, %v1957_v27 }
 0x125   : > { %v1004_v45 = vpack.c.bf16 %v1003_v49, %v1002_v47 }
 0x127   : > { %1292 = vrot.lane.b32.xlu1 %v1004_v45, %s1632_s27  ;;  %1100 = vrot.lane.b32.xlu0 %v1004_v45, %s1633_s28 }
 0x128   : > { %1561 = vmatmul.mubr.msk.bf16.vlgmr.msra.gmra.mrb[16].mxu1 %vm351_vm13, %v1004_v45 }
 0x129   : > { %1571 = vmatpush3.bf16.msra.mxu1 %v1202_v36  ;;  %1572 = vmatprep.mubr.msk.bf16.mxu1 %vm1631_vm1, %v1629_v3 }
 0x12b   : > { %1196 = vrot.lane.b32.xlu0 %v1004_v45, %s1634_s29 }
 0x199   : > { %v1101_v17 = vpop.permute.xlu0 %1100  ;;  %v1293_v52 = vpop.permute.xlu1 %1292 }
 0x19a   : > { %1567 = vmatmul.mubr.msk.bf16.vlgmr.msra.gmra.mrb[20].mxu0 %vm351_vm13, %v1101_v17 }
 0x19b   : > { %1577 = vmatpush3.bf16.msra.mxu0 %v1298_v10  ;;  %1578 = vmatprep.mubr.msk.bf16.mxu0 %vm1631_vm1, %v1629_v3 }
 0x19d   : > { %v1197_v51 = vpop.permute.xlu0 %1196 }
 0x19e   : > { %1573 = vmatmul.mubr.msk.bf16.vlgmr.msra.gmra.mrb[20].mxu1 %vm351_vm13, %v1197_v51 }
 0x1a2   : > { %1579 = vmatmul.mubr.msk.bf16.vlgmr.msra.gmra.mrb[24].mxu0 %vm351_vm13, %v1293_v52 }
 0x1fb   : > { %v1053_v53 = vpop.f32.mrb[16].mxu1 }
 0x1fc   : > { %v1054_v54 = vadd.f32 %v1467_v24, %v1053_v53  ;;  %v1562_v55 = vpop.f32.mrb[17].mxu1 }
 0x1fd   : > { %v1056_v18 = vpop.f32.mrb[18].mxu1 }
 0x1fe   : > { %1605 = vrsqrt.f32 %v1054_v54  ;;  %v1563_v25 = vpop.f32.mrb[19].mxu1  ;;  %v1057_v19 = vadd.f32 %v1467_v24, %v1056_v18  ;;  %vm1062_vm0 = vcmp.eq.f32.partialorder %v1054_v54, inf  ;;  %v1065_v26 = vand.u32 2147483648, %v1054_v54 }
 0x1ff   : > { %vm1064_vm1 = vcmp.eq.f32.partialorder %v1054_v54, 0.0 }
 0x200   : > { %1607 = vrsqrt.f32 %v1057_v19  ;;  %vm1069_vm3 = vcmp.eq.f32.partialorder %v1057_v19, inf  ;;  %v1072_v13 = vand.u32 2147483648, %v1057_v19  ;;  %vm1071_vm4 = vcmp.eq.f32.partialorder %v1057_v19, 0.0 }
 0x208   : > { %v1606_v3 = vpop.eup %1605 }
 0x209   : > { %v1061_v56 = vmul.f32 %v1606_v3, %v1054_v54 }
 0x20a   : > { %v1608_v20 = vpop.eup %1607 }
 0x20b   : > { %v1063_v57 = vsel %vm1062_vm0, %v1054_v54, %v1061_v56  ;;  %v1068_v12 = vmul.f32 %v1608_v20, %v1057_v19 }
 0x20c   : > { %v1066_v59 = vsel %vm1064_vm1, %v1065_v26, %v1063_v57  ;;  %vm1183_vm1 = vcmask 123968  }
 0x20d   : > { %v1074_v14 = vmul.f32 %v1066_v59, %v1955_v15  ;;  %v1070_v28 = vsel %vm1069_vm3, %v1057_v19, %v1068_v12  ;;  %vm1279_vm3 = vcmask 189568  }
 0x20e   : > { %v1073_v60 = vsel %vm1071_vm4, %v1072_v13, %v1070_v28  ;;  %vm1375_vm4 = vcmask 255168  }
 0x20f   : > { %v1078_v61 = vcombine.high %v1074_v14, %v1074_v14  ;;  %v1082_v63 = vpack.c.bf16 %v1074_v14, %v1074_v14  ;;  %v1075_v0 = vmul.f32 %v1073_v60, %v1957_v27 }
 0x211   : > { %v1083_v1 = vpack.c.bf16 %v1078_v61, %v1078_v61  ;;  %1087 = vst.msk [vmem:[%s1987_s12] sm:$0x3] %vm1086_vm5, %v1082_v63  ;;  %v1079_v2 = vcombine.high %v1075_v0, %v1075_v0  ;;  %v1084_v4 = vpack.c.bf16 %v1075_v0, %v1075_v0 }
 0x213   : > { %1088 = vst.msk [vmem:[%s1987_s12 + $0x2] sm:$0x3] %vm1086_vm5, %v1083_v1  ;;  %v1085_v5 = vpack.c.bf16 %v1079_v2, %v1079_v2  ;;  %1089 = vst.msk [vmem:[%s1987_s12 + $0x4] sm:$0x3] %vm1086_vm5, %v1084_v4 }
 0x215   : > { %1090 = vst.msk [vmem:[%s1987_s12 + $0x6] sm:$0x3] %vm1086_vm5, %v1085_v5 }
 0x26d   : > { %v1142_v6 = vpop.f32.mrb[20].mxu0 }
 0x26e   : > { %v1143_v8 = vadd.f32 %v1467_v24, %v1142_v6  ;;  %v1568_v9 = vpop.f32.mrb[21].mxu0 }
 0x26f   : > { %v1145_v11 = vpop.f32.mrb[22].mxu0 }
 0x270   : > { %1609 = vrsqrt.f32 %v1143_v8  ;;  %v1146_v29 = vadd.f32 %v1467_v24, %v1145_v11  ;;  %v1569_v30 = vpop.f32.mrb[23].mxu0  ;;  %vm1151_vm6 = vcmp.eq.f32.partialorder %v1143_v8, inf  ;;  %v1154_v42 = vand.u32 2147483648, %v1143_v8 }
 0x271   : > { %v1238_v31 = vpop.f32.mrb[20].mxu1  ;;  %vm1153_vm7 = vcmp.eq.f32.partialorder %v1143_v8, 0.0 }
 0x272   : > { %1611 = vrsqrt.f32 %v1146_v29  ;;  %v1239_v21 = vadd.f32 %v1467_v24, %v1238_v31  ;;  %v1574_v58 = vpop.f32.mrb[21].mxu1  ;;  %vm1158_vm8 = vcmp.eq.f32.partialorder %v1146_v29, inf  ;;  %v1161_v22 = vand.u32 2147483648, %v1146_v29 }
 0x273   : > { %v1241_v32 = vpop.f32.mrb[22].mxu1  ;;  %vm1160_vm9 = vcmp.eq.f32.partialorder %v1146_v29, 0.0 }
 0x274   : > { %1613 = vrsqrt.f32 %v1239_v21  ;;  %v1242_v62 = vadd.f32 %v1467_v24, %v1241_v32  ;;  %v1575_v7 = vpop.f32.mrb[23].mxu1  ;;  %vm1247_vm10 = vcmp.eq.f32.partialorder %v1239_v21, inf  ;;  %v1250_v36 = vand.u32 2147483648, %v1239_v21 }
 0x275   : > { %v1334_v33 = vpop.f32.mrb[24].mxu0  ;;  %vm1249_vm11 = vcmp.eq.f32.partialorder %v1239_v21, 0.0 }
 0x276   : > { %1615 = vrsqrt.f32 %v1242_v62  ;;  %v1335_v48 = vadd.f32 %v1467_v24, %v1334_v33  ;;  %v1580_v34 = vpop.f32.mrb[25].mxu0  ;;  %vm1254_vm12 = vcmp.eq.f32.partialorder %v1242_v62, inf  ;;  %v1257_v52 = vand.u32 2147483648, %v1242_v62 }
 0x277   : > { %v1337_v35 = vpop.f32.mrb[26].mxu0  ;;  %vm1256_vm13 = vcmp.eq.f32.partialorder %v1242_v62, 0.0 }
 0x278   : > { %1617 = vrsqrt.f32 %v1335_v48  ;;  %v1338_v23 = vadd.f32 %v1467_v24, %v1337_v35  ;;  %v1581_v37 = vpop.f32.mrb[27].mxu0  ;;  %vm1343_vm14 = vcmp.eq.f32.partialorder %v1335_v48, inf  ;;  %v1346_v18 = vand.u32 2147483648, %v1335_v48 }
 0x279   : > { %vm1345_vm15 = vcmp.eq.f32.partialorder %v1335_v48, 0.0 }
 0x27a   : > { %v1610_v38 = vpop.eup %1609  ;;  %1619 = vrsqrt.f32 %v1338_v23  ;;  %vm1350_vm2 = vcmp.eq.f32.partialorder %v1338_v23, inf  ;;  %v1353_v56 = vand.u32 2147483648, %v1338_v23  ;;  %vm1352_vm0 = vcmp.eq.f32.partialorder %v1338_v23, 0.0 }
 0x27b   : > { %v1150_v40 = vmul.f32 %v1610_v38, %v1143_v8 }
 0x27c   : > { %v1612_v41 = vpop.eup %1611 }
 0x27d   : > { %v1152_v43 = vsel %vm1151_vm6, %v1143_v8, %v1150_v40  ;;  %v1157_v44 = vmul.f32 %v1612_v41, %v1146_v29 }
 0x27e   : > { %v1614_v46 = vpop.eup %1613  ;;  %v1155_v16 = vsel %vm1153_vm7, %v1154_v42, %v1152_v43 }
 0x27f   : > { %1165 = vrot.lane.b32.xlu1 %v1155_v16, %s1635_s19  ;;  %v1159_v47 = vsel %vm1158_vm8, %v1146_v29, %v1157_v44  ;;  %v1246_v49 = vmul.f32 %v1614_v46, %v1239_v21 }
 0x280   : > { %v1616_v39 = vpop.eup %1615  ;;  %v1162_v45 = vsel %vm1160_vm9, %v1161_v22, %v1159_v47 }
 0x281   : > { %1167 = vrot.lane.b32.xlu0 %v1162_v45, %s1635_s19  ;;  %v1248_v50 = vsel %vm1247_vm10, %v1239_v21, %v1246_v49  ;;  %v1253_v10 = vmul.f32 %v1616_v39, %v1242_v62 }
 0x282   : > { %v1618_v17 = vpop.eup %1617  ;;  %v1251_v51 = vsel %vm1249_vm11, %v1250_v36, %v1248_v50 }
 0x283   : > { %1261 = vrot.lane.b32.xlu1 %v1251_v51, %s1636_s13  ;;  %v1255_v24 = vsel %vm1254_vm12, %v1242_v62, %v1253_v10  ;;  %v1342_v53 = vmul.f32 %v1618_v17, %v1335_v48 }
 0x284   : > { %v1620_v54 = vpop.eup %1619  ;;  %v1258_v55 = vsel %vm1256_vm13, %v1257_v52, %v1255_v24 }
 0x285   : > { %1263 = vrot.lane.b32.xlu0 %v1258_v55, %s1636_s13  ;;  %v1344_v25 = vsel %vm1343_vm14, %v1335_v48, %v1342_v53  ;;  %v1349_v19 = vmul.f32 %v1620_v54, %v1338_v23 }
 0x286   : > { %v1347_v3 = vsel %vm1345_vm15, %v1346_v18, %v1344_v25 }
 0x287   : > { %1357 = vrot.lane.b32.xlu1 %v1347_v3, %s1637_s14  ;;  %v1351_v26 = vsel %vm1350_vm2, %v1338_v23, %v1349_v19 }
 0x288   : > { %v1354_v20 = vsel %vm1352_vm0, %v1353_v56, %v1351_v26 }
 0x289   : > { %1359 = vrot.lane.b32.xlu0 %v1354_v20, %s1637_s14 }
 0x2f1   : > { %v1166_v57 = vpop.permute.xlu1 %1165 }
 0x2f2   : > { %v1171_v59 = vmul.f32 %v1166_v57, %v1955_v15 }
 0x2f3   : > { %v1168_v12 = vpop.permute.xlu0 %1167 }
 0x2f4   : > { %v1175_v13 = vcombine.high %v1171_v59, %v1171_v59  ;;  %v1179_v14 = vpack.c.bf16 %v1171_v59, %v1171_v59  ;;  %v1172_v28 = vmul.f32 %v1168_v12, %v1957_v27 }
 0x2f5   : > { %v1262_v60 = vpop.permute.xlu1 %1261 }
 0x2f6   : > { %v1180_v61 = vpack.c.bf16 %v1175_v13, %v1175_v13  ;;  %1184 = vst.msk [vmem:[%s1987_s12] sm:$0x3] %vm1183_vm1, %v1179_v14  ;;  %v1176_v63 = vcombine.high %v1172_v28, %v1172_v28  ;;  %v1181_v0 = vpack.c.bf16 %v1172_v28, %v1172_v28  ;;  %v1267_v1 = vmul.f32 %v1262_v60, %v1955_v15 }
 0x2f7   : > { %v1264_v2 = vpop.permute.xlu0 %1263 }
 0x2f8   : > { %1185 = vst.msk [vmem:[%s1987_s12 + $0x2] sm:$0x3] %vm1183_vm1, %v1180_v61  ;;  %v1182_v4 = vpack.c.bf16 %v1176_v63, %v1176_v63  ;;  %1186 = vst.msk [vmem:[%s1987_s12 + $0x4] sm:$0x3] %vm1183_vm1, %v1181_v0  ;;  %v1271_v5 = vcombine.high %v1267_v1, %v1267_v1  ;;  %v1275_v6 = vpack.c.bf16 %v1267_v1, %v1267_v1 }
 0x2f9   : > { %v1268_v8 = vmul.f32 %v1264_v2, %v1957_v27  ;;  %v1358_v9 = vpop.permute.xlu1 %1357 }
 0x2fa   : > { %1187 = vst.msk [vmem:[%s1987_s12 + $0x6] sm:$0x3] %vm1183_vm1, %v1182_v4  ;;  %v1276_v11 = vpack.c.bf16 %v1271_v5, %v1271_v5  ;;  %v1363_v31 = vmul.f32 %v1358_v9, %v1955_v15 }
 0x2fb   : > { %1280 = vst.msk [vmem:[%s1987_s12] sm:$0x3] %vm1279_vm3, %v1275_v6  ;;  %v1272_v29 = vcombine.high %v1268_v8, %v1268_v8  ;;  %v1277_v30 = vpack.c.bf16 %v1268_v8, %v1268_v8  ;;  %v1360_v21 = vpop.permute.xlu0 %1359 }
 0x2fc   : > { %1281 = vst.msk [vmem:[%s1987_s12 + $0x2] sm:$0x3] %vm1279_vm3, %v1276_v11  ;;  %v1367_v32 = vcombine.high %v1363_v31, %v1363_v31  ;;  %v1371_v62 = vpack.c.bf16 %v1363_v31, %v1363_v31  ;;  %v1364_v7 = vmul.f32 %v1360_v21, %v1957_v27 }
 0x2fd   : > { %v1278_v58 = vpack.c.bf16 %v1272_v29, %v1272_v29  ;;  %1282 = vst.msk [vmem:[%s1987_s12 + $0x4] sm:$0x3] %vm1279_vm3, %v1277_v30 }
 0x2fe   : > { %v1372_v33 = vpack.c.bf16 %v1367_v32, %v1367_v32  ;;  %1376 = vst.msk [vmem:[%s1987_s12] sm:$0x3] %vm1375_vm4, %v1371_v62  ;;  %v1368_v48 = vcombine.high %v1364_v7, %v1364_v7  ;;  %v1373_v15 = vpack.c.bf16 %v1364_v7, %v1364_v7 }
 0x2ff   : > { %1283 = vst.msk [vmem:[%s1987_s12 + $0x6] sm:$0x3] %vm1279_vm3, %v1278_v58 }
 0x300   : > { %1377 = vst.msk [vmem:[%s1987_s12 + $0x2] sm:$0x3] %vm1375_vm4, %v1372_v33  ;;  %v1374_v34 = vpack.c.bf16 %v1368_v48, %v1368_v48  ;;  %1378 = vst.msk [vmem:[%s1987_s12 + $0x4] sm:$0x3] %vm1375_vm4, %v1373_v15 }
 0x302   : > { %1379 = vst.msk [vmem:[%s1987_s12 + $0x6] sm:$0x3] %vm1375_vm4, %v1374_v34 }
 0x303 PF: > { %s15_s18 = sadd.s32 1, %s1627_s18  }
 0x304   : > { %p12_p4 = scmp.ge.s32.totalorder %s15_s18, 4  }
 0x306   :  { %14 = sbr.rel (!%p12_p4) target bundleno = 1 (0x1), region = 78 }

// kernel: factorized_prior_forward.15
= control target key start
LH: loop header
LB: loop body
LE: loop exit
PB: predicated region body
PF: predicated region fallthrough
CT: control target
= control target key end

     0   :  { %s1660_s12 = smov 0   ;;  %s2016_s0 = inlined_call_operand.vmem [shape: bf16[2,10,10,8], index: 0, kind: input, shape index: {}]   ;;  %s2017_s1 = inlined_call_operand.vmem [shape: bf16[9,8,12], index: 1, kind: input, shape index: {}]   ;;  %s2018_s2 = inlined_call_operand.vmem [shape: f32[1,12], index: 2, kind: input, shape index: {}]   ;;  %s2019_s3 = inlined_call_operand.vmem [shape: bf16[2,8,8,12], index: 3, kind: output, shape index: {}]  }
   0x1 LB: > { %s1310_s13 = sadd.s32 4294967295, %s1638_s12   ;;  %p1314_p0 = scmp.ge.s32.totalorder %s1638_s12, 1  ;;  %s1638_s12 = sphi %s1660_s12, %s13_s12  }
   0x2   : > { %p137_p1 = scmp.lt.s32.totalorder %s1638_s12, 3 }
   0x4   : > { %p138_p2 = pnand %p1314_p0, %p137_p1 }
   0x5   : > { %v1318_v0 = vld [vmem:[%s2017_s1 + $0x4] sm:$0xf] (!%p138_p2)  ;;  %vm335_vm0 = vcmask (!%p138_p2), 1043456   ;;  %v1674_v1 = vld [vmem:[%s2017_s1 + $0x10] sm:$0xf] (!%p138_p2)  ;;  %p161_p3 = scmp.lt.s32.totalorder (!%p138_p2), %s1310_s13, 1 }
   0x6   : > { %141 = sbr.rel (%p138_p2) target bundleno = 327 (0x147), region = 32  ;;  %1604 = vmatprep.subr.msk.bf16.mxu1 (!%p138_p2), %vm335_vm0, %v1318_v0  ;;  %1608 = vmatprep.subr.msk.bf16.mxu0 (!%p138_p2), %vm335_vm0, %v1674_v1  ;;  %v337_v2 = vsel (!%p138_p2), %vm335_vm0, %v1318_v0, 0  ;;  %v1682_v3 = vsel (!%p138_p2), %vm335_vm0, %v1674_v1, 0  ;;  %v192_v4 = vld [vmem:[%s2017_s1] sm:$0xf] (!%p138_p2)  ;;  %vm322_vm3 = vcmask (!%p138_p2), 64512  }
   0x7   : > { %1449 = vmatpush3.bf16.msra.mxu1 (!%p138_p2), %v337_v2  ;;  %1489 = vmatpush3.bf16.msra.mxu0 (!%p138_p2), %v1682_v3  ;;  %v1371_v5 = vld [vmem:[%s2017_s1 + $0x14] sm:$0xf] (!%p138_p2)  ;;  %vm193_vm1 = vsmask.f32 (!%p138_p2), 3328  ;;  %vm194_vm2 = vsmask.f32 (!%p138_p2), 7440 }
   0x8   : > { %1605 = vmatprep.subr.msk.bf16.mxu1 (!%p138_p2), %vm335_vm0, %v192_v4  ;;  %1610 = vmatprep.subr.msk.bf16.mxu0 (!%p138_p2), %vm335_vm0, %v1371_v5  ;;  %v1723_v17 = vsel (!%p138_p2), %vm335_vm0, %v192_v4, 0  ;;  %v1726_v18 = vsel (!%p138_p2), %vm335_vm0, %v1371_v5, 0  ;;  %vm1742_vm4 = vmor (!%p138_p2), %vm193_vm1, %vm194_vm2  ;;  %vm512_vm5 = vcmask (!%p138_p2), 1042432   ;;  %vm513_vm6 = vcmask (!%p138_p2), 1046532  }
   0x9   : > { %vm1813_vm7 = vmor (!%p138_p2), %vm512_vm5, %vm513_vm6  ;;  %vm1246_vm8 = vcmask (!%p138_p2), 93184  }
   0xd   : > { %s2025_s13 = smov (!%p161_p3, %s1310_s13), 1 }
   0xe   : > { %s1614_s22 = smul.u32 80, %s2025_s13  ;;  %s1402_s11 = sshll.u32 %s2025_s13, 5 }
   0xf   : > { %s1995_s16 = scalar_lea.vmem %s2019_s3, %s1402_s11 }
  0x10   : > { %s1699_s25 = scalar_lea.vmem %s2016_s0, %s1614_s22 }
  0x11   : > { %v1702_v6 = vld [vmem:[%s1699_s25] sm:$0xf]  ;;  %v1705_v7 = vld [vmem:[%s1699_s25 + $0x4] sm:$0x1]  ;;  %v1708_v8 = vld [vmem:[%s1699_s25 + $0x8] sm:$0xf] }
  0x12   : > { %v1711_v9 = vld [vmem:[%s1699_s25 + $0xc] sm:$0x1]  ;;  %v197_v10 = vshrl.u32 %v1702_v6, 16  ;;  %v200_v11 = vshll.u32 %v1702_v6, 16  ;;  %v206_v12 = vshll.u32 %v1705_v7, 16  ;;  %v211_v13 = vshrl.u32 %v1708_v8, 16 }
  0x13   : > { %v214_v14 = vshll.u32 %v1708_v8, 16  ;;  %v220_v15 = vshll.u32 %v1711_v9, 16  ;;  %v1720_v16 = vld [vmem:[%s1699_s25 + $0x10] sm:$0xf]  ;;  %v521_v22 = vrot.slane %v1711_v9, 5  ;;  %v1327_v9 = vcombine.low %v1702_v6, %v1708_v8 }
  0x14   : > { %v199_v19 = vrot.slane %v197_v10, 4  ;;  %v202_v20 = vrot.slane %v200_v11, 5  ;;  %v213_v21 = vrot.slane %v211_v13, 4  ;;  %v1730_v23 = vld [vmem:[%s1699_s25 + $0x14] sm:$0x1]  ;;  %v208_v24 = vrot.slane %v206_v12, 5 }
  0x15   : > { %v216_v25 = vrot.slane %v214_v14, 5  ;;  %v1733_v26 = vld [vmem:[%s1699_s25 + $0x18] sm:$0xf]  ;;  %v1736_v27 = vld [vmem:[%s1699_s25 + $0x1c] sm:$0x1]  ;;  %v222_v29 = vrot.slane %v220_v15, 5 }
  0x16   : > { %v203_v28 = vor.u32 %v202_v20, %v199_v19  ;;  %v225_v30 = vshrl.u32 %v1720_v16, 16  ;;  %v228_v31 = vshll.u32 %v1720_v16, 16  ;;  %v1747_v34 = vld [vmem:[%s1699_s25 + $0x20] sm:$0xf]  ;;  %v234_v35 = vshll.u32 %v1730_v23, 16 }
  0x17   : > { %v217_v33 = vor.u32 %v216_v25, %v213_v21  ;;  %v239_v36 = vshrl.u32 %v1733_v26, 16  ;;  %v242_v37 = vshll.u32 %v1733_v26, 16  ;;  %v1753_v39 = vld [vmem:[%s1699_s25 + $0x24] sm:$0x1]  ;;  %v248_v42 = vshll.u32 %v1736_v27, 16 }
  0x18   : > { %v204_v38 = vrot.slane %v203_v28, 4  ;;  %v227_v40 = vrot.slane %v225_v30, 4  ;;  %v230_v41 = vrot.slane %v228_v31, 5  ;;  %v236_v44 = vrot.slane %v234_v35, 5  ;;  %v1764_v55 = vld [vmem:[%s1699_s25 + $0x28] sm:$0xf] }
  0x19   : > { %v218_v43 = vrot.slane %v217_v33, 4  ;;  %v241_v45 = vrot.slane %v239_v36, 4  ;;  %v244_v46 = vrot.slane %v242_v37, 5  ;;  %v250_v49 = vrot.slane %v248_v42, 5  ;;  %v1768_v60 = vld [vmem:[%s1699_s25 + $0x2c] sm:$0x1] }
  0x1a   : > { %v209_v47 = vsel %vm1742_vm4, %v204_v38, %v208_v24  ;;  %v231_v48 = vor.u32 %v230_v41, %v227_v40  ;;  %v253_v50 = vshrl.u32 %v1747_v34, 16  ;;  %v256_v53 = vshll.u32 %v1747_v34, 16  ;;  %v1772_v2 = vld [vmem:[%s1699_s25 + $0x30] sm:$0xf]  ;;  %v1781_v12 = vld [vmem:[%s1699_s25 + $0x34] sm:$0x1] }
  0x1b   : > { %v223_v51 = vsel %vm1742_vm4, %v218_v43, %v222_v29  ;;  %v245_v52 = vor.u32 %v244_v46, %v241_v45  ;;  %v262_v54 = vshll.u32 %v1753_v39, 16  ;;  %v525_v59 = vrot.slane %v1730_v23, 5  ;;  %v1787_v20 = vld [vmem:[%s1699_s25 + $0x38] sm:$0xf]  ;;  %v1792_v25 = vld [vmem:[%s1699_s25 + $0x3c] sm:$0x1] }
  0x1c   : > { %v1319_v56 = vcombine.low %v209_v47, %v223_v51  ;;  %v232_v57 = vrot.slane %v231_v48, 4  ;;  %v255_v58 = vrot.slane %v253_v50, 4  ;;  %v258_v62 = vrot.slane %v256_v53, 5  ;;  %v1801_v35 = vld [vmem:[%s2017_s1 + $0x8] sm:$0xf] }
  0x1d   : > { %v246_v61 = vrot.slane %v245_v52, 4  ;;  %v264_v63 = vrot.slane %v262_v54, 5  ;;  %v529_v0 = vrot.slane %v1736_v27, 5  ;;  %v533_v5 = vrot.slane %v1753_v39, 5  ;;  %v1380_v53 = vld [vmem:[%s2017_s1 + $0x18] sm:$0xf] }
  0x1e   : > { %1450 = vmatprep.mubr.msk.bf16.mxu1 %vm322_vm3, %v1319_v56  ;;  %v237_v4 = vsel %vm1742_vm4, %v232_v57, %v236_v44  ;;  %v267_v10 = vshrl.u32 %v1764_v55, 16  ;;  %v270_v11 = vshll.u32 %v1764_v55, 16  ;;  %v259_v14 = vor.u32 %v258_v62, %v255_v58 }
  0x1f   : > { %v251_v13 = vsel %vm1742_vm4, %v246_v61, %v250_v49  ;;  %v1362_v15 = vcombine.low %v223_v51, %v237_v4  ;;  %v276_v19 = vshll.u32 %v1768_v60, 16  ;;  %v281_v28 = vshrl.u32 %v1772_v2, 16  ;;  %v1393_v49 = vld [vmem:[%s2017_s1 + $0x20] sm:$0xf] }
  0x20   : > { %v1789_v21 = vcombine.low %v237_v4, %v251_v13  ;;  %v269_v23 = vrot.slane %v267_v10, 4  ;;  %v272_v24 = vrot.slane %v270_v11, 5  ;;  %v260_v29 = vrot.slane %v259_v14, 4 }
  0x21   : > { %1490 = vmatprep.mubr.msk.bf16.mxu0 %vm322_vm3, %v1362_v15  ;;  %v278_v30 = vrot.slane %v276_v19, 5  ;;  %v284_v31 = vshll.u32 %v1772_v2, 16  ;;  %v290_v33 = vshll.u32 %v1781_v12, 16  ;;  %v283_v37 = vrot.slane %v281_v28, 4  ;;  %v1878_v28 = vld [vmem:[%s1699_s25 + $0x40] sm:$0xf] }
  0x22   : > { %1451 = vmatmul.mubr.msk.bf16.vlgmr.msra.gmra.mrb[0].mxu1 %vm322_vm3, %v1789_v21  ;;  %v273_v36 = vor.u32 %v272_v24, %v269_v23  ;;  %v295_v38 = vshrl.u32 %v1787_v20, 16  ;;  %v298_v40 = vshll.u32 %v1787_v20, 16  ;;  %v265_v41 = vsel %vm1742_vm4, %v260_v29, %v264_v63  ;;  %v1881_v29 = vld [vmem:[%s1699_s25 + $0x44] sm:$0x1] }
  0x23   : > { %1459 = vmatpush3.bf16.msra.mxu1 %v1723_v17  ;;  %v286_v42 = vrot.slane %v284_v31, 5  ;;  %v292_v43 = vrot.slane %v290_v33, 5  ;;  %v304_v44 = vshll.u32 %v1792_v25, 16  ;;  %v1363_v45 = vcombine.low %v251_v13, %v265_v41 }
  0x24   : > { %v274_v46 = vrot.slane %v273_v36, 4  ;;  %v297_v47 = vrot.slane %v295_v38, 4  ;;  %v300_v48 = vrot.slane %v298_v40, 5  ;;  %1606 = vmatprep.subr.msk.bf16.mxu1 %vm335_vm0, %v1801_v35  ;;  %v1336_v17 = vrot.slane %v1708_v8, 9 }
  0x25   : > { %v287_v50 = vor.u32 %v286_v42, %v283_v37  ;;  %v306_v51 = vrot.slane %v304_v44, 5  ;;  %v1337_v52 = vrot.slane %v1720_v16, 9  ;;  %1491 = vmatmul.mubr.msk.bf16.vlgmr.msra.gmra.mrb[0].mxu0 %vm322_vm3, %v1363_v45  ;;  %v1338_v57 = vrot.slane %v1733_v26, 9  ;;  %v1386_v37 = vld [vmem:[%s2017_s1 + $0x1c] sm:$0xf] }
  0x26   : > { %v1827_v54 = vsel %vm1742_vm4, %v274_v46, %v278_v30  ;;  %v301_v56 = vor.u32 %v300_v48, %v297_v47  ;;  %v1339_v58 = vrot.slane %v1747_v34, 9  ;;  %1499 = vmatpush3.bf16.msra.mxu0 %v1726_v18  ;;  %v522_v63 = vsel %vm1813_vm7, %v1336_v17, %v521_v22  ;;  %v190_v44 = vld [vmem:[%s1699_s25 + $0x48] sm:$0xf]  ;;  %v191_v45 = vld [vmem:[%s1699_s25 + $0x4c] sm:$0x1] }
  0x27   : > { %v1833_v61 = vcombine.low %v265_v41, %v1827_v54  ;;  %v288_v62 = vrot.slane %v287_v50, 4  ;;  %v526_v4 = vsel %vm1813_vm7, %v1337_v52, %v525_v59  ;;  %1611 = vmatprep.subr.msk.bf16.mxu0 %vm335_vm0, %v1380_v53  ;;  %v1340_v22 = vrot.slane %v1764_v55, 9 }
  0x28   : > { %v302_v10 = vrot.slane %v301_v56, 4  ;;  %v1372_v11 = vcombine.low %v522_v63, %v526_v4  ;;  %v537_v13 = vrot.slane %v1768_v60, 5  ;;  %v1341_v14 = vrot.slane %v1772_v2, 9 }
  0x29   : > { %1454 = vmatprep.mubr.msk.bf16.mxu1 %vm322_vm3, %v1833_v61  ;;  %v1846_v18 = vsel %vm1742_vm4, %v288_v62, %v292_v43  ;;  %v541_v15 = vrot.slane %v1781_v12, 5  ;;  %v530_v23 = vsel %vm1813_vm7, %v1338_v57, %v529_v0  ;;  %v534_v24 = vsel %vm1813_vm7, %v1339_v58, %v533_v5 }
  0x2a   : > { %v1853_v59 = vsel %vm1742_vm4, %v302_v10, %v306_v51  ;;  %1500 = vmatprep.mubr.msk.bf16.mxu0 %vm322_vm3, %v1372_v11  ;;  %v538_v60 = vsel %vm1813_vm7, %v1340_v22, %v537_v13  ;;  %v1373_v27 = vcombine.low %v530_v23, %v534_v24  ;;  %v1342_v39 = vrot.slane %v1787_v20, 9 }
  0x2b   : > { %v1861_v19 = vcombine.low %v1846_v18, %v1853_v59  ;;  %v1875_v12 = vsel %vm1813_vm7, %v1341_v14, %v541_v15  ;;  %v545_v5 = vrot.slane %v1792_v25, 5  ;;  %v1370_v30 = vrot.slane %v1878_v28, 9 }
  0x2c   : > { %v1374_v0 = vcombine.low %v538_v60, %v1875_v12  ;;  %v857_v31 = vrot.slane %v1881_v29, 5  ;;  %v963_v33 = vsel %vm335_vm0, %v1380_v53, 0  ;;  %v1328_v36 = vcombine.low %v1720_v16, %v1733_v26 }
  0x2d   : > { %1455 = vmatmul.mubr.msk.bf16.gmra.mrb[4].mxu1 %vm322_vm3, %v1861_v19  ;;  %v574_v38 = vsel %vm335_vm0, %v1801_v35, 0  ;;  %v1329_v25 = vcombine.low %v1747_v34, %v1764_v55  ;;  %v517_v40 = vrot.slane %v1705_v7, 5  ;;  %v546_v41 = vsel %vm1813_vm7, %v1342_v39, %v545_v5  ;;  %v1352_v7 = vld [vmem:[%s2017_s1 + $0xc] sm:$0xf] }
  0x2e   : > { %1460 = vmatprep.mubr.msk.bf16.mxu1 %vm322_vm3, %v1327_v9  ;;  %v1908_v42 = vsel %vm1813_vm7, %v1370_v30, %v857_v31  ;;  %v1335_v43 = vrot.slane %v1702_v6, 9  ;;  %v1392_v35 = vrot.slane %v190_v44, 9  ;;  %v1138_v46 = vrot.slane %v191_v45, 5 }
  0x2f   : > { %v1375_v47 = vcombine.low %v546_v41, %v1908_v42  ;;  %v1330_v50 = vcombine.low %v1772_v2, %v1787_v20  ;;  %v1060_v17 = vsel %vm335_vm0, %v1386_v37, 0  ;;  %v1345_v52 = vcombine.low %v526_v4, %v530_v23 }
  0x30   : > { %v1922_v6 = vsel %vm1813_vm7, %v1392_v35, %v1138_v46  ;;  %v518_v48 = vsel %vm1813_vm7, %v1335_v43, %v517_v40  ;;  %v670_v53 = vsel %vm335_vm0, %v1352_v7, 0  ;;  %v1346_v56 = vcombine.low %v534_v24, %v538_v60 }
  0x31   : > { %1501 = vmatmul.mubr.msk.bf16.vlgmr.msra.gmra.mrb[0].mxu0 %vm322_vm3, %v1373_v27  ;;  %v1344_v51 = vcombine.low %v518_v48, %v522_v63  ;;  %v1039_v57 = vshrl.u32 %v190_v44, 16  ;;  %v1042_v58 = vshll.u32 %v190_v44, 16  ;;  %v746_v62 = vshrl.u32 %v1878_v28, 16 }
  0x32   : > { %1509 = vmatpush3.bf16.msra.mxu0 %v963_v33  ;;  %1504 = vmatprep.mubr.msk.bf16.mxu0 %vm322_vm3, %v1374_v0  ;;  %v749_v63 = vshll.u32 %v1878_v28, 16  ;;  %v1381_v4 = vcombine.low %v1878_v28, %v190_v44  ;;  %v1347_v13 = vcombine.low %v1875_v12, %v546_v41  ;;  %v1353_v14 = vcombine.low %v1708_v8, %v1720_v16 }
  0x33   : > { %1612 = vmatprep.subr.msk.bf16.mxu0 %vm335_vm0, %v1386_v37  ;;  %v748_v10 = vrot.slane %v746_v62, 4  ;;  %v1041_v9 = vrot.slane %v1039_v57, 4  ;;  %v1044_v22 = vrot.slane %v1042_v58, 5  ;;  %v755_v23 = vshll.u32 %v1881_v29, 16 }
  0x34   : > { %v751_v11 = vrot.slane %v749_v63, 5  ;;  %v1048_v60 = vshll.u32 %v191_v45, 16  ;;  %v1148_v0 = vsel %vm335_vm0, %v1393_v49, 0  ;;  %v1354_v8 = vcombine.low %v1733_v26, %v1747_v34 }
  0x35   : > { %1461 = vmatmul.mubr.msk.bf16.vlgmr.msra.gmra.mrb[0].mxu1 %vm322_vm3, %v1328_v36  ;;  %v1045_v24 = vor.u32 %v1044_v22, %v1041_v9  ;;  %v757_v27 = vrot.slane %v755_v23, 5  ;;  %v1355_v16 = vcombine.low %v1764_v55, %v1772_v2  ;;  %v1356_v34 = vcombine.low %v1787_v20, %v1878_v28 }
  0x36   : > { %1469 = vmatpush3.bf16.msra.mxu1 %v574_v38  ;;  %1464 = vmatprep.mubr.msk.bf16.mxu1 %vm322_vm3, %v1329_v25  ;;  %v752_v15 = vor.u32 %v751_v11, %v748_v10  ;;  %v1050_v39 = vrot.slane %v1048_v60, 5  ;;  %v1364_v55 = vcombine.low %v1827_v54, %v1846_v18  ;;  %v1394_v32 = vcombine.low %v1908_v42, %v1922_v6 }
  0x37   : > { %1607 = vmatprep.subr.msk.bf16.mxu1 %vm335_vm0, %v1352_v7  ;;  %v1046_v12 = vrot.slane %v1045_v24, 4 }
  0x39   : > { %1505 = vmatmul.mubr.msk.bf16.gmra.mrb[4].mxu0 %vm322_vm3, %v1375_v47  ;;  %v1051_v29 = vsel %vm1742_vm4, %v1046_v12, %v1050_v39 }
  0x3a   : > { %1510 = vmatprep.mubr.msk.bf16.mxu0 %vm322_vm3, %v1328_v36 }
  0x3d   : > { %1465 = vmatmul.mubr.msk.bf16.gmra.mrb[4].mxu1 %vm322_vm3, %v1330_v50 }
  0x3e   : > { %1470 = vmatprep.mubr.msk.bf16.mxu1 %vm322_vm3, %v1344_v51 }
  0x41   : > { %1511 = vmatmul.mubr.msk.bf16.vlgmr.msra.gmra.mrb[0].mxu0 %vm322_vm3, %v1329_v25 }
  0x42   : > { %1519 = vmatpush3.bf16.msra.mxu0 %v1060_v17  ;;  %1514 = vmatprep.mubr.msk.bf16.mxu0 %vm322_vm3, %v1330_v50 }
  0x43   : > { %1613 = vmatprep.subr.msk.bf16.mxu0 %vm335_vm0, %v1393_v49 }
  0x45   : > { %1471 = vmatmul.mubr.msk.bf16.vlgmr.msra.gmra.mrb[0].mxu1 %vm322_vm3, %v1345_v52 }
  0x46   : > { %1479 = vmatpush3.bf16.msra.mxu1 %v670_v53  ;;  %1474 = vmatprep.mubr.msk.bf16.mxu1 %vm322_vm3, %v1346_v56 }
  0x47   : > { %1609 = vmatprep.subr.msk.bf16.mxu1 %vm335_vm0, %v1674_v1  ;;  %v753_v1 = vrot.slane %v752_v15, 4 }
  0x49   : > { %1515 = vmatmul.mubr.msk.bf16.gmra.mrb[4].mxu0 %vm322_vm3, %v1381_v4 }
  0x4a   : > { %1520 = vmatprep.mubr.msk.bf16.mxu0 %vm322_vm3, %v1789_v21  ;;  %v758_v21 = vsel %vm1742_vm4, %v753_v1, %v757_v27 }
  0x4b   : > { %v1387_v26 = vcombine.low %v758_v21, %v1051_v29 }
  0x4d   : > { %1475 = vmatmul.mubr.msk.bf16.gmra.mrb[4].mxu1 %vm322_vm3, %v1347_v13 }
  0x4e   : > { %1480 = vmatprep.mubr.msk.bf16.mxu1 %vm322_vm3, %v1353_v14 }
  0x51   : > { %1521 = vmatmul.mubr.msk.bf16.vlgmr.msra.gmra.mrb[0].mxu0 %vm322_vm3, %v1833_v61 }
  0x52   : > { %1529 = vmatpush3.bf16.msra.mxu0 %v1148_v0  ;;  %1524 = vmatprep.mubr.msk.bf16.mxu0 %vm322_vm3, %v1861_v19  ;;  %v1399_v19 = vld [vmem:[%s2018_s2] ss:$0 sm:$0xff] }
  0x55   : > { %1481 = vmatmul.mubr.msk.bf16.vlgmr.msra.gmra.mrb[0].mxu1 %vm322_vm3, %v1354_v8 }
  0x56   : > { %1539 = vmatpush3.bf16.msra.mxu1 %v1682_v3  ;;  %1484 = vmatprep.mubr.msk.bf16.mxu1 %vm322_vm3, %v1355_v16  ;;  %v1365_v3 = vcombine.low %v1853_v59, %v758_v21 }
  0x59   : > { %1525 = vmatmul.mubr.msk.bf16.gmra.mrb[4].mxu0 %vm322_vm3, %v1387_v26 }
  0x5a   : > { %1530 = vmatprep.mubr.msk.bf16.mxu0 %vm322_vm3, %v1345_v52 }
  0x5d   : > { %1485 = vmatmul.mubr.msk.bf16.gmra.mrb[4].mxu1 %vm322_vm3, %v1356_v34 }
  0x5e   : > { %1494 = vmatprep.mubr.msk.bf16.mxu1 %vm322_vm3, %v1364_v55 }
  0x61   : > { %1531 = vmatmul.mubr.msk.bf16.vlgmr.msra.gmra.mrb[0].mxu0 %vm322_vm3, %v1346_v56 }
  0x62   : > { %1534 = vmatprep.mubr.msk.bf16.mxu0 %vm322_vm3, %v1347_v13 }
  0x69   : > { %1495 = vmatmul.mubr.msk.bf16.vlgmr.msra.gmra.mrb[4].mxu1 %vm322_vm3, %v1365_v3  ;;  %1535 = vmatmul.mubr.msk.bf16.gmra.mrb[4].mxu0 %vm322_vm3, %v1394_v32 }
 0x128   : > { %v1482_v2 = vpop.f32.mrb[0].mxu1 }
 0x129   : > { %v706_v20 = vpop.f32.mrb[1].mxu1 }
 0x12a   : > { %v1483_v54 = vpop.f32.mrb[2].mxu1 }
 0x12b   : > { %v709_v61 = vpop.f32.mrb[3].mxu1 }
 0x134   : > { %v1532_v18 = vpop.f32.mrb[0].mxu0 }
 0x135   : > { %v1540_v28 = vadd.f32 %v1532_v18, %v1482_v2  ;;  %v1184_v5 = vpop.f32.mrb[1].mxu0 }
 0x136   : > { %v1541_v59 = vadd.f32 %v1184_v5, %v706_v20  ;;  %v1533_v30 = vpop.f32.mrb[2].mxu0 }
 0x137   : > { %v1232_v31 = vadd.f32 %v1540_v28, %v1399_v19  ;;  %v1542_v33 = vadd.f32 %v1533_v30, %v1483_v54  ;;  %v1187_v36 = vpop.f32.mrb[3].mxu0 }
 0x138   : > { %v1230_v37 = vadd.f32 %v1541_v59, %v1399_v19  ;;  %v1543_v38 = vadd.f32 %v1187_v36, %v709_v61 }
 0x139   : > { %v1240_v25 = vpack.c.bf16 %v1232_v31, %v1232_v31  ;;  %v1233_v40 = vadd.f32 %v1542_v33, %v1399_v19 }
 0x13a   : > { %v1238_v41 = vpack.c.bf16 %v1230_v37, %v1230_v37  ;;  %v1231_v42 = vadd.f32 %v1543_v38, %v1399_v19 }
 0x13b   : > { %1249 = vst.msk [vmem:[%s1995_s16 + $0x8] sm:$0xf] %vm1246_vm8, %v1240_v25  ;;  %v1241_v43 = vpack.c.bf16 %v1233_v40, %v1233_v40 }
 0x13c   : > { %v1496_v44 = vpop.f32.mrb[4].mxu1  ;;  %1247 = vst.msk [vmem:[%s1995_s16] sm:$0xf] %vm1246_vm8, %v1238_v41  ;;  %v1239_v45 = vpack.c.bf16 %v1231_v42, %v1231_v42  ;;  %v1536_v7 = vpop.f32.mrb[4].mxu0 }
 0x13d   : > { %v831_v35 = vpop.f32.mrb[5].mxu1  ;;  %1250 = vst.msk [vmem:[%s1995_s16 + $0xc] sm:$0xf] %vm1246_vm8, %v1241_v43  ;;  %v1544_v46 = vadd.f32 %v1536_v7, %v1496_v44  ;;  %v1200_v47 = vpop.f32.mrb[5].mxu0 }
 0x13e   : > { %v1497_v6 = vpop.f32.mrb[6].mxu1  ;;  %1248 = vst.msk [vmem:[%s1995_s16 + $0x4] sm:$0xf] %vm1246_vm8, %v1239_v45  ;;  %v1545_v48 = vadd.f32 %v1200_v47, %v831_v35  ;;  %v1537_v50 = vpop.f32.mrb[6].mxu0 }
 0x13f   : > { %v834_v51 = vpop.f32.mrb[7].mxu1  ;;  %v1236_v17 = vadd.f32 %v1544_v46, %v1399_v19  ;;  %v1546_v52 = vadd.f32 %v1537_v50, %v1497_v6  ;;  %v1203_v49 = vpop.f32.mrb[7].mxu0 }
 0x140   : > { %v1234_v53 = vadd.f32 %v1545_v48, %v1399_v19  ;;  %v1547_v56 = vadd.f32 %v1203_v49, %v834_v51 }
 0x141   : > { %v1244_v57 = vpack.c.bf16 %v1236_v17, %v1236_v17  ;;  %v1237_v58 = vadd.f32 %v1546_v52, %v1399_v19 }
 0x142   : > { %v1242_v62 = vpack.c.bf16 %v1234_v53, %v1234_v53  ;;  %v1235_v63 = vadd.f32 %v1547_v56, %v1399_v19 }
 0x143   : > { %1253 = vst.msk [vmem:[%s1995_s16 + $0x18] sm:$0xf] %vm1246_vm8, %v1244_v57  ;;  %v1245_v4 = vpack.c.bf16 %v1237_v58, %v1237_v58 }
 0x144   : > { %1251 = vst.msk [vmem:[%s1995_s16 + $0x10] sm:$0xf] %vm1246_vm8, %v1242_v62  ;;  %v1243_v10 = vpack.c.bf16 %v1235_v63, %v1235_v63 }
 0x145   : > { %1254 = vst.msk [vmem:[%s1995_s16 + $0x1c] sm:$0xf] %vm1246_vm8, %v1245_v4 }
 0x146   : > { %1252 = vst.msk [vmem:[%s1995_s16 + $0x14] sm:$0xf] %vm1246_vm8, %v1243_v10 }
 0x147 PF: > { %s13_s12 = sadd.s32 1, %s1638_s12  }
 0x148   : > { %p10_p4 = scmp.ge.s32.totalorder %s13_s12, 4  }
 0x14a   :  { %12 = sbr.rel (!%p10_p4) target bundleno = 1 (0x1), region = 70 }

</bundles_post_ra>
